<compile_context>
chip_gen: v6e
topology: v6e:2x2x1
jax: 0.10.0
libtpu: 0.0.40
codegen_flags: <defaults>
</compile_context>

<pallas_src>
import functools

import jax
import jax.numpy as jnp
import numpy as np
from jax.experimental import pallas as pl
from jax.experimental.pallas import tpu as pltpu

IMG_DIM = 28
LATENT_DIM = 2
N_LAYERS = 8  # 4 encoder + 4 decoder Linear layers


def _round_up(v, m):
    return (v + m - 1) // m * m


# ----------------------------- Pallas kernel --------------------------------
def _fused_ae_kernel(x_ref, *refs, n_layers):
    """Fused 8-layer MLP auto-encoder on one batch tile.

    refs = (w0, b0, w1, b1, ..., w7, b7, z_out, y_out)
    Weights are bf16 (padded), biases f32 (padded). Activations are f32.
    """
    w_refs = refs[0:2 * n_layers:2]
    b_refs = refs[1:2 * n_layers:2]
    z_ref = refs[2 * n_layers]       # padded reconstruction (TM, 896)
    y_ref = refs[2 * n_layers + 1]   # padded latent         (TM, 128)

    h = x_ref[...].astype(jnp.float32)
    for l in range(n_layers):
        y = jnp.dot(h.astype(jnp.bfloat16), w_refs[l][...],
                    preferred_element_type=jnp.float32)
        y = y + b_refs[l][...]                      # (1, N) broadcasts over rows
        if l == n_layers - 1:                       # final decoder layer: ReLU
            y = jnp.maximum(y, 0.0)
        elif l == 3:                                # latent Linear: no activation
            y_ref[...] = y.astype(y_ref.dtype)
        else:                                       # LeakyReLU(0.1) in f32 (VPU)
            y = jnp.where(y >= 0, y, 0.1 * y)
        h = y
    z_ref[...] = h.astype(z_ref.dtype)


# --------------------------- Parameter handling ------------------------------
def init_params(key, img_dim=IMG_DIM, latent_dim=LATENT_DIM):
    """f32 params, torch.nn.Linear-style init (U(-1/sqrt(fan_in), +)).

    Weights are stored as (in_features, out_features) so x @ W + b == torch's
    x @ W_t.T + b.
    """
    first, second, last = 1000, 1000, 108
    d = img_dim * img_dim
    enc_dims = [(d, first), (first, second), (second, last), (last, latent_dim)]
    dec_dims = [(latent_dim, last), (last, second), (second, first), (first, d)]

    params = []
    for (fan_in, fan_out) in enc_dims + dec_dims:
        key, kw, kb = jax.random.split(key, 3)
        bound = 1.0 / np.sqrt(fan_in)
        w = jax.random.uniform(kw, (fan_in, fan_out), jnp.float32, -bound, bound)
        b = jax.random.uniform(kb, (1, fan_out), jnp.float32, -bound, bound)
        params.append((w, b))
    return params[:4], params[4:]


def prepare_params(enc_params, dec_params):
    """Zero-pad feature dims to multiples of 128; weights -> bf16, biases -> f32."""
    padded = []
    for (w, b) in list(enc_params) + list(dec_params):
        k, n = w.shape
        kp, np_ = _round_up(k, 128), _round_up(n, 128)
        wp = jnp.zeros((kp, np_), jnp.bfloat16).at[:k, :n].set(w.astype(jnp.bfloat16))
        bp = jnp.zeros((1, np_), jnp.float32).at[:, :n].set(b.astype(jnp.float32))
        padded.append((wp, bp))
    return padded


# ------------------------------ Forward pass ---------------------------------
def liner_autoencoder_forward(x_nchw, padded_params,
                              img_dim=IMG_DIM, latent_dim=LATENT_DIM):
    """Returns (z, y) matching LinerAutoEncoder.forward semantics."""
    B = x_nchw.shape[0]
    d = img_dim * img_dim
    dp = _round_up(d, 128)           # 896
    lp = _round_up(latent_dim, 128)  # 128

    x = x_nchw.reshape(B, d).astype(jnp.float32)

    # Batch tiling: full MXU-friendly 128-row tiles for big batches,
    # otherwise a single sublane-aligned tile.
    tm = 128 if B >= 128 else _round_up(B, 8)
    bp = _round_up(B, tm)
    xp = jnp.zeros((bp, dp), jnp.float32).at[:B, :d].set(x)

    in_specs = [pl.BlockSpec((tm, dp), lambda i: (i, 0))]
    flat_args = [xp]
    for (w, b) in padded_params:
        # Full-array weight/bias blocks, same block every grid step -> stay
        # resident in VMEM across batch tiles (no per-tile re-DMA).
        in_specs.append(pl.BlockSpec(w.shape, lambda i: (0, 0)))
        in_specs.append(pl.BlockSpec(b.shape, lambda i: (0, 0)))
        flat_args.append(w)
        flat_args.append(b)

    out_specs = [
        pl.BlockSpec((tm, dp), lambda i: (i, 0)),   # padded reconstruction
        pl.BlockSpec((tm, lp), lambda i: (i, 0)),   # padded latent
    ]
    out_shape = [
        jax.ShapeDtypeStruct((bp, dp), jnp.float32),
        jax.ShapeDtypeStruct((bp, lp), jnp.float32),
    ]

    kernel = functools.partial(_fused_ae_kernel, n_layers=N_LAYERS)
    zp, yp = pl.pallas_call(
        kernel,
        out_shape=out_shape,
        grid=(bp // tm,),
        in_specs=in_specs,
        out_specs=out_specs,
        compiler_params=pltpu.CompilerParams(
            dimension_semantics=("parallel",),      # batch tiles across TCs (v7x)
            vmem_limit_bytes=48 * 1024 * 1024,      # headroom on v7x's 64 MiB
        ),
    )(*flat_args)

    y = yp[:B, :latent_dim]
    z = zp[:B, :d].reshape(B, 1, img_dim, img_dim)
    return z, y


# Pure-JAX reference with matching precision (bf16 weights, f32 accumulate).
def reference_forward(x_nchw, enc_params, dec_params, img_dim=IMG_DIM):
    def dot_bf16(h, w, b):
        return jnp.dot(h.astype(jnp.bfloat16), w.astype(jnp.bfloat16),
                       preferred_element_type=jnp.float32) + b

    def leaky(v):
        return jnp.where(v >= 0, v, 0.1 * v)

    h = x_nchw.reshape(-1, img_dim * img_dim).astype(jnp.float32)
    for i, (w, b) in enumerate(enc_params):
        h = dot_bf16(h, w, b)
        if i < len(enc_params) - 1:
            h = leaky(h)
    y = h
    h = y
    for i, (w, b) in enumerate(dec_params):
        h = dot_bf16(h, w, b)
        h = leaky(h) if i < len(dec_params) - 1 else jnp.maximum(h, 0.0)
    z = h.reshape(-1, 1, img_dim, img_dim)
    return z, y


# ----------------------------------- Main ------------------------------------
if __name__ == "__main__":
    batch = 2

    key = jax.random.PRNGKey(0)
    key_x, key_p = jax.random.split(key)
    x = jax.random.normal(key_x, (batch, 1, IMG_DIM, IMG_DIM), jnp.float32)
    enc_params, dec_params = init_params(key_p)
    padded_params = prepare_params(enc_params, dec_params)

    z, y = liner_autoencoder_forward(x, padded_params)
    z, y = jax.block_until_ready((z, y))

    z_ref, y_ref = reference_forward(x, enc_params, dec_params)
    np.testing.assert_allclose(np.asarray(y), np.asarray(y_ref), rtol=2e-3, atol=2e-3)
    np.testing.assert_allclose(np.asarray(z), np.asarray(z_ref), rtol=2e-3, atol=2e-3)
    assert z.shape == (batch, 1, IMG_DIM, IMG_DIM)
    assert y.shape == (batch, LATENT_DIM)

    print("KERNEL_OK")
</pallas_src>

<mosaic_0001>
module attributes {stable_mosaic.version = 11 : i64} {
  func.func @_fused_ae_kernel(%arg0: i32, %arg1: memref<8x896xf32, #tpu.memory_space<vmem>>, %arg2: memref<896x1024xbf16, #tpu.memory_space<vmem>>, %arg3: memref<1x1024xf32, #tpu.memory_space<vmem>>, %arg4: memref<1024x1024xbf16, #tpu.memory_space<vmem>>, %arg5: memref<1x1024xf32, #tpu.memory_space<vmem>>, %arg6: memref<1024x128xbf16, #tpu.memory_space<vmem>>, %arg7: memref<1x128xf32, #tpu.memory_space<vmem>>, %arg8: memref<128x128xbf16, #tpu.memory_space<vmem>>, %arg9: memref<1x128xf32, #tpu.memory_space<vmem>>, %arg10: memref<128x128xbf16, #tpu.memory_space<vmem>>, %arg11: memref<1x128xf32, #tpu.memory_space<vmem>>, %arg12: memref<128x1024xbf16, #tpu.memory_space<vmem>>, %arg13: memref<1x1024xf32, #tpu.memory_space<vmem>>, %arg14: memref<1024x1024xbf16, #tpu.memory_space<vmem>>, %arg15: memref<1x1024xf32, #tpu.memory_space<vmem>>, %arg16: memref<1024x896xbf16, #tpu.memory_space<vmem>>, %arg17: memref<1x896xf32, #tpu.memory_space<vmem>>, %arg18: memref<8x896xf32, #tpu.memory_space<vmem>>, %arg19: memref<8x128xf32, #tpu.memory_space<vmem>>) attributes {dimension_semantics = [#tpu.dimension_semantics<parallel>], iteration_bounds = array<i64: 1>, scalar_prefetch = 0 : i64, scratch_operands = 0 : i64, tpu.core_type = #tpu.core_type<tc>, window_params = [{transform_indices = @transform_0, window_bounds = array<i64: 8, 896>}, {pipeline_mode = #tpu.pipeline_mode<synchronous>, transform_indices = @transform_1, window_bounds = array<i64: 896, 1024>}, {pipeline_mode = #tpu.pipeline_mode<synchronous>, transform_indices = @transform_2, window_bounds = array<i64: 1, 1024>}, {pipeline_mode = #tpu.pipeline_mode<synchronous>, transform_indices = @transform_3, window_bounds = array<i64: 1024, 1024>}, {pipeline_mode = #tpu.pipeline_mode<synchronous>, transform_indices = @transform_4, window_bounds = array<i64: 1, 1024>}, {pipeline_mode = #tpu.pipeline_mode<synchronous>, transform_indices = @transform_5, window_bounds = array<i64: 1024, 128>}, {pipeline_mode = #tpu.pipeline_mode<synchronous>, transform_indices = @transform_6, window_bounds = array<i64: 1, 128>}, {pipeline_mode = #tpu.pipeline_mode<synchronous>, transform_indices = @transform_7, window_bounds = array<i64: 128, 128>}, {pipeline_mode = #tpu.pipeline_mode<synchronous>, transform_indices = @transform_8, window_bounds = array<i64: 1, 128>}, {pipeline_mode = #tpu.pipeline_mode<synchronous>, transform_indices = @transform_9, window_bounds = array<i64: 128, 128>}, {pipeline_mode = #tpu.pipeline_mode<synchronous>, transform_indices = @transform_10, window_bounds = array<i64: 1, 128>}, {pipeline_mode = #tpu.pipeline_mode<synchronous>, transform_indices = @transform_11, window_bounds = array<i64: 128, 1024>}, {pipeline_mode = #tpu.pipeline_mode<synchronous>, transform_indices = @transform_12, window_bounds = array<i64: 1, 1024>}, {pipeline_mode = #tpu.pipeline_mode<synchronous>, transform_indices = @transform_13, window_bounds = array<i64: 1024, 1024>}, {pipeline_mode = #tpu.pipeline_mode<synchronous>, transform_indices = @transform_14, window_bounds = array<i64: 1, 1024>}, {pipeline_mode = #tpu.pipeline_mode<synchronous>, transform_indices = @transform_15, window_bounds = array<i64: 1024, 896>}, {pipeline_mode = #tpu.pipeline_mode<synchronous>, transform_indices = @transform_16, window_bounds = array<i64: 1, 896>}, {transform_indices = @transform_17, window_bounds = array<i64: 8, 896>}, {transform_indices = @transform_18, window_bounds = array<i64: 8, 128>}]} {
    %c0 = arith.constant 0 : index
    %c0_0 = arith.constant 0 : index
    %0 = vector.load %arg1[%c0, %c0_0] : memref<8x896xf32, #tpu.memory_space<vmem>>, vector<8x896xf32>
    %1 = arith.truncf %0 : vector<8x896xf32> to vector<8x896xbf16>
    %c0_1 = arith.constant 0 : index
    %c0_2 = arith.constant 0 : index
    %2 = vector.load %arg2[%c0_1, %c0_2] : memref<896x1024xbf16, #tpu.memory_space<vmem>>, vector<896x1024xbf16>
    %cst = arith.constant dense<0.000000e+00> : vector<8x1024xf32>
    %3 = tpu.matmul %1, %2, %cst {dimension_numbers = #tpu.dot_dimension_numbers<[1], [0], [0], [1], [0, 0, 1, 1], [], []>} : vector<8x896xbf16>, vector<896x1024xbf16>, vector<8x1024xf32> -> vector<8x1024xf32>
    %c0_3 = arith.constant 0 : index
    %c0_4 = arith.constant 0 : index
    %4 = vector.load %arg3[%c0_3, %c0_4] : memref<1x1024xf32, #tpu.memory_space<vmem>>, vector<1x1024xf32>
    %5 = vector.broadcast %4 : vector<1x1024xf32> to vector<8x1024xf32>
    %6 = arith.addf %3, %5 : vector<8x1024xf32>
    %cst_5 = arith.constant 0.000000e+00 : f32
    %7 = vector.broadcast %cst_5 : f32 to vector<8x1024xf32>
    %8 = arith.cmpf oge, %6, %7 : vector<8x1024xf32>
    %cst_6 = arith.constant 1.000000e-01 : f32
    %9 = vector.broadcast %cst_6 : f32 to vector<8x1024xf32>
    %10 = arith.mulf %9, %6 : vector<8x1024xf32>
    %11 = arith.select %8, %6, %10 : vector<8x1024xi1>, vector<8x1024xf32>
    %12 = arith.truncf %11 : vector<8x1024xf32> to vector<8x1024xbf16>
    %c0_7 = arith.constant 0 : index
    %c0_8 = arith.constant 0 : index
    %13 = vector.load %arg4[%c0_7, %c0_8] : memref<1024x1024xbf16, #tpu.memory_space<vmem>>, vector<1024x1024xbf16>
    %cst_9 = arith.constant dense<0.000000e+00> : vector<8x1024xf32>
    %14 = tpu.matmul %12, %13, %cst_9 {dimension_numbers = #tpu.dot_dimension_numbers<[1], [0], [0], [1], [0, 0, 1, 1], [], []>} : vector<8x1024xbf16>, vector<1024x1024xbf16>, vector<8x1024xf32> -> vector<8x1024xf32>
    %c0_10 = arith.constant 0 : index
    %c0_11 = arith.constant 0 : index
    %15 = vector.load %arg5[%c0_10, %c0_11] : memref<1x1024xf32, #tpu.memory_space<vmem>>, vector<1x1024xf32>
    %16 = vector.broadcast %15 : vector<1x1024xf32> to vector<8x1024xf32>
    %17 = arith.addf %14, %16 : vector<8x1024xf32>
    %cst_12 = arith.constant 0.000000e+00 : f32
    %18 = vector.broadcast %cst_12 : f32 to vector<8x1024xf32>
    %19 = arith.cmpf oge, %17, %18 : vector<8x1024xf32>
    %cst_13 = arith.constant 1.000000e-01 : f32
    %20 = vector.broadcast %cst_13 : f32 to vector<8x1024xf32>
    %21 = arith.mulf %20, %17 : vector<8x1024xf32>
    %22 = arith.select %19, %17, %21 : vector<8x1024xi1>, vector<8x1024xf32>
    %23 = arith.truncf %22 : vector<8x1024xf32> to vector<8x1024xbf16>
    %c0_14 = arith.constant 0 : index
    %c0_15 = arith.constant 0 : index
    %24 = vector.load %arg6[%c0_14, %c0_15] : memref<1024x128xbf16, #tpu.memory_space<vmem>>, vector<1024x128xbf16>
    %cst_16 = arith.constant dense<0.000000e+00> : vector<8x128xf32>
    %25 = tpu.matmul %23, %24, %cst_16 {dimension_numbers = #tpu.dot_dimension_numbers<[1], [0], [0], [1], [0, 0, 1, 1], [], []>} : vector<8x1024xbf16>, vector<1024x128xbf16>, vector<8x128xf32> -> vector<8x128xf32>
    %c0_17 = arith.constant 0 : index
    %c0_18 = arith.constant 0 : index
    %26 = vector.load %arg7[%c0_17, %c0_18] : memref<1x128xf32, #tpu.memory_space<vmem>>, vector<1x128xf32>
    %27 = vector.broadcast %26 : vector<1x128xf32> to vector<8x128xf32>
    %28 = arith.addf %25, %27 : vector<8x128xf32>
    %cst_19 = arith.constant 0.000000e+00 : f32
    %29 = vector.broadcast %cst_19 : f32 to vector<8x128xf32>
    %30 = arith.cmpf oge, %28, %29 : vector<8x128xf32>
    %cst_20 = arith.constant 1.000000e-01 : f32
    %31 = vector.broadcast %cst_20 : f32 to vector<8x128xf32>
    %32 = arith.mulf %31, %28 : vector<8x128xf32>
    %33 = arith.select %30, %28, %32 : vector<8x128xi1>, vector<8x128xf32>
    %34 = arith.truncf %33 : vector<8x128xf32> to vector<8x128xbf16>
    %c0_21 = arith.constant 0 : index
    %c0_22 = arith.constant 0 : index
    %35 = vector.load %arg8[%c0_21, %c0_22] : memref<128x128xbf16, #tpu.memory_space<vmem>>, vector<128x128xbf16>
    %cst_23 = arith.constant dense<0.000000e+00> : vector<8x128xf32>
    %36 = tpu.matmul %34, %35, %cst_23 {dimension_numbers = #tpu.dot_dimension_numbers<[1], [0], [0], [1], [0, 0, 1, 1], [], []>} : vector<8x128xbf16>, vector<128x128xbf16>, vector<8x128xf32> -> vector<8x128xf32>
    %c0_24 = arith.constant 0 : index
    %c0_25 = arith.constant 0 : index
    %37 = vector.load %arg9[%c0_24, %c0_25] : memref<1x128xf32, #tpu.memory_space<vmem>>, vector<1x128xf32>
    %38 = vector.broadcast %37 : vector<1x128xf32> to vector<8x128xf32>
    %39 = arith.addf %36, %38 : vector<8x128xf32>
    %c0_26 = arith.constant 0 : index
    %c0_27 = arith.constant 0 : index
    %40 = vector.load %arg19[%c0_26, %c0_27] : memref<8x128xf32, #tpu.memory_space<vmem>>, vector<8x128xf32>
    tpu.vector_store %arg19[%c0_26, %c0_27], %39 {strides = array<i32>} : memref<8x128xf32, #tpu.memory_space<vmem>>, vector<8x128xf32>,
    %41 = arith.truncf %39 : vector<8x128xf32> to vector<8x128xbf16>
    %c0_28 = arith.constant 0 : index
    %c0_29 = arith.constant 0 : index
    %42 = vector.load %arg10[%c0_28, %c0_29] : memref<128x128xbf16, #tpu.memory_space<vmem>>, vector<128x128xbf16>
    %cst_30 = arith.constant dense<0.000000e+00> : vector<8x128xf32>
    %43 = tpu.matmul %41, %42, %cst_30 {dimension_numbers = #tpu.dot_dimension_numbers<[1], [0], [0], [1], [0, 0, 1, 1], [], []>} : vector<8x128xbf16>, vector<128x128xbf16>, vector<8x128xf32> -> vector<8x128xf32>
    %c0_31 = arith.constant 0 : index
    %c0_32 = arith.constant 0 : index
    %44 = vector.load %arg11[%c0_31, %c0_32] : memref<1x128xf32, #tpu.memory_space<vmem>>, vector<1x128xf32>
    %45 = vector.broadcast %44 : vector<1x128xf32> to vector<8x128xf32>
    %46 = arith.addf %43, %45 : vector<8x128xf32>
    %cst_33 = arith.constant 0.000000e+00 : f32
    %47 = vector.broadcast %cst_33 : f32 to vector<8x128xf32>
    %48 = arith.cmpf oge, %46, %47 : vector<8x128xf32>
    %cst_34 = arith.constant 1.000000e-01 : f32
    %49 = vector.broadcast %cst_34 : f32 to vector<8x128xf32>
    %50 = arith.mulf %49, %46 : vector<8x128xf32>
    %51 = arith.select %48, %46, %50 : vector<8x128xi1>, vector<8x128xf32>
    %52 = arith.truncf %51 : vector<8x128xf32> to vector<8x128xbf16>
    %c0_35 = arith.constant 0 : index
    %c0_36 = arith.constant 0 : index
    %53 = vector.load %arg12[%c0_35, %c0_36] : memref<128x1024xbf16, #tpu.memory_space<vmem>>, vector<128x1024xbf16>
    %cst_37 = arith.constant dense<0.000000e+00> : vector<8x1024xf32>
    %54 = tpu.matmul %52, %53, %cst_37 {dimension_numbers = #tpu.dot_dimension_numbers<[1], [0], [0], [1], [0, 0, 1, 1], [], []>} : vector<8x128xbf16>, vector<128x1024xbf16>, vector<8x1024xf32> -> vector<8x1024xf32>
    %c0_38 = arith.constant 0 : index
    %c0_39 = arith.constant 0 : index
    %55 = vector.load %arg13[%c0_38, %c0_39] : memref<1x1024xf32, #tpu.memory_space<vmem>>, vector<1x1024xf32>
    %56 = vector.broadcast %55 : vector<1x1024xf32> to vector<8x1024xf32>
    %57 = arith.addf %54, %56 : vector<8x1024xf32>
    %cst_40 = arith.constant 0.000000e+00 : f32
    %58 = vector.broadcast %cst_40 : f32 to vector<8x1024xf32>
    %59 = arith.cmpf oge, %57, %58 : vector<8x1024xf32>
    %cst_41 = arith.constant 1.000000e-01 : f32
    %60 = vector.broadcast %cst_41 : f32 to vector<8x1024xf32>
    %61 = arith.mulf %60, %57 : vector<8x1024xf32>
    %62 = arith.select %59, %57, %61 : vector<8x1024xi1>, vector<8x1024xf32>
    %63 = arith.truncf %62 : vector<8x1024xf32> to vector<8x1024xbf16>
    %c0_42 = arith.constant 0 : index
    %c0_43 = arith.constant 0 : index
    %64 = vector.load %arg14[%c0_42, %c0_43] : memref<1024x1024xbf16, #tpu.memory_space<vmem>>, vector<1024x1024xbf16>
    %cst_44 = arith.constant dense<0.000000e+00> : vector<8x1024xf32>
    %65 = tpu.matmul %63, %64, %cst_44 {dimension_numbers = #tpu.dot_dimension_numbers<[1], [0], [0], [1], [0, 0, 1, 1], [], []>} : vector<8x1024xbf16>, vector<1024x1024xbf16>, vector<8x1024xf32> -> vector<8x1024xf32>
    %c0_45 = arith.constant 0 : index
    %c0_46 = arith.constant 0 : index
    %66 = vector.load %arg15[%c0_45, %c0_46] : memref<1x1024xf32, #tpu.memory_space<vmem>>, vector<1x1024xf32>
    %67 = vector.broadcast %66 : vector<1x1024xf32> to vector<8x1024xf32>
    %68 = arith.addf %65, %67 : vector<8x1024xf32>
    %cst_47 = arith.constant 0.000000e+00 : f32
    %69 = vector.broadcast %cst_47 : f32 to vector<8x1024xf32>
    %70 = arith.cmpf oge, %68, %69 : vector<8x1024xf32>
    %cst_48 = arith.constant 1.000000e-01 : f32
    %71 = vector.broadcast %cst_48 : f32 to vector<8x1024xf32>
    %72 = arith.mulf %71, %68 : vector<8x1024xf32>
    %73 = arith.select %70, %68, %72 : vector<8x1024xi1>, vector<8x1024xf32>
    %74 = arith.truncf %73 : vector<8x1024xf32> to vector<8x1024xbf16>
    %c0_49 = arith.constant 0 : index
    %c0_50 = arith.constant 0 : index
    %75 = vector.load %arg16[%c0_49, %c0_50] : memref<1024x896xbf16, #tpu.memory_space<vmem>>, vector<1024x896xbf16>
    %cst_51 = arith.constant dense<0.000000e+00> : vector<8x896xf32>
    %76 = tpu.matmul %74, %75, %cst_51 {dimension_numbers = #tpu.dot_dimension_numbers<[1], [0], [0], [1], [0, 0, 1, 1], [], []>} : vector<8x1024xbf16>, vector<1024x896xbf16>, vector<8x896xf32> -> vector<8x896xf32>
    %c0_52 = arith.constant 0 : index
    %c0_53 = arith.constant 0 : index
    %77 = vector.load %arg17[%c0_52, %c0_53] : memref<1x896xf32, #tpu.memory_space<vmem>>, vector<1x896xf32>
    %78 = vector.broadcast %77 : vector<1x896xf32> to vector<8x896xf32>
    %79 = arith.addf %76, %78 : vector<8x896xf32>
    %cst_54 = arith.constant 0.000000e+00 : f32
    %80 = vector.broadcast %cst_54 : f32 to vector<8x896xf32>
    %81 = arith.maximumf %79, %80 : vector<8x896xf32>
    %c0_55 = arith.constant 0 : index
    %c0_56 = arith.constant 0 : index
    %82 = vector.load %arg18[%c0_55, %c0_56] : memref<8x896xf32, #tpu.memory_space<vmem>>, vector<8x896xf32>
    tpu.vector_store %arg18[%c0_55, %c0_56], %81 {strides = array<i32>} : memref<8x896xf32, #tpu.memory_space<vmem>>, vector<8x896xf32>,
    return
  }
  func.func @transform_0(%arg0: i32) -> (i32, i32) {
    %c0_i32 = arith.constant 0 : i32
    %c0_i32_0 = arith.constant 0 : i32
    return %arg0, %c0_i32 : i32, i32
  }
  func.func @transform_1(%arg0: i32) -> (i32, i32) {
    %c0_i32 = arith.constant 0 : i32
    %c0_i32_0 = arith.constant 0 : i32
    %c0_i32_1 = arith.constant 0 : i32
    return %c0_i32, %c0_i32_0 : i32, i32
  }
  func.func @transform_2(%arg0: i32) -> (i32, i32) {
    %c0_i32 = arith.constant 0 : i32
    %c0_i32_0 = arith.constant 0 : i32
    %c0_i32_1 = arith.constant 0 : i32
    return %c0_i32, %c0_i32_0 : i32, i32
  }
  func.func @transform_3(%arg0: i32) -> (i32, i32) {
    %c0_i32 = arith.constant 0 : i32
    %c0_i32_0 = arith.constant 0 : i32
    %c0_i32_1 = arith.constant 0 : i32
    return %c0_i32, %c0_i32_0 : i32, i32
  }
  func.func @transform_4(%arg0: i32) -> (i32, i32) {
    %c0_i32 = arith.constant 0 : i32
    %c0_i32_0 = arith.constant 0 : i32
    %c0_i32_1 = arith.constant 0 : i32
    return %c0_i32, %c0_i32_0 : i32, i32
  }
  func.func @transform_5(%arg0: i32) -> (i32, i32) {
    %c0_i32 = arith.constant 0 : i32
    %c0_i32_0 = arith.constant 0 : i32
    %c0_i32_1 = arith.constant 0 : i32
    return %c0_i32, %c0_i32_0 : i32, i32
  }
  func.func @transform_6(%arg0: i32) -> (i32, i32) {
    %c0_i32 = arith.constant 0 : i32
    %c0_i32_0 = arith.constant 0 : i32
    %c0_i32_1 = arith.constant 0 : i32
    return %c0_i32, %c0_i32_0 : i32, i32
  }
  func.func @transform_7(%arg0: i32) -> (i32, i32) {
    %c0_i32 = arith.constant 0 : i32
    %c0_i32_0 = arith.constant 0 : i32
    %c0_i32_1 = arith.constant 0 : i32
    return %c0_i32, %c0_i32_0 : i32, i32
  }
  func.func @transform_8(%arg0: i32) -> (i32, i32) {
    %c0_i32 = arith.constant 0 : i32
    %c0_i32_0 = arith.constant 0 : i32
    %c0_i32_1 = arith.constant 0 : i32
    return %c0_i32, %c0_i32_0 : i32, i32
  }
  func.func @transform_9(%arg0: i32) -> (i32, i32) {
    %c0_i32 = arith.constant 0 : i32
    %c0_i32_0 = arith.constant 0 : i32
    %c0_i32_1 = arith.constant 0 : i32
    return %c0_i32, %c0_i32_0 : i32, i32
  }
  func.func @transform_10(%arg0: i32) -> (i32, i32) {
    %c0_i32 = arith.constant 0 : i32
    %c0_i32_0 = arith.constant 0 : i32
    %c0_i32_1 = arith.constant 0 : i32
    return %c0_i32, %c0_i32_0 : i32, i32
  }
  func.func @transform_11(%arg0: i32) -> (i32, i32) {
    %c0_i32 = arith.constant 0 : i32
    %c0_i32_0 = arith.constant 0 : i32
    %c0_i32_1 = arith.constant 0 : i32
    return %c0_i32, %c0_i32_0 : i32, i32
  }
  func.func @transform_12(%arg0: i32) -> (i32, i32) {
    %c0_i32 = arith.constant 0 : i32
    %c0_i32_0 = arith.constant 0 : i32
    %c0_i32_1 = arith.constant 0 : i32
    return %c0_i32, %c0_i32_0 : i32, i32
  }
  func.func @transform_13(%arg0: i32) -> (i32, i32) {
    %c0_i32 = arith.constant 0 : i32
    %c0_i32_0 = arith.constant 0 : i32
    %c0_i32_1 = arith.constant 0 : i32
    return %c0_i32, %c0_i32_0 : i32, i32
  }
  func.func @transform_14(%arg0: i32) -> (i32, i32) {
    %c0_i32 = arith.constant 0 : i32
    %c0_i32_0 = arith.constant 0 : i32
    %c0_i32_1 = arith.constant 0 : i32
    return %c0_i32, %c0_i32_0 : i32, i32
  }
  func.func @transform_15(%arg0: i32) -> (i32, i32) {
    %c0_i32 = arith.constant 0 : i32
    %c0_i32_0 = arith.constant 0 : i32
    %c0_i32_1 = arith.constant 0 : i32
    return %c0_i32, %c0_i32_0 : i32, i32
  }
  func.func @transform_16(%arg0: i32) -> (i32, i32) {
    %c0_i32 = arith.constant 0 : i32
    %c0_i32_0 = arith.constant 0 : i32
    %c0_i32_1 = arith.constant 0 : i32
    return %c0_i32, %c0_i32_0 : i32, i32
  }
  func.func @transform_17(%arg0: i32) -> (i32, i32) {
    %c0_i32 = arith.constant 0 : i32
    %c0_i32_0 = arith.constant 0 : i32
    return %arg0, %c0_i32 : i32, i32
  }
  func.func @transform_18(%arg0: i32) -> (i32, i32) {
    %c0_i32 = arith.constant 0 : i32
    %c0_i32_0 = arith.constant 0 : i32
    return %arg0, %c0_i32 : i32, i32
  }
}

</mosaic_0001>

<bundles_post_ra>
// kernel: tpu_custom_call.1
= control target key start
LH: loop header
LB: loop body
LE: loop exit
PB: predicated region body
PF: predicated region fallthrough
CT: control target
= control target key end

     0   :  { %s20618_s0 = inlined_call_operand.hbm [shape: f32[8,896], index: 0, kind: input, shape index: {}]   ;;  %s20619_s1 = inlined_call_operand.hbm [shape: bf16[896,1024], index: 1, kind: input, shape index: {}]   ;;  %s20620_s2 = inlined_call_operand.hbm [shape: f32[1,1024], index: 2, kind: input, shape index: {}]   ;;  %s20621_s3 = inlined_call_operand.hbm [shape: bf16[1024,1024], index: 3, kind: input, shape index: {}]   ;;  %s20622_s4 = inlined_call_operand.hbm [shape: f32[1,1024], index: 4, kind: input, shape index: {}]   ;;  %s20623_s5 = inlined_call_operand.hbm [shape: bf16[1024,128], index: 5, kind: input, shape index: {}]   ;;  %s20624_s6 = inlined_call_operand.hbm [shape: f32[1,128], index: 6, kind: input, shape index: {}]   ;;  %s20625_s7 = inlined_call_operand.hbm [shape: bf16[128,128], index: 7, kind: input, shape index: {}]   ;;  %s20626_s8 = inlined_call_operand.hbm [shape: f32[1,128], index: 8, kind: input, shape index: {}]   ;;  %s20627_s9 = inlined_call_operand.hbm [shape: bf16[128,128], index: 9, kind: input, shape index: {}]   ;;  %s20628_s10 = inlined_call_operand.hbm [shape: f32[1,128], index: 10, kind: input, shape index: {}]   ;;  %s20629_s11 = inlined_call_operand.hbm [shape: bf16[128,1024], index: 11, kind: input, shape index: {}]   ;;  %s20630_s12 = inlined_call_operand.hbm [shape: f32[1,1024], index: 12, kind: input, shape index: {}]   ;;  %s20631_s13 = inlined_call_operand.hbm [shape: bf16[1024,1024], index: 13, kind: input, shape index: {}]   ;;  %s20632_s14 = inlined_call_operand.hbm [shape: f32[1,1024], index: 14, kind: input, shape index: {}]   ;;  %s20633_s15 = inlined_call_operand.hbm [shape: bf16[1024,896], index: 15, kind: input, shape index: {}]   ;;  %s20634_s16 = inlined_call_operand.hbm [shape: f32[1,896], index: 16, kind: input, shape index: {}]   ;;  %s20635_s17 = inlined_call_operand.hbm [shape: f32[8,896], index: 17, kind: output, shape index: {0}]   ;;  %s20636_s18 = inlined_call_operand.hbm [shape: f32[8,128], index: 18, kind: output, shape index: {1}]  }
   0x1   :  { %20637 = sst [smem:[#allocation43_spill]] %s20618_s0 }
   0x2   :  { %20638 = sst [smem:[#allocation44_spill]] %s20619_s1 }
   0x3   :  { %20639 = sst [smem:[#allocation45_spill]] %s20620_s2 }
   0x4   :  { %24 = vsyncpa [#allocation3], 0 }
   0x5   :  { %25 = vsyncpa [#allocation6], 0 }
   0x6   :  { %26 = vsyncpa [#allocation9], 0 }
   0x7   :  { %27 = vsyncpa [#allocation12], 0 }
   0x8   :  { %28 = vsyncpa [#allocation15], 0 }
   0x9   :  { %29 = vsyncpa [#allocation18], 0 }
   0xa   :  { %30 = vsyncpa [#allocation21], 0 }
   0xb   :  { %31 = vsyncpa [#allocation24], 0 }
   0xc   :  { %32 = vsyncpa [#allocation27], 0 }
   0xd   :  { %33 = vsyncpa [#allocation4], 0 }
   0xe   :  { %34 = vsyncpa [#allocation31], 0  ;;  %s19854_s27 = smov [#allocation5]  }
   0xf   :  { %s50_s28 = sshll.u32 %s19854_s27, 4  ;;  %s51_s28 = int_to_ptr.vmem [resolvable:$true] %s50_s28 }
  0x10   :  { %s19460_s29 = scalar_lea.vmem %s51_s28, 57344  ;;  %p19465_p1 = scmp.lt.s32.totalorder %s51_s28, %s51_s28 }
  0x11   :  { %p19461_p0 = scmp.ne.s32.totalorder %s51_s28, %s19460_s29  ;;  %p19466_p2 = scmp.lt.s32.totalorder %s19460_s29, %s19460_s29 }
  0x13   :  { %p19467_p3 = por %p19466_p2, %p19465_p1 }
  0x15   :  { %p19468_p4 = pnand %p19467_p3, %p19461_p0 }
  0x17   :  { %19471 = shalt.err (!%p19468_p4)
}
  0x18   :  { %s19855_s30 = smov 512   ;;  %s19856_s0 = smov 32  }
  0x19   :  { %s20640_s20 = sld [smem:[#allocation44_spill]]  ;;  %s19857_s21 = smov [#allocation8]  }
  0x1a   :  { %s72_s22 = sshll.u32 %s19857_s21, 4  ;;  %s19858_s2 = smov [#allocation11]   ;;  %s73_s22 = int_to_ptr.vmem [resolvable:$true] %s72_s22 }
  0x1b   :  { %s94_s23 = sshll.u32 %s19858_s2, 4  ;;  %s19480_s24 = scalar_lea.vmem %s73_s22, 65536  ;;  %s95_s23 = int_to_ptr.vmem [resolvable:$true] %s94_s23 }
  0x1c   :  { %p19481_p5 = scmp.ne.s32.totalorder %s73_s22, %s19480_s24  ;;  %p19485_p6 = scmp.lt.s32.totalorder %s73_s22, %s73_s22 }
  0x1d   :  { %p19486_p7 = scmp.lt.s32.totalorder %s19480_s24, %s19480_s24 }
  0x1f   :  { %56 = dma.hbm_to_vmem [thread:$0]  %s20640_s20, 57344, %s51_s28, [#allocation6], %s19855_s30, %s19855_s30, %s19856_s0  }
  0x20   :  { %p19487_p8 = por %p19486_p7, %p19485_p6 }
  0x22   :  { %p19488_p9 = pnand %p19487_p8, %p19481_p5 }
  0x24   :  { %19491 = shalt.err (!%p19488_p9)
}
  0x25   :  { %78 = dma.hbm_to_vmem [thread:$0]  %s20621_s3, 65536, %s73_s22, [#allocation9], %s19855_s30, %s19855_s30, %s19856_s0  }
  0x26   :  { %s19500_s27 = scalar_lea.vmem %s95_s23, 8192  ;;  %p19505_p11 = scmp.lt.s32.totalorder %s95_s23, %s95_s23 }
  0x27   :  { %p19501_p10 = scmp.ne.s32.totalorder %s95_s23, %s19500_s27  ;;  %p19506_p12 = scmp.lt.s32.totalorder %s19500_s27, %s19500_s27 }
  0x29   :  { %p19507_p13 = por %p19506_p12, %p19505_p11 }
  0x2b   :  { %p19508_p0 = pnand %p19507_p13, %p19501_p10 }
  0x2d   :  { %19511 = shalt.err (!%p19508_p0)
}
  0x2e   :  { %s19859_s28 = smov 64   ;;  %s19860_s29 = smov 4  }
  0x2f   :  { %100 = dma.hbm_to_vmem [thread:$0]  %s20623_s5, 8192, %s95_s23, [#allocation12], %s19859_s28, %s19859_s28, %s19860_s29  }
  0x30   :  { %s19861_s20 = smov [#allocation14]   ;;  %s19862_s2 = smov [#allocation17]  }
  0x31   :  { %s116_s21 = sshll.u32 %s19861_s20, 4  ;;  %s138_s24 = sshll.u32 %s19862_s2, 4  ;;  %s117_s21 = int_to_ptr.vmem [resolvable:$true] %s116_s21  ;;  %s139_s24 = int_to_ptr.vmem [resolvable:$true] %s138_s24 }
  0x32   :  { %s19520_s3 = scalar_lea.vmem %s117_s21, 1024  ;;  %p19525_p2 = scmp.lt.s32.totalorder %s117_s21, %s117_s21 }
  0x33   :  { %p19521_p1 = scmp.ne.s32.totalorder %s117_s21, %s19520_s3  ;;  %p19526_p3 = scmp.lt.s32.totalorder %s19520_s3, %s19520_s3 }
  0x35   :  { %p19527_p4 = por %p19526_p3, %p19525_p2 }
  0x37   :  { %p19528_p5 = pnand %p19527_p4, %p19521_p1 }
  0x39   :  { %19531 = shalt.err (!%p19528_p5)
}
  0x3a   :  { %122 = dma.hbm_to_vmem [thread:$0]  %s20625_s7, 1024, %s117_s21, [#allocation15], %s19859_s28, %s19859_s28, %s19860_s29  }
  0x3b   :  { %s19540_s26 = scalar_lea.vmem %s139_s24, 1024  ;;  %p19545_p7 = scmp.lt.s32.totalorder %s139_s24, %s139_s24 }
  0x3c   :  { %p19541_p6 = scmp.ne.s32.totalorder %s139_s24, %s19540_s26  ;;  %p19546_p8 = scmp.lt.s32.totalorder %s19540_s26, %s19540_s26 }
  0x3e   :  { %p19547_p9 = por %p19546_p8, %p19545_p7 }
  0x40   :  { %p19548_p10 = pnand %p19547_p9, %p19541_p6 }
  0x42   :  { %19551 = shalt.err (!%p19548_p10)
}
  0x43   :  { %144 = dma.hbm_to_vmem [thread:$0]  %s20627_s9, 1024, %s139_s24, [#allocation18], %s19859_s28, %s19859_s28, %s19860_s29  }
  0x44   :  { %s19863_s27 = smov [#allocation20]   ;;  %s19864_s1 = smov [#allocation23]  }
  0x45   :  { %s160_s19 = sshll.u32 %s19863_s27, 4  ;;  %s182_s20 = sshll.u32 %s19864_s1, 4  ;;  %s161_s19 = int_to_ptr.vmem [resolvable:$true] %s160_s19  ;;  %s183_s20 = int_to_ptr.vmem [resolvable:$true] %s182_s20 }
  0x46   :  { %s19560_s2 = scalar_lea.vmem %s161_s19, 8192  ;;  %p19565_p12 = scmp.lt.s32.totalorder %s161_s19, %s161_s19 }
  0x47   :  { %p19561_p11 = scmp.ne.s32.totalorder %s161_s19, %s19560_s2  ;;  %p19566_p13 = scmp.lt.s32.totalorder %s19560_s2, %s19560_s2 }
  0x49   :  { %p19567_p0 = por %p19566_p13, %p19565_p12 }
  0x4b   :  { %p19568_p1 = pnand %p19567_p0, %p19561_p11 }
  0x4d   :  { %19571 = shalt.err (!%p19568_p1)
}
  0x4e   :  { %166 = dma.hbm_to_vmem [thread:$0]  %s20629_s11, 8192, %s161_s19, [#allocation21], %s19855_s30, %s19855_s30, %s19856_s0  }
  0x4f   :  { %s19580_s9 = scalar_lea.vmem %s183_s20, 65536  ;;  %p19585_p3 = scmp.lt.s32.totalorder %s183_s20, %s183_s20 }
  0x50   :  { %p19581_p2 = scmp.ne.s32.totalorder %s183_s20, %s19580_s9  ;;  %p19586_p4 = scmp.lt.s32.totalorder %s19580_s9, %s19580_s9 }
  0x52   :  { %p19587_p5 = por %p19586_p4, %p19585_p3 }
  0x54   :  { %p19588_p6 = pnand %p19587_p5, %p19581_p2 }
  0x56   :  { %19591 = shalt.err (!%p19588_p6)
}
  0x57   :  { %188 = dma.hbm_to_vmem [thread:$0]  %s20631_s13, 65536, %s183_s20, [#allocation24], %s19855_s30, %s19855_s30, %s19856_s0  }
  0x58   :  { %s19865_s24 = smov [#allocation26]  }
  0x59   :  { %s204_s3 = sshll.u32 %s19865_s24, 4  ;;  %s205_s3 = int_to_ptr.vmem [resolvable:$true] %s204_s3 }
  0x5a   :  { %s19600_s22 = scalar_lea.vmem %s205_s3, 57344  ;;  %p19605_p8 = scmp.lt.s32.totalorder %s205_s3, %s205_s3 }
  0x5b   :  { %p19601_p7 = scmp.ne.s32.totalorder %s205_s3, %s19600_s22  ;;  %p19606_p9 = scmp.lt.s32.totalorder %s19600_s22, %s19600_s22 }
  0x5d   :  { %p19607_p10 = por %p19606_p9, %p19605_p8 }
  0x5f   :  { %p19608_p11 = pnand %p19607_p10, %p19601_p7 }
  0x61   :  { %19611 = shalt.err (!%p19608_p11)
}
  0x62   :  { %s19866_s11 = smov 448   ;;  %s19867_s25 = smov 28  }
  0x63   :  { %210 = dma.hbm_to_vmem [thread:$0]  %s20633_s15, 57344, %s205_s3, [#allocation27], %s19866_s11, %s19866_s11, %s19867_s25  }
  0x64   :  { %s19868_s23 = smov [#allocation2]   ;;  %s19869_s19 = smov [#allocation7]  }
  0x65   :  { %s41_s27 = sshll.u32 %s19868_s23, 4  ;;  %s63_s13 = sshll.u32 %s19869_s19, 4  ;;  %s42_s27 = int_to_ptr.vmem [resolvable:$true] %s41_s27  ;;  %s64_s13 = int_to_ptr.vmem [resolvable:$true] %s63_s13 }
  0x66   :  { %s19620_s30 = scalar_lea.vmem %s42_s27, 896  ;;  %p19625_p13 = scmp.lt.s32.totalorder %s42_s27, %s42_s27 }
  0x67   :  { %p19621_p12 = scmp.ne.s32.totalorder %s42_s27, %s19620_s30  ;;  %p19626_p0 = scmp.lt.s32.totalorder %s19620_s30, %s19620_s30 }
  0x69   :  { %p19627_p1 = por %p19626_p0, %p19625_p13 }
  0x6b   :  { %p19628_p2 = pnand %p19627_p1, %p19621_p12 }
  0x6d   :  { %19631 = shalt.err (!%p19628_p2)
}
  0x6e   :  { %s20641_s20 = sld [smem:[#allocation43_spill]]  ;;  %s19640_s2 = scalar_lea.vmem %s64_s13, 128 }
  0x6f   :  { %p19641_p3 = scmp.ne.s32.totalorder %s64_s13, %s19640_s2  ;;  %p19645_p4 = scmp.lt.s32.totalorder %s64_s13, %s64_s13 }
  0x70   :  { %p19646_p5 = scmp.lt.s32.totalorder %s19640_s2, %s19640_s2 }
  0x72   :  { %p19647_p6 = por %p19646_p5, %p19645_p4 }
  0x74   :  { %44 = dma.hbm_to_vmem [thread:$0]  %s20641_s20, 896, %s42_s27, [#allocation3]  }
  0x75   :  { %p19648_p7 = pnand %p19647_p6, %p19641_p3 }
  0x77   :  { %19651 = shalt.err (!%p19648_p7)
}
  0x78   :  { %s20642_s21 = sld [smem:[#allocation45_spill]]  ;;  %s19870_s9 = smov [#allocation10]  }
  0x79   :  { %s85_s28 = sshll.u32 %s19870_s9, 4  ;;  %s19871_s29 = smov [#allocation13]   ;;  %s86_s28 = int_to_ptr.vmem [resolvable:$true] %s85_s28 }
  0x7a   :  { %s107_s24 = sshll.u32 %s19871_s29, 4  ;;  %s19660_s3 = scalar_lea.vmem %s86_s28, 128  ;;  %s108_s24 = int_to_ptr.vmem [resolvable:$true] %s107_s24 }
  0x7b   :  { %p19661_p8 = scmp.ne.s32.totalorder %s86_s28, %s19660_s3  ;;  %p19665_p9 = scmp.lt.s32.totalorder %s86_s28, %s86_s28 }
  0x7c   :  { %p19666_p10 = scmp.lt.s32.totalorder %s19660_s3, %s19660_s3 }
  0x7e   :  { %66 = dma.hbm_to_vmem [thread:$0]  %s20642_s21, 128, %s64_s13, [#allocation6]  }
  0x7f   :  { %p19667_p11 = por %p19666_p10, %p19665_p9 }
  0x81   :  { %p19668_p12 = pnand %p19667_p11, %p19661_p8 }
  0x83   :  { %19671 = shalt.err (!%p19668_p12)
}
  0x84   :  { %88 = dma.hbm_to_vmem [thread:$0]  %s20622_s4, 128, %s86_s28, [#allocation9]  }
  0x85   :  { %s19680_s25 = scalar_lea.vmem %s108_s24, 16  ;;  %s19684_s26 = scalar_lea.vmem %s108_s24, 32 }
  0x86   :  { %p19681_p13 = scmp.ne.s32.totalorder %s108_s24, %s19680_s25  ;;  %p19685_p0 = scmp.lt.s32.totalorder %s108_s24, %s108_s24 }
  0x87   :  { %p19686_p1 = scmp.lt.s32.totalorder %s19684_s26, %s19680_s25 }
  0x89   :  { %p19687_p2 = por %p19686_p1, %p19685_p0 }
  0x8b   :  { %p19688_p3 = pnand %p19687_p2, %p19681_p13 }
  0x8d   :  { %19691 = shalt.err (!%p19688_p3)
}
  0x8e   :  { %110 = dma.hbm_to_vmem [thread:$0]  %s20624_s6, 16, %s108_s24, [#allocation12]  }
  0x8f   :  { %s19872_s27 = smov [#allocation16]   ;;  %s19873_s13 = smov [#allocation19]  }
  0x90   :  { %s129_s19 = sshll.u32 %s19872_s27, 4  ;;  %s151_s30 = sshll.u32 %s19873_s13, 4  ;;  %s130_s19 = int_to_ptr.vmem [resolvable:$true] %s129_s19  ;;  %s152_s30 = int_to_ptr.vmem [resolvable:$true] %s151_s30 }
  0x91   :  { %s19700_s0 = scalar_lea.vmem %s130_s19, 16  ;;  %s19704_s4 = scalar_lea.vmem %s130_s19, 32 }
  0x92   :  { %p19701_p4 = scmp.ne.s32.totalorder %s130_s19, %s19700_s0  ;;  %p19705_p5 = scmp.lt.s32.totalorder %s130_s19, %s130_s19 }
  0x93   :  { %p19706_p6 = scmp.lt.s32.totalorder %s19704_s4, %s19700_s0 }
  0x95   :  { %p19707_p7 = por %p19706_p6, %p19705_p5 }
  0x97   :  { %p19708_p8 = pnand %p19707_p7, %p19701_p4 }
  0x99   :  { %19711 = shalt.err (!%p19708_p8)
}
  0x9a   :  { %132 = dma.hbm_to_vmem [thread:$0]  %s20626_s8, 16, %s130_s19, [#allocation15]  }
  0x9b   :  { %s19720_s2 = scalar_lea.vmem %s152_s30, 16  ;;  %s19724_s6 = scalar_lea.vmem %s152_s30, 32 }
  0x9c   :  { %p19721_p9 = scmp.ne.s32.totalorder %s152_s30, %s19720_s2  ;;  %p19725_p10 = scmp.lt.s32.totalorder %s152_s30, %s152_s30 }
  0x9d   :  { %p19726_p11 = scmp.lt.s32.totalorder %s19724_s6, %s19720_s2 }
  0x9f   :  { %p19727_p12 = por %p19726_p11, %p19725_p10 }
  0xa1   :  { %p19728_p13 = pnand %p19727_p12, %p19721_p9 }
  0xa3   :  { %19731 = shalt.err (!%p19728_p13)
}
  0xa4   :  { %154 = dma.hbm_to_vmem [thread:$0]  %s20628_s10, 16, %s152_s30, [#allocation18]  }
  0xa5   :  { %s19874_s21 = smov [#allocation22]   ;;  %s19875_s28 = smov [#allocation25]  }
  0xa6   :  { %s173_s9 = sshll.u32 %s19874_s21, 4  ;;  %s195_s29 = sshll.u32 %s19875_s28, 4  ;;  %s174_s9 = int_to_ptr.vmem [resolvable:$true] %s173_s9  ;;  %s196_s29 = int_to_ptr.vmem [resolvable:$true] %s195_s29 }
  0xa7   :  { %s19740_s24 = scalar_lea.vmem %s174_s9, 128  ;;  %p19745_p1 = scmp.lt.s32.totalorder %s174_s9, %s174_s9 }
  0xa8   :  { %p19741_p0 = scmp.ne.s32.totalorder %s174_s9, %s19740_s24  ;;  %p19746_p2 = scmp.lt.s32.totalorder %s19740_s24, %s19740_s24 }
  0xaa   :  { %p19747_p3 = por %p19746_p2, %p19745_p1 }
  0xac   :  { %p19748_p4 = pnand %p19747_p3, %p19741_p0 }
  0xae   :  { %19751 = shalt.err (!%p19748_p4)
}
  0xaf   :  { %176 = dma.hbm_to_vmem [thread:$0]  %s20630_s12, 128, %s174_s9, [#allocation21]  }
  0xb0   :  { %s19760_s22 = scalar_lea.vmem %s196_s29, 128  ;;  %p19765_p6 = scmp.lt.s32.totalorder %s196_s29, %s196_s29 }
  0xb1   :  { %p19761_p5 = scmp.ne.s32.totalorder %s196_s29, %s19760_s22  ;;  %p19766_p7 = scmp.lt.s32.totalorder %s19760_s22, %s19760_s22 }
  0xb3   :  { %p19767_p8 = por %p19766_p7, %p19765_p6 }
  0xb5   :  { %p19768_p9 = pnand %p19767_p8, %p19761_p5 }
  0xb7   :  { %19771 = shalt.err (!%p19768_p9)
}
  0xb8   :  { %198 = dma.hbm_to_vmem [thread:$0]  %s20632_s14, 128, %s196_s29, [#allocation24]  }
  0xb9   :  { %s19876_s25 = smov [#allocation28]  }
  0xba   :  { %s217_s26 = sshll.u32 %s19876_s25, 4  ;;  %s218_s26 = int_to_ptr.vmem [resolvable:$true] %s217_s26 }
  0xbb   :  { %s19780_s5 = scalar_lea.vmem %s218_s26, 112  ;;  %s19784_s23 = scalar_lea.vmem %s218_s26, 128 }
  0xbc   :  { %p19781_p10 = scmp.ne.s32.totalorder %s218_s26, %s19780_s5  ;;  %p19785_p11 = scmp.lt.s32.totalorder %s218_s26, %s218_s26 }
  0xbd   :  { %p19786_p12 = scmp.lt.s32.totalorder %s19784_s23, %s19780_s5 }
  0xbf   :  { %p19787_p13 = por %p19786_p12, %p19785_p11 }
  0xc1   :  { %p19788_p0 = pnand %p19787_p13, %p19781_p10 }
  0xc3   :  { %19791 = shalt.err (!%p19788_p0)
}
  0xc4   :  { %220 = dma.hbm_to_vmem [thread:$0]  %s20634_s16, 112, %s218_s26, [#allocation27]  }
  0xc5   :  { %19832 = dma.done.wait [#allocation3], 896  }
  0xc6   :  { %19833 = vsyncadd [#allocation3], 4294966400 }
  0xc7   :  { %19834 = dma.done.wait [#allocation6], 57472  }
  0xc8   :  { %19835 = vsyncadd [#allocation6], 4294909824 }
  0xc9   :  { %19836 = dma.done.wait [#allocation9], 65664  }
  0xca   :  { %19837 = vsyncadd [#allocation9], 4294901632 }
  0xcb   :  { %19838 = dma.done.wait [#allocation12], 8208  }
  0xcc   :  { %19839 = vsyncadd [#allocation12], 4294959088 }
  0xcd   :  { %19840 = dma.done.wait [#allocation15], 1040  }
  0xce   :  { %19841 = vsyncadd [#allocation15], 4294966256 }
  0xcf   :  { %19842 = dma.done.wait [#allocation18], 1040  }
  0xd0   :  { %19843 = vsyncadd [#allocation18], 4294966256 }
  0xd1   :  { %19844 = dma.done.wait [#allocation21], 8320  }
  0xd2   :  { %19845 = vsyncadd [#allocation21], 4294958976 }
  0xd3   :  { %19846 = dma.done.wait [#allocation24], 65664  }
  0xd4   :  { %19847 = vsyncadd [#allocation24], 4294901632 }
  0xd5   :  { %19848 = dma.done.wait [#allocation27], 57456  }
  0xd6   :  { %19849 = vsyncadd [#allocation27], 4294909840  ;;  %v343_v0 = vld [vmem:[#allocation5 + $0x1c0] sm:$0xff]  ;;  %v274_v53 = vld [vmem:[#allocation2 + $0x8] sm:$0xff]  ;;  %s19880_s14 = smov [#allocation30]  }
  0xd7   :  { %v347_v1 = vld [vmem:[#allocation5 + $0x1e0] sm:$0xff]  ;;  %v20040_v58 = vpack.c.bf16 %v274_v53, %v274_v53  ;;  %s16377_s16 = sshll.u32 %s19880_s14, 4  ;;  %s16378_s16 = int_to_ptr.vmem [resolvable:$true] %s16377_s16 }
  0xd8   :  { %v471_v2 = vld [vmem:[#allocation5 + $0x5c0] sm:$0xff]  ;;  %v16455_v3 = vcombine.high %v343_v0, %v347_v1  ;;  %v16454_v5 = vcombine.low %v343_v0, %v347_v1  ;;  %s19792_s19 = scalar_lea.vmem %s16378_s16, 128  ;;  %p19797_p2 = scmp.lt.s32.totalorder %s16378_s16, %s16378_s16 }
  0xd9   :  { %v475_v4 = vld [vmem:[#allocation5 + $0x5e0] sm:$0xff]  ;;  %3049 = vmatprep.mubr.bf16.mxu0 %v20040_v58  ;;  %p19793_p1 = scmp.ne.s32.totalorder %s16378_s16, %s19792_s19  ;;  %p19798_p3 = scmp.lt.s32.totalorder %s19792_s19, %s19792_s19 }
  0xda   :  { %v335_v6 = vld [vmem:[#allocation5 + $0x180] sm:$0xff]  ;;  %v16583_v8 = vcombine.high %v471_v2, %v475_v4  ;;  %v16582_v9 = vcombine.low %v471_v2, %v475_v4  ;;  %3017 = vmatprep.subr.bf16.mxu0 %v16455_v3 }
  0xdb   :  { %v339_v7 = vld [vmem:[#allocation5 + $0x1a0] sm:$0xff]  ;;  %3018 = vmatpush1.bf16.msra.mxu0 %v16454_v5  ;;  %p19799_p4 = por %p19798_p3, %p19797_p2 }
  0xdc   :  { %v16447_v10 = vcombine.high %v335_v6, %v339_v7  ;;  %v463_v11 = vld [vmem:[#allocation5 + $0x580] sm:$0xff]  ;;  %3058 = vmatprep.subr.bf16.mxu1 %v16583_v8  ;;  %v16446_v18 = vcombine.low %v335_v6, %v339_v7 }
  0xdd   :  { %v467_v12 = vld [vmem:[#allocation5 + $0x5a0] sm:$0xff]  ;;  %3059 = vmatpush1.bf16.msra.mxu1 %v16582_v9  ;;  %p19800_p5 = pnand %p19799_p4, %p19793_p1 }
  0xde   :  { %v327_v13 = vld [vmem:[#allocation5 + $0x140] sm:$0xff]  ;;  %v16575_v14 = vcombine.high %v463_v11, %v467_v12  ;;  %3019 = vmatprep.subr.bf16.mxu0 %v16447_v10  ;;  %v16574_v19 = vcombine.low %v463_v11, %v467_v12 }
  0xdf   :  { %v331_v15 = vld [vmem:[#allocation5 + $0x160] sm:$0xff]  ;;  %3020 = vmatpush1.bf16.msra.mxu0 %v16446_v18 }
  0xe0   :  { %v455_v16 = vld [vmem:[#allocation5 + $0x540] sm:$0xff]  ;;  %v16439_v20 = vcombine.high %v327_v13, %v331_v15  ;;  %3060 = vmatprep.subr.bf16.mxu1 %v16575_v14  ;;  %v16438_v26 = vcombine.low %v327_v13, %v331_v15 }
  0xe1   :  { %v459_v17 = vld [vmem:[#allocation5 + $0x560] sm:$0xff]  ;;  %3061 = vmatpush1.bf16.msra.mxu1 %v16574_v19 }
  0xe2   :  { %v16567_v21 = vcombine.high %v455_v16, %v459_v17  ;;  %v319_v22 = vld [vmem:[#allocation5 + $0x100] sm:$0xff]  ;;  %3021 = vmatprep.subr.bf16.mxu0 %v16439_v20  ;;  %v16566_v27 = vcombine.low %v455_v16, %v459_v17 }
  0xe3   :  { %v323_v23 = vld [vmem:[#allocation5 + $0x120] sm:$0xff]  ;;  %3022 = vmatpush1.bf16.msra.mxu0 %v16438_v26 }
  0xe4   :  { %v447_v24 = vld [vmem:[#allocation5 + $0x500] sm:$0xff]  ;;  %v16431_v28 = vcombine.high %v319_v22, %v323_v23  ;;  %3062 = vmatprep.subr.bf16.mxu1 %v16567_v21  ;;  %v16430_v34 = vcombine.low %v319_v22, %v323_v23 }
  0xe5   :  { %v451_v25 = vld [vmem:[#allocation5 + $0x520] sm:$0xff]  ;;  %3063 = vmatpush1.bf16.msra.mxu1 %v16566_v27 }
  0xe6   :  { %v16559_v29 = vcombine.high %v447_v24, %v451_v25  ;;  %v311_v30 = vld [vmem:[#allocation5 + $0xc0] sm:$0xff]  ;;  %3023 = vmatprep.subr.bf16.mxu0 %v16431_v28  ;;  %v16558_v35 = vcombine.low %v447_v24, %v451_v25 }
  0xe7   :  { %v315_v31 = vld [vmem:[#allocation5 + $0xe0] sm:$0xff]  ;;  %3024 = vmatpush1.bf16.msra.mxu0 %v16430_v34 }
  0xe8   :  { %v439_v32 = vld [vmem:[#allocation5 + $0x4c0] sm:$0xff]  ;;  %v16423_v36 = vcombine.high %v311_v30, %v315_v31  ;;  %3064 = vmatprep.subr.bf16.mxu1 %v16559_v29  ;;  %v16422_v42 = vcombine.low %v311_v30, %v315_v31 }
  0xe9   :  { %v443_v33 = vld [vmem:[#allocation5 + $0x4e0] sm:$0xff]  ;;  %3065 = vmatpush1.bf16.msra.mxu1 %v16558_v35 }
  0xea   :  { %v16551_v37 = vcombine.high %v439_v32, %v443_v33  ;;  %v303_v38 = vld [vmem:[#allocation5 + $0x80] sm:$0xff]  ;;  %3025 = vmatprep.subr.bf16.mxu0 %v16423_v36  ;;  %v16550_v43 = vcombine.low %v439_v32, %v443_v33 }
  0xeb   :  { %v307_v39 = vld [vmem:[#allocation5 + $0xa0] sm:$0xff]  ;;  %3026 = vmatpush1.bf16.msra.mxu0 %v16422_v42 }
  0xec   :  { %v431_v40 = vld [vmem:[#allocation5 + $0x480] sm:$0xff]  ;;  %v16415_v44 = vcombine.high %v303_v38, %v307_v39  ;;  %3066 = vmatprep.subr.bf16.mxu1 %v16551_v37  ;;  %v16414_v50 = vcombine.low %v303_v38, %v307_v39 }
  0xed   :  { %v435_v41 = vld [vmem:[#allocation5 + $0x4a0] sm:$0xff]  ;;  %3067 = vmatpush1.bf16.msra.mxu1 %v16550_v43 }
  0xee   :  { %v16543_v45 = vcombine.high %v431_v40, %v435_v41  ;;  %v295_v46 = vld [vmem:[#allocation5 + $0x40] sm:$0xff]  ;;  %3027 = vmatprep.subr.bf16.mxu0 %v16415_v44  ;;  %v16542_v51 = vcombine.low %v431_v40, %v435_v41 }
  0xef   :  { %v299_v47 = vld [vmem:[#allocation5 + $0x60] sm:$0xff]  ;;  %3028 = vmatpush1.bf16.msra.mxu0 %v16414_v50 }
  0xf0   :  { %v423_v48 = vld [vmem:[#allocation5 + $0x440] sm:$0xff]  ;;  %v16407_v52 = vcombine.high %v295_v46, %v299_v47  ;;  %3068 = vmatprep.subr.bf16.mxu1 %v16543_v45  ;;  %v16406_v62 = vcombine.low %v295_v46, %v299_v47 }
  0xf1   :  { %v427_v49 = vld [vmem:[#allocation5 + $0x460] sm:$0xff]  ;;  %3069 = vmatpush1.bf16.msra.mxu1 %v16542_v51 }
  0xf2   :  { %v276_v54 = vld [vmem:[#allocation2 + $0x18] sm:$0xff]  ;;  %v16535_v55 = vcombine.high %v423_v48, %v427_v49  ;;  %3029 = vmatprep.subr.bf16.mxu0 %v16407_v52  ;;  %v16534_v63 = vcombine.low %v423_v48, %v427_v49 }
  0xf3   :  { %v287_v56 = vld [vmem:[#allocation5] sm:$0xff]  ;;  %v20042_v59 = vpack.c.bf16 %v276_v54, %v276_v54  ;;  %3030 = vmatpush1.bf16.msra.mxu0 %v16406_v62 }
  0xf4   :  { %v291_v57 = vld [vmem:[#allocation5 + $0x20] sm:$0xff]  ;;  %3070 = vmatprep.subr.bf16.mxu1 %v16535_v55 }
  0xf5   :  { %v415_v60 = vld [vmem:[#allocation5 + $0x400] sm:$0xff]  ;;  %v16399_v0 = vcombine.high %v287_v56, %v291_v57  ;;  %3090 = vmatprep.mubr.bf16.mxu1 %v20042_v59  ;;  %v16398_v6 = vcombine.low %v287_v56, %v291_v57  ;;  %3071 = vmatpush1.bf16.msra.mxu1 %v16534_v63 }
  0xf6   :  { %v419_v61 = vld [vmem:[#allocation5 + $0x420] sm:$0xff] }
  0xf7   :  { %v16527_v1 = vcombine.high %v415_v60, %v419_v61  ;;  %v407_v2 = vld [vmem:[#allocation5 + $0x3c0] sm:$0xff]  ;;  %3031 = vmatprep.subr.bf16.mxu0 %v16399_v0  ;;  %v16526_v7 = vcombine.low %v415_v60, %v419_v61 }
  0xf8   :  { %v411_v3 = vld [vmem:[#allocation5 + $0x3e0] sm:$0xff]  ;;  %3032 = vmatpush1.bf16.msra.mxu0 %v16398_v6 }
  0xf9   :  { %v535_v4 = vld [vmem:[#allocation5 + $0x7c0] sm:$0xff]  ;;  %v16519_v8 = vcombine.high %v407_v2, %v411_v3  ;;  %3072 = vmatprep.subr.bf16.mxu1 %v16527_v1  ;;  %v16518_v14 = vcombine.low %v407_v2, %v411_v3 }
  0xfa   :  { %v539_v5 = vld [vmem:[#allocation5 + $0x7e0] sm:$0xff]  ;;  %3073 = vmatpush1.bf16.msra.mxu1 %v16526_v7 }
  0xfb   :  { %v16647_v9 = vcombine.high %v535_v4, %v539_v5  ;;  %v399_v10 = vld [vmem:[#allocation5 + $0x380] sm:$0xff]  ;;  %3033 = vmatprep.subr.bf16.mxu0 %v16519_v8  ;;  %v16646_v15 = vcombine.low %v535_v4, %v539_v5 }
  0xfc   :  { %v403_v11 = vld [vmem:[#allocation5 + $0x3a0] sm:$0xff]  ;;  %3034 = vmatpush2.bf16.msra.mxu0 %v16518_v14 }
  0xfd   :  { %v527_v12 = vld [vmem:[#allocation5 + $0x780] sm:$0xff]  ;;  %v16511_v16 = vcombine.high %v399_v10, %v403_v11  ;;  %3074 = vmatprep.subr.bf16.mxu1 %v16647_v9  ;;  %v16510_v22 = vcombine.low %v399_v10, %v403_v11  ;;  %v273_v9 = vld [vmem:[#allocation2] sm:$0xff]  ;;  %v275_v11 = vld [vmem:[#allocation2 + $0x10] sm:$0xff] }
  0xfe   :  { %v531_v13 = vld [vmem:[#allocation5 + $0x7a0] sm:$0xff]  ;;  %3075 = vmatpush2.bf16.msra.mxu1 %v16646_v15 }
  0xff   :  { %v16639_v17 = vcombine.high %v527_v12, %v531_v13  ;;  %v391_v18 = vld [vmem:[#allocation5 + $0x340] sm:$0xff]  ;;  %3035 = vmatprep.subr.bf16.mxu0 %v16511_v16  ;;  %v16638_v23 = vcombine.low %v527_v12, %v531_v13  ;;  %v20046_v16 = vpack.c.bf16 %v273_v9, %v273_v9 }
 0x100   :  { %v395_v19 = vld [vmem:[#allocation5 + $0x360] sm:$0xff]  ;;  %3036 = vmatpush2.bf16.msra.mxu0 %v16510_v22 }
 0x101   :  { %v519_v20 = vld [vmem:[#allocation5 + $0x740] sm:$0xff]  ;;  %v16503_v24 = vcombine.high %v391_v18, %v395_v19  ;;  %3076 = vmatprep.subr.bf16.mxu1 %v16639_v17  ;;  %v16502_v30 = vcombine.low %v391_v18, %v395_v19  ;;  %v20048_v19 = vpack.c.bf16 %v275_v11, %v275_v11 }
 0x102   :  { %v523_v21 = vld [vmem:[#allocation5 + $0x760] sm:$0xff]  ;;  %3077 = vmatpush2.bf16.msra.mxu1 %v16638_v23 }
 0x103   :  { %v16631_v25 = vcombine.high %v519_v20, %v523_v21  ;;  %v383_v26 = vld [vmem:[#allocation5 + $0x300] sm:$0xff]  ;;  %3037 = vmatprep.subr.bf16.mxu0 %v16503_v24  ;;  %v16630_v31 = vcombine.low %v519_v20, %v523_v21  ;;  %v278_v21 = vld [vmem:[#allocation2 + $0x28] sm:$0xff] }
 0x104   :  { %v387_v27 = vld [vmem:[#allocation5 + $0x320] sm:$0xff]  ;;  %3038 = vmatpush2.bf16.msra.mxu0 %v16502_v30 }
 0x105   :  { %v511_v28 = vld [vmem:[#allocation5 + $0x700] sm:$0xff]  ;;  %v16495_v32 = vcombine.high %v383_v26, %v387_v27  ;;  %3078 = vmatprep.subr.bf16.mxu1 %v16631_v25  ;;  %v16494_v38 = vcombine.low %v383_v26, %v387_v27 }
 0x106   :  { %v515_v29 = vld [vmem:[#allocation5 + $0x720] sm:$0xff]  ;;  %3079 = vmatpush2.bf16.msra.mxu1 %v16630_v31 }
 0x107   :  { %v16623_v33 = vcombine.high %v511_v28, %v515_v29  ;;  %v375_v34 = vld [vmem:[#allocation5 + $0x2c0] sm:$0xff]  ;;  %3039 = vmatprep.subr.bf16.mxu0 %v16495_v32  ;;  %v16622_v39 = vcombine.low %v511_v28, %v515_v29  ;;  %v20051_v29 = vpack.c.bf16 %v278_v21, %v278_v21 }
 0x108   :  { %v379_v35 = vld [vmem:[#allocation5 + $0x2e0] sm:$0xff]  ;;  %3040 = vmatpush2.bf16.msra.mxu0 %v16494_v38  ;;  %v19877_v38 = vmov 0  }
 0x109   :  { %v503_v36 = vld [vmem:[#allocation5 + $0x6c0] sm:$0xff]  ;;  %v16487_v40 = vcombine.high %v375_v34, %v379_v35  ;;  %3080 = vmatprep.subr.bf16.mxu1 %v16623_v33  ;;  %v16486_v46 = vcombine.low %v375_v34, %v379_v35 }
 0x10a   :  { %v507_v37 = vld [vmem:[#allocation5 + $0x6e0] sm:$0xff]  ;;  %3081 = vmatpush2.bf16.msra.mxu1 %v16622_v39 }
 0x10b   :  { %v16615_v41 = vcombine.high %v503_v36, %v507_v37  ;;  %v367_v42 = vld [vmem:[#allocation5 + $0x280] sm:$0xff]  ;;  %3041 = vmatprep.subr.bf16.mxu0 %v16487_v40  ;;  %v16614_v47 = vcombine.low %v503_v36, %v507_v37 }
 0x10c   :  { %v371_v43 = vld [vmem:[#allocation5 + $0x2a0] sm:$0xff]  ;;  %3042 = vmatpush2.bf16.msra.mxu0 %v16486_v46 }
 0x10d   :  { %v495_v44 = vld [vmem:[#allocation5 + $0x680] sm:$0xff]  ;;  %v16479_v48 = vcombine.high %v367_v42, %v371_v43  ;;  %3082 = vmatprep.subr.bf16.mxu1 %v16615_v41  ;;  %v16478_v54 = vcombine.low %v367_v42, %v371_v43 }
 0x10e   :  { %v499_v45 = vld [vmem:[#allocation5 + $0x6a0] sm:$0xff]  ;;  %3083 = vmatpush2.bf16.msra.mxu1 %v16614_v47 }
 0x10f   :  { %v16607_v49 = vcombine.high %v495_v44, %v499_v45  ;;  %v359_v50 = vld [vmem:[#allocation5 + $0x240] sm:$0xff]  ;;  %3043 = vmatprep.subr.bf16.mxu0 %v16479_v48  ;;  %v16606_v55 = vcombine.low %v495_v44, %v499_v45 }
 0x110   :  { %v363_v51 = vld [vmem:[#allocation5 + $0x260] sm:$0xff]  ;;  %3044 = vmatpush2.bf16.msra.mxu0 %v16478_v54 }
 0x111   :  { %v487_v52 = vld [vmem:[#allocation5 + $0x640] sm:$0xff]  ;;  %v16471_v56 = vcombine.high %v359_v50, %v363_v51  ;;  %3084 = vmatprep.subr.bf16.mxu1 %v16607_v49  ;;  %v16470_v0 = vcombine.low %v359_v50, %v363_v51 }
 0x112   :  { %v491_v53 = vld [vmem:[#allocation5 + $0x660] sm:$0xff]  ;;  %3085 = vmatpush2.bf16.msra.mxu1 %v16606_v55 }
 0x113   :  { %v16599_v57 = vcombine.high %v487_v52, %v491_v53  ;;  %v351_v60 = vld [vmem:[#allocation5 + $0x200] sm:$0xff]  ;;  %3045 = vmatprep.subr.bf16.mxu0 %v16471_v56  ;;  %v16598_v1 = vcombine.low %v487_v52, %v491_v53 }
 0x114   :  { %v355_v61 = vld [vmem:[#allocation5 + $0x220] sm:$0xff]  ;;  %3046 = vmatpush2.bf16.msra.mxu0 %v16470_v0 }
 0x115   :  { %v479_v62 = vld [vmem:[#allocation5 + $0x600] sm:$0xff]  ;;  %v16463_v2 = vcombine.high %v351_v60, %v355_v61  ;;  %3086 = vmatprep.subr.bf16.mxu1 %v16599_v57  ;;  %v16462_v8 = vcombine.low %v351_v60, %v355_v61 }
 0x116   :  { %v483_v63 = vld [vmem:[#allocation5 + $0x620] sm:$0xff]  ;;  %3087 = vmatpush2.bf16.msra.mxu1 %v16598_v1 }
 0x117   :  { %v16591_v3 = vcombine.high %v479_v62, %v483_v63  ;;  %v599_v4 = vld [vmem:[#allocation5 + $0x9c0] sm:$0xff]  ;;  %3047 = vmatprep.subr.bf16.mxu0 %v16463_v2  ;;  %v16590_v10 = vcombine.low %v479_v62, %v483_v63 }
 0x118   :  { %v603_v5 = vld [vmem:[#allocation5 + $0x9e0] sm:$0xff]  ;;  %3048 = vmatpush2.bf16.msra.mxu0 %v16462_v8 }
 0x119   :  { %v727_v6 = vld [vmem:[#allocation5 + $0xdc0] sm:$0xff]  ;;  %v16711_v12 = vcombine.high %v599_v4, %v603_v5  ;;  %3088 = vmatprep.subr.bf16.mxu1 %v16591_v3  ;;  %v16710_v20 = vcombine.low %v599_v4, %v603_v5 }
 0x11a   :  { %v731_v7 = vld [vmem:[#allocation5 + $0xde0] sm:$0xff]  ;;  %3089 = vmatpush2.bf16.msra.mxu1 %v16590_v10 }
 0x11b   :  { %v16839_v13 = vcombine.high %v727_v6, %v731_v7  ;;  %v591_v14 = vld [vmem:[#allocation5 + $0x980] sm:$0xff]  ;;  %3099 = vmatprep.subr.bf16.mxu0 %v16711_v12  ;;  %v16838_v22 = vcombine.low %v727_v6, %v731_v7  ;;  %3050 = vmatmul.mubr.bf16.vlgmr.msra.gmra.mxu0 %v20046_v16 }
 0x11c   :  { %v595_v15 = vld [vmem:[#allocation5 + $0x9a0] sm:$0xff]  ;;  %3100 = vmatpush1.bf16.msra.mxu0 %v16710_v20  ;;  %3131 = vmatprep.mubr.bf16.mxu0 %v20051_v29 }
 0x11d   :  { %v719_v17 = vld [vmem:[#allocation5 + $0xd80] sm:$0xff]  ;;  %v16703_v23 = vcombine.high %v591_v14, %v595_v15  ;;  %3140 = vmatprep.subr.bf16.mxu1 %v16839_v13  ;;  %3091 = vmatmul.mubr.bf16.vlgmr.msra.gmra.mxu1 %v20048_v19  ;;  %v16702_v30 = vcombine.low %v591_v14, %v595_v15  ;;  %v344_v14 = vld [vmem:[#allocation5 + $0x1c8] sm:$0xff] }
 0x11e   :  { %v723_v18 = vld [vmem:[#allocation5 + $0xda0] sm:$0xff]  ;;  %3141 = vmatpush1.bf16.msra.mxu1 %v16838_v22  ;;  %3172 = vmatprep.mubr.bf16.mxu1 %v19877_v38 }
 0x11f   :  { %v16831_v24 = vcombine.high %v719_v17, %v723_v18  ;;  %v583_v25 = vld [vmem:[#allocation5 + $0x940] sm:$0xff]  ;;  %3101 = vmatprep.subr.bf16.mxu0 %v16703_v23  ;;  %v16830_v31 = vcombine.low %v719_v17, %v723_v18  ;;  %v348_v17 = vld [vmem:[#allocation5 + $0x1e8] sm:$0xff]  ;;  %v279_v18 = vld [vmem:[#allocation2 + $0x30] sm:$0xff] }
 0x120   :  { %v587_v26 = vld [vmem:[#allocation5 + $0x960] sm:$0xff]  ;;  %3102 = vmatpush1.bf16.msra.mxu0 %v16702_v30  ;;  %v20056_v30 = vpack.c.bf16 %v279_v18, %v279_v18 }
 0x121   :  { %v711_v27 = vld [vmem:[#allocation5 + $0xd40] sm:$0xff]  ;;  %v16695_v32 = vcombine.high %v583_v25, %v587_v26  ;;  %3142 = vmatprep.subr.bf16.mxu1 %v16831_v24  ;;  %v16694_v39 = vcombine.low %v583_v25, %v587_v26  ;;  %v336_v25 = vld [vmem:[#allocation5 + $0x188] sm:$0xff]  ;;  %v16457_v26 = vcombine.high %v344_v14, %v348_v17 }
 0x122   :  { %v715_v28 = vld [vmem:[#allocation5 + $0xd60] sm:$0xff]  ;;  %3143 = vmatpush1.bf16.msra.mxu1 %v16830_v31  ;;  %v16456_v31 = vcombine.low %v344_v14, %v348_v17  ;;  %v288_v14 = vld [vmem:[#allocation5 + $0x8] sm:$0xff] }
 0x123   :  { %v575_v33 = vld [vmem:[#allocation5 + $0x900] sm:$0xff]  ;;  %v16823_v36 = vcombine.high %v711_v27, %v715_v28  ;;  %3103 = vmatprep.subr.bf16.mxu0 %v16695_v32  ;;  %v16822_v40 = vcombine.low %v711_v27, %v715_v28  ;;  %v340_v27 = vld [vmem:[#allocation5 + $0x1a8] sm:$0xff] }
 0x124   :  { %v579_v34 = vld [vmem:[#allocation5 + $0x920] sm:$0xff]  ;;  %3104 = vmatpush1.bf16.msra.mxu0 %v16694_v39  ;;  %v292_v17 = vld [vmem:[#allocation5 + $0x28] sm:$0xff] }
 0x125   :  { %v703_v35 = vld [vmem:[#allocation5 + $0xd00] sm:$0xff]  ;;  %v16687_v41 = vcombine.high %v575_v33, %v579_v34  ;;  %3144 = vmatprep.subr.bf16.mxu1 %v16823_v36  ;;  %v16686_v47 = vcombine.low %v575_v33, %v579_v34  ;;  %v16449_v36 = vcombine.high %v336_v25, %v340_v27 }
 0x126   :  { %v707_v37 = vld [vmem:[#allocation5 + $0xd20] sm:$0xff]  ;;  %3145 = vmatpush1.bf16.msra.mxu1 %v16822_v40  ;;  %v16448_v40 = vcombine.low %v336_v25, %v340_v27  ;;  %v16401_v25 = vcombine.high %v288_v14, %v292_v17  ;;  %v476_v27 = vld [vmem:[#allocation5 + $0x5e8] sm:$0xff] }
 0x127   :  { %v567_v42 = vld [vmem:[#allocation5 + $0x8c0] sm:$0xff]  ;;  %v16815_v45 = vcombine.high %v703_v35, %v707_v37  ;;  %3105 = vmatprep.subr.bf16.mxu0 %v16687_v41  ;;  %v16814_v48 = vcombine.low %v703_v35, %v707_v37  ;;  %v328_v35 = vld [vmem:[#allocation5 + $0x148] sm:$0xff] }
 0x128   :  { %v571_v43 = vld [vmem:[#allocation5 + $0x8e0] sm:$0xff]  ;;  %3106 = vmatpush1.bf16.msra.mxu0 %v16686_v47  ;;  %v332_v37 = vld [vmem:[#allocation5 + $0x168] sm:$0xff] }
 0x129   :  { %v695_v44 = vld [vmem:[#allocation5 + $0xcc0] sm:$0xff]  ;;  %v16679_v49 = vcombine.high %v567_v42, %v571_v43  ;;  %3146 = vmatprep.subr.bf16.mxu1 %v16815_v45  ;;  %v16678_v55 = vcombine.low %v567_v42, %v571_v43  ;;  %v16441_v45 = vcombine.high %v328_v35, %v332_v37 }
 0x12a   :  { %v699_v46 = vld [vmem:[#allocation5 + $0xce0] sm:$0xff]  ;;  %3147 = vmatpush1.bf16.msra.mxu1 %v16814_v48  ;;  %v16440_v48 = vcombine.low %v328_v35, %v332_v37  ;;  %v464_v35 = vld [vmem:[#allocation5 + $0x588] sm:$0xff] }
 0x12b   :  { %v559_v50 = vld [vmem:[#allocation5 + $0x880] sm:$0xff]  ;;  %v16807_v53 = vcombine.high %v695_v44, %v699_v46  ;;  %3107 = vmatprep.subr.bf16.mxu0 %v16679_v49  ;;  %v16806_v56 = vcombine.low %v695_v44, %v699_v46  ;;  %v320_v44 = vld [vmem:[#allocation5 + $0x108] sm:$0xff] }
 0x12c   :  { %v563_v51 = vld [vmem:[#allocation5 + $0x8a0] sm:$0xff]  ;;  %3108 = vmatpush1.bf16.msra.mxu0 %v16678_v55  ;;  %v324_v46 = vld [vmem:[#allocation5 + $0x128] sm:$0xff] }
 0x12d   :  { %v687_v52 = vld [vmem:[#allocation5 + $0xc80] sm:$0xff]  ;;  %v16671_v57 = vcombine.high %v559_v50, %v563_v51  ;;  %3148 = vmatprep.subr.bf16.mxu1 %v16807_v53  ;;  %v16670_v1 = vcombine.low %v559_v50, %v563_v51  ;;  %v16433_v53 = vcombine.high %v320_v44, %v324_v46  ;;  %v468_v37 = vld [vmem:[#allocation5 + $0x5a8] sm:$0xff] }
 0x12e   :  { %v691_v54 = vld [vmem:[#allocation5 + $0xca0] sm:$0xff]  ;;  %3149 = vmatpush1.bf16.msra.mxu1 %v16806_v56  ;;  %v16432_v56 = vcombine.low %v320_v44, %v324_v46  ;;  %v396_v44 = vld [vmem:[#allocation5 + $0x368] sm:$0xff] }
 0x12f   :  { %v551_v60 = vld [vmem:[#allocation5 + $0x840] sm:$0xff]  ;;  %v16799_v63 = vcombine.high %v687_v52, %v691_v54  ;;  %3109 = vmatprep.subr.bf16.mxu0 %v16671_v57  ;;  %v16798_v2 = vcombine.low %v687_v52, %v691_v54  ;;  %v312_v52 = vld [vmem:[#allocation5 + $0xc8] sm:$0xff] }
 0x130   :  { %v555_v61 = vld [vmem:[#allocation5 + $0x860] sm:$0xff]  ;;  %3110 = vmatpush1.bf16.msra.mxu0 %v16670_v1  ;;  %v316_v54 = vld [vmem:[#allocation5 + $0xe8] sm:$0xff] }
 0x131   :  { %v679_v62 = vld [vmem:[#allocation5 + $0xc40] sm:$0xff]  ;;  %v16663_v3 = vcombine.high %v551_v60, %v555_v61  ;;  %3150 = vmatprep.subr.bf16.mxu1 %v16799_v63  ;;  %v16662_v9 = vcombine.low %v551_v60, %v555_v61  ;;  %v16425_v63 = vcombine.high %v312_v52, %v316_v54  ;;  %v456_v46 = vld [vmem:[#allocation5 + $0x548] sm:$0xff] }
 0x132   :  { %v683_v0 = vld [vmem:[#allocation5 + $0xc60] sm:$0xff]  ;;  %3151 = vmatpush1.bf16.msra.mxu1 %v16798_v2  ;;  %v16424_v2 = vcombine.low %v312_v52, %v316_v54  ;;  %v388_v52 = vld [vmem:[#allocation5 + $0x328] sm:$0xff] }
 0x133   :  { %v543_v4 = vld [vmem:[#allocation5 + $0x800] sm:$0xff]  ;;  %v16791_v7 = vcombine.high %v679_v62, %v683_v0  ;;  %3111 = vmatprep.subr.bf16.mxu0 %v16663_v3  ;;  %v16790_v10 = vcombine.low %v679_v62, %v683_v0  ;;  %v304_v62 = vld [vmem:[#allocation5 + $0x88] sm:$0xff] }
 0x134   :  { %v547_v5 = vld [vmem:[#allocation5 + $0x820] sm:$0xff]  ;;  %3112 = vmatpush1.bf16.msra.mxu0 %v16662_v9  ;;  %v308_v0 = vld [vmem:[#allocation5 + $0xa8] sm:$0xff] }
 0x135   :  { %v671_v6 = vld [vmem:[#allocation5 + $0xc00] sm:$0xff]  ;;  %v16655_v11 = vcombine.high %v543_v4, %v547_v5  ;;  %3152 = vmatprep.subr.bf16.mxu1 %v16791_v7  ;;  %v16654_v20 = vcombine.low %v543_v4, %v547_v5  ;;  %v16417_v7 = vcombine.high %v304_v62, %v308_v0 }
 0x136   :  { %v675_v8 = vld [vmem:[#allocation5 + $0xc20] sm:$0xff]  ;;  %3153 = vmatpush1.bf16.msra.mxu1 %v16790_v10  ;;  %v16416_v10 = vcombine.low %v304_v62, %v308_v0  ;;  %v380_v62 = vld [vmem:[#allocation5 + $0x2e8] sm:$0xff] }
 0x137   :  { %v663_v12 = vld [vmem:[#allocation5 + $0xbc0] sm:$0xff]  ;;  %v16783_v15 = vcombine.high %v671_v6, %v675_v8  ;;  %3113 = vmatprep.subr.bf16.mxu0 %v16655_v11  ;;  %v16782_v21 = vcombine.low %v671_v6, %v675_v8  ;;  %v296_v6 = vld [vmem:[#allocation5 + $0x48] sm:$0xff] }
 0x138   :  { %v667_v13 = vld [vmem:[#allocation5 + $0xbe0] sm:$0xff]  ;;  %3114 = vmatpush1.bf16.msra.mxu0 %v16654_v20  ;;  %v300_v8 = vld [vmem:[#allocation5 + $0x68] sm:$0xff] }
 0x139   :  { %v16775_v22 = vcombine.high %v663_v12, %v667_v13  ;;  %v655_v23 = vld [vmem:[#allocation5 + $0xb80] sm:$0xff]  ;;  %3154 = vmatprep.subr.bf16.mxu1 %v16783_v15  ;;  %v16774_v28 = vcombine.low %v663_v12, %v667_v13  ;;  %v16409_v15 = vcombine.high %v296_v6, %v300_v8  ;;  %v16408_v20 = vcombine.low %v296_v6, %v300_v8  ;;  %v372_v6 = vld [vmem:[#allocation5 + $0x2a8] sm:$0xff] }
 0x13a   :  { %v659_v24 = vld [vmem:[#allocation5 + $0xba0] sm:$0xff]  ;;  %3155 = vmatpush1.bf16.msra.mxu1 %v16782_v21 }
 0x13b   :  { %3115 = vmatprep.subr.bf16.mxu0 %v16775_v22  ;;  %v16767_v32 = vcombine.high %v655_v23, %v659_v24  ;;  %v647_v33 = vld [vmem:[#allocation5 + $0xb40] sm:$0xff]  ;;  %3181 = vmatprep.subr.bf16.mxu1 %v16457_v26  ;;  %v16766_v39 = vcombine.low %v655_v23, %v659_v24  ;;  %v408_v22 = vld [vmem:[#allocation5 + $0x3c8] sm:$0xff] }
 0x13c   :  { %v651_v34 = vld [vmem:[#allocation5 + $0xb60] sm:$0xff]  ;;  %3116 = vmatpush2.bf16.msra.mxu0 %v16774_v28  ;;  %v412_v23 = vld [vmem:[#allocation5 + $0x3e8] sm:$0xff] }
 0x13d   :  { %3173 = vmatmul.mubr.bf16.vlgmr.msra.gmra.mxu1 %v20056_v30  ;;  %3117 = vmatprep.subr.bf16.mxu0 %v16767_v32  ;;  %v16759_v41 = vcombine.high %v647_v33, %v651_v34  ;;  %v639_v42 = vld [vmem:[#allocation5 + $0xb00] sm:$0xff]  ;;  %v16758_v47 = vcombine.low %v647_v33, %v651_v34  ;;  %v472_v24 = vld [vmem:[#allocation5 + $0x5c8] sm:$0xff] }
 0x13e   :  { %3182 = vmatpush1.bf16.msra.mxu1 %v16456_v31  ;;  %v643_v43 = vld [vmem:[#allocation5 + $0xb20] sm:$0xff]  ;;  %3213 = vmatprep.mubr.bf16.mxu1 %v20040_v58  ;;  %v277_v26 = vld [vmem:[#allocation2 + $0x20] sm:$0xff]  ;;  %v16400_v31 = vcombine.low %v288_v14, %v292_v17  ;;  %v16585_v32 = vcombine.high %v472_v24, %v476_v27 }
 0x13f   :  { %3183 = vmatprep.subr.bf16.mxu1 %v16449_v36  ;;  %v16751_v49 = vcombine.high %v639_v42, %v643_v43  ;;  %v631_v50 = vld [vmem:[#allocation5 + $0xac0] sm:$0xff]  ;;  %v16750_v55 = vcombine.low %v639_v42, %v643_v43  ;;  %v400_v33 = vld [vmem:[#allocation5 + $0x388] sm:$0xff]  ;;  %v16521_v36 = vcombine.high %v408_v22, %v412_v23  ;;  %v16577_v42 = vcombine.high %v464_v35, %v468_v37 }
 0x140   :  { %3118 = vmatpush2.bf16.msra.mxu0 %v16766_v39  ;;  %v635_v51 = vld [vmem:[#allocation5 + $0xae0] sm:$0xff]  ;;  %v404_v34 = vld [vmem:[#allocation5 + $0x3a8] sm:$0xff]  ;;  %v20060_v39 = vpack.c.bf16 %v277_v26, %v277_v26 }
 0x141   :  { %3119 = vmatprep.subr.bf16.mxu0 %v16759_v41  ;;  %v16743_v57 = vcombine.high %v631_v50, %v635_v51  ;;  %v623_v60 = vld [vmem:[#allocation5 + $0xa80] sm:$0xff]  ;;  %v16742_v1 = vcombine.low %v631_v50, %v635_v51  ;;  %v16520_v41 = vcombine.low %v408_v22, %v412_v23  ;;  %v392_v43 = vld [vmem:[#allocation5 + $0x348] sm:$0xff] }
 0x142   :  { %3184 = vmatpush1.bf16.msra.mxu1 %v16448_v40  ;;  %v627_v61 = vld [vmem:[#allocation5 + $0xaa0] sm:$0xff]  ;;  %v16584_v40 = vcombine.low %v472_v24, %v476_v27  ;;  %v384_v51 = vld [vmem:[#allocation5 + $0x308] sm:$0xff]  ;;  %v16505_v54 = vcombine.high %v392_v43, %v396_v44 }
 0x143   :  { %3185 = vmatprep.subr.bf16.mxu1 %v16441_v45  ;;  %v16735_v3 = vcombine.high %v623_v60, %v627_v61  ;;  %v615_v4 = vld [vmem:[#allocation5 + $0xa40] sm:$0xff]  ;;  %v16734_v9 = vcombine.low %v623_v60, %v627_v61  ;;  %v16513_v45 = vcombine.high %v400_v33, %v404_v34  ;;  %v376_v61 = vld [vmem:[#allocation5 + $0x2c8] sm:$0xff]  ;;  %v16497_v0 = vcombine.high %v384_v51, %v388_v52 }
 0x144   :  { %3120 = vmatpush2.bf16.msra.mxu0 %v16758_v47  ;;  %v619_v5 = vld [vmem:[#allocation5 + $0xa60] sm:$0xff]  ;;  %v460_v47 = vld [vmem:[#allocation5 + $0x568] sm:$0xff]  ;;  %v16489_v8 = vcombine.high %v376_v61, %v380_v62 }
 0x145   :  { %3121 = vmatprep.subr.bf16.mxu0 %v16751_v49  ;;  %v16727_v11 = vcombine.high %v615_v4, %v619_v5  ;;  %v607_v12 = vld [vmem:[#allocation5 + $0xa00] sm:$0xff]  ;;  %v16726_v18 = vcombine.low %v615_v4, %v619_v5  ;;  %v16512_v49 = vcombine.low %v400_v33, %v404_v34  ;;  %v16569_v50 = vcombine.high %v456_v46, %v460_v47  ;;  %v368_v5 = vld [vmem:[#allocation5 + $0x288] sm:$0xff] }
 0x146   :  { %3186 = vmatpush1.bf16.msra.mxu1 %v16440_v48  ;;  %v611_v13 = vld [vmem:[#allocation5 + $0xa20] sm:$0xff]  ;;  %v16576_v48 = vcombine.low %v464_v35, %v468_v37  ;;  %v364_v14 = vld [vmem:[#allocation5 + $0x268] sm:$0xff]  ;;  %v16481_v17 = vcombine.high %v368_v5, %v372_v6 }
 0x147   :  { %3187 = vmatprep.subr.bf16.mxu1 %v16433_v53  ;;  %v16719_v21 = vcombine.high %v607_v12, %v611_v13  ;;  %v16718_v28 = vcombine.low %v607_v12, %v611_v13  ;;  %v448_v53 = vld [vmem:[#allocation5 + $0x508] sm:$0xff] }
 0x148   :  { %3122 = vmatpush2.bf16.msra.mxu0 %v16750_v55  ;;  %v452_v55 = vld [vmem:[#allocation5 + $0x528] sm:$0xff] }
 0x149   :  { %3123 = vmatprep.subr.bf16.mxu0 %v16743_v57  ;;  %v16504_v57 = vcombine.low %v392_v43, %v396_v44  ;;  %v16561_v60 = vcombine.high %v448_v53, %v452_v55  ;;  %v360_v13 = vld [vmem:[#allocation5 + $0x248] sm:$0xff] }
 0x14a   :  { %3188 = vmatpush1.bf16.msra.mxu1 %v16432_v56  ;;  %v16568_v56 = vcombine.low %v456_v46, %v460_v47  ;;  %v352_v23 = vld [vmem:[#allocation5 + $0x208] sm:$0xff]  ;;  %v16473_v26 = vcombine.high %v360_v13, %v364_v14 }
 0x14b   :  { %3189 = vmatprep.subr.bf16.mxu1 %v16425_v63  ;;  %v440_v63 = vld [vmem:[#allocation5 + $0x4c8] sm:$0xff] }
 0x14c   :  { %3124 = vmatpush2.bf16.msra.mxu0 %v16742_v1  ;;  %v444_v1 = vld [vmem:[#allocation5 + $0x4e8] sm:$0xff] }
 0x14d   :  { %3125 = vmatprep.subr.bf16.mxu0 %v16735_v3  ;;  %v16496_v3 = vcombine.low %v384_v51, %v388_v52  ;;  %v16553_v4 = vcombine.high %v440_v63, %v444_v1  ;;  %v356_v24 = vld [vmem:[#allocation5 + $0x228] sm:$0xff] }
 0x14e   :  { %3190 = vmatpush1.bf16.msra.mxu1 %v16424_v2  ;;  %v16560_v2 = vcombine.low %v448_v53, %v452_v55  ;;  %v420_v27 = vld [vmem:[#allocation5 + $0x428] sm:$0xff] }
 0x14f   :  { %3191 = vmatprep.subr.bf16.mxu1 %v16417_v7  ;;  %v432_v7 = vld [vmem:[#allocation5 + $0x488] sm:$0xff] }
 0x150   :  { %3126 = vmatpush2.bf16.msra.mxu0 %v16734_v9  ;;  %v436_v9 = vld [vmem:[#allocation5 + $0x4a8] sm:$0xff] }
 0x151   :  { %3127 = vmatprep.subr.bf16.mxu0 %v16727_v11  ;;  %v16488_v11 = vcombine.low %v376_v61, %v380_v62  ;;  %v16545_v12 = vcombine.high %v432_v7, %v436_v9  ;;  %v536_v33 = vld [vmem:[#allocation5 + $0x7c8] sm:$0xff] }
 0x152   :  { %3192 = vmatpush1.bf16.msra.mxu1 %v16416_v10  ;;  %v16552_v10 = vcombine.low %v440_v63, %v444_v1  ;;  %v540_v34 = vld [vmem:[#allocation5 + $0x7e8] sm:$0xff] }
 0x153   :  { %3193 = vmatprep.subr.bf16.mxu1 %v16409_v15  ;;  %v424_v15 = vld [vmem:[#allocation5 + $0x448] sm:$0xff] }
 0x154   :  { %3128 = vmatpush2.bf16.msra.mxu0 %v16726_v18  ;;  %v428_v18 = vld [vmem:[#allocation5 + $0x468] sm:$0xff] }
 0x155   :  { %3129 = vmatprep.subr.bf16.mxu0 %v16719_v21  ;;  %v16480_v21 = vcombine.low %v368_v5, %v372_v6  ;;  %v16537_v22 = vcombine.high %v424_v15, %v428_v18  ;;  %v600_v35 = vld [vmem:[#allocation5 + $0x9c8] sm:$0xff] }
 0x156   :  { %3194 = vmatpush1.bf16.msra.mxu1 %v16408_v20  ;;  %v16544_v20 = vcombine.low %v432_v7, %v436_v9  ;;  %v604_v37 = vld [vmem:[#allocation5 + $0x9e8] sm:$0xff] }
 0x157   :  { %3195 = vmatprep.subr.bf16.mxu1 %v16401_v25  ;;  %v416_v25 = vld [vmem:[#allocation5 + $0x408] sm:$0xff]  ;;  %v16713_v46 = vcombine.high %v600_v35, %v604_v37 }
 0x158   :  { %3130 = vmatpush2.bf16.msra.mxu0 %v16718_v28  ;;  %v16536_v28 = vcombine.low %v424_v15, %v428_v18  ;;  %v528_v43 = vld [vmem:[#allocation5 + $0x788] sm:$0xff] }
 0x159   :  { %3222 = vmatprep.subr.bf16.mxu0 %v16585_v32  ;;  %v16529_v32 = vcombine.high %v416_v25, %v420_v27  ;;  %v532_v44 = vld [vmem:[#allocation5 + $0x7a8] sm:$0xff] }
 0x15a   :  { %3196 = vmatpush1.bf16.msra.mxu1 %v16400_v31  ;;  %v16472_v31 = vcombine.low %v360_v13, %v364_v14  ;;  %v596_v47 = vld [vmem:[#allocation5 + $0x9a8] sm:$0xff] }
 0x15b   :  { %3197 = vmatprep.subr.bf16.mxu1 %v16521_v36  ;;  %3132 = vmatmul.mubr.bf16.vlgmr.msra.gmra.mxu0 %v20060_v39  ;;  %v16465_v36 = vcombine.high %v352_v23, %v356_v24  ;;  %v520_v51 = vld [vmem:[#allocation5 + $0x748] sm:$0xff] }
 0x15c   :  { %3223 = vmatpush1.bf16.msra.mxu0 %v16584_v40  ;;  %3254 = vmatprep.mubr.bf16.mxu0 %v20042_v59  ;;  %v16528_v40 = vcombine.low %v416_v25, %v420_v27  ;;  %v524_v52 = vld [vmem:[#allocation5 + $0x768] sm:$0xff] }
 0x15d   :  { %3224 = vmatprep.subr.bf16.mxu0 %v16577_v42  ;;  %v16649_v42 = vcombine.high %v536_v33, %v540_v34  ;;  %v584_v53 = vld [vmem:[#allocation5 + $0x948] sm:$0xff] }
 0x15e   :  { %3198 = vmatpush2.bf16.msra.mxu1 %v16520_v41  ;;  %v16464_v41 = vcombine.low %v352_v23, %v356_v24  ;;  %v588_v55 = vld [vmem:[#allocation5 + $0x968] sm:$0xff] }
 0x15f   :  { %3199 = vmatprep.subr.bf16.mxu1 %v16513_v45  ;;  %v592_v45 = vld [vmem:[#allocation5 + $0x988] sm:$0xff] }
 0x160   :  { %3225 = vmatpush1.bf16.msra.mxu0 %v16576_v48  ;;  %v16648_v48 = vcombine.low %v536_v33, %v540_v34  ;;  %v512_v61 = vld [vmem:[#allocation5 + $0x708] sm:$0xff] }
 0x161   :  { %3226 = vmatprep.subr.bf16.mxu0 %v16569_v50  ;;  %v16641_v50 = vcombine.high %v528_v43, %v532_v44  ;;  %v516_v62 = vld [vmem:[#allocation5 + $0x728] sm:$0xff] }
 0x162   :  { %3200 = vmatpush2.bf16.msra.mxu1 %v16512_v49  ;;  %v16712_v49 = vcombine.low %v600_v35, %v604_v37  ;;  %v576_v63 = vld [vmem:[#allocation5 + $0x908] sm:$0xff] }
 0x163   :  { %3201 = vmatprep.subr.bf16.mxu1 %v16505_v54  ;;  %v16705_v54 = vcombine.high %v592_v45, %v596_v47  ;;  %v580_v1 = vld [vmem:[#allocation5 + $0x928] sm:$0xff] }
 0x164   :  { %3227 = vmatpush1.bf16.msra.mxu0 %v16568_v56  ;;  %v16640_v56 = vcombine.low %v528_v43, %v532_v44  ;;  %v504_v5 = vld [vmem:[#allocation5 + $0x6c8] sm:$0xff] }
 0x165   :  { %3228 = vmatprep.subr.bf16.mxu0 %v16561_v60  ;;  %v16633_v60 = vcombine.high %v520_v51, %v524_v52  ;;  %v508_v6 = vld [vmem:[#allocation5 + $0x6e8] sm:$0xff] }
 0x166   :  { %3202 = vmatpush2.bf16.msra.mxu1 %v16504_v57  ;;  %v16704_v57 = vcombine.low %v592_v45, %v596_v47  ;;  %v568_v7 = vld [vmem:[#allocation5 + $0x8c8] sm:$0xff] }
 0x167   :  { %3203 = vmatprep.subr.bf16.mxu1 %v16497_v0  ;;  %v16697_v0 = vcombine.high %v584_v53, %v588_v55  ;;  %v572_v9 = vld [vmem:[#allocation5 + $0x8e8] sm:$0xff] }
 0x168   :  { %3229 = vmatpush1.bf16.msra.mxu0 %v16560_v2  ;;  %v16632_v2 = vcombine.low %v520_v51, %v524_v52  ;;  %v496_v13 = vld [vmem:[#allocation5 + $0x688] sm:$0xff] }
 0x169   :  { %3230 = vmatprep.subr.bf16.mxu0 %v16553_v4  ;;  %v16625_v4 = vcombine.high %v512_v61, %v516_v62  ;;  %v500_v14 = vld [vmem:[#allocation5 + $0x6a8] sm:$0xff] }
 0x16a   :  { %3204 = vmatpush2.bf16.msra.mxu1 %v16496_v3  ;;  %v16696_v3 = vcombine.low %v584_v53, %v588_v55  ;;  %v560_v15 = vld [vmem:[#allocation5 + $0x888] sm:$0xff] }
 0x16b   :  { %3205 = vmatprep.subr.bf16.mxu1 %v16489_v8  ;;  %v16689_v8 = vcombine.high %v576_v63, %v580_v1  ;;  %v564_v18 = vld [vmem:[#allocation5 + $0x8a8] sm:$0xff] }
 0x16c   :  { %3231 = vmatpush1.bf16.msra.mxu0 %v16552_v10  ;;  %v16624_v10 = vcombine.low %v512_v61, %v516_v62  ;;  %v488_v23 = vld [vmem:[#allocation5 + $0x648] sm:$0xff] }
 0x16d   :  { %3232 = vmatprep.subr.bf16.mxu0 %v16545_v12  ;;  %v16617_v12 = vcombine.high %v504_v5, %v508_v6  ;;  %v492_v24 = vld [vmem:[#allocation5 + $0x668] sm:$0xff] }
 0x16e   :  { %3206 = vmatpush2.bf16.msra.mxu1 %v16488_v11  ;;  %v16688_v11 = vcombine.low %v576_v63, %v580_v1  ;;  %v552_v25 = vld [vmem:[#allocation5 + $0x848] sm:$0xff] }
 0x16f   :  { %3207 = vmatprep.subr.bf16.mxu1 %v16481_v17  ;;  %v16681_v17 = vcombine.high %v568_v7, %v572_v9  ;;  %v556_v27 = vld [vmem:[#allocation5 + $0x868] sm:$0xff] }
 0x170   :  { %3233 = vmatpush1.bf16.msra.mxu0 %v16544_v20  ;;  %v16616_v20 = vcombine.low %v504_v5, %v508_v6  ;;  %v480_v33 = vld [vmem:[#allocation5 + $0x608] sm:$0xff] }
 0x171   :  { %3234 = vmatprep.subr.bf16.mxu0 %v16537_v22  ;;  %v16609_v22 = vcombine.high %v496_v13, %v500_v14  ;;  %v484_v34 = vld [vmem:[#allocation5 + $0x628] sm:$0xff] }
 0x172   :  { %3208 = vmatpush2.bf16.msra.mxu1 %v16480_v21  ;;  %v16680_v21 = vcombine.low %v568_v7, %v572_v9  ;;  %v544_v35 = vld [vmem:[#allocation5 + $0x808] sm:$0xff] }
 0x173   :  { %3209 = vmatprep.subr.bf16.mxu1 %v16473_v26  ;;  %v16673_v26 = vcombine.high %v560_v15, %v564_v18  ;;  %v548_v37 = vld [vmem:[#allocation5 + $0x828] sm:$0xff] }
 0x174   :  { %3235 = vmatpush1.bf16.msra.mxu0 %v16536_v28  ;;  %v16608_v28 = vcombine.low %v496_v13, %v500_v14  ;;  %v664_v43 = vld [vmem:[#allocation5 + $0xbc8] sm:$0xff] }
 0x175   :  { %3236 = vmatprep.subr.bf16.mxu0 %v16529_v32  ;;  %v16601_v32 = vcombine.high %v488_v23, %v492_v24  ;;  %v668_v44 = vld [vmem:[#allocation5 + $0xbe8] sm:$0xff] }
 0x176   :  { %3210 = vmatpush2.bf16.msra.mxu1 %v16472_v31  ;;  %v16672_v31 = vcombine.low %v560_v15, %v564_v18  ;;  %v728_v45 = vld [vmem:[#allocation5 + $0xdc8] sm:$0xff] }
 0x177   :  { %3211 = vmatprep.subr.bf16.mxu1 %v16465_v36  ;;  %v16665_v36 = vcombine.high %v552_v25, %v556_v27  ;;  %v732_v47 = vld [vmem:[#allocation5 + $0xde8] sm:$0xff] }
 0x178   :  { %3237 = vmatpush1.bf16.msra.mxu0 %v16528_v40  ;;  %v16600_v40 = vcombine.low %v488_v23, %v492_v24  ;;  %v656_v51 = vld [vmem:[#allocation5 + $0xb88] sm:$0xff] }
 0x179   :  { %3238 = vmatprep.subr.bf16.mxu0 %v16649_v42  ;;  %v16593_v42 = vcombine.high %v480_v33, %v484_v34  ;;  %v660_v52 = vld [vmem:[#allocation5 + $0xba8] sm:$0xff] }
 0x17a   :  { %3212 = vmatpush2.bf16.msra.mxu1 %v16464_v41  ;;  %v16664_v41 = vcombine.low %v552_v25, %v556_v27  ;;  %v720_v53 = vld [vmem:[#allocation5 + $0xd88] sm:$0xff] }
 0x17b   :  { %3263 = vmatprep.subr.bf16.mxu1 %v16713_v46  ;;  %v16657_v46 = vcombine.high %v544_v35, %v548_v37  ;;  %v724_v55 = vld [vmem:[#allocation5 + $0xda8] sm:$0xff] }
 0x17c   :  { %3239 = vmatpush2.bf16.msra.mxu0 %v16648_v48  ;;  %v16592_v48 = vcombine.low %v480_v33, %v484_v34  ;;  %v648_v61 = vld [vmem:[#allocation5 + $0xb48] sm:$0xff] }
 0x17d   :  { %3214 = vmatmul.mubr.bf16.vlgmr.msra.gmra.mxu1 %v20046_v16  ;;  %3240 = vmatprep.subr.bf16.mxu0 %v16641_v50  ;;  %v16841_v50 = vcombine.high %v728_v45, %v732_v47  ;;  %v652_v62 = vld [vmem:[#allocation5 + $0xb68] sm:$0xff] }
 0x17e   :  { %3264 = vmatpush1.bf16.msra.mxu1 %v16712_v49  ;;  %3295 = vmatprep.mubr.bf16.mxu1 %v20051_v29  ;;  %v16656_v49 = vcombine.low %v544_v35, %v548_v37  ;;  %v712_v63 = vld [vmem:[#allocation5 + $0xd48] sm:$0xff] }
 0x17f   :  { %3265 = vmatprep.subr.bf16.mxu1 %v16705_v54  ;;  %v16777_v54 = vcombine.high %v664_v43, %v668_v44  ;;  %v716_v1 = vld [vmem:[#allocation5 + $0xd68] sm:$0xff] }
 0x180   :  { %3241 = vmatpush2.bf16.msra.mxu0 %v16640_v56  ;;  %v16840_v56 = vcombine.low %v728_v45, %v732_v47  ;;  %v640_v5 = vld [vmem:[#allocation5 + $0xb08] sm:$0xff] }
 0x181   :  { %3242 = vmatprep.subr.bf16.mxu0 %v16633_v60  ;;  %v16833_v60 = vcombine.high %v720_v53, %v724_v55  ;;  %v644_v6 = vld [vmem:[#allocation5 + $0xb28] sm:$0xff] }
 0x182   :  { %3266 = vmatpush1.bf16.msra.mxu1 %v16704_v57  ;;  %v16776_v57 = vcombine.low %v664_v43, %v668_v44  ;;  %v704_v7 = vld [vmem:[#allocation5 + $0xd08] sm:$0xff] }
 0x183   :  { %3267 = vmatprep.subr.bf16.mxu1 %v16697_v0  ;;  %v16769_v0 = vcombine.high %v656_v51, %v660_v52  ;;  %v708_v9 = vld [vmem:[#allocation5 + $0xd28] sm:$0xff] }
 0x184   :  { %3243 = vmatpush2.bf16.msra.mxu0 %v16632_v2  ;;  %v16832_v2 = vcombine.low %v720_v53, %v724_v55  ;;  %v632_v13 = vld [vmem:[#allocation5 + $0xac8] sm:$0xff]  ;;  %v473_v53 = vld [vmem:[#allocation5 + $0x5d0] sm:$0xff] }
 0x185   :  { %3244 = vmatprep.subr.bf16.mxu0 %v16625_v4  ;;  %v16825_v4 = vcombine.high %v712_v63, %v716_v1  ;;  %v636_v14 = vld [vmem:[#allocation5 + $0xae8] sm:$0xff]  ;;  %v477_v55 = vld [vmem:[#allocation5 + $0x5f0] sm:$0xff] }
 0x186   :  { %3268 = vmatpush1.bf16.msra.mxu1 %v16696_v3  ;;  %v16768_v3 = vcombine.low %v656_v51, %v660_v52  ;;  %v696_v15 = vld [vmem:[#allocation5 + $0xcc8] sm:$0xff]  ;;  %v345_v51 = vld [vmem:[#allocation5 + $0x1d0] sm:$0xff] }
 0x187   :  { %3269 = vmatprep.subr.bf16.mxu1 %v16689_v8  ;;  %v16761_v8 = vcombine.high %v648_v61, %v652_v62  ;;  %v700_v18 = vld [vmem:[#allocation5 + $0xce8] sm:$0xff]  ;;  %v349_v52 = vld [vmem:[#allocation5 + $0x1f0] sm:$0xff] }
 0x188   :  { %3245 = vmatpush2.bf16.msra.mxu0 %v16624_v10  ;;  %v16824_v10 = vcombine.low %v712_v63, %v716_v1  ;;  %v624_v23 = vld [vmem:[#allocation5 + $0xa88] sm:$0xff]  ;;  %v465_v63 = vld [vmem:[#allocation5 + $0x590] sm:$0xff] }
 0x189   :  { %3246 = vmatprep.subr.bf16.mxu0 %v16617_v12  ;;  %v16817_v12 = vcombine.high %v704_v7, %v708_v9  ;;  %v628_v24 = vld [vmem:[#allocation5 + $0xaa8] sm:$0xff]  ;;  %v469_v1 = vld [vmem:[#allocation5 + $0x5b0] sm:$0xff] }
 0x18a   :  { %3270 = vmatpush1.bf16.msra.mxu1 %v16688_v11  ;;  %v16760_v11 = vcombine.low %v648_v61, %v652_v62  ;;  %v688_v25 = vld [vmem:[#allocation5 + $0xc88] sm:$0xff]  ;;  %v337_v61 = vld [vmem:[#allocation5 + $0x190] sm:$0xff] }
 0x18b   :  { %3271 = vmatprep.subr.bf16.mxu1 %v16681_v17  ;;  %v16753_v17 = vcombine.high %v640_v5, %v644_v6  ;;  %v692_v27 = vld [vmem:[#allocation5 + $0xca8] sm:$0xff]  ;;  %v341_v62 = vld [vmem:[#allocation5 + $0x1b0] sm:$0xff] }
 0x18c   :  { %3247 = vmatpush2.bf16.msra.mxu0 %v16616_v20  ;;  %v16816_v20 = vcombine.low %v704_v7, %v708_v9  ;;  %v616_v33 = vld [vmem:[#allocation5 + $0xa48] sm:$0xff]  ;;  %v457_v7 = vld [vmem:[#allocation5 + $0x550] sm:$0xff] }
 0x18d   :  { %3248 = vmatprep.subr.bf16.mxu0 %v16609_v22  ;;  %v16809_v22 = vcombine.high %v696_v15, %v700_v18  ;;  %v620_v34 = vld [vmem:[#allocation5 + $0xa68] sm:$0xff]  ;;  %v461_v9 = vld [vmem:[#allocation5 + $0x570] sm:$0xff] }
 0x18e   :  { %3272 = vmatpush1.bf16.msra.mxu1 %v16680_v21  ;;  %v16752_v21 = vcombine.low %v640_v5, %v644_v6  ;;  %v680_v35 = vld [vmem:[#allocation5 + $0xc48] sm:$0xff]  ;;  %v329_v5 = vld [vmem:[#allocation5 + $0x150] sm:$0xff] }
 0x18f   :  { %3273 = vmatprep.subr.bf16.mxu1 %v16673_v26  ;;  %v16745_v26 = vcombine.high %v632_v13, %v636_v14  ;;  %v684_v37 = vld [vmem:[#allocation5 + $0xc68] sm:$0xff]  ;;  %v333_v6 = vld [vmem:[#allocation5 + $0x170] sm:$0xff] }
 0x190   :  { %3249 = vmatpush2.bf16.msra.mxu0 %v16608_v28  ;;  %v16808_v28 = vcombine.low %v696_v15, %v700_v18  ;;  %v608_v43 = vld [vmem:[#allocation5 + $0xa08] sm:$0xff]  ;;  %v449_v15 = vld [vmem:[#allocation5 + $0x510] sm:$0xff] }
 0x191   :  { %3250 = vmatprep.subr.bf16.mxu0 %v16601_v32  ;;  %v16801_v32 = vcombine.high %v688_v25, %v692_v27  ;;  %v612_v44 = vld [vmem:[#allocation5 + $0xa28] sm:$0xff]  ;;  %v453_v18 = vld [vmem:[#allocation5 + $0x530] sm:$0xff] }
 0x192   :  { %3274 = vmatpush1.bf16.msra.mxu1 %v16672_v31  ;;  %v16744_v31 = vcombine.low %v632_v13, %v636_v14  ;;  %v672_v45 = vld [vmem:[#allocation5 + $0xc08] sm:$0xff]  ;;  %v321_v13 = vld [vmem:[#allocation5 + $0x110] sm:$0xff] }
 0x193   :  { %3275 = vmatprep.subr.bf16.mxu1 %v16665_v36  ;;  %v16737_v36 = vcombine.high %v624_v23, %v628_v24  ;;  %v676_v47 = vld [vmem:[#allocation5 + $0xc28] sm:$0xff]  ;;  %v325_v14 = vld [vmem:[#allocation5 + $0x130] sm:$0xff] }
 0x194   :  { %3251 = vmatpush2.bf16.msra.mxu0 %v16600_v40  ;;  %v16800_v40 = vcombine.low %v688_v25, %v692_v27  ;;  %v441_v25 = vld [vmem:[#allocation5 + $0x4d0] sm:$0xff] }
 0x195   :  { %3252 = vmatprep.subr.bf16.mxu0 %v16593_v42  ;;  %v16793_v42 = vcombine.high %v680_v35, %v684_v37  ;;  %v445_v27 = vld [vmem:[#allocation5 + $0x4f0] sm:$0xff] }
 0x196   :  { %3276 = vmatpush1.bf16.msra.mxu1 %v16664_v41  ;;  %v16736_v41 = vcombine.low %v624_v23, %v628_v24  ;;  %v313_v23 = vld [vmem:[#allocation5 + $0xd0] sm:$0xff] }
 0x197   :  { %3277 = vmatprep.subr.bf16.mxu1 %v16657_v46  ;;  %v16729_v46 = vcombine.high %v616_v33, %v620_v34  ;;  %v317_v24 = vld [vmem:[#allocation5 + $0xf0] sm:$0xff] }
 0x198   :  { %3253 = vmatpush2.bf16.msra.mxu0 %v16592_v48  ;;  %v16792_v48 = vcombine.low %v680_v35, %v684_v37  ;;  %v433_v35 = vld [vmem:[#allocation5 + $0x490] sm:$0xff] }
 0x199   :  { %3304 = vmatprep.subr.bf16.mxu0 %v16841_v50  ;;  %v16785_v50 = vcombine.high %v672_v45, %v676_v47  ;;  %v437_v37 = vld [vmem:[#allocation5 + $0x4b0] sm:$0xff] }
 0x19a   :  { %3278 = vmatpush1.bf16.msra.mxu1 %v16656_v49  ;;  %v16728_v49 = vcombine.low %v616_v33, %v620_v34  ;;  %v305_v33 = vld [vmem:[#allocation5 + $0x90] sm:$0xff] }
 0x19b   :  { %3279 = vmatprep.subr.bf16.mxu1 %v16777_v54  ;;  %3255 = vmatmul.mubr.bf16.vlgmr.msra.gmra.mxu0 %v20048_v19  ;;  %v16721_v54 = vcombine.high %v608_v43, %v612_v44  ;;  %v309_v34 = vld [vmem:[#allocation5 + $0xb0] sm:$0xff] }
 0x19c   :  { %3305 = vmatpush1.bf16.msra.mxu0 %v16840_v56  ;;  %3336 = vmatprep.mubr.bf16.mxu0 %v19877_v38  ;;  %v16784_v56 = vcombine.low %v672_v45, %v676_v47  ;;  %v425_v45 = vld [vmem:[#allocation5 + $0x450] sm:$0xff] }
 0x19d   :  { %3306 = vmatprep.subr.bf16.mxu0 %v16833_v60  ;;  %v16459_v60 = vcombine.high %v345_v51, %v349_v52  ;;  %v429_v47 = vld [vmem:[#allocation5 + $0x470] sm:$0xff] }
 0x19e   :  { %3280 = vmatpush2.bf16.msra.mxu1 %v16776_v57  ;;  %v16720_v57 = vcombine.low %v608_v43, %v612_v44  ;;  %v297_v43 = vld [vmem:[#allocation5 + $0x50] sm:$0xff] }
 0x19f   :  { %3281 = vmatprep.subr.bf16.mxu1 %v16769_v0  ;;  %v16587_v0 = vcombine.high %v473_v53, %v477_v55  ;;  %v301_v44 = vld [vmem:[#allocation5 + $0x70] sm:$0xff] }
 0x1a0   :  { %3307 = vmatpush1.bf16.msra.mxu0 %v16832_v2  ;;  %v16458_v2 = vcombine.low %v345_v51, %v349_v52  ;;  %v16411_v51 = vcombine.high %v297_v43, %v301_v44  ;;  %v289_v52 = vld [vmem:[#allocation5 + $0x10] sm:$0xff] }
 0x1a1   :  { %3308 = vmatprep.subr.bf16.mxu0 %v16825_v4  ;;  %v16451_v4 = vcombine.high %v337_v61, %v341_v62 }
 0x1a2   :  { %3282 = vmatpush2.bf16.msra.mxu1 %v16768_v3  ;;  %v16586_v3 = vcombine.low %v473_v53, %v477_v55  ;;  %v293_v53 = vld [vmem:[#allocation5 + $0x30] sm:$0xff]  ;;  %v16539_v55 = vcombine.high %v425_v45, %v429_v47 }
 0x1a3   :  { %3283 = vmatprep.subr.bf16.mxu1 %v16761_v8  ;;  %v16579_v8 = vcombine.high %v465_v63, %v469_v1 }
 0x1a4   :  { %3309 = vmatpush1.bf16.msra.mxu0 %v16824_v10  ;;  %v16450_v10 = vcombine.low %v337_v61, %v341_v62  ;;  %v16538_v61 = vcombine.low %v425_v45, %v429_v47  ;;  %v16403_v62 = vcombine.high %v289_v52, %v293_v53  ;;  %v517_v45 = vld [vmem:[#allocation5 + $0x730] sm:$0xff] }
 0x1a5   :  { %3310 = vmatprep.subr.bf16.mxu0 %v16817_v12  ;;  %v16443_v12 = vcombine.high %v329_v5, %v333_v6 }
 0x1a6   :  { %3284 = vmatpush2.bf16.msra.mxu1 %v16760_v11  ;;  %v16578_v11 = vcombine.low %v465_v63, %v469_v1  ;;  %v409_v63 = vld [vmem:[#allocation5 + $0x3d0] sm:$0xff] }
 0x1a7   :  { %3285 = vmatprep.subr.bf16.mxu1 %v16753_v17  ;;  %v16571_v17 = vcombine.high %v457_v7, %v461_v9  ;;  %v537_v1 = vld [vmem:[#allocation5 + $0x7d0] sm:$0xff] }
 0x1a8   :  { %3311 = vmatpush1.bf16.msra.mxu0 %v16816_v20  ;;  %v16442_v20 = vcombine.low %v329_v5, %v333_v6  ;;  %v16402_v5 = vcombine.low %v289_v52, %v293_v53  ;;  %v377_v53 = vld [vmem:[#allocation5 + $0x2d0] sm:$0xff] }
 0x1a9   :  { %3312 = vmatprep.subr.bf16.mxu0 %v16809_v22  ;;  %v16435_v22 = vcombine.high %v321_v13, %v325_v14 }
 0x1aa   :  { %3286 = vmatpush2.bf16.msra.mxu1 %v16752_v21  ;;  %v16570_v21 = vcombine.low %v457_v7, %v461_v9  ;;  %v401_v9 = vld [vmem:[#allocation5 + $0x390] sm:$0xff] }
 0x1ab   :  { %3287 = vmatprep.subr.bf16.mxu1 %v16745_v26  ;;  %v16563_v26 = vcombine.high %v449_v15, %v453_v18 }
 0x1ac   :  { %3313 = vmatpush1.bf16.msra.mxu0 %v16808_v28  ;;  %v16434_v28 = vcombine.low %v321_v13, %v325_v14  ;;  %v533_v14 = vld [vmem:[#allocation5 + $0x7b0] sm:$0xff] }
 0x1ad   :  { %3314 = vmatprep.subr.bf16.mxu0 %v16801_v32  ;;  %v16427_v32 = vcombine.high %v313_v23, %v317_v24 }
 0x1ae   :  { %3288 = vmatpush2.bf16.msra.mxu1 %v16744_v31  ;;  %v16562_v31 = vcombine.low %v449_v15, %v453_v18 }
 0x1af   :  { %3289 = vmatprep.subr.bf16.mxu1 %v16737_v36  ;;  %v16555_v36 = vcombine.high %v441_v25, %v445_v27 }
 0x1b0   :  { %3315 = vmatpush1.bf16.msra.mxu0 %v16800_v40  ;;  %v16426_v40 = vcombine.low %v313_v23, %v317_v24  ;;  %v521_v23 = vld [vmem:[#allocation5 + $0x750] sm:$0xff] }
 0x1b1   :  { %3316 = vmatprep.subr.bf16.mxu0 %v16793_v42  ;;  %v16419_v42 = vcombine.high %v305_v33, %v309_v34 }
 0x1b2   :  { %3290 = vmatpush2.bf16.msra.mxu1 %v16736_v41  ;;  %v16554_v41 = vcombine.low %v441_v25, %v445_v27 }
 0x1b3   :  { %3291 = vmatprep.subr.bf16.mxu1 %v16729_v46  ;;  %v16547_v46 = vcombine.high %v433_v35, %v437_v37 }
 0x1b4   :  { %3317 = vmatpush1.bf16.msra.mxu0 %v16792_v48  ;;  %v16418_v48 = vcombine.low %v305_v33, %v309_v34 }
 0x1b5   :  { %3318 = vmatprep.subr.bf16.mxu0 %v16785_v50  ;;  %v16546_v50 = vcombine.low %v433_v35, %v437_v37  ;;  %v389_v37 = vld [vmem:[#allocation5 + $0x330] sm:$0xff] }
 0x1b6   :  { %3292 = vmatpush2.bf16.msra.mxu1 %v16728_v49  ;;  %v737_v49 = vlaneseq }
 0x1b7   :  { %3293 = vmatprep.subr.bf16.mxu1 %v16721_v54  ;;  %v417_v54 = vld [vmem:[#allocation5 + $0x410] sm:$0xff] }
 0x1b8   :  { %3319 = vmatpush1.bf16.msra.mxu0 %v16784_v56  ;;  %v421_v56 = vld [vmem:[#allocation5 + $0x430] sm:$0xff] }
 0x1b9   :  { %3345 = vmatprep.subr.bf16.mxu0 %v16459_v60  ;;  %v20072_v60 = vshrl.u32 %v737_v49, 7  ;;  %v16530_v7 = vcombine.low %v417_v54, %v421_v56 }
 0x1ba   :  { %3294 = vmatpush2.bf16.msra.mxu1 %v16720_v57  ;;  %v16410_v57 = vcombine.low %v297_v43, %v301_v44 }
 0x1bb   :  { %3386 = vmatprep.subr.bf16.mxu1 %v16587_v0  ;;  %3337 = vmatmul.mubr.bf16.vlgmr.msra.gmra.mxu0 %v20056_v30  ;;  %v413_v0 = vld [vmem:[#allocation5 + $0x3f0] sm:$0xff]  ;;  %v20075_v6 = vsub.s32 0, %v20072_v60  ;;  %v20078_v13 = vsub.s32 1, %v20072_v60 }
 0x1bc   :  { %3346 = vmatpush1.bf16.msra.mxu0 %v16458_v2  ;;  %3377 = vmatprep.mubr.bf16.mxu0 %v20040_v58  ;;  %v16531_v2 = vcombine.high %v417_v54, %v421_v56  ;;  %v381_v54 = vld [vmem:[#allocation5 + $0x2f0] sm:$0xff] }
 0x1bd   :  { %3296 = vmatmul.mubr.bf16.vlgmr.msra.gmra.mxu1 %v20060_v39  ;;  %3347 = vmatprep.subr.bf16.mxu0 %v16451_v4  ;;  %v735_v4 = vld [vmem:[#allocation7] sm:$0xff] }
 0x1be   :  { %3387 = vmatpush1.bf16.msra.mxu1 %v16586_v3  ;;  %3418 = vmatprep.mubr.bf16.mxu1 %v20042_v59  ;;  %v541_v3 = vld [vmem:[#allocation5 + $0x7f0] sm:$0xff]  ;;  %v740_v15 = vrot.slane %v735_v4, %v20075_v6  ;;  %v744_v24 = vrot.slane %v735_v4, %v20078_v13 }
 0x1bf   :  { %3388 = vmatprep.subr.bf16.mxu1 %v16579_v8  ;;  %v16523_v8 = vcombine.high %v409_v63, %v413_v0  ;;  %v16650_v18 = vcombine.low %v537_v1, %v541_v3 }
 0x1c0   :  { %3348 = vmatpush1.bf16.msra.mxu0 %v16450_v10  ;;  %v405_v10 = vld [vmem:[#allocation5 + $0x3b0] sm:$0xff] }
 0x1c1   :  { %3349 = vmatprep.subr.bf16.mxu0 %v16443_v12  ;;  %v16651_v12 = vcombine.high %v537_v1, %v541_v3  ;;  %v369_v1 = vld [vmem:[#allocation5 + $0x290] sm:$0xff] }
 0x1c2   :  { %3389 = vmatpush1.bf16.msra.mxu1 %v16578_v11  ;;  %v529_v11 = vld [vmem:[#allocation5 + $0x790] sm:$0xff] }
 0x1c3   :  { %3390 = vmatprep.subr.bf16.mxu1 %v16571_v17  ;;  %v16522_v17 = vcombine.low %v409_v63, %v413_v0  ;;  %v16643_v25 = vcombine.high %v529_v11, %v533_v14  ;;  %v16642_v34 = vcombine.low %v529_v11, %v533_v14  ;;  %v16491_v0 = vcombine.high %v377_v53, %v381_v54  ;;  %v497_v3 = vld [vmem:[#allocation5 + $0x690] sm:$0xff] }
 0x1c4   :  { %3350 = vmatpush1.bf16.msra.mxu0 %v16442_v20  ;;  %v16515_v20 = vcombine.high %v401_v9, %v405_v10  ;;  %v365_v11 = vld [vmem:[#allocation5 + $0x270] sm:$0xff] }
 0x1c5   :  { %3351 = vmatprep.subr.bf16.mxu0 %v16435_v22  ;;  %v397_v22 = vld [vmem:[#allocation5 + $0x370] sm:$0xff] }
 0x1c6   :  { %3391 = vmatpush1.bf16.msra.mxu1 %v16570_v21  ;;  %v393_v21 = vld [vmem:[#allocation5 + $0x350] sm:$0xff] }
 0x1c7   :  { %3392 = vmatprep.subr.bf16.mxu1 %v16563_v26  ;;  %v525_v26 = vld [vmem:[#allocation5 + $0x770] sm:$0xff]  ;;  %v16507_v35 = vcombine.high %v393_v21, %v397_v22  ;;  %v16506_v49 = vcombine.low %v393_v21, %v397_v22 }
 0x1c8   :  { %3352 = vmatpush1.bf16.msra.mxu0 %v16434_v28  ;;  %v16635_v44 = vcombine.high %v521_v23, %v525_v26  ;;  %v353_v21 = vld [vmem:[#allocation5 + $0x210] sm:$0xff] }
 0x1c9   :  { %3353 = vmatprep.subr.bf16.mxu0 %v16427_v32  ;;  %v16514_v32 = vcombine.low %v401_v9, %v405_v10  ;;  %v361_v10 = vld [vmem:[#allocation5 + $0x250] sm:$0xff] }
 0x1ca   :  { %3393 = vmatpush1.bf16.msra.mxu1 %v16562_v31  ;;  %v357_v22 = vld [vmem:[#allocation5 + $0x230] sm:$0xff] }
 0x1cb   :  { %3394 = vmatprep.subr.bf16.mxu1 %v16555_v36  ;;  %v385_v36 = vld [vmem:[#allocation5 + $0x310] sm:$0xff] }
 0x1cc   :  { %3354 = vmatpush1.bf16.msra.mxu0 %v16426_v40  ;;  %v513_v40 = vld [vmem:[#allocation5 + $0x710] sm:$0xff]  ;;  %v16499_v52 = vcombine.high %v385_v36, %v389_v37 }
 0x1cd   :  { %3355 = vmatprep.subr.bf16.mxu0 %v16419_v42  ;;  %v16626_v63 = vcombine.low %v513_v40, %v517_v45 }
 0x1ce   :  { %3395 = vmatpush1.bf16.msra.mxu1 %v16554_v41 }
 0x1cf   :  { %3396 = vmatprep.subr.bf16.mxu1 %v16547_v46 }
 0x1d0   :  { %3356 = vmatpush1.bf16.msra.mxu0 %v16418_v48 }
 0x1d1   :  { %3357 = vmatprep.subr.bf16.mxu0 %v16411_v51  ;;  %v16634_v51 = vcombine.low %v521_v23, %v525_v26  ;;  %v481_v23 = vld [vmem:[#allocation5 + $0x610] sm:$0xff]  ;;  %v16474_v26 = vcombine.low %v361_v10, %v365_v11 }
 0x1d2   :  { %3397 = vmatpush1.bf16.msra.mxu1 %v16546_v50 }
 0x1d3   :  { %3398 = vmatprep.subr.bf16.mxu1 %v16539_v55  ;;  %v505_v55 = vld [vmem:[#allocation5 + $0x6d0] sm:$0xff] }
 0x1d4   :  { %3358 = vmatpush1.bf16.msra.mxu0 %v16410_v57  ;;  %v16627_v57 = vcombine.high %v513_v40, %v517_v45 }
 0x1d5   :  { %3359 = vmatprep.subr.bf16.mxu0 %v16403_v62  ;;  %v16498_v62 = vcombine.low %v385_v36, %v389_v37  ;;  %v16466_v36 = vcombine.low %v353_v21, %v357_v22 }
 0x1d6   :  { %3399 = vmatpush1.bf16.msra.mxu1 %v16538_v61  ;;  %v509_v61 = vld [vmem:[#allocation5 + $0x6f0] sm:$0xff] }
 0x1d7   :  { %3400 = vmatprep.subr.bf16.mxu1 %v16531_v2  ;;  %v373_v2 = vld [vmem:[#allocation5 + $0x2b0] sm:$0xff]  ;;  %v16619_v4 = vcombine.high %v505_v55, %v509_v61 }
 0x1d8   :  { %3360 = vmatpush1.bf16.msra.mxu0 %v16402_v5  ;;  %v501_v5 = vld [vmem:[#allocation5 + $0x6b0] sm:$0xff]  ;;  %v16483_v9 = vcombine.high %v369_v1, %v373_v2 }
 0x1d9   :  { %3361 = vmatprep.subr.bf16.mxu0 %v16523_v8  ;;  %v16618_v8 = vcombine.low %v505_v55, %v509_v61  ;;  %v16611_v14 = vcombine.high %v497_v3, %v501_v5  ;;  %v717_v55 = vld [vmem:[#allocation5 + $0xd70] sm:$0xff] }
 0x1da   :  { %3401 = vmatpush1.bf16.msra.mxu1 %v16530_v7  ;;  %v16490_v7 = vcombine.low %v377_v53, %v381_v54  ;;  %v713_v53 = vld [vmem:[#allocation5 + $0xd50] sm:$0xff] }
 0x1db   :  { %3402 = vmatprep.subr.bf16.mxu1 %v16651_v12  ;;  %v3051_v27 = vpop.f32.mrf.mxu0  ;;  %v489_v12 = vld [vmem:[#allocation5 + $0x650] sm:$0xff] }
 0x1dc   :  { %v3052_v28 = vadd.f32 %v3051_v27, %v740_v15  ;;  %3362 = vmatpush2.bf16.msra.mxu0 %v16522_v17  ;;  %v493_v15 = vld [vmem:[#allocation5 + $0x670] sm:$0xff]  ;;  %v16482_v17 = vcombine.low %v369_v1, %v373_v2 }
 0x1dd   :  { %v3092_v31 = vpop.f32.mrf.mxu1  ;;  %v3053_v33 = vpop.f32.mrf.mxu0  ;;  %3363 = vmatprep.subr.bf16.mxu0 %v16515_v20  ;;  %v16475_v20 = vcombine.high %v361_v10, %v365_v11  ;;  %v16602_v27 = vcombine.low %v489_v12, %v493_v15  ;;  %v705_v1 = vld [vmem:[#allocation5 + $0xd10] sm:$0xff] }
 0x1de   :  { %3403 = vmatpush2.bf16.msra.mxu1 %v16650_v18  ;;  %v20082_v41 = vadd.f32 %v3092_v31, %v3052_v28  ;;  %v3054_v42 = vadd.f32 %v3053_v33, %v744_v24  ;;  %v16610_v18 = vcombine.low %v497_v3, %v501_v5  ;;  %v16603_v24 = vcombine.high %v489_v12, %v493_v15  ;;  %v601_v31 = vld [vmem:[#allocation5 + $0x9d0] sm:$0xff] }
 0x1df   :  { %v3094_v43 = vpop.f32.mrf.mxu1  ;;  %3404 = vmatprep.subr.bf16.mxu1 %v16643_v25  ;;  %v3055_v46 = vpop.f32.mrf.mxu0  ;;  %v485_v25 = vld [vmem:[#allocation5 + $0x630] sm:$0xff]  ;;  %v16467_v28 = vcombine.high %v353_v21, %v357_v22  ;;  %v16827_v3 = vcombine.high %v713_v53, %v717_v55 }
 0x1e0   :  { %v20084_v47 = vadd.f32 %v3094_v43, %v3054_v42  ;;  %3364 = vmatpush2.bf16.msra.mxu0 %v16514_v32  ;;  %v605_v32 = vld [vmem:[#allocation5 + $0x9f0] sm:$0xff]  ;;  %v16594_v37 = vcombine.low %v481_v23, %v485_v25 }
 0x1e1   :  { %v3096_v48 = vpop.f32.mrf.mxu1  ;;  %v3056_v50 = vpop.f32.mrf.mxu0  ;;  %3365 = vmatprep.subr.bf16.mxu0 %v16507_v35  ;;  %v729_v33 = vld [vmem:[#allocation5 + $0xdd0] sm:$0xff]  ;;  %v16715_v40 = vcombine.high %v601_v31, %v605_v32 }
 0x1e2   :  { %3405 = vmatpush2.bf16.msra.mxu1 %v16642_v34  ;;  %v16595_v34 = vcombine.high %v481_v23, %v485_v25  ;;  %v733_v35 = vld [vmem:[#allocation5 + $0xdf0] sm:$0xff]  ;;  %v16714_v48 = vcombine.low %v601_v31, %v605_v32 }
 0x1e3   :  { %v3097_v56 = vpop.f32.mrf.mxu1  ;;  %3406 = vmatprep.subr.bf16.mxu1 %v16635_v44  ;;  %v593_v42 = vld [vmem:[#allocation5 + $0x990] sm:$0xff]  ;;  %v16843_v45 = vcombine.high %v729_v33, %v733_v35 }
 0x1e4   :  { %3366 = vmatpush2.bf16.msra.mxu0 %v16506_v49  ;;  %v597_v43 = vld [vmem:[#allocation5 + $0x9b0] sm:$0xff]  ;;  %v16842_v49 = vcombine.low %v729_v33, %v733_v35 }
 0x1e5   :  { %3367 = vmatprep.subr.bf16.mxu0 %v16499_v52  ;;  %v721_v44 = vld [vmem:[#allocation5 + $0xd90] sm:$0xff]  ;;  %v16707_v50 = vcombine.high %v593_v42, %v597_v43 }
 0x1e6   :  { %3407 = vmatpush2.bf16.msra.mxu1 %v16634_v51  ;;  %v725_v46 = vld [vmem:[#allocation5 + $0xdb0] sm:$0xff] }
 0x1e7   :  { %3408 = vmatprep.subr.bf16.mxu1 %v16627_v57  ;;  %v585_v51 = vld [vmem:[#allocation5 + $0x950] sm:$0xff]  ;;  %v16835_v54 = vcombine.high %v721_v44, %v725_v46  ;;  %v16706_v57 = vcombine.low %v593_v42, %v597_v43  ;;  %v16834_v61 = vcombine.low %v721_v44, %v725_v46 }
 0x1e8   :  { %3368 = vmatpush2.bf16.msra.mxu0 %v16498_v62  ;;  %v589_v52 = vld [vmem:[#allocation5 + $0x970] sm:$0xff] }
 0x1e9   :  { %3369 = vmatprep.subr.bf16.mxu0 %v16491_v0  ;;  %v16699_v62 = vcombine.high %v585_v51, %v589_v52  ;;  %v581_v0 = vld [vmem:[#allocation5 + $0x930] sm:$0xff] }
 0x1ea   :  { %3409 = vmatpush2.bf16.msra.mxu1 %v16626_v63  ;;  %v577_v63 = vld [vmem:[#allocation5 + $0x910] sm:$0xff] }
 0x1eb   :  { %3410 = vmatprep.subr.bf16.mxu1 %v16619_v4  ;;  %v709_v4 = vld [vmem:[#allocation5 + $0xd30] sm:$0xff] }
 0x1ec   :  { %3370 = vmatpush2.bf16.msra.mxu0 %v16490_v7  ;;  %v16698_v7 = vcombine.low %v585_v51, %v589_v52  ;;  %v569_v10 = vld [vmem:[#allocation5 + $0x8d0] sm:$0xff]  ;;  %v16819_v15 = vcombine.high %v705_v1, %v709_v4 }
 0x1ed   :  { %3371 = vmatprep.subr.bf16.mxu0 %v16483_v9  ;;  %v16691_v9 = vcombine.high %v577_v63, %v581_v0  ;;  %v573_v11 = vld [vmem:[#allocation5 + $0x8f0] sm:$0xff] }
 0x1ee   :  { %3411 = vmatpush2.bf16.msra.mxu1 %v16618_v8  ;;  %v16826_v8 = vcombine.low %v713_v53, %v717_v55  ;;  %v697_v12 = vld [vmem:[#allocation5 + $0xcd0] sm:$0xff]  ;;  %v16683_v21 = vcombine.high %v569_v10, %v573_v11 }
 0x1ef   :  { %3412 = vmatprep.subr.bf16.mxu1 %v16611_v14  ;;  %v561_v22 = vld [vmem:[#allocation5 + $0x890] sm:$0xff] }
 0x1f0   :  { %3372 = vmatpush2.bf16.msra.mxu0 %v16482_v17  ;;  %v701_v17 = vld [vmem:[#allocation5 + $0xcf0] sm:$0xff] }
 0x1f1   :  { %3373 = vmatprep.subr.bf16.mxu0 %v16475_v20  ;;  %v16818_v20 = vcombine.low %v705_v1, %v709_v4  ;;  %v565_v23 = vld [vmem:[#allocation5 + $0x8b0] sm:$0xff]  ;;  %v16811_v25 = vcombine.high %v697_v12, %v701_v17 }
 0x1f2   :  { %3413 = vmatpush2.bf16.msra.mxu1 %v16610_v18  ;;  %v16690_v18 = vcombine.low %v577_v63, %v581_v0  ;;  %v16675_v31 = vcombine.high %v561_v22, %v565_v23  ;;  %v553_v32 = vld [vmem:[#allocation5 + $0x850] sm:$0xff] }
 0x1f3   :  { %3414 = vmatprep.subr.bf16.mxu1 %v16603_v24  ;;  %v689_v24 = vld [vmem:[#allocation5 + $0xc90] sm:$0xff] }
 0x1f4   :  { %3374 = vmatpush2.bf16.msra.mxu0 %v16474_v26  ;;  %v693_v26 = vld [vmem:[#allocation5 + $0xcb0] sm:$0xff] }
 0x1f5   :  { %3375 = vmatprep.subr.bf16.mxu0 %v16467_v28  ;;  %v16810_v28 = vcombine.low %v697_v12, %v701_v17  ;;  %v557_v33 = vld [vmem:[#allocation5 + $0x870] sm:$0xff]  ;;  %v16803_v35 = vcombine.high %v689_v24, %v693_v26  ;;  %v330_v12 = vld [vmem:[#allocation5 + $0x158] sm:$0xff] }
 0x1f6   :  { %3415 = vmatpush2.bf16.msra.mxu1 %v16602_v27  ;;  %v16682_v27 = vcombine.low %v569_v10, %v573_v11  ;;  %v16667_v42 = vcombine.high %v553_v32, %v557_v33  ;;  %v545_v43 = vld [vmem:[#allocation5 + $0x810] sm:$0xff] }
 0x1f7   :  { %3416 = vmatprep.subr.bf16.mxu1 %v16595_v34  ;;  %v681_v34 = vld [vmem:[#allocation5 + $0xc50] sm:$0xff] }
 0x1f8   :  { %3376 = vmatpush2.bf16.msra.mxu0 %v16466_v36  ;;  %v685_v36 = vld [vmem:[#allocation5 + $0xc70] sm:$0xff] }
 0x1f9   :  { %3427 = vmatprep.subr.bf16.mxu0 %v16715_v40  ;;  %v16802_v40 = vcombine.low %v689_v24, %v693_v26  ;;  %v549_v44 = vld [vmem:[#allocation5 + $0x830] sm:$0xff]  ;;  %v16795_v46 = vcombine.high %v681_v34, %v685_v36 }
 0x1fa   :  { %3417 = vmatpush2.bf16.msra.mxu1 %v16594_v37  ;;  %v16674_v37 = vcombine.low %v561_v22, %v565_v23  ;;  %v16659_v51 = vcombine.high %v545_v43, %v549_v44  ;;  %v665_v52 = vld [vmem:[#allocation5 + $0xbd0] sm:$0xff] }
 0x1fb   :  { %3468 = vmatprep.subr.bf16.mxu1 %v16843_v45  ;;  %3378 = vmatmul.mubr.bf16.vlgmr.msra.gmra.mxu0 %v20046_v16  ;;  %v673_v45 = vld [vmem:[#allocation5 + $0xc10] sm:$0xff] }
 0x1fc   :  { %3428 = vmatpush1.bf16.msra.mxu0 %v16714_v48  ;;  %3459 = vmatprep.mubr.bf16.mxu0 %v20051_v29  ;;  %v677_v48 = vld [vmem:[#allocation5 + $0xc30] sm:$0xff] }
 0x1fd   :  { %v20087_v56 = vpop.f32.mrf.mxu1  ;;  %3419 = vmatmul.mubr.bf16.vlgmr.msra.gmra.mxu1 %v20048_v19  ;;  %3429 = vmatprep.subr.bf16.mxu0 %v16707_v50  ;;  %v16794_v50 = vcombine.low %v681_v34, %v685_v36  ;;  %v669_v53 = vld [vmem:[#allocation5 + $0xbf0] sm:$0xff]  ;;  %v16787_v55 = vcombine.high %v673_v45, %v677_v48 }
 0x1fe   :  { %3469 = vmatpush1.bf16.msra.mxu1 %v16842_v49  ;;  %3500 = vmatprep.mubr.bf16.mxu1 %v19877_v38  ;;  %v16666_v49 = vcombine.low %v553_v32, %v557_v33  ;;  %v16779_v63 = vcombine.high %v665_v52, %v669_v53  ;;  %v657_v0 = vld [vmem:[#allocation5 + $0xb90] sm:$0xff]  ;;  %v326_v32 = vld [vmem:[#allocation5 + $0x138] sm:$0xff] }
 0x1ff   :  { %v20090_v2 = vpop.f32.mrf.mxu1  ;;  %3470 = vmatprep.subr.bf16.mxu1 %v16835_v54  ;;  %v346_v54 = vld [vmem:[#allocation5 + $0x1d8] sm:$0xff]  ;;  %v661_v1 = vld [vmem:[#allocation5 + $0xbb0] sm:$0xff] }
 0x200   :  { %3430 = vmatpush1.bf16.msra.mxu0 %v16706_v57  ;;  %v350_v57 = vld [vmem:[#allocation5 + $0x1f8] sm:$0xff]  ;;  %v649_v10 = vld [vmem:[#allocation5 + $0xb50] sm:$0xff] }
 0x201   :  { %v3178_v5 = vpop.f32.mrf.mxu1  ;;  %3431 = vmatprep.subr.bf16.mxu0 %v16699_v62  ;;  %v16786_v62 = vcombine.low %v673_v45, %v677_v48  ;;  %v16461_v4 = vcombine.high %v346_v54, %v350_v57  ;;  %v653_v11 = vld [vmem:[#allocation5 + $0xb70] sm:$0xff]  ;;  %v306_v48 = vld [vmem:[#allocation5 + $0x98] sm:$0xff] }
 0x202   :  { %3471 = vmatpush1.bf16.msra.mxu1 %v16834_v61  ;;  %v16658_v61 = vcombine.low %v545_v43, %v549_v44  ;;  %v342_v5 = vld [vmem:[#allocation5 + $0x1b8] sm:$0xff]  ;;  %v16763_v23 = vcombine.high %v649_v10, %v653_v11  ;;  %v16762_v34 = vcombine.low %v649_v10, %v653_v11  ;;  %v625_v45 = vld [vmem:[#allocation5 + $0xa90] sm:$0xff] }
 0x203   :  { %v3179_v14 = vpop.f32.mrf.mxu1  ;;  %3472 = vmatprep.subr.bf16.mxu1 %v16827_v3  ;;  %v338_v3 = vld [vmem:[#allocation5 + $0x198] sm:$0xff] }
 0x204   :  { %3432 = vmatpush1.bf16.msra.mxu0 %v16698_v7  ;;  %v16778_v7 = vcombine.low %v665_v52, %v669_v53  ;;  %v16453_v14 = vcombine.high %v338_v3, %v342_v5  ;;  %v16452_v22 = vcombine.low %v338_v3, %v342_v5  ;;  %v318_v43 = vld [vmem:[#allocation5 + $0xf8] sm:$0xff]  ;;  %v609_v3 = vld [vmem:[#allocation5 + $0xa10] sm:$0xff] }
 0x205   :  { %3433 = vmatprep.subr.bf16.mxu0 %v16691_v9  ;;  %v16771_v9 = vcombine.high %v657_v0, %v661_v1  ;;  %v290_v5 = vld [vmem:[#allocation5 + $0x18] sm:$0xff] }
 0x206   :  { %3473 = vmatpush1.bf16.msra.mxu1 %v16826_v8  ;;  %v16460_v8 = vcombine.low %v346_v54, %v350_v57  ;;  %v617_v54 = vld [vmem:[#allocation5 + $0xa50] sm:$0xff]  ;;  %v298_v57 = vld [vmem:[#allocation5 + $0x58] sm:$0xff] }
 0x207   :  { %3474 = vmatprep.subr.bf16.mxu1 %v16819_v15  ;;  %v334_v15 = vld [vmem:[#allocation5 + $0x178] sm:$0xff] }
 0x208   :  { %3434 = vmatpush1.bf16.msra.mxu0 %v16690_v18  ;;  %v16445_v26 = vcombine.high %v330_v12, %v334_v15 }
 0x209   :  { %3435 = vmatprep.subr.bf16.mxu0 %v16683_v21 }
 0x20a   :  { %3475 = vmatpush1.bf16.msra.mxu1 %v16818_v20  ;;  %v16770_v20 = vcombine.low %v657_v0, %v661_v1 }
 0x20b   :  { %3476 = vmatprep.subr.bf16.mxu1 %v16811_v25 }
 0x20c   :  { %3436 = vmatpush1.bf16.msra.mxu0 %v16682_v27  ;;  %v641_v27 = vld [vmem:[#allocation5 + $0xb10] sm:$0xff] }
 0x20d   :  { %3437 = vmatprep.subr.bf16.mxu0 %v16675_v31  ;;  %v322_v31 = vld [vmem:[#allocation5 + $0x118] sm:$0xff] }
 0x20e   :  { %3477 = vmatpush1.bf16.msra.mxu1 %v16810_v28  ;;  %v645_v28 = vld [vmem:[#allocation5 + $0xb30] sm:$0xff]  ;;  %v16436_v44 = vcombine.low %v322_v31, %v326_v32 }
 0x20f   :  { %3478 = vmatprep.subr.bf16.mxu1 %v16803_v35  ;;  %v16755_v36 = vcombine.high %v641_v27, %v645_v28 }
 0x210   :  { %3438 = vmatpush1.bf16.msra.mxu0 %v16674_v37  ;;  %v637_v37 = vld [vmem:[#allocation5 + $0xaf0] sm:$0xff] }
 0x211   :  { %3439 = vmatprep.subr.bf16.mxu0 %v16667_v42  ;;  %v314_v42 = vld [vmem:[#allocation5 + $0xd8] sm:$0xff] }
 0x212   :  { %3479 = vmatpush1.bf16.msra.mxu1 %v16802_v40  ;;  %v16437_v40 = vcombine.high %v322_v31, %v326_v32  ;;  %v16428_v52 = vcombine.low %v314_v42, %v318_v43 }
 0x213   :  { %3480 = vmatprep.subr.bf16.mxu1 %v16795_v46  ;;  %v629_v46 = vld [vmem:[#allocation5 + $0xab0] sm:$0xff] }
 0x214   :  { %3440 = vmatpush1.bf16.msra.mxu0 %v16666_v49  ;;  %v16429_v49 = vcombine.high %v314_v42, %v318_v43  ;;  %v16739_v53 = vcombine.high %v625_v45, %v629_v46 }
 0x215   :  { %3441 = vmatprep.subr.bf16.mxu0 %v16659_v51 }
 0x216   :  { %3481 = vmatpush1.bf16.msra.mxu1 %v16794_v50  ;;  %v310_v50 = vld [vmem:[#allocation5 + $0xb8] sm:$0xff] }
 0x217   :  { %3482 = vmatprep.subr.bf16.mxu1 %v16787_v55  ;;  %v621_v55 = vld [vmem:[#allocation5 + $0xa70] sm:$0xff]  ;;  %v16420_v0 = vcombine.low %v306_v48, %v310_v50 }
 0x218   :  { %3442 = vmatpush1.bf16.msra.mxu0 %v16658_v61  ;;  %v16421_v61 = vcombine.high %v306_v48, %v310_v50  ;;  %v16731_v1 = vcombine.high %v617_v54, %v621_v55  ;;  %v390_v48 = vld [vmem:[#allocation5 + $0x338] sm:$0xff] }
 0x219   :  { %3443 = vmatprep.subr.bf16.mxu0 %v16779_v63  ;;  %v16738_v63 = vcombine.low %v625_v45, %v629_v46  ;;  %v450_v45 = vld [vmem:[#allocation5 + $0x518] sm:$0xff] }
 0x21a   :  { %3483 = vmatpush1.bf16.msra.mxu1 %v16786_v62  ;;  %v302_v62 = vld [vmem:[#allocation5 + $0x78] sm:$0xff] }
 0x21b   :  { %3509 = vmatprep.subr.bf16.mxu1 %v16461_v4  ;;  %v3133_v17 = vpop.f32.mrf.mxu0  ;;  %v613_v4 = vld [vmem:[#allocation5 + $0xa30] sm:$0xff]  ;;  %v16412_v10 = vcombine.low %v298_v57, %v302_v62  ;;  %v454_v46 = vld [vmem:[#allocation5 + $0x538] sm:$0xff] }
 0x21c   :  { %v3134_v18 = vadd.f32 %v3133_v17, %v20082_v41  ;;  %3444 = vmatpush2.bf16.msra.mxu0 %v16778_v7  ;;  %v16413_v7 = vcombine.high %v298_v57, %v302_v62  ;;  %v16723_v11 = vcombine.high %v609_v3, %v613_v4  ;;  %v446_v57 = vld [vmem:[#allocation5 + $0x4f8] sm:$0xff]  ;;  %v16564_v62 = vcombine.low %v450_v45, %v454_v46 }
 0x21d   :  { %3501 = vmatmul.mubr.bf16.vlgmr.msra.gmra.mxu1 %v20056_v30  ;;  %v3135_v21 = vpop.f32.mrf.mxu0  ;;  %3445 = vmatprep.subr.bf16.mxu0 %v16771_v9  ;;  %v16730_v9 = vcombine.low %v617_v54, %v621_v55  ;;  %v378_v54 = vld [vmem:[#allocation5 + $0x2d8] sm:$0xff] }
 0x21e   :  { %3510 = vmatpush1.bf16.msra.mxu1 %v16460_v8  ;;  %v20097_v24 = vadd.f32 %v20087_v56, %v3134_v18  ;;  %v3136_v25 = vadd.f32 %v3135_v21, %v20084_v47  ;;  %3541 = vmatprep.mubr.bf16.mxu1 %v20040_v58  ;;  %v16444_v56 = vcombine.low %v330_v12, %v334_v15  ;;  %v633_v47 = vld [vmem:[#allocation5 + $0xad0] sm:$0xff]  ;;  %v294_v8 = vld [vmem:[#allocation5 + $0x38] sm:$0xff] }
 0x21f   :  { %3511 = vmatprep.subr.bf16.mxu1 %v16453_v14  ;;  %v3137_v41 = vpop.f32.mrf.mxu0  ;;  %v16754_v58 = vcombine.low %v641_v27, %v645_v28  ;;  %v16746_v51 = vcombine.low %v633_v47, %v637_v37  ;;  %v410_v12 = vld [vmem:[#allocation5 + $0x3d8] sm:$0xff]  ;;  %v16405_v17 = vcombine.high %v290_v5, %v294_v8  ;;  %v16404_v21 = vcombine.low %v290_v5, %v294_v8 }
 0x220   :  { %v20102_v33 = vadd.f32 %v20090_v2, %v3136_v25  ;;  %3446 = vmatpush2.bf16.msra.mxu0 %v16770_v20  ;;  %v16747_v2 = vcombine.high %v633_v47, %v637_v37  ;;  %v414_v14 = vld [vmem:[#allocation5 + $0x3f8] sm:$0xff]  ;;  %v16722_v20 = vcombine.low %v609_v3, %v613_v4  ;;  %vm3673_vm2 = vcmp.ge.f32.partialorder %v20097_v24, 0.0 }
 0x221   :  { %v3138_v35 = vpop.f32.mrf.mxu0  ;;  %3447 = vmatprep.subr.bf16.mxu0 %v16763_v23  ;;  %v474_v15 = vld [vmem:[#allocation5 + $0x5d8] sm:$0xff]  ;;  %v16525_v27 = vcombine.high %v410_v12, %v414_v14  ;;  %v16524_v41 = vcombine.low %v410_v12, %v414_v14 }
 0x222   :  { %3512 = vmatpush1.bf16.msra.mxu1 %v16452_v22  ;;  %v478_v18 = vld [vmem:[#allocation5 + $0x5f8] sm:$0xff]  ;;  %vm3674_vm0 = vcmp.ge.f32.partialorder %v20102_v33, 0.0 }
 0x223   :  { %3513 = vmatprep.subr.bf16.mxu1 %v16445_v26  ;;  %v16589_v22 = vcombine.high %v474_v15, %v478_v18  ;;  %v402_v23 = vld [vmem:[#allocation5 + $0x398] sm:$0xff]  ;;  %v16588_v31 = vcombine.low %v474_v15, %v478_v18 }
 0x224   :  { %3448 = vmatpush2.bf16.msra.mxu0 %v16762_v34  ;;  %v406_v25 = vld [vmem:[#allocation5 + $0x3b8] sm:$0xff] }
 0x225   :  { %3449 = vmatprep.subr.bf16.mxu0 %v16755_v36  ;;  %v466_v26 = vld [vmem:[#allocation5 + $0x598] sm:$0xff]  ;;  %v16517_v34 = vcombine.high %v402_v23, %v406_v25  ;;  %v16516_v42 = vcombine.low %v402_v23, %v406_v25 }
 0x226   :  { %3514 = vmatpush1.bf16.msra.mxu1 %v16444_v56  ;;  %v470_v28 = vld [vmem:[#allocation5 + $0x5b8] sm:$0xff] }
 0x227   :  { %3515 = vmatprep.subr.bf16.mxu1 %v16437_v40  ;;  %v16581_v32 = vcombine.high %v466_v26, %v470_v28  ;;  %v394_v35 = vld [vmem:[#allocation5 + $0x358] sm:$0xff]  ;;  %v16580_v40 = vcombine.low %v466_v26, %v470_v28 }
 0x228   :  { %3450 = vmatpush2.bf16.msra.mxu0 %v16754_v58  ;;  %v458_v56 = vld [vmem:[#allocation5 + $0x558] sm:$0xff] }
 0x229   :  { %3451 = vmatprep.subr.bf16.mxu0 %v16747_v2  ;;  %v462_v36 = vld [vmem:[#allocation5 + $0x578] sm:$0xff] }
 0x22a   :  { %3516 = vmatpush1.bf16.msra.mxu1 %v16436_v44  ;;  %v398_v47 = vld [vmem:[#allocation5 + $0x378] sm:$0xff]  ;;  %v16573_v43 = vcombine.high %v458_v56, %v462_v36  ;;  %v16572_v50 = vcombine.low %v458_v56, %v462_v36  ;;  %v20111_v56 = vsub.s32 2, %v20072_v60 }
 0x22b   :  { %3517 = vmatprep.subr.bf16.mxu1 %v16429_v49  ;;  %v16509_v44 = vcombine.high %v394_v35, %v398_v47  ;;  %v386_v2 = vld [vmem:[#allocation5 + $0x318] sm:$0xff] }
 0x22c   :  { %3452 = vmatpush2.bf16.msra.mxu0 %v16746_v51  ;;  %v16508_v51 = vcombine.low %v394_v35, %v398_v47  ;;  %v442_v55 = vld [vmem:[#allocation5 + $0x4d8] sm:$0xff] }
 0x22d   :  { %3453 = vmatprep.subr.bf16.mxu0 %v16739_v53  ;;  %v16501_v53 = vcombine.high %v386_v2, %v390_v48  ;;  %v374_v3 = vld [vmem:[#allocation5 + $0x2b8] sm:$0xff]  ;;  %v16556_v8 = vcombine.low %v442_v55, %v446_v57 }
 0x22e   :  { %3518 = vmatpush1.bf16.msra.mxu1 %v16428_v52  ;;  %v16565_v52 = vcombine.high %v450_v45, %v454_v46  ;;  %v434_v4 = vld [vmem:[#allocation5 + $0x498] sm:$0xff]  ;;  %v20113_v46 = vld [vmem:[#allocation7] sm:$0xff] }
 0x22f   :  { %3519 = vmatprep.subr.bf16.mxu1 %v16421_v61  ;;  %v382_v61 = vld [vmem:[#allocation5 + $0x2f8] sm:$0xff] }
 0x230   :  { %3454 = vmatpush2.bf16.msra.mxu0 %v16738_v63  ;;  %v16500_v63 = vcombine.low %v386_v2, %v390_v48  ;;  %v16493_v5 = vcombine.high %v378_v54, %v382_v61  ;;  %v366_v12 = vld [vmem:[#allocation5 + $0x278] sm:$0xff]  ;;  %v748_v48 = vrot.slane %v20113_v46, %v20111_v56 }
 0x231   :  { %3455 = vmatprep.subr.bf16.mxu0 %v16731_v1  ;;  %v370_v1 = vld [vmem:[#allocation5 + $0x298] sm:$0xff] }
 0x232   :  { %3520 = vmatpush1.bf16.msra.mxu1 %v16420_v0  ;;  %v16557_v0 = vcombine.high %v442_v55, %v446_v57  ;;  %v426_v14 = vld [vmem:[#allocation5 + $0x458] sm:$0xff]  ;;  %v16485_v15 = vcombine.high %v370_v1, %v374_v3 }
 0x233   :  { %3521 = vmatprep.subr.bf16.mxu1 %v16413_v7  ;;  %v438_v7 = vld [vmem:[#allocation5 + $0x4b8] sm:$0xff] }
 0x234   :  { %3456 = vmatpush2.bf16.msra.mxu0 %v16730_v9  ;;  %v16492_v9 = vcombine.low %v378_v54, %v382_v61  ;;  %v16548_v18 = vcombine.low %v434_v4, %v438_v7  ;;  %v358_v23 = vld [vmem:[#allocation5 + $0x238] sm:$0xff] }
 0x235   :  { %3457 = vmatprep.subr.bf16.mxu0 %v16723_v11  ;;  %v362_v11 = vld [vmem:[#allocation5 + $0x258] sm:$0xff] }
 0x236   :  { %3522 = vmatpush1.bf16.msra.mxu1 %v16412_v10  ;;  %v16549_v10 = vcombine.high %v434_v4, %v438_v7  ;;  %v418_v25 = vld [vmem:[#allocation5 + $0x418] sm:$0xff]  ;;  %v16477_v26 = vcombine.high %v362_v11, %v366_v12 }
 0x237   :  { %3523 = vmatprep.subr.bf16.mxu1 %v16405_v17  ;;  %v430_v17 = vld [vmem:[#allocation5 + $0x478] sm:$0xff] }
 0x238   :  { %3458 = vmatpush2.bf16.msra.mxu0 %v16722_v20  ;;  %v16484_v20 = vcombine.low %v370_v1, %v374_v3  ;;  %v16540_v28 = vcombine.low %v426_v14, %v430_v17  ;;  %v602_v35 = vld [vmem:[#allocation5 + $0x9d8] sm:$0xff] }
 0x239   :  { %3550 = vmatprep.subr.bf16.mxu0 %v16589_v22  ;;  %v354_v22 = vld [vmem:[#allocation5 + $0x218] sm:$0xff] }
 0x23a   :  { %3524 = vmatpush1.bf16.msra.mxu1 %v16404_v21  ;;  %v16541_v21 = vcombine.high %v426_v14, %v430_v17  ;;  %v16469_v36 = vcombine.high %v354_v22, %v358_v23  ;;  %v606_v47 = vld [vmem:[#allocation5 + $0x9f8] sm:$0xff] }
 0x23b   :  { %3525 = vmatprep.subr.bf16.mxu1 %v16525_v27  ;;  %3460 = vmatmul.mubr.bf16.vlgmr.msra.gmra.mxu0 %v20060_v39  ;;  %v422_v27 = vld [vmem:[#allocation5 + $0x438] sm:$0xff] }
 0x23c   :  { %3551 = vmatpush1.bf16.msra.mxu0 %v16588_v31  ;;  %3582 = vmatprep.mubr.bf16.mxu0 %v20042_v59  ;;  %v16476_v31 = vcombine.low %v362_v11, %v366_v12  ;;  %v534_v2 = vld [vmem:[#allocation5 + $0x7b8] sm:$0xff] }
 0x23d   :  { %v20105_v37 = vpop.f32.mrf.mxu1  ;;  %3552 = vmatprep.subr.bf16.mxu0 %v16581_v32  ;;  %v538_v32 = vld [vmem:[#allocation5 + $0x7d8] sm:$0xff] }
 0x23e   :  { %3526 = vmatpush2.bf16.msra.mxu1 %v16524_v41  ;;  %v16533_v41 = vcombine.high %v418_v25, %v422_v27  ;;  %v594_v45 = vld [vmem:[#allocation5 + $0x998] sm:$0xff]  ;;  %v3216_v55 = vadd.f32 %v20105_v37, %v748_v48 }
 0x23f   :  { %v20108_v58 = vpop.f32.mrf.mxu1  ;;  %3527 = vmatprep.subr.bf16.mxu1 %v16517_v34  ;;  %v542_v34 = vld [vmem:[#allocation5 + $0x7f8] sm:$0xff] }
 0x240   :  { %3553 = vmatpush1.bf16.msra.mxu0 %v16580_v40  ;;  %v16532_v40 = vcombine.low %v418_v25, %v422_v27  ;;  %v586_v61 = vld [vmem:[#allocation5 + $0x958] sm:$0xff] }
 0x241   :  { %v3219_v49 = vpop.f32.mrf.mxu1  ;;  %3554 = vmatprep.subr.bf16.mxu0 %v16573_v43  ;;  %v16653_v43 = vcombine.high %v538_v32, %v542_v34  ;;  %v514_v3 = vld [vmem:[#allocation5 + $0x718] sm:$0xff] }
 0x242   :  { %3528 = vmatpush2.bf16.msra.mxu1 %v16516_v42  ;;  %v16468_v42 = vcombine.low %v354_v22, %v358_v23  ;;  %v16717_v49 = vcombine.high %v602_v35, %v606_v47  ;;  %v518_v4 = vld [vmem:[#allocation5 + $0x738] sm:$0xff] }
 0x243   :  { %v3220_v59 = vpop.f32.mrf.mxu1  ;;  %3529 = vmatprep.subr.bf16.mxu1 %v16509_v44  ;;  %v530_v44 = vld [vmem:[#allocation5 + $0x798] sm:$0xff]  ;;  %v16628_v23 = vcombine.low %v514_v3, %v518_v4 }
 0x244   :  { %3555 = vmatpush1.bf16.msra.mxu0 %v16572_v50  ;;  %v598_v50 = vld [vmem:[#allocation5 + $0x9b8] sm:$0xff]  ;;  %v16645_v54 = vcombine.high %v530_v44, %v534_v2  ;;  %v16644_v1 = vcombine.low %v530_v44, %v534_v2 }
 0x245   :  { %3556 = vmatprep.subr.bf16.mxu0 %v16565_v52  ;;  %v522_v52 = vld [vmem:[#allocation5 + $0x758] sm:$0xff]  ;;  %v16709_v57 = vcombine.high %v594_v45, %v598_v50  ;;  %v16708_v7 = vcombine.low %v594_v45, %v598_v50 }
 0x246   :  { %3530 = vmatpush2.bf16.msra.mxu1 %v16508_v51  ;;  %v16652_v51 = vcombine.low %v538_v32, %v542_v34  ;;  %v526_v59 = vld [vmem:[#allocation5 + $0x778] sm:$0xff] }
 0x247   :  { %3531 = vmatprep.subr.bf16.mxu1 %v16501_v53  ;;  %v16716_v53 = vcombine.low %v602_v35, %v606_v47  ;;  %v16636_v12 = vcombine.low %v522_v52, %v526_v59  ;;  %v510_v14 = vld [vmem:[#allocation5 + $0x6f8] sm:$0xff] }
 0x248   :  { %3557 = vmatpush1.bf16.msra.mxu0 %v16564_v62  ;;  %v590_v62 = vld [vmem:[#allocation5 + $0x978] sm:$0xff] }
 0x249   :  { %3558 = vmatprep.subr.bf16.mxu0 %v16557_v0  ;;  %v16701_v37 = vcombine.high %v586_v61, %v590_v62  ;;  %v16700_v17 = vcombine.low %v586_v61, %v590_v62  ;;  %v574_v22 = vld [vmem:[#allocation5 + $0x8f8] sm:$0xff] }
 0x24a   :  { %3532 = vmatpush2.bf16.msra.mxu1 %v16500_v63  ;;  %v498_v25 = vld [vmem:[#allocation5 + $0x698] sm:$0xff] }
 0x24b   :  { %3533 = vmatprep.subr.bf16.mxu1 %v16493_v5  ;;  %v490_v47 = vld [vmem:[#allocation5 + $0x658] sm:$0xff] }
 0x24c   :  { %3559 = vmatpush1.bf16.msra.mxu0 %v16556_v8  ;;  %v16637_v8 = vcombine.high %v522_v52, %v526_v59  ;;  %v486_v50 = vld [vmem:[#allocation5 + $0x638] sm:$0xff] }
 0x24d   :  { %3560 = vmatprep.subr.bf16.mxu0 %v16549_v10  ;;  %v582_v10 = vld [vmem:[#allocation5 + $0x938] sm:$0xff] }
 0x24e   :  { %3534 = vmatpush2.bf16.msra.mxu1 %v16492_v9  ;;  %v578_v9 = vld [vmem:[#allocation5 + $0x918] sm:$0xff] }
 0x24f   :  { %3535 = vmatprep.subr.bf16.mxu1 %v16485_v15  ;;  %v550_v52 = vld [vmem:[#allocation5 + $0x838] sm:$0xff] }
 0x250   :  { %3561 = vmatpush1.bf16.msra.mxu0 %v16548_v18  ;;  %v16629_v18 = vcombine.high %v514_v3, %v518_v4  ;;  %v734_v61 = vld [vmem:[#allocation5 + $0xdf8] sm:$0xff] }
 0x251   :  { %3562 = vmatprep.subr.bf16.mxu0 %v16541_v21  ;;  %v570_v21 = vld [vmem:[#allocation5 + $0x8d8] sm:$0xff] }
 0x252   :  { %3536 = vmatpush2.bf16.msra.mxu1 %v16484_v20  ;;  %v16693_v20 = vcombine.high %v578_v9, %v582_v10  ;;  %v16684_v34 = vcombine.low %v570_v21, %v574_v22  ;;  %v666_v62 = vld [vmem:[#allocation5 + $0xbd8] sm:$0xff] }
 0x253   :  { %3537 = vmatprep.subr.bf16.mxu1 %v16477_v26  ;;  %v502_v26 = vld [vmem:[#allocation5 + $0x6b8] sm:$0xff] }
 0x254   :  { %3563 = vmatpush1.bf16.msra.mxu0 %v16540_v28  ;;  %v562_v28 = vld [vmem:[#allocation5 + $0x898] sm:$0xff]  ;;  %v16613_v35 = vcombine.high %v498_v25, %v502_v26  ;;  %v16612_v44 = vcombine.low %v498_v25, %v502_v26 }
 0x255   :  { %3564 = vmatprep.subr.bf16.mxu0 %v16533_v41  ;;  %v16685_v41 = vcombine.high %v570_v21, %v574_v22  ;;  %v654_v21 = vld [vmem:[#allocation5 + $0xb78] sm:$0xff] }
 0x256   :  { %3538 = vmatpush2.bf16.msra.mxu1 %v16476_v31  ;;  %v566_v31 = vld [vmem:[#allocation5 + $0x8b8] sm:$0xff] }
 0x257   :  { %3539 = vmatprep.subr.bf16.mxu1 %v16469_v36  ;;  %v16677_v36 = vcombine.high %v562_v28, %v566_v31  ;;  %v16676_v2 = vcombine.low %v562_v28, %v566_v31 }
 0x258   :  { %3565 = vmatpush1.bf16.msra.mxu0 %v16532_v40  ;;  %v494_v40 = vld [vmem:[#allocation5 + $0x678] sm:$0xff] }
 0x259   :  { %3566 = vmatprep.subr.bf16.mxu0 %v16653_v43  ;;  %v558_v43 = vld [vmem:[#allocation5 + $0x878] sm:$0xff]  ;;  %v16605_v45 = vcombine.high %v490_v47, %v494_v40  ;;  %v16604_v59 = vcombine.low %v490_v47, %v494_v40 }
 0x25a   :  { %3540 = vmatpush2.bf16.msra.mxu1 %v16468_v42  ;;  %v554_v42 = vld [vmem:[#allocation5 + $0x858] sm:$0xff] }
 0x25b   :  { %3591 = vmatprep.subr.bf16.mxu1 %v16717_v49  ;;  %v3256_v63 = vpop.f32.mrf.mxu0  ;;  %v16669_v48 = vcombine.high %v554_v42, %v558_v43  ;;  %v482_v49 = vld [vmem:[#allocation5 + $0x618] sm:$0xff] }
 0x25c   :  { %v20118_v0 = vadd.f32 %v3256_v63, %v3216_v55  ;;  %3567 = vmatpush2.bf16.msra.mxu0 %v16652_v51  ;;  %v546_v51 = vld [vmem:[#allocation5 + $0x818] sm:$0xff] }
 0x25d   :  { %3542 = vmatmul.mubr.bf16.vlgmr.msra.gmra.mxu1 %v20046_v16  ;;  %v20121_v5 = vpop.f32.mrf.mxu0  ;;  %3568 = vmatprep.subr.bf16.mxu0 %v16645_v54  ;;  %v506_v16 = vld [vmem:[#allocation5 + $0x6d8] sm:$0xff]  ;;  %v16597_v54 = vcombine.high %v482_v49, %v486_v50  ;;  %v16661_v55 = vcombine.high %v546_v51, %v550_v52  ;;  %v16660_v3 = vcombine.low %v546_v51, %v550_v52 }
 0x25e   :  { %3592 = vmatpush1.bf16.msra.mxu1 %v16716_v53  ;;  %3623 = vmatprep.mubr.bf16.mxu1 %v20051_v29  ;;  %v16692_v29 = vcombine.low %v578_v9, %v582_v10  ;;  %v16621_v27 = vcombine.high %v506_v16, %v510_v14  ;;  %v16620_v32 = vcombine.low %v506_v16, %v510_v14  ;;  %v670_v63 = vld [vmem:[#allocation5 + $0xbf8] sm:$0xff] }
 0x25f   :  { %3593 = vmatprep.subr.bf16.mxu1 %v16709_v57  ;;  %v3260_v11 = vpop.f32.mrf.mxu0  ;;  %v16668_v53 = vcombine.low %v554_v42, %v558_v43  ;;  %v730_v57 = vld [vmem:[#allocation5 + $0xdd8] sm:$0xff] }
 0x260   :  { %3569 = vmatpush2.bf16.msra.mxu0 %v16644_v1  ;;  %v16596_v1 = vcombine.low %v482_v49, %v486_v50  ;;  %v16845_v4 = vcombine.high %v730_v57, %v734_v61  ;;  %v658_v9 = vld [vmem:[#allocation5 + $0xb98] sm:$0xff]  ;;  %v16844_v11 = vcombine.low %v730_v57, %v734_v61 }
 0x261   :  { %v3261_v15 = vpop.f32.mrf.mxu0  ;;  %3570 = vmatprep.subr.bf16.mxu0 %v16637_v8  ;;  %v722_v8 = vld [vmem:[#allocation5 + $0xd98] sm:$0xff] }
 0x262   :  { %3594 = vmatpush1.bf16.msra.mxu1 %v16708_v7  ;;  %v16781_v7 = vcombine.high %v666_v62, %v670_v63  ;;  %v662_v10 = vld [vmem:[#allocation5 + $0xbb8] sm:$0xff] }
 0x263   :  { %3595 = vmatprep.subr.bf16.mxu1 %v16701_v37  ;;  %v726_v37 = vld [vmem:[#allocation5 + $0xdb8] sm:$0xff]  ;;  %v16773_v14 = vcombine.high %v658_v9, %v662_v10 }
 0x264   :  { %3571 = vmatpush2.bf16.msra.mxu0 %v16636_v12  ;;  %v16780_v12 = vcombine.low %v666_v62, %v670_v63  ;;  %v16837_v16 = vcombine.high %v722_v8, %v726_v37  ;;  %v714_v15 = vld [vmem:[#allocation5 + $0xd58] sm:$0xff] }
 0x265   :  { %3572 = vmatprep.subr.bf16.mxu0 %v16629_v18  ;;  %v702_v49 = vld [vmem:[#allocation5 + $0xcf8] sm:$0xff] }
 0x266   :  { %3596 = vmatpush1.bf16.msra.mxu1 %v16700_v17  ;;  %v718_v17 = vld [vmem:[#allocation5 + $0xd78] sm:$0xff] }
 0x267   :  { %3597 = vmatprep.subr.bf16.mxu1 %v16693_v20  ;;  %v650_v20 = vld [vmem:[#allocation5 + $0xb58] sm:$0xff]  ;;  %v16828_v40 = vcombine.low %v714_v15, %v718_v17 }
 0x268   :  { %3573 = vmatpush2.bf16.msra.mxu0 %v16628_v23  ;;  %v16836_v23 = vcombine.low %v722_v8, %v726_v37  ;;  %v16765_v31 = vcombine.high %v650_v20, %v654_v21  ;;  %v16764_v43 = vcombine.low %v650_v20, %v654_v21  ;;  %v634_v50 = vld [vmem:[#allocation5 + $0xad8] sm:$0xff] }
 0x269   :  { %3574 = vmatprep.subr.bf16.mxu0 %v16621_v27  ;;  %v16829_v27 = vcombine.high %v714_v15, %v718_v17  ;;  %v638_v51 = vld [vmem:[#allocation5 + $0xaf8] sm:$0xff] }
 0x26a   :  { %3598 = vmatpush1.bf16.msra.mxu1 %v16692_v29  ;;  %v16772_v29 = vcombine.low %v658_v9, %v662_v10  ;;  %v690_v57 = vld [vmem:[#allocation5 + $0xc98] sm:$0xff] }
 0x26b   :  { %3599 = vmatprep.subr.bf16.mxu1 %v16685_v41  ;;  %v706_v41 = vld [vmem:[#allocation5 + $0xd18] sm:$0xff] }
 0x26c   :  { %3575 = vmatpush2.bf16.msra.mxu0 %v16620_v32  ;;  %v694_v61 = vld [vmem:[#allocation5 + $0xcb8] sm:$0xff] }
 0x26d   :  { %3576 = vmatprep.subr.bf16.mxu0 %v16613_v35  ;;  %v642_v35 = vld [vmem:[#allocation5 + $0xb18] sm:$0xff] }
 0x26e   :  { %3600 = vmatpush1.bf16.msra.mxu1 %v16684_v34  ;;  %v626_v62 = vld [vmem:[#allocation5 + $0xa98] sm:$0xff] }
 0x26f   :  { %3601 = vmatprep.subr.bf16.mxu1 %v16677_v36  ;;  %v646_v36 = vld [vmem:[#allocation5 + $0xb38] sm:$0xff] }
 0x270   :  { %3577 = vmatpush2.bf16.msra.mxu0 %v16612_v44  ;;  %v630_v63 = vld [vmem:[#allocation5 + $0xab8] sm:$0xff] }
 0x271   :  { %3578 = vmatprep.subr.bf16.mxu0 %v16605_v45  ;;  %v16757_v45 = vcombine.high %v642_v35, %v646_v36  ;;  %v16741_v8 = vcombine.high %v626_v62, %v630_v63  ;;  %v682_v37 = vld [vmem:[#allocation5 + $0xc58] sm:$0xff]  ;;  %v16740_v15 = vcombine.low %v626_v62, %v630_v63 }
 0x272   :  { %3602 = vmatpush1.bf16.msra.mxu1 %v16676_v2  ;;  %v686_v9 = vld [vmem:[#allocation5 + $0xc78] sm:$0xff] }
 0x273   :  { %3603 = vmatprep.subr.bf16.mxu1 %v16669_v48  ;;  %v698_v48 = vld [vmem:[#allocation5 + $0xcd8] sm:$0xff]  ;;  %v16797_v17 = vcombine.high %v682_v37, %v686_v9 }
 0x274   :  { %3579 = vmatpush2.bf16.msra.mxu0 %v16604_v59  ;;  %v678_v20 = vld [vmem:[#allocation5 + $0xc38] sm:$0xff] }
 0x275   :  { %3580 = vmatprep.subr.bf16.mxu0 %v16597_v54  ;;  %v16813_v54 = vcombine.high %v698_v48, %v702_v49  ;;  %v610_v21 = vld [vmem:[#allocation5 + $0xa18] sm:$0xff] }
 0x276   :  { %3604 = vmatpush1.bf16.msra.mxu1 %v16668_v53  ;;  %v16756_v53 = vcombine.low %v642_v35, %v646_v36 }
 0x277   :  { %3605 = vmatprep.subr.bf16.mxu1 %v16661_v55  ;;  %v16749_v55 = vcombine.high %v634_v50, %v638_v51 }
 0x278   :  { %3581 = vmatpush2.bf16.msra.mxu0 %v16596_v1  ;;  %v16812_v1 = vcombine.low %v698_v48, %v702_v49  ;;  %v3885_v48 = vld [vmem:[#allocation8 + $0x5a0] sm:$0xff] }
 0x279   :  { %3632 = vmatprep.subr.bf16.mxu0 %v16845_v4  ;;  %v16748_v4 = vcombine.low %v634_v50, %v638_v51 }
 0x27a   :  { %3606 = vmatpush1.bf16.msra.mxu1 %v16660_v3 }
 0x27b   :  { %3607 = vmatprep.subr.bf16.mxu1 %v16781_v7  ;;  %v3338_v18 = vpop.f32.mrf.mxu0  ;;  %3583 = vmatmul.mubr.bf16.vlgmr.msra.gmra.mxu0 %v20048_v19  ;;  %v710_v19 = vld [vmem:[#allocation5 + $0xd38] sm:$0xff]  ;;  %v16805_v7 = vcombine.high %v690_v57, %v694_v61 }
 0x27c   :  { %3633 = vmatpush1.bf16.msra.mxu0 %v16844_v11  ;;  %3664 = vmatprep.mubr.bf16.mxu0 %v19877_v38  ;;  %v16821_v44 = vcombine.high %v706_v41, %v710_v19  ;;  %v16820_v52 = vcombine.low %v706_v41, %v710_v19  ;;  %v618_v11 = vld [vmem:[#allocation5 + $0xa58] sm:$0xff]  ;;  %v3889_v41 = vld [vmem:[#allocation8 + $0x5c0] sm:$0xff] }
 0x27d   :  { %v3297_v22 = vpop.f32.mrf.mxu1  ;;  %v20127_v26 = vpop.f32.mrf.mxu0  ;;  %3634 = vmatprep.subr.bf16.mxu0 %v16837_v16  ;;  %v16804_v16 = vcombine.low %v690_v57, %v694_v61  ;;  %v3893_v19 = vld [vmem:[#allocation8 + $0x5e0] sm:$0xff] }
 0x27e   :  { %v3298_v25 = vadd.f32 %v3297_v22, %v20118_v0  ;;  %3608 = vmatpush2.bf16.msra.mxu1 %v16780_v12  ;;  %v20132_v0 = vsub.s32 3, %v20072_v60  ;;  %v622_v12 = vld [vmem:[#allocation5 + $0xa78] sm:$0xff]  ;;  %v17030_v50 = vcombine.low %v3889_v41, %v3893_v19  ;;  %v3877_v57 = vld [vmem:[#allocation8 + $0x560] sm:$0xff] }
 0x27f   :  { %v3299_v28 = vpop.f32.mrf.mxu1  ;;  %3609 = vmatprep.subr.bf16.mxu1 %v16773_v14  ;;  %v3342_v34 = vpop.f32.mrf.mxu0  ;;  %v614_v22 = vld [vmem:[#allocation5 + $0xa38] sm:$0xff] }
 0x280   :  { %v20129_v32 = vadd.f32 %v3338_v18, %v3298_v25  ;;  %3635 = vmatpush1.bf16.msra.mxu0 %v16836_v23  ;;  %v752_v59 = vrot.slane %v20113_v46, %v20132_v0  ;;  %v674_v18 = vld [vmem:[#allocation5 + $0xc18] sm:$0xff]  ;;  %v16796_v23 = vcombine.low %v682_v37, %v686_v9  ;;  %v3682_v34 = vmul.f32 0.1, %v20102_v33 }
 0x281   :  { %v3301_v47 = vpop.f32.mrf.mxu1  ;;  %v3343_v42 = vpop.f32.mrf.mxu0  ;;  %3636 = vmatprep.subr.bf16.mxu0 %v16829_v27  ;;  %v16725_v27 = vcombine.high %v610_v21, %v614_v22  ;;  %v16788_v35 = vcombine.low %v674_v18, %v678_v20 }
 0x282   :  { %3610 = vmatpush2.bf16.msra.mxu1 %v16772_v29  ;;  %v3218_v3 = vadd.f32 %v20108_v58, %v752_v59  ;;  %v16733_v58 = vcombine.high %v618_v11, %v622_v12  ;;  %v16789_v29 = vcombine.high %v674_v18, %v678_v20  ;;  %v16724_v47 = vcombine.low %v610_v21, %v614_v22  ;;  %v3753_v42 = vld [vmem:[#allocation8 + $0x180] sm:$0xff] }
 0x283   :  { %v3302_v2 = vpop.f32.mrf.mxu1  ;;  %3611 = vmatprep.subr.bf16.mxu1 %v16765_v31  ;;  %v3765_v31 = vld [vmem:[#allocation8 + $0x1e0] sm:$0xff]  ;;  %vm3675_vm3 = vcmp.ge.f32.partialorder %v20129_v32, 0.0 }
 0x284   :  { %3637 = vmatpush1.bf16.msra.mxu0 %v16828_v40  ;;  %v3259_v10 = vadd.f32 %v20121_v5, %v3218_v3  ;;  %v16732_v5 = vcombine.low %v618_v11, %v622_v12  ;;  %v17031_v40 = vcombine.high %v3889_v41, %v3893_v19  ;;  %v3749_v59 = vld [vmem:[#allocation8 + $0x160] sm:$0xff] }
 0x285   :  { %3638 = vmatprep.subr.bf16.mxu0 %v16821_v44  ;;  %v3690_v44 = vsel %vm3674_vm0, %v20102_v33, %v3682_v34  ;;  %v3737_v3 = vld [vmem:[#allocation8 + $0x100] sm:$0xff]  ;;  %vm19879_vm0 = vmmov 0  }
 0x286   :  { %3612 = vmatpush2.bf16.msra.mxu1 %v16764_v43  ;;  %v3300_v14 = vadd.f32 %v3299_v28, %v3259_v10  ;;  %v3761_v28 = vld [vmem:[#allocation8 + $0x1c0] sm:$0xff] }
 0x287   :  { %3613 = vmatprep.subr.bf16.mxu1 %v16757_v45  ;;  %v3757_v43 = vld [vmem:[#allocation8 + $0x1a0] sm:$0xff]  ;;  %v16902_v2 = vcombine.low %v3761_v28, %v3765_v31 }
 0x288   :  { %3639 = vmatpush1.bf16.msra.mxu0 %v16820_v52  ;;  %v3341_v25 = vadd.f32 %v20127_v26, %v3300_v14  ;;  %v16903_v26 = vcombine.high %v3761_v28, %v3765_v31  ;;  %v3881_v45 = vld [vmem:[#allocation8 + $0x580] sm:$0xff]  ;;  %v16895_v51 = vcombine.high %v3753_v42, %v3757_v43  ;;  %v16894_v61 = vcombine.low %v3753_v42, %v3757_v43 }
 0x289   :  { %3640 = vmatprep.subr.bf16.mxu0 %v16813_v54  ;;  %v3745_v52 = vld [vmem:[#allocation8 + $0x140] sm:$0xff]  ;;  %v17023_v54 = vcombine.high %v3881_v45, %v3885_v48  ;;  %v17022_v62 = vcombine.low %v3881_v45, %v3885_v48 }
 0x28a   :  { %3614 = vmatpush2.bf16.msra.mxu1 %v16756_v53  ;;  %v3684_v36 = vmul.f32 0.1, %v3341_v25  ;;  %vm3676_vm1 = vcmp.ge.f32.partialorder %v3341_v25, 0.0  ;;  %v20142_v53 = vpack.c.bf16 %v3690_v44, %v3690_v44  ;;  %v16887_v63 = vcombine.high %v3745_v52, %v3749_v59  ;;  %v3729_v10 = vld [vmem:[#allocation8 + $0xc0] sm:$0xff] }
 0x28b   :  { %3615 = vmatprep.subr.bf16.mxu1 %v16749_v55  ;;  %v3873_v55 = vld [vmem:[#allocation8 + $0x540] sm:$0xff] }
 0x28c   :  { %3641 = vmatpush1.bf16.msra.mxu0 %v16812_v1  ;;  %v3692_v49 = vsel %vm3676_vm1, %v3341_v25, %v3684_v36  ;;  %v17015_v1 = vcombine.high %v3873_v55, %v3877_v57  ;;  %v3733_v11 = vld [vmem:[#allocation8 + $0xe0] sm:$0xff] }
 0x28d   :  { %3642 = vmatprep.subr.bf16.mxu0 %v16805_v7  ;;  %v20145_v33 = vpack.c.bf16 %v3692_v49, %v3692_v49  ;;  %v3869_v7 = vld [vmem:[#allocation8 + $0x520] sm:$0xff] }
 0x28e   :  { %3616 = vmatpush2.bf16.msra.mxu1 %v16748_v4  ;;  %v3865_v4 = vld [vmem:[#allocation8 + $0x500] sm:$0xff] }
 0x28f   :  { %3617 = vmatprep.subr.bf16.mxu1 %v16741_v8  ;;  %v16886_v8 = vcombine.low %v3745_v52, %v3749_v59  ;;  %v17007_v9 = vcombine.high %v3865_v4, %v3869_v7  ;;  %v3857_v12 = vld [vmem:[#allocation8 + $0x4c0] sm:$0xff]  ;;  %v20151_v59 = vsub.s32 4, %v20072_v60 }
 0x290   :  { %3643 = vmatpush1.bf16.msra.mxu0 %v16804_v16  ;;  %v3861_v16 = vld [vmem:[#allocation8 + $0x4e0] sm:$0xff] }
 0x291   :  { %3644 = vmatprep.subr.bf16.mxu0 %v16797_v17  ;;  %v16871_v17 = vcombine.high %v3729_v10, %v3733_v11  ;;  %v3721_v18 = vld [vmem:[#allocation8 + $0x80] sm:$0xff]  ;;  %v16998_v25 = vcombine.low %v3857_v12, %v3861_v16 }
 0x292   :  { %3618 = vmatpush2.bf16.msra.mxu1 %v16740_v15  ;;  %v17006_v15 = vcombine.low %v3865_v4, %v3869_v7  ;;  %v3725_v20 = vld [vmem:[#allocation8 + $0xa0] sm:$0xff] }
 0x293   :  { %3619 = vmatprep.subr.bf16.mxu1 %v16733_v58  ;;  %v16999_v58 = vcombine.high %v3857_v12, %v3861_v16  ;;  %v3849_v21 = vld [vmem:[#allocation8 + $0x480] sm:$0xff]  ;;  %v16862_v19 = vcombine.low %v3721_v18, %v3725_v20 }
 0x294   :  { %3645 = vmatpush1.bf16.msra.mxu0 %v16796_v23  ;;  %v3853_v22 = vld [vmem:[#allocation8 + $0x4a0] sm:$0xff]  ;;  %v16870_v23 = vcombine.low %v3729_v10, %v3733_v11 }
 0x295   :  { %3646 = vmatprep.subr.bf16.mxu0 %v16789_v29  ;;  %v16991_v29 = vcombine.high %v3849_v21, %v3853_v22  ;;  %v3717_v28 = vld [vmem:[#allocation8 + $0x60] sm:$0xff]  ;;  %v16990_v34 = vcombine.low %v3849_v21, %v3853_v22 }
 0x296   :  { %3620 = vmatpush2.bf16.msra.mxu1 %v16732_v5  ;;  %v16863_v5 = vcombine.high %v3721_v18, %v3725_v20  ;;  %v3841_v31 = vld [vmem:[#allocation8 + $0x440] sm:$0xff] }
 0x297   :  { %3621 = vmatprep.subr.bf16.mxu1 %v16725_v27  ;;  %v3713_v27 = vld [vmem:[#allocation8 + $0x40] sm:$0xff] }
 0x298   :  { %3647 = vmatpush1.bf16.msra.mxu0 %v16788_v35  ;;  %v3845_v41 = vld [vmem:[#allocation8 + $0x460] sm:$0xff]  ;;  %v16855_v35 = vcombine.high %v3713_v27, %v3717_v28  ;;  %v16854_v43 = vcombine.low %v3713_v27, %v3717_v28 }
 0x299   :  { %6819 = vmatprep.subr.bf16.mxu0 %v16903_v26  ;;  %v16983_v36 = vcombine.high %v3841_v31, %v3845_v41  ;;  %v3709_v26 = vld [vmem:[#allocation8 + $0x20] sm:$0xff]  ;;  %v16982_v44 = vcombine.low %v3841_v31, %v3845_v41 }
 0x29a   :  { %3622 = vmatpush2.bf16.msra.mxu1 %v16724_v47  ;;  %v3705_v47 = vld [vmem:[#allocation8] sm:$0xff] }
 0x29b   :  { %6860 = vmatprep.subr.bf16.mxu1 %v17031_v40  ;;  %3665 = vmatmul.mubr.bf16.vlgmr.msra.gmra.mxu0 %v20056_v30  ;;  %v3741_v30 = vld [vmem:[#allocation8 + $0x120] sm:$0xff]  ;;  %v16846_v52 = vcombine.low %v3705_v47, %v3709_v26 }
 0x29c   :  { %6820 = vmatpush1.bf16.msra.mxu0 %v16902_v2  ;;  %6851 = vmatprep.mubr.bf16.mxu0 %v20142_v53  ;;  %v16879_v37 = vcombine.high %v3737_v3, %v3741_v30  ;;  %v16878_v14 = vcombine.low %v3737_v3, %v3741_v30  ;;  %v3833_v40 = vld [vmem:[#allocation8 + $0x400] sm:$0xff]  ;;  %v16847_v2 = vcombine.high %v3705_v47, %v3709_v26 }
 0x29d   :  { %3624 = vmatmul.mubr.bf16.vlgmr.msra.gmra.mxu1 %v20060_v39  ;;  %6821 = vmatprep.subr.bf16.mxu0 %v16895_v51  ;;  %v17014_v39 = vcombine.low %v3873_v55, %v3877_v57  ;;  %v3837_v42 = vld [vmem:[#allocation8 + $0x420] sm:$0xff]  ;;  %v756_v3 = vrot.slane %v20113_v46, %v20151_v59 }
 0x29e   :  { %6861 = vmatpush1.bf16.msra.mxu1 %v17030_v50  ;;  %6892 = vmatprep.mubr.bf16.mxu1 %v20145_v33  ;;  %v16975_v45 = vcombine.high %v3833_v40, %v3837_v42  ;;  %v3825_v48 = vld [vmem:[#allocation8 + $0x3c0] sm:$0xff] }
 0x29f   :  { %6862 = vmatprep.subr.bf16.mxu1 %v17023_v54  ;;  %v3829_v49 = vld [vmem:[#allocation8 + $0x3e0] sm:$0xff]  ;;  %v16974_v54 = vcombine.low %v3833_v40, %v3837_v42 }
 0x2a0   :  { %6822 = vmatpush1.bf16.msra.mxu0 %v16894_v61  ;;  %v3953_v50 = vld [vmem:[#allocation8 + $0x7c0] sm:$0xff]  ;;  %v16967_v55 = vcombine.high %v3825_v48, %v3829_v49  ;;  %v16966_v30 = vcombine.low %v3825_v48, %v3829_v49 }
 0x2a1   :  { %6823 = vmatprep.subr.bf16.mxu0 %v16887_v63  ;;  %v3957_v51 = vld [vmem:[#allocation8 + $0x7e0] sm:$0xff] }
 0x2a2   :  { %6863 = vmatpush1.bf16.msra.mxu1 %v17022_v62  ;;  %v17095_v57 = vcombine.high %v3953_v50, %v3957_v51  ;;  %v3817_v61 = vld [vmem:[#allocation8 + $0x380] sm:$0xff]  ;;  %v17094_v4 = vcombine.low %v3953_v50, %v3957_v51 }
 0x2a3   :  { %6864 = vmatprep.subr.bf16.mxu1 %v17015_v1  ;;  %v3821_v62 = vld [vmem:[#allocation8 + $0x3a0] sm:$0xff] }
 0x2a4   :  { %6824 = vmatpush1.bf16.msra.mxu0 %v16886_v8  ;;  %v3945_v63 = vld [vmem:[#allocation8 + $0x780] sm:$0xff]  ;;  %v16959_v7 = vcombine.high %v3817_v61, %v3821_v62 }
 0x2a5   :  { %6825 = vmatprep.subr.bf16.mxu0 %v16879_v37  ;;  %v3949_v1 = vld [vmem:[#allocation8 + $0x7a0] sm:$0xff] }
 0x2a6   :  { %6865 = vmatpush1.bf16.msra.mxu1 %v17014_v39  ;;  %v17087_v8 = vcombine.high %v3945_v63, %v3949_v1  ;;  %v3809_v39 = vld [vmem:[#allocation8 + $0x340] sm:$0xff]  ;;  %v17086_v46 = vcombine.low %v3945_v63, %v3949_v1 }
 0x2a7   :  { %6866 = vmatprep.subr.bf16.mxu1 %v17007_v9  ;;  %v3813_v37 = vld [vmem:[#allocation8 + $0x360] sm:$0xff] }
 0x2a8   :  { %6826 = vmatpush1.bf16.msra.mxu0 %v16878_v14  ;;  %v3937_v10 = vld [vmem:[#allocation8 + $0x740] sm:$0xff]  ;;  %v16958_v14 = vcombine.low %v3817_v61, %v3821_v62  ;;  %v16950_v27 = vcombine.low %v3809_v39, %v3813_v37 }
 0x2a9   :  { %6827 = vmatprep.subr.bf16.mxu0 %v16871_v17  ;;  %v3941_v11 = vld [vmem:[#allocation8 + $0x760] sm:$0xff]  ;;  %v16951_v17 = vcombine.high %v3809_v39, %v3813_v37 }
 0x2aa   :  { %6867 = vmatpush1.bf16.msra.mxu1 %v17006_v15  ;;  %v17079_v20 = vcombine.high %v3937_v10, %v3941_v11  ;;  %v3801_v21 = vld [vmem:[#allocation8 + $0x300] sm:$0xff]  ;;  %v17078_v31 = vcombine.low %v3937_v10, %v3941_v11  ;;  %v3681_v11 = vmul.f32 0.1, %v20097_v24 }
 0x2ab   :  { %6868 = vmatprep.subr.bf16.mxu1 %v16999_v58  ;;  %v3805_v22 = vld [vmem:[#allocation8 + $0x320] sm:$0xff] }
 0x2ac   :  { %6828 = vmatpush1.bf16.msra.mxu0 %v16870_v23  ;;  %v16943_v41 = vcombine.high %v3801_v21, %v3805_v22  ;;  %v3921_v47 = vld [vmem:[#allocation8 + $0x6c0] sm:$0xff]  ;;  %v16942_v40 = vcombine.low %v3801_v21, %v3805_v22 }
 0x2ad   :  { %6829 = vmatprep.subr.bf16.mxu0 %v16863_v5  ;;  %v3933_v5 = vld [vmem:[#allocation8 + $0x720] sm:$0xff] }
 0x2ae   :  { %6869 = vmatpush1.bf16.msra.mxu1 %v16998_v25  ;;  %v3929_v25 = vld [vmem:[#allocation8 + $0x700] sm:$0xff] }
 0x2af   :  { %6870 = vmatprep.subr.bf16.mxu1 %v16991_v29  ;;  %v3925_v26 = vld [vmem:[#allocation8 + $0x6e0] sm:$0xff]  ;;  %v17070_v42 = vcombine.low %v3929_v25, %v3933_v5 }
 0x2b0   :  { %6830 = vmatpush1.bf16.msra.mxu0 %v16862_v19  ;;  %v3913_v48 = vld [vmem:[#allocation8 + $0x680] sm:$0xff]  ;;  %v17062_v51 = vcombine.low %v3921_v47, %v3925_v26 }
 0x2b1   :  { %6831 = vmatprep.subr.bf16.mxu0 %v16855_v35  ;;  %v3793_v35 = vld [vmem:[#allocation8 + $0x2c0] sm:$0xff] }
 0x2b2   :  { %6871 = vmatpush1.bf16.msra.mxu1 %v16990_v34  ;;  %v17071_v34 = vcombine.high %v3929_v25, %v3933_v5  ;;  %v3917_v49 = vld [vmem:[#allocation8 + $0x6a0] sm:$0xff]  ;;  %v3689_v25 = vsel %vm3673_vm2, %v20097_v24, %v3681_v11 }
 0x2b3   :  { %6872 = vmatprep.subr.bf16.mxu1 %v16983_v36  ;;  %v3797_v36 = vld [vmem:[#allocation8 + $0x2e0] sm:$0xff]  ;;  %v17054_v1 = vcombine.low %v3913_v48, %v3917_v49 }
 0x2b4   :  { %6832 = vmatpush1.bf16.msra.mxu0 %v16854_v43  ;;  %v16935_v43 = vcombine.high %v3793_v35, %v3797_v36  ;;  %v16934_v50 = vcombine.low %v3793_v35, %v3797_v36  ;;  %v3905_v61 = vld [vmem:[#allocation8 + $0x640] sm:$0xff] }
 0x2b5   :  { %6833 = vmatprep.subr.bf16.mxu0 %v16847_v2  ;;  %v3785_v2 = vld [vmem:[#allocation8 + $0x280] sm:$0xff] }
 0x2b6   :  { %6873 = vmatpush1.bf16.msra.mxu1 %v16982_v44  ;;  %v17063_v44 = vcombine.high %v3921_v47, %v3925_v26  ;;  %v3909_v62 = vld [vmem:[#allocation8 + $0x660] sm:$0xff] }
 0x2b7   :  { %6874 = vmatprep.subr.bf16.mxu1 %v16975_v45  ;;  %v3789_v45 = vld [vmem:[#allocation8 + $0x2a0] sm:$0xff] }
 0x2b8   :  { %6834 = vmatpush1.bf16.msra.mxu0 %v16846_v52  ;;  %v16927_v52 = vcombine.high %v3785_v2, %v3789_v45  ;;  %v16926_v63 = vcombine.low %v3785_v2, %v3789_v45  ;;  %v3901_v39 = vld [vmem:[#allocation8 + $0x620] sm:$0xff] }
 0x2b9   :  { %6835 = vmatprep.subr.bf16.mxu0 %v16967_v55  ;;  %v3777_v55 = vld [vmem:[#allocation8 + $0x240] sm:$0xff] }
 0x2ba   :  { %6875 = vmatpush1.bf16.msra.mxu1 %v16974_v54  ;;  %v17055_v54 = vcombine.high %v3913_v48, %v3917_v49  ;;  %v4009_v5 = vld [vmem:[#allocation8 + $0x980] sm:$0xff] }
 0x2bb   :  { %6876 = vmatprep.subr.bf16.mxu1 %v17095_v57  ;;  %v3379_v9 = vpop.f32.mrf.mxu0  ;;  %v3781_v57 = vld [vmem:[#allocation8 + $0x260] sm:$0xff] }
 0x2bc   :  { %v3380_v12 = vadd.f32 %v3379_v9, %v756_v3  ;;  %6836 = vmatpush2.bf16.msra.mxu0 %v16966_v30  ;;  %v16919_v3 = vcombine.high %v3777_v55, %v3781_v57  ;;  %v17047_v30 = vcombine.high %v3905_v61, %v3909_v62  ;;  %v16918_v37 = vcombine.low %v3777_v55, %v3781_v57  ;;  %v4001_v26 = vld [vmem:[#allocation8 + $0x940] sm:$0xff] }
 0x2bd   :  { %v3420_v16 = vpop.f32.mrf.mxu1  ;;  %v20155_v15 = vpop.f32.mrf.mxu0  ;;  %6837 = vmatprep.subr.bf16.mxu0 %v16959_v7  ;;  %v3773_v7 = vld [vmem:[#allocation8 + $0x220] sm:$0xff]  ;;  %v17046_v9 = vcombine.low %v3905_v61, %v3909_v62 }
 0x2be   :  { %6877 = vmatpush2.bf16.msra.mxu1 %v17094_v4  ;;  %v20157_v58 = vadd.f32 %v3420_v16, %v3380_v12  ;;  %v3769_v4 = vld [vmem:[#allocation8 + $0x200] sm:$0xff] }
 0x2bf   :  { %v20159_v18 = vpop.f32.mrf.mxu1  ;;  %6878 = vmatprep.subr.bf16.mxu1 %v17087_v8  ;;  %v3383_v23 = vpop.f32.mrf.mxu0  ;;  %v3897_v8 = vld [vmem:[#allocation8 + $0x600] sm:$0xff]  ;;  %v16911_v10 = vcombine.high %v3769_v4, %v3773_v7  ;;  %v16910_v21 = vcombine.low %v3769_v4, %v3773_v7 }
 0x2c0   :  { %6838 = vmatpush2.bf16.msra.mxu0 %v16958_v14  ;;  %v17039_v12 = vcombine.high %v3897_v8, %v3901_v39  ;;  %v4017_v16 = vld [vmem:[#allocation8 + $0x9c0] sm:$0xff]  ;;  %v17038_v22 = vcombine.low %v3897_v8, %v3901_v39 }
 0x2c1   :  { %v3424_v29 = vpop.f32.mrf.mxu1  ;;  %v3384_v28 = vpop.f32.mrf.mxu0  ;;  %6839 = vmatprep.subr.bf16.mxu0 %v16951_v17  ;;  %v4021_v14 = vld [vmem:[#allocation8 + $0x9e0] sm:$0xff] }
 0x2c2   :  { %6879 = vmatpush2.bf16.msra.mxu1 %v17086_v46  ;;  %v3683_v46 = vmul.f32 0.1, %v20129_v32  ;;  %v4145_v17 = vld [vmem:[#allocation8 + $0xdc0] sm:$0xff]  ;;  %v17159_v23 = vcombine.high %v4017_v16, %v4021_v14 }
 0x2c3   :  { %v3425_v19 = vpop.f32.mrf.mxu1  ;;  %6880 = vmatprep.subr.bf16.mxu1 %v17079_v20  ;;  %v4149_v20 = vld [vmem:[#allocation8 + $0xde0] sm:$0xff] }
 0x2c4   :  { %6840 = vmatpush2.bf16.msra.mxu0 %v16950_v27  ;;  %v4013_v29 = vld [vmem:[#allocation8 + $0x9a0] sm:$0xff]  ;;  %v17287_v27 = vcombine.high %v4145_v17, %v4149_v20  ;;  %v3691_v28 = vsel %vm3675_vm3, %v20129_v32, %v3683_v46  ;;  %v17158_v19 = vcombine.low %v4017_v16, %v4021_v14  ;;  %v17286_v36 = vcombine.low %v4145_v17, %v4149_v20  ;;  %v20179_v16 = vld [vmem:[#allocation8 + $0x5e8] sm:$0xff] }
 0x2c5   :  { %6841 = vmatprep.subr.bf16.mxu0 %v16943_v41  ;;  %v4141_v41 = vld [vmem:[#allocation8 + $0xda0] sm:$0xff]  ;;  %v17151_v35 = vcombine.high %v4009_v5, %v4013_v29  ;;  %v20169_v47 = vpack.c.bf16 %v3691_v28, %v3691_v28 }
 0x2c6   :  { %6881 = vmatpush2.bf16.msra.mxu1 %v17078_v31  ;;  %v4137_v31 = vld [vmem:[#allocation8 + $0xd80] sm:$0xff] }
 0x2c7   :  { %6882 = vmatprep.subr.bf16.mxu1 %v17071_v34  ;;  %v20167_v34 = vpack.c.bf16 %v3689_v25, %v3689_v25  ;;  %v4005_v24 = vld [vmem:[#allocation8 + $0x960] sm:$0xff]  ;;  %v17278_v45 = vcombine.low %v4137_v31, %v4141_v41 }
 0x2c8   :  { %6842 = vmatpush2.bf16.msra.mxu0 %v16942_v40  ;;  %v17279_v40 = vcombine.high %v4137_v31, %v4141_v41  ;;  %v4133_v32 = vld [vmem:[#allocation8 + $0xd60] sm:$0xff]  ;;  %v17143_v2 = vcombine.high %v4001_v26, %v4005_v24  ;;  %v17142_v57 = vcombine.low %v4001_v26, %v4005_v24 }
 0x2c9   :  { %6843 = vmatprep.subr.bf16.mxu0 %v16935_v43  ;;  %v3993_v49 = vld [vmem:[#allocation8 + $0x900] sm:$0xff] }
 0x2ca   :  { %6883 = vmatpush2.bf16.msra.mxu1 %v17070_v42  ;;  %v4129_v42 = vld [vmem:[#allocation8 + $0xd40] sm:$0xff] }
 0x2cb   :  { %6884 = vmatprep.subr.bf16.mxu1 %v17063_v44  ;;  %v17150_v44 = vcombine.low %v4009_v5, %v4013_v29  ;;  %v17270_v62 = vcombine.low %v4129_v42, %v4133_v32  ;;  %v4113_v4 = vld [vmem:[#allocation8 + $0xcc0] sm:$0xff] }
 0x2cc   :  { %6844 = vmatpush2.bf16.msra.mxu0 %v16934_v50  ;;  %v3997_v50 = vld [vmem:[#allocation8 + $0x920] sm:$0xff] }
 0x2cd   :  { %6845 = vmatprep.subr.bf16.mxu0 %v16927_v52  ;;  %v4121_v52 = vld [vmem:[#allocation8 + $0xd00] sm:$0xff]  ;;  %v17135_v61 = vcombine.high %v3993_v49, %v3997_v50  ;;  %v17134_v8 = vcombine.low %v3993_v49, %v3997_v50 }
 0x2ce   :  { %6885 = vmatpush2.bf16.msra.mxu1 %v17062_v51  ;;  %v17271_v51 = vcombine.high %v4129_v42, %v4133_v32  ;;  %v4117_v7 = vld [vmem:[#allocation8 + $0xce0] sm:$0xff] }
 0x2cf   :  { %6886 = vmatprep.subr.bf16.mxu1 %v17055_v54  ;;  %v4125_v54 = vld [vmem:[#allocation8 + $0xd20] sm:$0xff]  ;;  %v17255_v11 = vcombine.high %v4113_v4, %v4117_v7 }
 0x2d0   :  { %6846 = vmatpush2.bf16.msra.mxu0 %v16926_v63  ;;  %v4105_v14 = vld [vmem:[#allocation8 + $0xc80] sm:$0xff] }
 0x2d1   :  { %6847 = vmatprep.subr.bf16.mxu0 %v16919_v3  ;;  %v3989_v3 = vld [vmem:[#allocation8 + $0x8e0] sm:$0xff] }
 0x2d2   :  { %6887 = vmatpush2.bf16.msra.mxu1 %v17054_v1  ;;  %v3985_v1 = vld [vmem:[#allocation8 + $0x8c0] sm:$0xff] }
 0x2d3   :  { %6888 = vmatprep.subr.bf16.mxu1 %v17047_v30  ;;  %v17263_v30 = vcombine.high %v4121_v52, %v4125_v54  ;;  %v17127_v39 = vcombine.high %v3985_v1, %v3989_v3  ;;  %v4109_v46 = vld [vmem:[#allocation8 + $0xca0] sm:$0xff]  ;;  %v17126_v17 = vcombine.low %v3985_v1, %v3989_v3 }
 0x2d4   :  { %6848 = vmatpush2.bf16.msra.mxu0 %v16918_v37  ;;  %v3977_v37 = vld [vmem:[#allocation8 + $0x880] sm:$0xff]  ;;  %v17247_v5 = vcombine.high %v4105_v14, %v4109_v46  ;;  %v17246_v41 = vcombine.low %v4105_v14, %v4109_v46 }
 0x2d5   :  { %6849 = vmatprep.subr.bf16.mxu0 %v16911_v10  ;;  %v3981_v10 = vld [vmem:[#allocation8 + $0x8a0] sm:$0xff] }
 0x2d6   :  { %6889 = vmatpush2.bf16.msra.mxu1 %v17046_v9  ;;  %v17262_v9 = vcombine.low %v4121_v52, %v4125_v54  ;;  %v3973_v25 = vld [vmem:[#allocation8 + $0x860] sm:$0xff]  ;;  %v17118_v28 = vcombine.low %v3977_v37, %v3981_v10  ;;  %v20186_v52 = vld [vmem:[#allocation7] sm:$0xff] }
 0x2d7   :  { %6890 = vmatprep.subr.bf16.mxu1 %v17039_v12  ;;  %v20177_v12 = vld [vmem:[#allocation8 + $0x5c8] sm:$0xff]  ;;  %v4097_v29 = vld [vmem:[#allocation8 + $0xc40] sm:$0xff] }
 0x2d8   :  { %6850 = vmatpush2.bf16.msra.mxu0 %v16910_v21  ;;  %v17032_v20 = vcombine.low %v20177_v12, %v20179_v16  ;;  %v17119_v21 = vcombine.high %v3977_v37, %v3981_v10  ;;  %v4089_v26 = vld [vmem:[#allocation8 + $0xc00] sm:$0xff] }
 0x2d9   :  { %6901 = vmatprep.subr.bf16.mxu0 %v17159_v23  ;;  %v3969_v23 = vld [vmem:[#allocation8 + $0x840] sm:$0xff] }
 0x2da   :  { %6891 = vmatpush2.bf16.msra.mxu1 %v17038_v22  ;;  %v17254_v22 = vcombine.low %v4113_v4, %v4117_v7  ;;  %v17111_v31 = vcombine.high %v3969_v23, %v3973_v25  ;;  %v4093_v24 = vld [vmem:[#allocation8 + $0xc20] sm:$0xff]  ;;  %v17110_v42 = vcombine.low %v3969_v23, %v3973_v25 }
 0x2db   :  { %6942 = vmatprep.subr.bf16.mxu1 %v17287_v27  ;;  %6852 = vmatmul.mubr.bf16.vlgmr.msra.gmra.mxu0 %v20167_v34  ;;  %v4101_v27 = vld [vmem:[#allocation8 + $0xc60] sm:$0xff]  ;;  %v17231_v49 = vcombine.high %v4089_v26, %v4093_v24 }
 0x2dc   :  { %6902 = vmatpush1.bf16.msra.mxu0 %v17158_v19  ;;  %v3961_v19 = vld [vmem:[#allocation8 + $0x800] sm:$0xff] }
 0x2dd   :  { %v20172_v43 = vpop.f32.mrf.mxu1  ;;  %6893 = vmatmul.mubr.bf16.vlgmr.msra.gmra.mxu1 %v20169_v47  ;;  %6903 = vmatprep.subr.bf16.mxu0 %v17151_v35  ;;  %v3965_v35 = vld [vmem:[#allocation8 + $0x820] sm:$0xff] }
 0x2de   :  { %6943 = vmatpush1.bf16.msra.mxu1 %v17286_v36  ;;  %v17239_v36 = vcombine.high %v4097_v29, %v4101_v27  ;;  %v17103_v32 = vcombine.high %v3961_v19, %v3965_v35  ;;  %v4209_v50 = vld [vmem:[#allocation8 + $0xfc0] sm:$0xff] }
 0x2df   :  { %v20175_v48 = vpop.f32.mrf.mxu1  ;;  %6944 = vmatprep.subr.bf16.mxu1 %v17279_v40  ;;  %v20184_v40 = vsub.s32 5, %v20072_v60  ;;  %v4201_v3 = vld [vmem:[#allocation8 + $0xf80] sm:$0xff] }
 0x2e0   :  { %6904 = vmatpush1.bf16.msra.mxu0 %v17150_v44  ;;  %v17238_v44 = vcombine.low %v4097_v29, %v4101_v27  ;;  %v4065_v37 = vld [vmem:[#allocation8 + $0xb40] sm:$0xff] }
 0x2e1   :  { %v3506_v55 = vpop.f32.mrf.mxu1  ;;  %6905 = vmatprep.subr.bf16.mxu0 %v17143_v2  ;;  %v4081_v2 = vld [vmem:[#allocation8 + $0xbc0] sm:$0xff]  ;;  %v760_v54 = vrot.slane %v20186_v52, %v20184_v40 }
 0x2e2   :  { %6945 = vmatpush1.bf16.msra.mxu1 %v17278_v45  ;;  %v4085_v45 = vld [vmem:[#allocation8 + $0xbe0] sm:$0xff]  ;;  %v17102_v55 = vcombine.low %v3961_v19, %v3965_v35 }
 0x2e3   :  { %v3507_v63 = vpop.f32.mrf.mxu1  ;;  %6946 = vmatprep.subr.bf16.mxu1 %v17271_v51  ;;  %v4213_v51 = vld [vmem:[#allocation8 + $0xfe0] sm:$0xff]  ;;  %v3382_v4 = vadd.f32 %v20155_v15, %v760_v54  ;;  %v17222_v7 = vcombine.low %v4081_v2, %v4085_v45 }
 0x2e4   :  { %6906 = vmatpush1.bf16.msra.mxu0 %v17142_v57  ;;  %v17223_v57 = vcombine.high %v4081_v2, %v4085_v45  ;;  %v4077_v63 = vld [vmem:[#allocation8 + $0xba0] sm:$0xff]  ;;  %v17351_v1 = vcombine.high %v4209_v50, %v4213_v51 }
 0x2e5   :  { %6907 = vmatprep.subr.bf16.mxu0 %v17135_v61  ;;  %v17230_v61 = vcombine.low %v4089_v26, %v4093_v24  ;;  %v4193_v14 = vld [vmem:[#allocation8 + $0xf40] sm:$0xff] }
 0x2e6   :  { %6947 = vmatpush1.bf16.msra.mxu1 %v17270_v62  ;;  %v4073_v62 = vld [vmem:[#allocation8 + $0xb80] sm:$0xff] }
 0x2e7   :  { %6948 = vmatprep.subr.bf16.mxu1 %v17263_v30  ;;  %v4205_v30 = vld [vmem:[#allocation8 + $0xfa0] sm:$0xff] }
 0x2e8   :  { %6908 = vmatpush1.bf16.msra.mxu0 %v17134_v8  ;;  %v17215_v8 = vcombine.high %v4073_v62, %v4077_v63  ;;  %v17343_v10 = vcombine.high %v4201_v3, %v4205_v30  ;;  %v4197_v46 = vld [vmem:[#allocation8 + $0xf60] sm:$0xff]  ;;  %v17342_v23 = vcombine.low %v4201_v3, %v4205_v30 }
 0x2e9   :  { %6909 = vmatprep.subr.bf16.mxu0 %v17127_v39  ;;  %v17350_v39 = vcombine.low %v4209_v50, %v4213_v51  ;;  %v4061_v29 = vld [vmem:[#allocation8 + $0xb20] sm:$0xff]  ;;  %v17335_v27 = vcombine.high %v4193_v14, %v4197_v46  ;;  %v17334_v26 = vcombine.low %v4193_v14, %v4197_v46 }
 0x2ea   :  { %6949 = vmatpush1.bf16.msra.mxu1 %v17262_v9  ;;  %v4069_v9 = vld [vmem:[#allocation8 + $0xb60] sm:$0xff] }
 0x2eb   :  { %6950 = vmatprep.subr.bf16.mxu1 %v17255_v11  ;;  %v17207_v15 = vcombine.high %v4065_v37, %v4069_v9  ;;  %v17206_v35 = vcombine.low %v4065_v37, %v4069_v9  ;;  %v4177_v2 = vld [vmem:[#allocation8 + $0xec0] sm:$0xff] }
 0x2ec   :  { %6910 = vmatpush1.bf16.msra.mxu0 %v17126_v17  ;;  %v3423_v17 = vadd.f32 %v20159_v18, %v3382_v4  ;;  %v4181_v45 = vld [vmem:[#allocation8 + $0xee0] sm:$0xff] }
 0x2ed   :  { %6911 = vmatprep.subr.bf16.mxu0 %v17119_v21  ;;  %v17214_v21 = vcombine.low %v4073_v62, %v4077_v63  ;;  %v4169_v62 = vld [vmem:[#allocation8 + $0xe80] sm:$0xff]  ;;  %v17318_v30 = vcombine.low %v4177_v2, %v4181_v45 }
 0x2ee   :  { %6951 = vmatpush1.bf16.msra.mxu1 %v17254_v22  ;;  %v4173_v63 = vld [vmem:[#allocation8 + $0xea0] sm:$0xff] }
 0x2ef   :  { %6952 = vmatprep.subr.bf16.mxu1 %v17247_v5  ;;  %v4057_v5 = vld [vmem:[#allocation8 + $0xb00] sm:$0xff]  ;;  %v17310_v46 = vcombine.low %v4169_v62, %v4173_v63 }
 0x2f0   :  { %6912 = vmatpush1.bf16.msra.mxu0 %v17118_v28  ;;  %v17198_v50 = vcombine.low %v4057_v5, %v4061_v29  ;;  %v4161_v37 = vld [vmem:[#allocation8 + $0xe40] sm:$0xff] }
 0x2f1   :  { %6913 = vmatprep.subr.bf16.mxu0 %v17111_v31  ;;  %v4185_v31 = vld [vmem:[#allocation8 + $0xf00] sm:$0xff] }
 0x2f2   :  { %6953 = vmatpush1.bf16.msra.mxu1 %v17246_v41  ;;  %v4189_v41 = vld [vmem:[#allocation8 + $0xf20] sm:$0xff] }
 0x2f3   :  { %6954 = vmatprep.subr.bf16.mxu1 %v17239_v36  ;;  %v17199_v36 = vcombine.high %v4057_v5, %v4061_v29  ;;  %v17326_v54 = vcombine.low %v4185_v31, %v4189_v41  ;;  %v4165_v9 = vld [vmem:[#allocation8 + $0xe60] sm:$0xff] }
 0x2f4   :  { %6914 = vmatpush1.bf16.msra.mxu0 %v17110_v42  ;;  %v4049_v42 = vld [vmem:[#allocation8 + $0xac0] sm:$0xff]  ;;  %v17302_v5 = vcombine.low %v4161_v37, %v4165_v9 }
 0x2f5   :  { %6915 = vmatprep.subr.bf16.mxu0 %v17103_v32  ;;  %v4053_v32 = vld [vmem:[#allocation8 + $0xae0] sm:$0xff] }
 0x2f6   :  { %6955 = vmatpush1.bf16.msra.mxu1 %v17238_v44  ;;  %v17327_v44 = vcombine.high %v4185_v31, %v4189_v41 }
 0x2f7   :  { %6956 = vmatprep.subr.bf16.mxu1 %v17231_v49 }
 0x2f8   :  { %6916 = vmatpush1.bf16.msra.mxu0 %v17102_v55  ;;  %v4041_v55 = vld [vmem:[#allocation8 + $0xa80] sm:$0xff] }
 0x2f9   :  { %6917 = vmatprep.subr.bf16.mxu0 %v17223_v57  ;;  %v4045_v57 = vld [vmem:[#allocation8 + $0xaa0] sm:$0xff] }
 0x2fa   :  { %6957 = vmatpush1.bf16.msra.mxu1 %v17230_v61  ;;  %v17319_v61 = vcombine.high %v4177_v2, %v4181_v45  ;;  %v17183_v3 = vcombine.high %v4041_v55, %v4045_v57  ;;  %v3750_v2 = vld [vmem:[#allocation8 + $0x168] sm:$0xff] }
 0x2fb   :  { %6958 = vmatprep.subr.bf16.mxu1 %v17351_v1  ;;  %v3461_v11 = vpop.f32.mrf.mxu0  ;;  %v17190_v1 = vcombine.low %v4049_v42, %v4053_v32 }
 0x2fc   :  { %6918 = vmatpush2.bf16.msra.mxu0 %v17222_v7  ;;  %v3462_v4 = vadd.f32 %v3461_v11, %v20157_v58  ;;  %v4033_v7 = vld [vmem:[#allocation8 + $0xa40] sm:$0xff] }
 0x2fd   :  { %v3463_v22 = vpop.f32.mrf.mxu0  ;;  %6919 = vmatprep.subr.bf16.mxu0 %v17215_v8  ;;  %v4037_v8 = vld [vmem:[#allocation8 + $0xa60] sm:$0xff] }
 0x2fe   :  { %6959 = vmatpush2.bf16.msra.mxu1 %v17350_v39  ;;  %v3464_v25 = vadd.f32 %v3463_v22, %v3423_v17  ;;  %v17311_v39 = vcombine.high %v4169_v62, %v4173_v63  ;;  %v17175_v14 = vcombine.high %v4033_v7, %v4037_v8  ;;  %v3503_v17 = vadd.f32 %v20172_v43, %v3462_v4  ;;  %v4029_v22 = vld [vmem:[#allocation8 + $0xa20] sm:$0xff] }
 0x2ff   :  { %6960 = vmatprep.subr.bf16.mxu1 %v17343_v10  ;;  %v3465_v28 = vpop.f32.mrf.mxu0  ;;  %v17182_v10 = vcombine.low %v4041_v55, %v4045_v57  ;;  %v4157_v58 = vld [vmem:[#allocation8 + $0xe20] sm:$0xff]  ;;  %v17174_v11 = vcombine.low %v4033_v7, %v4037_v8  ;;  %v3742_v55 = vld [vmem:[#allocation8 + $0x128] sm:$0xff] }
 0x300   :  { %v3505_v19 = vadd.f32 %v20175_v48, %v3464_v25  ;;  %6920 = vmatpush2.bf16.msra.mxu0 %v17214_v21  ;;  %v17191_v48 = vcombine.high %v4049_v42, %v4053_v32  ;;  %v4025_v21 = vld [vmem:[#allocation8 + $0xa00] sm:$0xff]  ;;  %v3685_v29 = vmul.f32 0.1, %v3503_v17  ;;  %v3766_v28 = vld [vmem:[#allocation8 + $0x1e8] sm:$0xff]  ;;  %vm3677_vm5 = vcmp.ge.f32.partialorder %v3503_v17, 0.0 }
 0x301   :  { %v3466_v18 = vpop.f32.mrf.mxu0  ;;  %6921 = vmatprep.subr.bf16.mxu0 %v17207_v15  ;;  %v17303_v15 = vcombine.high %v4161_v37, %v4165_v9  ;;  %v17167_v25 = vcombine.high %v4025_v21, %v4029_v22  ;;  %v17166_v43 = vcombine.low %v4025_v21, %v4029_v22  ;;  %v3722_v7 = vld [vmem:[#allocation8 + $0x88] sm:$0xff] }
 0x302   :  { %6961 = vmatpush2.bf16.msra.mxu1 %v17342_v23  ;;  %vm3678_vm4 = vcmp.ge.f32.partialorder %v3505_v19, 0.0  ;;  %v3686_v24 = vmul.f32 0.1, %v3505_v19  ;;  %v4153_v23 = vld [vmem:[#allocation8 + $0xe00] sm:$0xff]  ;;  %v3754_v18 = vld [vmem:[#allocation8 + $0x188] sm:$0xff] }
 0x303   :  { %6962 = vmatprep.subr.bf16.mxu1 %v17335_v27  ;;  %v3762_v27 = vld [vmem:[#allocation8 + $0x1c8] sm:$0xff]  ;;  %v17295_v31 = vcombine.high %v4153_v23, %v4157_v58 }
 0x304   :  { %v3694_v49 = vsel %vm3678_vm4, %v3505_v19, %v3686_v24  ;;  %6922 = vmatpush2.bf16.msra.mxu0 %v17206_v35  ;;  %v16905_v41 = vcombine.high %v3762_v27, %v3766_v28  ;;  %v17294_v19 = vcombine.low %v4153_v23, %v4157_v58  ;;  %v3693_v35 = vsel %vm3677_vm5, %v3503_v17, %v3685_v29  ;;  %v3726_v8 = vld [vmem:[#allocation8 + $0xa8] sm:$0xff] }
 0x305   :  { %v20193_v51 = vpack.c.bf16 %v3694_v49, %v3694_v49  ;;  %6923 = vmatprep.subr.bf16.mxu0 %v17199_v36  ;;  %v3758_v36 = vld [vmem:[#allocation8 + $0x1a8] sm:$0xff]  ;;  %v16904_v24 = vcombine.low %v3762_v27, %v3766_v28  ;;  %v20200_v42 = vpack.c.bf16 %v3693_v35, %v3693_v35  ;;  %v16865_v37 = vcombine.high %v3722_v7, %v3726_v8 }
 0x306   :  { %6963 = vmatpush2.bf16.msra.mxu1 %v17334_v26  ;;  %v17033_v26 = vcombine.high %v20177_v12, %v20179_v16  ;;  %v16897_v32 = vcombine.high %v3754_v18, %v3758_v36  ;;  %v16896_v49 = vcombine.low %v3754_v18, %v3758_v36  ;;  %v3714_v9 = vld [vmem:[#allocation8 + $0x48] sm:$0xff] }
 0x307   :  { %6964 = vmatprep.subr.bf16.mxu1 %v17327_v44  ;;  %6933 = vmatprep.mubr.bf16.mxu0 %v20193_v51  ;;  %v3746_v44 = vld [vmem:[#allocation8 + $0x148] sm:$0xff] }
 0x308   :  { %6924 = vmatpush2.bf16.msra.mxu0 %v17198_v50  ;;  %v16889_v50 = vcombine.high %v3746_v44, %v3750_v2  ;;  %v3706_v17 = vld [vmem:[#allocation8 + $0x8] sm:$0xff] }
 0x309   :  { %6925 = vmatprep.subr.bf16.mxu0 %v17191_v48  ;;  %v3710_v21 = vld [vmem:[#allocation8 + $0x28] sm:$0xff] }
 0x30a   :  { %6965 = vmatpush2.bf16.msra.mxu1 %v17326_v54  ;;  %v3738_v54 = vld [vmem:[#allocation8 + $0x108] sm:$0xff] }
 0x30b   :  { %6966 = vmatprep.subr.bf16.mxu1 %v17319_v61  ;;  %v16888_v61 = vcombine.low %v3746_v44, %v3750_v2  ;;  %v16881_v62 = vcombine.high %v3738_v54, %v3742_v55  ;;  %v3826_v23 = vld [vmem:[#allocation8 + $0x3c8] sm:$0xff] }
 0x30c   :  { %6926 = vmatpush2.bf16.msra.mxu0 %v17190_v1  ;;  %v3730_v1 = vld [vmem:[#allocation8 + $0xc8] sm:$0xff] }
 0x30d   :  { %6927 = vmatprep.subr.bf16.mxu0 %v17183_v3  ;;  %v3734_v3 = vld [vmem:[#allocation8 + $0xe8] sm:$0xff] }
 0x30e   :  { %6967 = vmatpush2.bf16.msra.mxu1 %v17318_v30  ;;  %v16880_v30 = vcombine.low %v3738_v54, %v3742_v55  ;;  %v16873_v4 = vcombine.high %v3730_v1, %v3734_v3  ;;  %v3830_v58 = vld [vmem:[#allocation8 + $0x3e8] sm:$0xff] }
 0x30f   :  { %6968 = vmatprep.subr.bf16.mxu1 %v17311_v39  ;;  %v16872_v39 = vcombine.low %v3730_v1, %v3734_v3  ;;  %v3822_v29 = vld [vmem:[#allocation8 + $0x3a8] sm:$0xff]  ;;  %v16968_v27 = vcombine.low %v3826_v23, %v3830_v58 }
 0x310   :  { %6928 = vmatpush2.bf16.msra.mxu0 %v17182_v10  ;;  %v3718_v10 = vld [vmem:[#allocation8 + $0x68] sm:$0xff] }
 0x311   :  { %6929 = vmatprep.subr.bf16.mxu0 %v17175_v14  ;;  %v16864_v14 = vcombine.low %v3722_v7, %v3726_v8  ;;  %v16856_v22 = vcombine.low %v3714_v9, %v3718_v10  ;;  %v3802_v36 = vld [vmem:[#allocation8 + $0x308] sm:$0xff] }
 0x312   :  { %6969 = vmatpush2.bf16.msra.mxu1 %v17310_v46  ;;  %v16857_v46 = vcombine.high %v3714_v9, %v3718_v10  ;;  %v3778_v1 = vld [vmem:[#allocation8 + $0x248] sm:$0xff] }
 0x313   :  { %6970 = vmatprep.subr.bf16.mxu1 %v17303_v15  ;;  %v16849_v15 = vcombine.high %v3706_v17, %v3710_v21  ;;  %v3782_v3 = vld [vmem:[#allocation8 + $0x268] sm:$0xff] }
 0x314   :  { %6930 = vmatpush2.bf16.msra.mxu0 %v17174_v11  ;;  %v16848_v11 = vcombine.low %v3706_v17, %v3710_v21  ;;  %v3770_v7 = vld [vmem:[#allocation8 + $0x208] sm:$0xff] }
 0x315   :  { %6931 = vmatprep.subr.bf16.mxu0 %v17167_v25  ;;  %v16969_v25 = vcombine.high %v3826_v23, %v3830_v58  ;;  %v3774_v8 = vld [vmem:[#allocation8 + $0x228] sm:$0xff] }
 0x316   :  { %6971 = vmatpush2.bf16.msra.mxu1 %v17302_v5  ;;  %v3818_v5 = vld [vmem:[#allocation8 + $0x388] sm:$0xff]  ;;  %v16913_v9 = vcombine.high %v3770_v7, %v3774_v8  ;;  %v16912_v17 = vcombine.low %v3770_v7, %v3774_v8 }
 0x317   :  { %6972 = vmatprep.subr.bf16.mxu1 %v17295_v31  ;;  %v16961_v28 = vcombine.high %v3818_v5, %v3822_v29  ;;  %v3810_v31 = vld [vmem:[#allocation8 + $0x348] sm:$0xff] }
 0x318   :  { %6932 = vmatpush2.bf16.msra.mxu0 %v17166_v43  ;;  %v3814_v43 = vld [vmem:[#allocation8 + $0x368] sm:$0xff] }
 0x319   :  { %6983 = vmatprep.subr.bf16.mxu0 %v16905_v41  ;;  %v16953_v18 = vcombine.high %v3810_v31, %v3814_v43  ;;  %v4018_v10 = vld [vmem:[#allocation8 + $0x9c8] sm:$0xff] }
 0x31a   :  { %6973 = vmatpush2.bf16.msra.mxu1 %v17294_v19  ;;  %v16960_v19 = vcombine.low %v3818_v5, %v3822_v29  ;;  %v4014_v23 = vld [vmem:[#allocation8 + $0x9a8] sm:$0xff] }
 0x31b   :  { %7024 = vmatprep.subr.bf16.mxu1 %v17033_v26  ;;  %6934 = vmatmul.mubr.bf16.vlgmr.msra.gmra.mxu0 %v20200_v42  ;;  %v3806_v26 = vld [vmem:[#allocation8 + $0x328] sm:$0xff] }
 0x31c   :  { %6984 = vmatpush1.bf16.msra.mxu0 %v16904_v24  ;;  %7015 = vmatprep.mubr.bf16.mxu0 %v20142_v53  ;;  %v16945_v2 = vcombine.high %v3802_v36, %v3806_v26  ;;  %v16944_v54 = vcombine.low %v3802_v36, %v3806_v26  ;;  %v4006_v29 = vld [vmem:[#allocation8 + $0x968] sm:$0xff] }
 0x31d   :  { %v20203_v45 = vpop.f32.mrf.mxu1  ;;  %6985 = vmatprep.subr.bf16.mxu0 %v16897_v32  ;;  %v16952_v32 = vcombine.low %v3810_v31, %v3814_v43 }
 0x31f   :  { %v20206_v48 = vpop.f32.mrf.mxu1 }
 0x320   :  { %6986 = vmatpush1.bf16.msra.mxu0 %v16896_v49  ;;  %v3794_v49 = vld [vmem:[#allocation8 + $0x2c8] sm:$0xff] }
 0x321   :  { %v3547_v57 = vpop.f32.mrf.mxu1  ;;  %6987 = vmatprep.subr.bf16.mxu0 %v16889_v50  ;;  %v3798_v50 = vld [vmem:[#allocation8 + $0x2e8] sm:$0xff] }
 0x322   :  { %v16937_v55 = vcombine.high %v3794_v49, %v3798_v50  ;;  %v3786_v57 = vld [vmem:[#allocation8 + $0x288] sm:$0xff] }
 0x323   :  { %v3548_v63 = vpop.f32.mrf.mxu1 }
 0x324   :  { %6988 = vmatpush1.bf16.msra.mxu0 %v16888_v61  ;;  %v3790_v61 = vld [vmem:[#allocation8 + $0x2a8] sm:$0xff] }
 0x325   :  { %6989 = vmatprep.subr.bf16.mxu0 %v16881_v62  ;;  %v16936_v62 = vcombine.low %v3794_v49, %v3798_v50  ;;  %v16929_v63 = vcombine.high %v3786_v57, %v3790_v61 }
 0x328   :  { %6990 = vmatpush1.bf16.msra.mxu0 %v16880_v30  ;;  %v16928_v30 = vcombine.low %v3786_v57, %v3790_v61  ;;  %v3986_v61 = vld [vmem:[#allocation8 + $0x8c8] sm:$0xff] }
 0x329   :  { %6991 = vmatprep.subr.bf16.mxu0 %v16873_v4  ;;  %v16921_v4 = vcombine.high %v3778_v1, %v3782_v3 }
 0x32c   :  { %6992 = vmatpush1.bf16.msra.mxu0 %v16872_v39  ;;  %v16920_v39 = vcombine.low %v3778_v1, %v3782_v3 }
 0x32d   :  { %6993 = vmatprep.subr.bf16.mxu0 %v16865_v37  ;;  %v20209_v37 = vsub.s32 6, %v20072_v60 }
 0x32f   :  { %v764_v21 = vrot.slane %v20186_v52, %v20209_v37 }
 0x330   :  { %6994 = vmatpush1.bf16.msra.mxu0 %v16864_v14  ;;  %v4022_v14 = vld [vmem:[#allocation8 + $0x9e8] sm:$0xff] }
 0x331   :  { %6995 = vmatprep.subr.bf16.mxu0 %v16857_v46  ;;  %v20212_v46 = vsub.s32 7, %v20072_v60  ;;  %v4002_v60 = vld [vmem:[#allocation8 + $0x948] sm:$0xff] }
 0x332   :  { %v17144_v49 = vcombine.low %v4002_v60, %v4006_v29 }
 0x333   :  { %v768_v58 = vrot.slane %v20186_v52, %v20212_v46 }
 0x334   :  { %6996 = vmatpush1.bf16.msra.mxu0 %v16856_v22  ;;  %v17161_v22 = vcombine.high %v4018_v10, %v4022_v14 }
 0x335   :  { %6997 = vmatprep.subr.bf16.mxu0 %v16849_v15  ;;  %v4010_v15 = vld [vmem:[#allocation8 + $0x988] sm:$0xff] }
 0x336   :  { %v17153_v5 = vcombine.high %v4010_v15, %v4014_v23 }
 0x338   :  { %6998 = vmatpush1.bf16.msra.mxu0 %v16848_v11  ;;  %v17160_v11 = vcombine.low %v4018_v10, %v4022_v14  ;;  %v3982_v10 = vld [vmem:[#allocation8 + $0x8a8] sm:$0xff] }
 0x339   :  { %6999 = vmatprep.subr.bf16.mxu0 %v16969_v25  ;;  %v3544_v25 = vadd.f32 %v20203_v45, %v764_v21  ;;  %v17145_v45 = vcombine.high %v4002_v60, %v4006_v29  ;;  %v3866_v29 = vld [vmem:[#allocation8 + $0x508] sm:$0xff] }
 0x33b   :  { %v3584_v41 = vpop.f32.mrf.mxu0 }
 0x33c   :  { %7000 = vmatpush2.bf16.msra.mxu0 %v16968_v27  ;;  %v3546_v27 = vadd.f32 %v20206_v48, %v768_v58 }
 0x33d   :  { %v3586_v35 = vpop.f32.mrf.mxu0  ;;  %7001 = vmatprep.subr.bf16.mxu0 %v16961_v28  ;;  %v3585_v28 = vadd.f32 %v3584_v41, %v3544_v25  ;;  %v3974_v25 = vld [vmem:[#allocation8 + $0x868] sm:$0xff] }
 0x33e   :  { %v3587_v52 = vadd.f32 %v3586_v35, %v3546_v27  ;;  %v3870_v27 = vld [vmem:[#allocation8 + $0x528] sm:$0xff] }
 0x33f   :  { %v3588_v24 = vpop.f32.mrf.mxu0  ;;  %v17009_v12 = vcombine.high %v3866_v29, %v3870_v27 }
 0x340   :  { %7002 = vmatpush2.bf16.msra.mxu0 %v16960_v19  ;;  %v17152_v19 = vcombine.low %v4010_v15, %v4014_v23  ;;  %v3994_v24 = vld [vmem:[#allocation8 + $0x908] sm:$0xff] }
 0x341   :  { %v3589_v44 = vpop.f32.mrf.mxu0  ;;  %7003 = vmatprep.subr.bf16.mxu0 %v16953_v18  ;;  %v3878_v15 = vld [vmem:[#allocation8 + $0x568] sm:$0xff] }
 0x344   :  { %7004 = vmatpush2.bf16.msra.mxu0 %v16952_v32  ;;  %v3998_v32 = vld [vmem:[#allocation8 + $0x928] sm:$0xff] }
 0x345   :  { %7005 = vmatprep.subr.bf16.mxu0 %v16945_v2  ;;  %v17137_v57 = vcombine.high %v3994_v24, %v3998_v32  ;;  %v17136_v3 = vcombine.low %v3994_v24, %v3998_v32 }
 0x348   :  { %7006 = vmatpush2.bf16.msra.mxu0 %v16944_v54 }
 0x349   :  { %7007 = vmatprep.subr.bf16.mxu0 %v16937_v55 }
 0x34c   :  { %7008 = vmatpush2.bf16.msra.mxu0 %v16936_v62  ;;  %v3990_v62 = vld [vmem:[#allocation8 + $0x8e8] sm:$0xff] }
 0x34d   :  { %7009 = vmatprep.subr.bf16.mxu0 %v16929_v63  ;;  %v17129_v8 = vcombine.high %v3986_v61, %v3990_v62  ;;  %v17128_v21 = vcombine.low %v3986_v61, %v3990_v62 }
 0x350   :  { %7010 = vmatpush2.bf16.msra.mxu0 %v16928_v30  ;;  %v3882_v30 = vld [vmem:[#allocation8 + $0x588] sm:$0xff] }
 0x351   :  { %7011 = vmatprep.subr.bf16.mxu0 %v16921_v4  ;;  %v3886_v4 = vld [vmem:[#allocation8 + $0x5a8] sm:$0xff] }
 0x352   :  { %v17024_v58 = vcombine.low %v3882_v30, %v3886_v4 }
 0x354   :  { %7012 = vmatpush2.bf16.msra.mxu0 %v16920_v39 }
 0x355   :  { %7013 = vmatprep.subr.bf16.mxu0 %v16913_v9  ;;  %v3978_v9 = vld [vmem:[#allocation8 + $0x888] sm:$0xff] }
 0x356   :  { %v17121_v23 = vcombine.high %v3978_v9, %v3982_v10  ;;  %v17120_v60 = vcombine.low %v3978_v9, %v3982_v10  ;;  %v4058_v10 = vld [vmem:[#allocation8 + $0xb08] sm:$0xff] }
 0x358   :  { %7014 = vmatpush2.bf16.msra.mxu0 %v16912_v17  ;;  %v17025_v17 = vcombine.high %v3882_v30, %v3886_v4  ;;  %v3834_v4 = vld [vmem:[#allocation8 + $0x408] sm:$0xff] }
 0x359   :  { %7065 = vmatprep.subr.bf16.mxu0 %v17161_v22  ;;  %v3874_v22 = vld [vmem:[#allocation8 + $0x548] sm:$0xff] }
 0x35b   :  { %v3666_v31 = vpop.f32.mrf.mxu0  ;;  %7016 = vmatmul.mubr.bf16.vlgmr.msra.gmra.mxu0 %v20167_v34 }
 0x35c   :  { %7066 = vmatpush1.bf16.msra.mxu0 %v17160_v11  ;;  %7097 = vmatprep.mubr.bf16.mxu0 %v20193_v51  ;;  %v3970_v11 = vld [vmem:[#allocation8 + $0x848] sm:$0xff] }
 0x35d   :  { %v3625_v43 = vpop.f32.mrf.mxu1  ;;  %v3668_v36 = vpop.f32.mrf.mxu0  ;;  %7067 = vmatprep.subr.bf16.mxu0 %v17153_v5  ;;  %v17017_v5 = vcombine.high %v3874_v22, %v3878_v15  ;;  %v17112_v16 = vcombine.low %v3970_v11, %v3974_v25 }
 0x35e   :  { %v3626_v18 = vadd.f32 %v3625_v43, %v3585_v28  ;;  %v17113_v28 = vcombine.high %v3970_v11, %v3974_v25  ;;  %v3962_v43 = vld [vmem:[#allocation8 + $0x808] sm:$0xff] }
 0x35f   :  { %v3627_v26 = vpop.f32.mrf.mxu1  ;;  %v3670_v48 = vpop.f32.mrf.mxu0  ;;  %v4050_v25 = vld [vmem:[#allocation8 + $0xac8] sm:$0xff] }
 0x360   :  { %v3667_v44 = vadd.f32 %v3666_v31, %v3626_v18  ;;  %v3628_v2 = vadd.f32 %v3627_v26, %v3587_v52  ;;  %7068 = vmatpush1.bf16.msra.mxu0 %v17152_v19  ;;  %v17016_v31 = vcombine.low %v3874_v22, %v3878_v15  ;;  %v3966_v19 = vld [vmem:[#allocation8 + $0x828] sm:$0xff] }
 0x361   :  { %v3629_v41 = vpop.f32.mrf.mxu1  ;;  %v3671_v55 = vpop.f32.mrf.mxu0  ;;  %7069 = vmatprep.subr.bf16.mxu0 %v17145_v45  ;;  %v3862_v52 = vld [vmem:[#allocation8 + $0x4e8] sm:$0xff]  ;;  %v17105_v18 = vcombine.high %v3962_v43, %v3966_v19  ;;  %v17104_v32 = vcombine.low %v3962_v43, %v3966_v19 }
 0x362   :  { %vm3679_vm6 = vcmp.ge.f32.partialorder %v3667_v44, 0.0  ;;  %v3687_v50 = vmul.f32 0.1, %v3667_v44  ;;  %v3669_v54 = vadd.f32 %v3668_v36, %v3628_v2  ;;  %v17008_v36 = vcombine.low %v3866_v29, %v3870_v27  ;;  %v4082_v45 = vld [vmem:[#allocation8 + $0xbc8] sm:$0xff] }
 0x363   :  { %v3630_v35 = vpop.f32.mrf.mxu1  ;;  %v4086_v26 = vld [vmem:[#allocation8 + $0xbe8] sm:$0xff] }
 0x364   :  { %vm3680_vm7 = vcmp.ge.f32.partialorder %v3669_v54, 0.0  ;;  %v3688_v63 = vmul.f32 0.1, %v3669_v54  ;;  %v3695_v1 = vsel %vm3679_vm6, %v3667_v44, %v3687_v50  ;;  %7070 = vmatpush1.bf16.msra.mxu0 %v17144_v49  ;;  %v3850_v44 = vld [vmem:[#allocation8 + $0x488] sm:$0xff]  ;;  %v17225_v48 = vcombine.high %v4082_v45, %v4086_v26 }
 0x365   :  { %7071 = vmatprep.subr.bf16.mxu0 %v17137_v57  ;;  %v20224_v14 = vpack.c.bf16 %v3695_v1, %v3695_v1  ;;  %v3854_v2 = vld [vmem:[#allocation8 + $0x4a8] sm:$0xff]  ;;  %v17224_v55 = vcombine.low %v4082_v45, %v4086_v26 }
 0x366   :  { %v3696_v7 = vsel %vm3680_vm7, %v3669_v54, %v3688_v63  ;;  %v4074_v49 = vld [vmem:[#allocation8 + $0xb88] sm:$0xff]  ;;  %v16993_v54 = vcombine.high %v3850_v44, %v3854_v2  ;;  %v16992_v62 = vcombine.low %v3850_v44, %v3854_v2 }
 0x367   :  { %v20222_v39 = vpack.c.bf16 %v3696_v7, %v3696_v7  ;;  %v4078_v50 = vld [vmem:[#allocation8 + $0xba8] sm:$0xff] }
 0x368   :  { %7072 = vmatpush1.bf16.msra.mxu0 %v17136_v3  ;;  %v3842_v57 = vld [vmem:[#allocation8 + $0x448] sm:$0xff]  ;;  %v17217_v61 = vcombine.high %v4074_v49, %v4078_v50  ;;  %v17216_v30 = vcombine.low %v4074_v49, %v4078_v50 }
 0x369   :  { %6974 = vmatprep.mubr.bf16.mxu1 %v20222_v39  ;;  %7073 = vmatprep.subr.bf16.mxu0 %v17129_v8  ;;  %v3846_v35 = vld [vmem:[#allocation8 + $0x468] sm:$0xff] }
 0x36a   :  { %6975 = vmatmul.mubr.bf16.vlgmr.msra.gmra.mxu1 %v20224_v14  ;;  %v4066_v63 = vld [vmem:[#allocation8 + $0xb48] sm:$0xff]  ;;  %v16985_v3 = vcombine.high %v3842_v57, %v3846_v35  ;;  %v16984_v9 = vcombine.low %v3842_v57, %v3846_v35 }
 0x36b   :  { %7025 = vmatpush1.bf16.msra.mxu1 %v17032_v20  ;;  %7056 = vmatprep.mubr.bf16.mxu1 %v20145_v33  ;;  %v3858_v20 = vld [vmem:[#allocation8 + $0x4c8] sm:$0xff] }
 0x36c   :  { %7026 = vmatprep.subr.bf16.mxu1 %v17025_v17  ;;  %7074 = vmatpush1.bf16.msra.mxu0 %v17128_v21  ;;  %v17001_v24 = vcombine.high %v3858_v20, %v3862_v52  ;;  %v17000_v41 = vcombine.low %v3858_v20, %v3862_v52  ;;  %v4070_v1 = vld [vmem:[#allocation8 + $0xb68] sm:$0xff] }
 0x36d   :  { %7075 = vmatprep.subr.bf16.mxu0 %v17121_v23  ;;  %v3838_v7 = vld [vmem:[#allocation8 + $0x428] sm:$0xff]  ;;  %v17209_v8 = vcombine.high %v4066_v63, %v4070_v1  ;;  %v17208_v22 = vcombine.low %v4066_v63, %v4070_v1  ;;  %v3763_v1 = vld [vmem:[#allocation8 + $0x1d0] sm:$0xff] }
 0x36e   :  { %v4062_v17 = vld [vmem:[#allocation8 + $0xb28] sm:$0xff]  ;;  %v16977_v21 = vcombine.high %v3834_v4, %v3838_v7  ;;  %v16976_v11 = vcombine.low %v3834_v4, %v3838_v7 }
 0x36f   :  { %7027 = vmatpush1.bf16.msra.mxu1 %v17024_v58  ;;  %v3954_v15 = vld [vmem:[#allocation8 + $0x7c8] sm:$0xff]  ;;  %v17201_v58 = vcombine.high %v4058_v10, %v4062_v17  ;;  %v17200_v29 = vcombine.low %v4058_v10, %v4062_v17 }
 0x370   :  { %7028 = vmatprep.subr.bf16.mxu1 %v17017_v5  ;;  %7076 = vmatpush1.bf16.msra.mxu0 %v17120_v60  ;;  %v3958_v23 = vld [vmem:[#allocation8 + $0x7e8] sm:$0xff] }
 0x371   :  { %7077 = vmatprep.subr.bf16.mxu0 %v17113_v28  ;;  %v4054_v5 = vld [vmem:[#allocation8 + $0xae8] sm:$0xff]  ;;  %v17097_v60 = vcombine.high %v3954_v15, %v3958_v23  ;;  %v17096_v43 = vcombine.low %v3954_v15, %v3958_v23 }
 0x372   :  { %v3946_v27 = vld [vmem:[#allocation8 + $0x788] sm:$0xff]  ;;  %v17192_v20 = vcombine.low %v4050_v25, %v4054_v5 }
 0x373   :  { %7029 = vmatpush1.bf16.msra.mxu1 %v17016_v31  ;;  %v3950_v28 = vld [vmem:[#allocation8 + $0x7a8] sm:$0xff]  ;;  %v17193_v31 = vcombine.high %v4050_v25, %v4054_v5 }
 0x374   :  { %7030 = vmatprep.subr.bf16.mxu1 %v17009_v12  ;;  %7078 = vmatpush1.bf16.msra.mxu0 %v17112_v16  ;;  %v4042_v19 = vld [vmem:[#allocation8 + $0xa88] sm:$0xff]  ;;  %v17089_v16 = vcombine.high %v3946_v27, %v3950_v28  ;;  %v17088_v45 = vcombine.low %v3946_v27, %v3950_v28  ;;  %v3747_v27 = vld [vmem:[#allocation8 + $0x150] sm:$0xff] }
 0x375   :  { %7079 = vmatprep.subr.bf16.mxu0 %v17105_v18  ;;  %v4046_v12 = vld [vmem:[#allocation8 + $0xaa8] sm:$0xff]  ;;  %v3751_v28 = vld [vmem:[#allocation8 + $0x170] sm:$0xff] }
 0x376   :  { %v3938_v52 = vld [vmem:[#allocation8 + $0x748] sm:$0xff]  ;;  %v17184_v44 = vcombine.low %v4042_v19, %v4046_v12 }
 0x377   :  { %7031 = vmatpush1.bf16.msra.mxu1 %v17008_v36  ;;  %v3942_v18 = vld [vmem:[#allocation8 + $0x768] sm:$0xff]  ;;  %v17185_v36 = vcombine.high %v4042_v19, %v4046_v12 }
 0x378   :  { %7032 = vmatprep.subr.bf16.mxu1 %v17001_v24  ;;  %7080 = vmatpush1.bf16.msra.mxu0 %v17104_v32  ;;  %v4034_v26 = vld [vmem:[#allocation8 + $0xa48] sm:$0xff]  ;;  %v17081_v32 = vcombine.high %v3938_v52, %v3942_v18  ;;  %v17080_v49 = vcombine.low %v3938_v52, %v3942_v18 }
 0x379   :  { %7081 = vmatprep.subr.bf16.mxu0 %v17225_v48  ;;  %v4038_v24 = vld [vmem:[#allocation8 + $0xa68] sm:$0xff] }
 0x37a   :  { %v3930_v2 = vld [vmem:[#allocation8 + $0x708] sm:$0xff]  ;;  %v17176_v57 = vcombine.low %v4034_v26, %v4038_v24 }
 0x37b   :  { %7033 = vmatpush1.bf16.msra.mxu1 %v17000_v41  ;;  %v3934_v48 = vld [vmem:[#allocation8 + $0x728] sm:$0xff]  ;;  %v17177_v41 = vcombine.high %v4034_v26, %v4038_v24 }
 0x37c   :  { %7034 = vmatprep.subr.bf16.mxu1 %v16993_v54  ;;  %7082 = vmatpush2.bf16.msra.mxu0 %v17224_v55  ;;  %v4026_v50 = vld [vmem:[#allocation8 + $0xa08] sm:$0xff]  ;;  %v17073_v55 = vcombine.high %v3930_v2, %v3934_v48  ;;  %v17072_v63 = vcombine.low %v3930_v2, %v3934_v48  ;;  %v3743_v2 = vld [vmem:[#allocation8 + $0x130] sm:$0xff] }
 0x37d   :  { %7083 = vmatprep.subr.bf16.mxu0 %v17217_v61  ;;  %v4030_v54 = vld [vmem:[#allocation8 + $0xa28] sm:$0xff] }
 0x37e   :  { %v3922_v35 = vld [vmem:[#allocation8 + $0x6c8] sm:$0xff]  ;;  %v17168_v4 = vcombine.low %v4026_v50, %v4030_v54 }
 0x37f   :  { %7035 = vmatpush1.bf16.msra.mxu1 %v16992_v62  ;;  %v3926_v61 = vld [vmem:[#allocation8 + $0x6e8] sm:$0xff]  ;;  %v17169_v62 = vcombine.high %v4026_v50, %v4030_v54  ;;  %v16890_v54 = vcombine.low %v3747_v27, %v3751_v28 }
 0x380   :  { %7036 = vmatprep.subr.bf16.mxu1 %v16985_v3  ;;  %7084 = vmatpush2.bf16.msra.mxu0 %v17216_v30  ;;  %v3767_v3 = vld [vmem:[#allocation8 + $0x1f0] sm:$0xff]  ;;  %v17065_v30 = vcombine.high %v3922_v35, %v3926_v61  ;;  %v3914_v7 = vld [vmem:[#allocation8 + $0x688] sm:$0xff]  ;;  %v17064_v17 = vcombine.low %v3922_v35, %v3926_v61 }
 0x381   :  { %7085 = vmatprep.subr.bf16.mxu0 %v17209_v8  ;;  %v3918_v8 = vld [vmem:[#allocation8 + $0x6a8] sm:$0xff]  ;;  %v16907_v10 = vcombine.high %v3763_v1, %v3767_v3 }
 0x382   :  { %v17057_v15 = vcombine.high %v3914_v7, %v3918_v8  ;;  %v3910_v25 = vld [vmem:[#allocation8 + $0x668] sm:$0xff] }
 0x383   :  { %7037 = vmatpush1.bf16.msra.mxu1 %v16984_v9  ;;  %v4217_v9 = vld [vmem:[#allocation10] sm:$0xff]  ;;  %v3902_v52 = vld [vmem:[#allocation8 + $0x628] sm:$0xff] }
 0x384   :  { %7038 = vmatprep.subr.bf16.mxu1 %v16977_v21  ;;  %7086 = vmatpush2.bf16.msra.mxu0 %v17208_v22  ;;  %v3755_v21 = vld [vmem:[#allocation8 + $0x190] sm:$0xff]  ;;  %v4222_v23 = vrot.slane %v4217_v9, %v20075_v6 }
 0x385   :  { %7087 = vmatprep.subr.bf16.mxu0 %v17201_v58  ;;  %v3759_v22 = vld [vmem:[#allocation8 + $0x1b0] sm:$0xff]  ;;  %v16906_v58 = vcombine.low %v3763_v1, %v3767_v3 }
 0x386   :  { %v16899_v5 = vcombine.high %v3755_v21, %v3759_v22  ;;  %v3731_v1 = vld [vmem:[#allocation8 + $0xd0] sm:$0xff] }
 0x387   :  { %7039 = vmatpush1.bf16.msra.mxu1 %v16976_v11  ;;  %v3906_v11 = vld [vmem:[#allocation8 + $0x648] sm:$0xff]  ;;  %v3735_v3 = vld [vmem:[#allocation8 + $0xf0] sm:$0xff] }
 0x388   :  { %7040 = vmatprep.subr.bf16.mxu1 %v17097_v60  ;;  %7088 = vmatpush2.bf16.msra.mxu0 %v17200_v29  ;;  %v17056_v60 = vcombine.low %v3914_v7, %v3918_v8  ;;  %v4226_v29 = vrot.slane %v4217_v9, %v20078_v13  ;;  %v4138_v7 = vld [vmem:[#allocation8 + $0xd88] sm:$0xff]  ;;  %v16875_v9 = vcombine.high %v3731_v1, %v3735_v3 }
 0x389   :  { %7089 = vmatprep.subr.bf16.mxu0 %v17193_v31  ;;  %v4142_v8 = vld [vmem:[#allocation8 + $0xda8] sm:$0xff] }
 0x38b   :  { %7041 = vmatpush2.bf16.msra.mxu1 %v17096_v43  ;;  %v17049_v43 = vcombine.high %v3906_v11, %v3910_v25 }
 0x38c   :  { %7042 = vmatprep.subr.bf16.mxu1 %v17089_v16  ;;  %7090 = vmatpush2.bf16.msra.mxu0 %v17192_v20  ;;  %v16898_v16 = vcombine.low %v3755_v21, %v3759_v22  ;;  %v3898_v20 = vld [vmem:[#allocation8 + $0x608] sm:$0xff]  ;;  %v3727_v21 = vld [vmem:[#allocation8 + $0xb0] sm:$0xff]  ;;  %v17281_v22 = vcombine.high %v4138_v7, %v4142_v8 }
 0x38d   :  { %7091 = vmatprep.subr.bf16.mxu0 %v17185_v36  ;;  %v16891_v36 = vcombine.high %v3747_v27, %v3751_v28  ;;  %v4122_v28 = vld [vmem:[#allocation8 + $0xd08] sm:$0xff] }
 0x38f   :  { %7043 = vmatpush2.bf16.msra.mxu1 %v17088_v45 }
 0x390   :  { %7044 = vmatprep.subr.bf16.mxu1 %v17081_v32  ;;  %7092 = vmatpush2.bf16.msra.mxu0 %v17184_v44  ;;  %v17048_v32 = vcombine.low %v3906_v11, %v3910_v25  ;;  %v3739_v44 = vld [vmem:[#allocation8 + $0x110] sm:$0xff]  ;;  %v17280_v25 = vcombine.low %v4138_v7, %v4142_v8 }
 0x391   :  { %7093 = vmatprep.subr.bf16.mxu0 %v17177_v41  ;;  %v17041_v41 = vcombine.high %v3898_v20, %v3902_v52  ;;  %v16883_v61 = vcombine.high %v3739_v44, %v3743_v2  ;;  %v3815_v7 = vld [vmem:[#allocation8 + $0x370] sm:$0xff] }
 0x393   :  { %7045 = vmatpush2.bf16.msra.mxu1 %v17080_v49 }
 0x394   :  { %7046 = vmatprep.subr.bf16.mxu1 %v17073_v55  ;;  %7094 = vmatpush2.bf16.msra.mxu0 %v17176_v57  ;;  %v4146_v55 = vld [vmem:[#allocation8 + $0xdc8] sm:$0xff] }
 0x395   :  { %7095 = vmatprep.subr.bf16.mxu0 %v17169_v62  ;;  %v4150_v57 = vld [vmem:[#allocation8 + $0xde8] sm:$0xff] }
 0x397   :  { %7047 = vmatpush2.bf16.msra.mxu1 %v17072_v63  ;;  %v17040_v63 = vcombine.low %v3898_v20, %v3902_v52 }
 0x398   :  { %7048 = vmatprep.subr.bf16.mxu1 %v17065_v30  ;;  %7096 = vmatpush2.bf16.msra.mxu0 %v17168_v4  ;;  %v17289_v30 = vcombine.high %v4146_v55, %v4150_v57  ;;  %v16882_v4 = vcombine.low %v3739_v44, %v3743_v2  ;;  %v3831_v44 = vld [vmem:[#allocation8 + $0x3f0] sm:$0xff] }
 0x399   :  { %7147 = vmatprep.subr.bf16.mxu0 %v16907_v10  ;;  %v17288_v10 = vcombine.low %v4146_v55, %v4150_v57  ;;  %v3819_v57 = vld [vmem:[#allocation8 + $0x390] sm:$0xff] }
 0x39b   :  { %7049 = vmatpush2.bf16.msra.mxu1 %v17064_v17  ;;  %v6853_v31 = vpop.f32.mrf.mxu0  ;;  %7098 = vmatmul.mubr.bf16.vlgmr.msra.gmra.mxu0 %v20200_v42  ;;  %v3723_v17 = vld [vmem:[#allocation8 + $0x90] sm:$0xff] }
 0x39c   :  { %7050 = vmatprep.subr.bf16.mxu1 %v17057_v15  ;;  %v6854_v19 = vadd.f32 %v6853_v31, %v4222_v23  ;;  %7148 = vmatpush1.bf16.msra.mxu0 %v16906_v58  ;;  %v16874_v15 = vcombine.low %v3731_v1, %v3735_v3  ;;  %v4130_v23 = vld [vmem:[#allocation8 + $0xd48] sm:$0xff]  ;;  %v16867_v11 = vcombine.high %v3723_v17, %v3727_v21 }
 0x39d   :  { %v6894_v12 = vpop.f32.mrf.mxu1  ;;  %7179 = vmatprep.mubr.bf16.mxu0 %v20142_v53  ;;  %v6855_v18 = vpop.f32.mrf.mxu0  ;;  %7149 = vmatprep.subr.bf16.mxu0 %v16899_v5  ;;  %v4134_v58 = vld [vmem:[#allocation8 + $0xd68] sm:$0xff]  ;;  %v3715_v5 = vld [vmem:[#allocation8 + $0x50] sm:$0xff]  ;;  %v16866_v27 = vcombine.low %v3723_v17, %v3727_v21 }
 0x39e   :  { %v20236_v45 = vadd.f32 %v6894_v12, %v6854_v19  ;;  %v6856_v26 = vadd.f32 %v6855_v18, %v4226_v29  ;;  %v17273_v29 = vcombine.high %v4130_v23, %v4134_v58  ;;  %v4126_v31 = vld [vmem:[#allocation8 + $0xd28] sm:$0xff]  ;;  %v17272_v19 = vcombine.low %v4130_v23, %v4134_v58  ;;  %v3707_v12 = vld [vmem:[#allocation8 + $0x10] sm:$0xff] }
 0x39f   :  { %7051 = vmatpush2.bf16.msra.mxu1 %v17056_v60  ;;  %v6896_v24 = vpop.f32.mrf.mxu1  ;;  %v6857_v48 = vpop.f32.mrf.mxu0  ;;  %v3719_v60 = vld [vmem:[#allocation8 + $0x70] sm:$0xff]  ;;  %v17265_v20 = vcombine.high %v4122_v28, %v4126_v31  ;;  %v4114_v18 = vld [vmem:[#allocation8 + $0xcc8] sm:$0xff] }
 0x3a0   :  { %7052 = vmatprep.subr.bf16.mxu1 %v17049_v43  ;;  %v20238_v49 = vadd.f32 %v6896_v24, %v6856_v26  ;;  %7150 = vmatpush1.bf16.msra.mxu0 %v16898_v16  ;;  %v16859_v43 = vcombine.high %v3715_v5, %v3719_v60  ;;  %v3711_v16 = vld [vmem:[#allocation8 + $0x30] sm:$0xff]  ;;  %v16858_v52 = vcombine.low %v3715_v5, %v3719_v60  ;;  %v4102_v1 = vld [vmem:[#allocation8 + $0xc68] sm:$0xff] }
 0x3a1   :  { %v6898_v50 = vpop.f32.mrf.mxu1  ;;  %v6858_v35 = vpop.f32.mrf.mxu0  ;;  %7151 = vmatprep.subr.bf16.mxu0 %v16891_v36  ;;  %v4118_v36 = vld [vmem:[#allocation8 + $0xce8] sm:$0xff]  ;;  %v16851_v26 = vcombine.high %v3707_v12, %v3711_v16  ;;  %v17264_v24 = vcombine.low %v4122_v28, %v4126_v31  ;;  %v16850_v48 = vcombine.low %v3707_v12, %v3711_v16  ;;  %v3807_v23 = vld [vmem:[#allocation8 + $0x330] sm:$0xff] }
 0x3a2   :  { %v17257_v2 = vcombine.high %v4114_v18, %v4118_v36  ;;  %v4110_v50 = vld [vmem:[#allocation8 + $0xca8] sm:$0xff]  ;;  %v17256_v55 = vcombine.low %v4114_v18, %v4118_v36  ;;  %v3823_v35 = vld [vmem:[#allocation8 + $0x3b0] sm:$0xff] }
 0x3a3   :  { %7053 = vmatpush2.bf16.msra.mxu1 %v17048_v32  ;;  %v6899_v62 = vpop.f32.mrf.mxu1  ;;  %v3827_v32 = vld [vmem:[#allocation8 + $0x3d0] sm:$0xff]  ;;  %v16963_v3 = vcombine.high %v3819_v57, %v3823_v35  ;;  %v4094_v17 = vld [vmem:[#allocation8 + $0xc28] sm:$0xff] }
 0x3a4   :  { %7054 = vmatprep.subr.bf16.mxu1 %v17041_v41  ;;  %7152 = vmatpush1.bf16.msra.mxu0 %v16890_v54  ;;  %v4106_v41 = vld [vmem:[#allocation8 + $0xc88] sm:$0xff]  ;;  %v16971_v54 = vcombine.high %v3827_v32, %v3831_v44  ;;  %v16970_v62 = vcombine.low %v3827_v32, %v3831_v44  ;;  %v3799_v28 = vld [vmem:[#allocation8 + $0x2f0] sm:$0xff] }
 0x3a5   :  { %7153 = vmatprep.subr.bf16.mxu0 %v16883_v61  ;;  %v17249_v61 = vcombine.high %v4106_v41, %v4110_v50  ;;  %v4214_v5 = vld [vmem:[#allocation8 + $0xfe8] sm:$0xff]  ;;  %v3791_v18 = vld [vmem:[#allocation8 + $0x2b0] sm:$0xff] }
 0x3a6   :  { %v4206_v12 = vld [vmem:[#allocation8 + $0xfa8] sm:$0xff] }
 0x3a7   :  { %7055 = vmatpush2.bf16.msra.mxu1 %v17040_v63  ;;  %v4098_v63 = vld [vmem:[#allocation8 + $0xc48] sm:$0xff] }
 0x3a8   :  { %7106 = vmatprep.subr.bf16.mxu1 %v17289_v30  ;;  %7154 = vmatpush1.bf16.msra.mxu0 %v16882_v4  ;;  %v17248_v30 = vcombine.low %v4106_v41, %v4110_v50  ;;  %v3811_v4 = vld [vmem:[#allocation8 + $0x350] sm:$0xff]  ;;  %v17241_v8 = vcombine.high %v4098_v63, %v4102_v1  ;;  %v4198_v32 = vld [vmem:[#allocation8 + $0xf68] sm:$0xff] }
 0x3a9   :  { %7155 = vmatprep.subr.bf16.mxu0 %v16875_v9  ;;  %v16962_v9 = vcombine.low %v3819_v57, %v3823_v35  ;;  %v16955_v21 = vcombine.high %v3811_v4, %v3815_v7  ;;  %v3783_v41 = vld [vmem:[#allocation8 + $0x270] sm:$0xff]  ;;  %v4190_v57 = vld [vmem:[#allocation8 + $0xf28] sm:$0xff] }
 0x3aa   :  { %7057 = vmatmul.mubr.bf16.vlgmr.msra.gmra.mxu1 %v20169_v47 }
 0x3ab   :  { %7107 = vmatpush1.bf16.msra.mxu1 %v17288_v10  ;;  %7138 = vmatprep.mubr.bf16.mxu1 %v20222_v39  ;;  %v4090_v10 = vld [vmem:[#allocation8 + $0xc08] sm:$0xff] }
 0x3ac   :  { %7108 = vmatprep.subr.bf16.mxu1 %v17281_v22  ;;  %7156 = vmatpush1.bf16.msra.mxu0 %v16874_v15  ;;  %v17240_v22 = vcombine.low %v4098_v63, %v4102_v1  ;;  %v3803_v15 = vld [vmem:[#allocation8 + $0x310] sm:$0xff]  ;;  %v17233_v58 = vcombine.high %v4090_v10, %v4094_v17 }
 0x3ad   :  { %7157 = vmatprep.subr.bf16.mxu0 %v16867_v11  ;;  %v16954_v11 = vcombine.low %v3811_v4, %v3815_v7  ;;  %v16947_v60 = vcombine.high %v3803_v15, %v3807_v23  ;;  %v3775_v63 = vld [vmem:[#allocation8 + $0x230] sm:$0xff]  ;;  %v4182_v4 = vld [vmem:[#allocation8 + $0xee8] sm:$0xff] }
 0x3af   :  { %7109 = vmatpush1.bf16.msra.mxu1 %v17280_v25  ;;  %v4210_v25 = vld [vmem:[#allocation8 + $0xfc8] sm:$0xff] }
 0x3b0   :  { %7110 = vmatprep.subr.bf16.mxu1 %v17273_v29  ;;  %7158 = vmatpush1.bf16.msra.mxu0 %v16866_v27  ;;  %v17232_v29 = vcombine.low %v4090_v10, %v4094_v17  ;;  %v3795_v27 = vld [vmem:[#allocation8 + $0x2d0] sm:$0xff]  ;;  %v17353_v31 = vcombine.high %v4210_v25, %v4214_v5 }
 0x3b1   :  { %7159 = vmatprep.subr.bf16.mxu0 %v16859_v43  ;;  %v16946_v43 = vcombine.low %v3803_v15, %v3807_v23  ;;  %v16939_v16 = vcombine.high %v3795_v27, %v3799_v28  ;;  %v4023_v10 = vld [vmem:[#allocation8 + $0x9f0] sm:$0xff]  ;;  %v4174_v15 = vld [vmem:[#allocation8 + $0xea8] sm:$0xff] }
 0x3b3   :  { %7111 = vmatpush1.bf16.msra.mxu1 %v17272_v19  ;;  %v4202_v19 = vld [vmem:[#allocation8 + $0xf88] sm:$0xff] }
 0x3b4   :  { %7112 = vmatprep.subr.bf16.mxu1 %v17265_v20  ;;  %7160 = vmatpush1.bf16.msra.mxu0 %v16858_v52  ;;  %v17352_v20 = vcombine.low %v4210_v25, %v4214_v5  ;;  %v3787_v52 = vld [vmem:[#allocation8 + $0x290] sm:$0xff]  ;;  %v17345_v36 = vcombine.high %v4202_v19, %v4206_v12 }
 0x3b5   :  { %7161 = vmatprep.subr.bf16.mxu0 %v16851_v26  ;;  %v16938_v26 = vcombine.low %v3795_v27, %v3799_v28  ;;  %v16931_v44 = vcombine.high %v3787_v52, %v3791_v18  ;;  %v4015_v25 = vld [vmem:[#allocation8 + $0x9b0] sm:$0xff]  ;;  %v4166_v27 = vld [vmem:[#allocation8 + $0xe68] sm:$0xff] }
 0x3b7   :  { %7113 = vmatpush1.bf16.msra.mxu1 %v17264_v24  ;;  %v4194_v24 = vld [vmem:[#allocation8 + $0xf48] sm:$0xff] }
 0x3b8   :  { %7114 = vmatprep.subr.bf16.mxu1 %v17257_v2  ;;  %7162 = vmatpush1.bf16.msra.mxu0 %v16850_v48  ;;  %v17344_v2 = vcombine.low %v4202_v19, %v4206_v12  ;;  %v3779_v48 = vld [vmem:[#allocation8 + $0x250] sm:$0xff]  ;;  %v17337_v50 = vcombine.high %v4194_v24, %v4198_v32 }
 0x3b9   :  { %7163 = vmatprep.subr.bf16.mxu0 %v16971_v54  ;;  %v16930_v54 = vcombine.low %v3787_v52, %v3791_v18  ;;  %v16923_v35 = vcombine.high %v3779_v48, %v3783_v41  ;;  %v4007_v19 = vld [vmem:[#allocation8 + $0x970] sm:$0xff]  ;;  %v4154_v18 = vld [vmem:[#allocation8 + $0xe08] sm:$0xff] }
 0x3bb   :  { %7115 = vmatpush1.bf16.msra.mxu1 %v17256_v55  ;;  %v4186_v55 = vld [vmem:[#allocation8 + $0xf08] sm:$0xff] }
 0x3bc   :  { %7116 = vmatprep.subr.bf16.mxu1 %v17249_v61  ;;  %7164 = vmatpush2.bf16.msra.mxu0 %v16970_v62  ;;  %v17336_v61 = vcombine.low %v4194_v24, %v4198_v32  ;;  %v3771_v62 = vld [vmem:[#allocation8 + $0x210] sm:$0xff]  ;;  %v17329_v1 = vcombine.high %v4186_v55, %v4190_v57 }
 0x3bd   :  { %7165 = vmatprep.subr.bf16.mxu0 %v16963_v3  ;;  %v16922_v3 = vcombine.low %v3779_v48, %v3783_v41  ;;  %v16915_v7 = vcombine.high %v3771_v62, %v3775_v63  ;;  %v3999_v48 = vld [vmem:[#allocation8 + $0x930] sm:$0xff] }
 0x3bf   :  { %7117 = vmatpush1.bf16.msra.mxu1 %v17248_v30  ;;  %v4178_v30 = vld [vmem:[#allocation8 + $0xec8] sm:$0xff] }
 0x3c0   :  { %7118 = vmatprep.subr.bf16.mxu1 %v17241_v8  ;;  %7166 = vmatpush2.bf16.msra.mxu0 %v16962_v9  ;;  %v17328_v8 = vcombine.low %v4186_v55, %v4190_v57  ;;  %v4019_v9 = vld [vmem:[#allocation8 + $0x9d0] sm:$0xff]  ;;  %v17321_v17 = vcombine.high %v4178_v30, %v4182_v4 }
 0x3c1   :  { %7167 = vmatprep.subr.bf16.mxu0 %v16955_v21  ;;  %v16914_v21 = vcombine.low %v3771_v62, %v3775_v63  ;;  %v17163_v23 = vcombine.high %v4019_v9, %v4023_v10  ;;  %v3895_v55 = vld [vmem:[#allocation8 + $0x5f0] sm:$0xff] }
 0x3c2   :  { %v3987_v62 = vld [vmem:[#allocation8 + $0x8d0] sm:$0xff] }
 0x3c3   :  { %7119 = vmatpush1.bf16.msra.mxu1 %v17240_v22  ;;  %v4170_v22 = vld [vmem:[#allocation8 + $0xe88] sm:$0xff]  ;;  %v3991_v63 = vld [vmem:[#allocation8 + $0x8f0] sm:$0xff] }
 0x3c4   :  { %7120 = vmatprep.subr.bf16.mxu1 %v17233_v58  ;;  %7168 = vmatpush2.bf16.msra.mxu0 %v16954_v11  ;;  %v17320_v58 = vcombine.low %v4178_v30, %v4182_v4  ;;  %v4011_v11 = vld [vmem:[#allocation8 + $0x990] sm:$0xff]  ;;  %v17313_v5 = vcombine.high %v4170_v22, %v4174_v15  ;;  %v17131_v4 = vcombine.high %v3987_v62, %v3991_v63 }
 0x3c5   :  { %7169 = vmatprep.subr.bf16.mxu0 %v16947_v60  ;;  %v17162_v60 = vcombine.low %v4019_v9, %v4023_v10  ;;  %v17155_v28 = vcombine.high %v4011_v11, %v4015_v25  ;;  %v17154_v52 = vcombine.low %v4011_v11, %v4015_v25  ;;  %v3887_v30 = vld [vmem:[#allocation8 + $0x5b0] sm:$0xff] }
 0x3c6   :  { %v3983_v9 = vld [vmem:[#allocation8 + $0x8b0] sm:$0xff] }
 0x3c7   :  { %7121 = vmatpush1.bf16.msra.mxu1 %v17232_v29  ;;  %v4162_v29 = vld [vmem:[#allocation8 + $0xe48] sm:$0xff]  ;;  %v3975_v11 = vld [vmem:[#allocation8 + $0x870] sm:$0xff] }
 0x3c8   :  { %7122 = vmatprep.subr.bf16.mxu1 %v17353_v31  ;;  %7170 = vmatpush2.bf16.msra.mxu0 %v16946_v43  ;;  %v17312_v31 = vcombine.low %v4170_v22, %v4174_v15  ;;  %v4003_v43 = vld [vmem:[#allocation8 + $0x950] sm:$0xff] }
 0x3c9   :  { %7171 = vmatprep.subr.bf16.mxu0 %v16939_v16  ;;  %v17305_v16 = vcombine.high %v4162_v29, %v4166_v27  ;;  %v17147_v24 = vcombine.high %v4003_v43, %v4007_v19  ;;  %v3879_v22 = vld [vmem:[#allocation8 + $0x570] sm:$0xff] }
 0x3cb   :  { %7123 = vmatpush2.bf16.msra.mxu1 %v17352_v20 }
 0x3cc   :  { %7124 = vmatprep.subr.bf16.mxu1 %v17345_v36  ;;  %7172 = vmatpush2.bf16.msra.mxu0 %v16938_v26  ;;  %v4158_v36 = vld [vmem:[#allocation8 + $0xe28] sm:$0xff] }
 0x3cd   :  { %7173 = vmatprep.subr.bf16.mxu0 %v16931_v44  ;;  %v17304_v44 = vcombine.low %v4162_v29, %v4166_v27  ;;  %v3871_v29 = vld [vmem:[#allocation8 + $0x530] sm:$0xff] }
 0x3cf   :  { %7125 = vmatpush2.bf16.msra.mxu1 %v17344_v2  ;;  %v3995_v2 = vld [vmem:[#allocation8 + $0x910] sm:$0xff] }
 0x3d0   :  { %7126 = vmatprep.subr.bf16.mxu1 %v17337_v50  ;;  %7174 = vmatpush2.bf16.msra.mxu0 %v16930_v54  ;;  %v17146_v50 = vcombine.low %v4003_v43, %v4007_v19  ;;  %v3891_v54 = vld [vmem:[#allocation8 + $0x5d0] sm:$0xff] }
 0x3d1   :  { %7175 = vmatprep.subr.bf16.mxu0 %v16923_v35  ;;  %v17139_v35 = vcombine.high %v3995_v2, %v3999_v48  ;;  %v3967_v43 = vld [vmem:[#allocation8 + $0x830] sm:$0xff] }
 0x3d3   :  { %7127 = vmatpush2.bf16.msra.mxu1 %v17336_v61  ;;  %v17296_v61 = vcombine.low %v4154_v18, %v4158_v36 }
 0x3d4   :  { %7128 = vmatprep.subr.bf16.mxu1 %v17329_v1  ;;  %7176 = vmatpush2.bf16.msra.mxu0 %v16922_v3  ;;  %v17138_v1 = vcombine.low %v3995_v2, %v3999_v48  ;;  %v3883_v3 = vld [vmem:[#allocation8 + $0x590] sm:$0xff] }
 0x3d5   :  { %7177 = vmatprep.subr.bf16.mxu0 %v16915_v7  ;;  %v17034_v7 = vcombine.low %v3891_v54, %v3895_v55  ;;  %v17027_v10 = vcombine.high %v3883_v3, %v3887_v30  ;;  %v3851_v48 = vld [vmem:[#allocation8 + $0x490] sm:$0xff] }
 0x3d7   :  { %7129 = vmatpush2.bf16.msra.mxu1 %v17328_v8  ;;  %v3979_v8 = vld [vmem:[#allocation8 + $0x890] sm:$0xff] }
 0x3d8   :  { %7130 = vmatprep.subr.bf16.mxu1 %v17321_v17  ;;  %7178 = vmatpush2.bf16.msra.mxu0 %v16914_v21  ;;  %v17130_v17 = vcombine.low %v3987_v62, %v3991_v63  ;;  %v3875_v21 = vld [vmem:[#allocation8 + $0x550] sm:$0xff]  ;;  %v17123_v15 = vcombine.high %v3979_v8, %v3983_v9 }
 0x3d9   :  { %7229 = vmatprep.subr.bf16.mxu0 %v17163_v23  ;;  %v17026_v23 = vcombine.low %v3883_v3, %v3887_v30  ;;  %v17019_v25 = vcombine.high %v3875_v21, %v3879_v22  ;;  %v3847_v62 = vld [vmem:[#allocation8 + $0x470] sm:$0xff] }
 0x3da   :  { %v4071_v3 = vld [vmem:[#allocation8 + $0xb70] sm:$0xff] }
 0x3db   :  { %7131 = vmatpush2.bf16.msra.mxu1 %v17320_v58  ;;  %v6935_v12 = vpop.f32.mrf.mxu0  ;;  %7180 = vmatmul.mubr.bf16.vlgmr.msra.gmra.mxu0 %v20167_v34  ;;  %v3971_v58 = vld [vmem:[#allocation8 + $0x850] sm:$0xff] }
 0x3dc   :  { %7132 = vmatprep.subr.bf16.mxu1 %v17313_v5  ;;  %v20244_v20 = vadd.f32 %v6935_v12, %v20236_v45  ;;  %7230 = vmatpush1.bf16.msra.mxu0 %v17162_v60  ;;  %v17297_v45 = vcombine.high %v4154_v18, %v4158_v36  ;;  %v17122_v5 = vcombine.low %v3979_v8, %v3983_v9  ;;  %v3867_v60 = vld [vmem:[#allocation8 + $0x510] sm:$0xff] }
 0x3dd   :  { %7261 = vmatprep.mubr.bf16.mxu0 %v20193_v51  ;;  %v6937_v26 = vpop.f32.mrf.mxu0  ;;  %7231 = vmatprep.subr.bf16.mxu0 %v17155_v28  ;;  %v17115_v27 = vcombine.high %v3971_v58, %v3975_v11  ;;  %v17018_v28 = vcombine.low %v3875_v21, %v3879_v22  ;;  %v17011_v19 = vcombine.high %v3867_v60, %v3871_v29  ;;  %v3839_v8 = vld [vmem:[#allocation8 + $0x430] sm:$0xff] }
 0x3de   :  { %v20248_v32 = vadd.f32 %v6937_v26, %v20238_v49  ;;  %v17035_v49 = vcombine.high %v3891_v54, %v3895_v55  ;;  %v17114_v12 = vcombine.low %v3971_v58, %v3975_v11  ;;  %v17010_v36 = vcombine.low %v3867_v60, %v3871_v29  ;;  %v4083_v26 = vld [vmem:[#allocation8 + $0xbd0] sm:$0xff] }
 0x3df   :  { %7133 = vmatpush2.bf16.msra.mxu1 %v17312_v31  ;;  %v6939_v41 = vpop.f32.mrf.mxu0  ;;  %v3963_v31 = vld [vmem:[#allocation8 + $0x810] sm:$0xff] }
 0x3e0   :  { %7134 = vmatprep.subr.bf16.mxu1 %v17305_v16  ;;  %7232 = vmatpush1.bf16.msra.mxu0 %v17154_v52  ;;  %v3859_v16 = vld [vmem:[#allocation8 + $0x4d0] sm:$0xff]  ;;  %v17107_v18 = vcombine.high %v3963_v31, %v3967_v43  ;;  %v17106_v2 = vcombine.low %v3963_v31, %v3967_v43 }
 0x3e1   :  { %v6940_v57 = vpop.f32.mrf.mxu0  ;;  %7233 = vmatprep.subr.bf16.mxu0 %v17147_v24  ;;  %v3863_v52 = vld [vmem:[#allocation8 + $0x4f0] sm:$0xff] }
 0x3e2   :  { %v4087_v24 = vld [vmem:[#allocation8 + $0xbf0] sm:$0xff] }
 0x3e3   :  { %7135 = vmatpush2.bf16.msra.mxu1 %v17304_v44  ;;  %v17003_v44 = vcombine.high %v3859_v16, %v3863_v52  ;;  %v3855_v41 = vld [vmem:[#allocation8 + $0x4b0] sm:$0xff] }
 0x3e4   :  { %7136 = vmatprep.subr.bf16.mxu1 %v17297_v45  ;;  %7234 = vmatpush1.bf16.msra.mxu0 %v17146_v50  ;;  %v17227_v45 = vcombine.high %v4083_v26, %v4087_v24  ;;  %v17002_v50 = vcombine.low %v3859_v16, %v3863_v52  ;;  %v4075_v54 = vld [vmem:[#allocation8 + $0xb90] sm:$0xff]  ;;  %v16995_v57 = vcombine.high %v3851_v48, %v3855_v41 }
 0x3e5   :  { %7235 = vmatprep.subr.bf16.mxu0 %v17139_v35  ;;  %v4079_v55 = vld [vmem:[#allocation8 + $0xbb0] sm:$0xff]  ;;  %v17226_v35 = vcombine.low %v4083_v26, %v4087_v24 }
 0x3e6   :  { %v17219_v63 = vcombine.high %v4075_v54, %v4079_v55  ;;  %v4063_v21 = vld [vmem:[#allocation8 + $0xb30] sm:$0xff] }
 0x3e7   :  { %7137 = vmatpush2.bf16.msra.mxu1 %v17296_v61  ;;  %v3843_v61 = vld [vmem:[#allocation8 + $0x450] sm:$0xff] }
 0x3e8   :  { %7188 = vmatprep.subr.bf16.mxu1 %v17035_v49  ;;  %7236 = vmatpush1.bf16.msra.mxu0 %v17138_v1  ;;  %v16994_v49 = vcombine.low %v3851_v48, %v3855_v41  ;;  %v4067_v1 = vld [vmem:[#allocation8 + $0xb50] sm:$0xff]  ;;  %v16987_v30 = vcombine.high %v3843_v61, %v3847_v62 }
 0x3e9   :  { %7237 = vmatprep.subr.bf16.mxu0 %v17131_v4  ;;  %v17218_v4 = vcombine.low %v4075_v54, %v4079_v55  ;;  %v17211_v9 = vcombine.high %v4067_v1, %v4071_v3  ;;  %v3959_v58 = vld [vmem:[#allocation8 + $0x7f0] sm:$0xff] }
 0x3ea   :  { %7139 = vmatmul.mubr.bf16.vlgmr.msra.gmra.mxu1 %v20224_v14  ;;  %v4055_v60 = vld [vmem:[#allocation8 + $0xaf0] sm:$0xff] }
 0x3eb   :  { %7189 = vmatpush1.bf16.msra.mxu1 %v17034_v7  ;;  %7220 = vmatprep.mubr.bf16.mxu1 %v20145_v33  ;;  %v3835_v7 = vld [vmem:[#allocation8 + $0x410] sm:$0xff] }
 0x3ec   :  { %7190 = vmatprep.subr.bf16.mxu1 %v17027_v10  ;;  %7238 = vmatpush1.bf16.msra.mxu0 %v17130_v17  ;;  %v16986_v10 = vcombine.low %v3843_v61, %v3847_v62  ;;  %v4059_v17 = vld [vmem:[#allocation8 + $0xb10] sm:$0xff]  ;;  %v16979_v22 = vcombine.high %v3835_v7, %v3839_v8 }
 0x3ed   :  { %7239 = vmatprep.subr.bf16.mxu0 %v17123_v15  ;;  %v17210_v15 = vcombine.low %v4067_v1, %v4071_v3  ;;  %v17203_v11 = vcombine.high %v4059_v17, %v4063_v21  ;;  %v3951_v31 = vld [vmem:[#allocation8 + $0x7b0] sm:$0xff] }
 0x3ee   :  { %v4047_v16 = vld [vmem:[#allocation8 + $0xab0] sm:$0xff] }
 0x3ef   :  { %7191 = vmatpush1.bf16.msra.mxu1 %v17026_v23  ;;  %v3955_v23 = vld [vmem:[#allocation8 + $0x7d0] sm:$0xff] }
 0x3f0   :  { %7192 = vmatprep.subr.bf16.mxu1 %v17019_v25  ;;  %7240 = vmatpush1.bf16.msra.mxu0 %v17122_v5  ;;  %v16978_v25 = vcombine.low %v3835_v7, %v3839_v8  ;;  %v4051_v5 = vld [vmem:[#allocation8 + $0xad0] sm:$0xff]  ;;  %v17099_v29 = vcombine.high %v3955_v23, %v3959_v58  ;;  %v3768_v7 = vld [vmem:[#allocation8 + $0x1f8] sm:$0xff] }
 0x3f1   :  { %7241 = vmatprep.subr.bf16.mxu0 %v17115_v27  ;;  %v17202_v27 = vcombine.low %v4059_v17, %v4063_v21  ;;  %v17195_v43 = vcombine.high %v4051_v5, %v4055_v60  ;;  %v3943_v26 = vld [vmem:[#allocation8 + $0x770] sm:$0xff] }
 0x3f2   :  { %v4039_v48 = vld [vmem:[#allocation8 + $0xa70] sm:$0xff] }
 0x3f3   :  { %7193 = vmatpush1.bf16.msra.mxu1 %v17018_v28  ;;  %v3947_v28 = vld [vmem:[#allocation8 + $0x790] sm:$0xff] }
 0x3f4   :  { %7194 = vmatprep.subr.bf16.mxu1 %v17011_v19  ;;  %7242 = vmatpush1.bf16.msra.mxu0 %v17114_v12  ;;  %v17098_v19 = vcombine.low %v3955_v23, %v3959_v58  ;;  %v4043_v12 = vld [vmem:[#allocation8 + $0xa90] sm:$0xff]  ;;  %v17091_v52 = vcombine.high %v3947_v28, %v3951_v31  ;;  %v3760_v23 = vld [vmem:[#allocation8 + $0x1b8] sm:$0xff] }
 0x3f5   :  { %7243 = vmatprep.subr.bf16.mxu0 %v17107_v18  ;;  %v17194_v18 = vcombine.low %v4051_v5, %v4055_v60  ;;  %v17187_v24 = vcombine.high %v4043_v12, %v4047_v16  ;;  %v3935_v54 = vld [vmem:[#allocation8 + $0x730] sm:$0xff] }
 0x3f6   :  { %v4031_v61 = vld [vmem:[#allocation8 + $0xa30] sm:$0xff] }
 0x3f7   :  { %7195 = vmatpush1.bf16.msra.mxu1 %v17010_v36  ;;  %v3939_v36 = vld [vmem:[#allocation8 + $0x750] sm:$0xff] }
 0x3f8   :  { %7196 = vmatprep.subr.bf16.mxu1 %v17003_v44  ;;  %7244 = vmatpush1.bf16.msra.mxu0 %v17106_v2  ;;  %v17090_v44 = vcombine.low %v3947_v28, %v3951_v31  ;;  %v4035_v2 = vld [vmem:[#allocation8 + $0xa50] sm:$0xff]  ;;  %v17083_v41 = vcombine.high %v3939_v36, %v3943_v26  ;;  %v3752_v28 = vld [vmem:[#allocation8 + $0x178] sm:$0xff] }
 0x3f9   :  { %7245 = vmatprep.subr.bf16.mxu0 %v17227_v45  ;;  %v17186_v45 = vcombine.low %v4043_v12, %v4047_v16  ;;  %v17179_v55 = vcombine.high %v4035_v2, %v4039_v48  ;;  %v3927_v1 = vld [vmem:[#allocation8 + $0x6f0] sm:$0xff] }
 0x3fa   :  { %v3919_v17 = vld [vmem:[#allocation8 + $0x6b0] sm:$0xff] }
 0x3fb   :  { %7197 = vmatpush1.bf16.msra.mxu1 %v17002_v50  ;;  %v3931_v50 = vld [vmem:[#allocation8 + $0x710] sm:$0xff] }
 0x3fc   :  { %7198 = vmatprep.subr.bf16.mxu1 %v16995_v57  ;;  %7246 = vmatpush2.bf16.msra.mxu0 %v17226_v35  ;;  %v17082_v57 = vcombine.low %v3939_v36, %v3943_v26  ;;  %v4027_v35 = vld [vmem:[#allocation8 + $0xa10] sm:$0xff]  ;;  %v17075_v62 = vcombine.high %v3931_v50, %v3935_v54  ;;  %v3740_v26 = vld [vmem:[#allocation8 + $0x118] sm:$0xff] }
 0x3fd   :  { %7247 = vmatprep.subr.bf16.mxu0 %v17219_v63  ;;  %v17178_v63 = vcombine.low %v4035_v2, %v4039_v48  ;;  %v17171_v3 = vcombine.high %v4027_v35, %v4031_v61  ;;  %v3911_v5 = vld [vmem:[#allocation8 + $0x670] sm:$0xff] }
 0x3fe   :  { %v3899_v12 = vld [vmem:[#allocation8 + $0x610] sm:$0xff] }
 0x3ff   :  { %7199 = vmatpush1.bf16.msra.mxu1 %v16994_v49  ;;  %v3923_v49 = vld [vmem:[#allocation8 + $0x6d0] sm:$0xff] }
 0x400   :  { %7200 = vmatprep.subr.bf16.mxu1 %v16987_v30  ;;  %7248 = vmatpush2.bf16.msra.mxu0 %v17218_v4  ;;  %v17074_v30 = vcombine.low %v3931_v50, %v3935_v54  ;;  %v3764_v4 = vld [vmem:[#allocation8 + $0x1d8] sm:$0xff]  ;;  %v17067_v8 = vcombine.high %v3923_v49, %v3927_v1  ;;  %v3903_v16 = vld [vmem:[#allocation8 + $0x630] sm:$0xff] }
 0x401   :  { %7249 = vmatprep.subr.bf16.mxu0 %v17211_v9  ;;  %v17170_v9 = vcombine.low %v4027_v35, %v4031_v61  ;;  %v16909_v21 = vcombine.high %v3764_v4, %v3768_v7  ;;  %v17043_v2 = vcombine.high %v3899_v12, %v3903_v16  ;;  %v17042_v54 = vcombine.low %v3899_v12, %v3903_v16 }
 0x403   :  { %7201 = vmatpush1.bf16.msra.mxu1 %v16986_v10  ;;  %v3915_v10 = vld [vmem:[#allocation8 + $0x690] sm:$0xff] }
 0x404   :  { %7202 = vmatprep.subr.bf16.mxu1 %v16979_v22  ;;  %7250 = vmatpush2.bf16.msra.mxu0 %v17210_v15  ;;  %v17066_v22 = vcombine.low %v3923_v49, %v3927_v1  ;;  %v3756_v15 = vld [vmem:[#allocation8 + $0x198] sm:$0xff]  ;;  %v17059_v58 = vcombine.high %v3915_v10, %v3919_v17 }
 0x405   :  { %7251 = vmatprep.subr.bf16.mxu0 %v17203_v11  ;;  %v16908_v11 = vcombine.low %v3764_v4, %v3768_v7  ;;  %v16901_v60 = vcombine.high %v3756_v15, %v3760_v23 }
 0x407   :  { %7203 = vmatpush1.bf16.msra.mxu1 %v16978_v25  ;;  %v3907_v25 = vld [vmem:[#allocation8 + $0x650] sm:$0xff] }
 0x408   :  { %7204 = vmatprep.subr.bf16.mxu1 %v17099_v29  ;;  %7252 = vmatpush2.bf16.msra.mxu0 %v17202_v27  ;;  %v17058_v29 = vcombine.low %v3915_v10, %v3919_v17  ;;  %v3748_v27 = vld [vmem:[#allocation8 + $0x158] sm:$0xff]  ;;  %v17050_v36 = vcombine.low %v3907_v25, %v3911_v5 }
 0x409   :  { %7253 = vmatprep.subr.bf16.mxu0 %v17195_v43  ;;  %v17051_v43 = vcombine.high %v3907_v25, %v3911_v5  ;;  %v16892_v48 = vcombine.low %v3748_v27, %v3752_v28 }
 0x40b   :  { %7205 = vmatpush2.bf16.msra.mxu1 %v17098_v19  ;;  %v16900_v19 = vcombine.low %v3756_v15, %v3760_v23  ;;  %v3716_v15 = vld [vmem:[#allocation8 + $0x58] sm:$0xff] }
 0x40c   :  { %7206 = vmatprep.subr.bf16.mxu1 %v17091_v52  ;;  %7254 = vmatpush2.bf16.msra.mxu0 %v17194_v18  ;;  %v16893_v18 = vcombine.high %v3748_v27, %v3752_v28  ;;  %v3720_v23 = vld [vmem:[#allocation8 + $0x78] sm:$0xff] }
 0x40d   :  { %7255 = vmatprep.subr.bf16.mxu0 %v17187_v24  ;;  %v3744_v24 = vld [vmem:[#allocation8 + $0x138] sm:$0xff] }
 0x40e   :  { %v16884_v61 = vcombine.low %v3740_v26, %v3744_v24 }
 0x40f   :  { %7207 = vmatpush2.bf16.msra.mxu1 %v17090_v44 }
 0x410   :  { %7208 = vmatprep.subr.bf16.mxu1 %v17083_v41  ;;  %7256 = vmatpush2.bf16.msra.mxu0 %v17186_v45  ;;  %v4147_v41 = vld [vmem:[#allocation8 + $0xdd0] sm:$0xff] }
 0x411   :  { %7257 = vmatprep.subr.bf16.mxu0 %v17179_v55  ;;  %v4151_v45 = vld [vmem:[#allocation8 + $0xdf0] sm:$0xff]  ;;  %v3732_v55 = vld [vmem:[#allocation8 + $0xd8] sm:$0xff] }
 0x412   :  { %v17291_v35 = vcombine.high %v4147_v41, %v4151_v45  ;;  %v17290_v1 = vcombine.low %v4147_v41, %v4151_v45  ;;  %v4107_v45 = vld [vmem:[#allocation8 + $0xc90] sm:$0xff] }
 0x413   :  { %7209 = vmatpush2.bf16.msra.mxu1 %v17082_v57  ;;  %v3736_v57 = vld [vmem:[#allocation8 + $0xf8] sm:$0xff] }
 0x414   :  { %7210 = vmatprep.subr.bf16.mxu1 %v17075_v62  ;;  %7258 = vmatpush2.bf16.msra.mxu0 %v17178_v63  ;;  %v4139_v62 = vld [vmem:[#allocation8 + $0xd90] sm:$0xff]  ;;  %v16877_v49 = vcombine.high %v3732_v55, %v3736_v57  ;;  %v16876_v7 = vcombine.low %v3732_v55, %v3736_v57  ;;  %v3820_v55 = vld [vmem:[#allocation8 + $0x398] sm:$0xff] }
 0x415   :  { %7259 = vmatprep.subr.bf16.mxu0 %v17171_v3  ;;  %v4143_v63 = vld [vmem:[#allocation8 + $0xdb0] sm:$0xff]  ;;  %v3724_v3 = vld [vmem:[#allocation8 + $0x98] sm:$0xff] }
 0x416   :  { %v17283_v4 = vcombine.high %v4139_v62, %v4143_v63  ;;  %v3824_v57 = vld [vmem:[#allocation8 + $0x3b8] sm:$0xff] }
 0x417   :  { %7211 = vmatpush2.bf16.msra.mxu1 %v17074_v30  ;;  %v3728_v30 = vld [vmem:[#allocation8 + $0xb8] sm:$0xff] }
 0x418   :  { %7212 = vmatprep.subr.bf16.mxu1 %v17067_v8  ;;  %7260 = vmatpush2.bf16.msra.mxu0 %v17170_v9  ;;  %v4131_v8 = vld [vmem:[#allocation8 + $0xd50] sm:$0xff]  ;;  %v16869_v17 = vcombine.high %v3724_v3, %v3728_v30  ;;  %v16868_v5 = vcombine.low %v3724_v3, %v3728_v30  ;;  %v3812_v3 = vld [vmem:[#allocation8 + $0x358] sm:$0xff] }
 0x419   :  { %7311 = vmatprep.subr.bf16.mxu0 %v16909_v21  ;;  %v4135_v9 = vld [vmem:[#allocation8 + $0xd70] sm:$0xff]  ;;  %v3816_v30 = vld [vmem:[#allocation8 + $0x378] sm:$0xff] }
 0x41a   :  { %v17274_v28 = vcombine.low %v4131_v8, %v4135_v9 }
 0x41b   :  { %7213 = vmatpush2.bf16.msra.mxu1 %v17066_v22  ;;  %v20252_v31 = vpop.f32.mrf.mxu0  ;;  %7262 = vmatmul.mubr.bf16.vlgmr.msra.gmra.mxu0 %v20200_v42  ;;  %v17282_v22 = vcombine.low %v4139_v62, %v4143_v63  ;;  %v4099_v62 = vld [vmem:[#allocation8 + $0xc50] sm:$0xff] }
 0x41c   :  { %7214 = vmatprep.subr.bf16.mxu1 %v17059_v58  ;;  %7312 = vmatpush1.bf16.msra.mxu0 %v16908_v11  ;;  %v17275_v11 = vcombine.high %v4131_v8, %v4135_v9  ;;  %v4103_v63 = vld [vmem:[#allocation8 + $0xc70] sm:$0xff] }
 0x41d   :  { %7343 = vmatprep.mubr.bf16.mxu0 %v20142_v53  ;;  %v20256_v52 = vpop.f32.mrf.mxu0  ;;  %7313 = vmatprep.subr.bf16.mxu0 %v16901_v60  ;;  %v16885_v53 = vcombine.high %v3740_v26, %v3744_v24  ;;  %v4123_v60 = vld [vmem:[#allocation8 + $0xd10] sm:$0xff] }
 0x41e   :  { %v4119_v26 = vld [vmem:[#allocation8 + $0xcf0] sm:$0xff] }
 0x41f   :  { %7215 = vmatpush2.bf16.msra.mxu1 %v17058_v29  ;;  %v7021_v44 = vpop.f32.mrf.mxu0  ;;  %v4127_v29 = vld [vmem:[#allocation8 + $0xd30] sm:$0xff] }
 0x420   :  { %7216 = vmatprep.subr.bf16.mxu1 %v17051_v43  ;;  %7314 = vmatpush1.bf16.msra.mxu0 %v16900_v19  ;;  %v3708_v43 = vld [vmem:[#allocation8 + $0x18] sm:$0xff]  ;;  %v17267_v16 = vcombine.high %v4123_v60, %v4127_v29  ;;  %v17266_v24 = vcombine.low %v4123_v60, %v4127_v29  ;;  %v4091_v8 = vld [vmem:[#allocation8 + $0xc10] sm:$0xff] }
 0x421   :  { %v7022_v50 = vpop.f32.mrf.mxu0  ;;  %7315 = vmatprep.subr.bf16.mxu0 %v16893_v18  ;;  %v3712_v19 = vld [vmem:[#allocation8 + $0x38] sm:$0xff]  ;;  %v16860_v18 = vcombine.low %v3716_v15, %v3720_v23  ;;  %v4095_v9 = vld [vmem:[#allocation8 + $0xc30] sm:$0xff] }
 0x422   :  { %v3828_v44 = vld [vmem:[#allocation8 + $0x3d8] sm:$0xff]  ;;  %v16852_v41 = vcombine.low %v3708_v43, %v3712_v19  ;;  %v4111_v50 = vld [vmem:[#allocation8 + $0xcb0] sm:$0xff]  ;;  %v17234_v29 = vcombine.low %v4091_v8, %v4095_v9 }
 0x423   :  { %7217 = vmatpush2.bf16.msra.mxu1 %v17050_v36  ;;  %v4115_v36 = vld [vmem:[#allocation8 + $0xcd0] sm:$0xff] }
 0x424   :  { %7218 = vmatprep.subr.bf16.mxu1 %v17043_v2  ;;  %7316 = vmatpush1.bf16.msra.mxu0 %v16892_v48  ;;  %v3832_v2 = vld [vmem:[#allocation8 + $0x3f8] sm:$0xff]  ;;  %v17259_v48 = vcombine.high %v4115_v36, %v4119_v26 }
 0x425   :  { %7317 = vmatprep.subr.bf16.mxu0 %v16885_v53  ;;  %v16973_v53 = vcombine.high %v3828_v44, %v3832_v2 }
 0x427   :  { %7219 = vmatpush2.bf16.msra.mxu1 %v17042_v54  ;;  %v17258_v54 = vcombine.low %v4115_v36, %v4119_v26  ;;  %v3788_v36 = vld [vmem:[#allocation8 + $0x298] sm:$0xff] }
 0x428   :  { %7270 = vmatprep.subr.bf16.mxu1 %v17291_v35  ;;  %7318 = vmatpush1.bf16.msra.mxu0 %v16884_v61  ;;  %v17251_v35 = vcombine.high %v4107_v45, %v4111_v50  ;;  %v16972_v61 = vcombine.low %v3828_v44, %v3832_v2  ;;  %v3792_v26 = vld [vmem:[#allocation8 + $0x2b8] sm:$0xff]  ;;  %v4195_v44 = vld [vmem:[#allocation8 + $0xf50] sm:$0xff] }
 0x429   :  { %7319 = vmatprep.subr.bf16.mxu0 %v16877_v49  ;;  %v16965_v49 = vcombine.high %v3820_v55, %v3824_v57  ;;  %v4199_v2 = vld [vmem:[#allocation8 + $0xf70] sm:$0xff] }
 0x42a   :  { %7221 = vmatmul.mubr.bf16.vlgmr.msra.gmra.mxu1 %v20169_v47  ;;  %v6976_v10 = vpop.f32.mrf.mxu1 }
 0x42b   :  { %v20260_v21 = vadd.f32 %v6976_v10, %v20244_v20  ;;  %7271 = vmatpush1.bf16.msra.mxu1 %v17290_v1  ;;  %7302 = vmatprep.mubr.bf16.mxu1 %v20222_v39  ;;  %v16861_v20 = vcombine.high %v3716_v15, %v3720_v23  ;;  %v17250_v1 = vcombine.low %v4107_v45, %v4111_v50  ;;  %v3808_v15 = vld [vmem:[#allocation8 + $0x338] sm:$0xff] }
 0x42c   :  { %v6978_v58 = vpop.f32.mrf.mxu1  ;;  %7272 = vmatprep.subr.bf16.mxu1 %v17283_v4  ;;  %7320 = vmatpush1.bf16.msra.mxu0 %v16876_v7  ;;  %v17243_v4 = vcombine.high %v4099_v62, %v4103_v63  ;;  %v16964_v7 = vcombine.low %v3820_v55, %v3824_v57  ;;  %v16957_v10 = vcombine.high %v3812_v3, %v3816_v30  ;;  %v3780_v45 = vld [vmem:[#allocation8 + $0x258] sm:$0xff]  ;;  %v4187_v55 = vld [vmem:[#allocation8 + $0xf10] sm:$0xff] }
 0x42d   :  { %v20264_v25 = vadd.f32 %v6978_v58, %v20248_v32  ;;  %7321 = vmatprep.subr.bf16.mxu0 %v16869_v17  ;;  %v16853_v32 = vcombine.high %v3708_v43, %v3712_v19  ;;  %v17242_v17 = vcombine.low %v4099_v62, %v4103_v63  ;;  %v17235_v23 = vcombine.high %v4091_v8, %v4095_v9  ;;  %v4203_v19 = vld [vmem:[#allocation8 + $0xf90] sm:$0xff]  ;;  %v3784_v50 = vld [vmem:[#allocation8 + $0x278] sm:$0xff] }
 0x42e   :  { %v6980_v27 = vpop.f32.mrf.mxu1  ;;  %v16956_v58 = vcombine.low %v3812_v3, %v3816_v30  ;;  %v4191_v57 = vld [vmem:[#allocation8 + $0xf30] sm:$0xff]  ;;  %v3772_v62 = vld [vmem:[#allocation8 + $0x218] sm:$0xff]  ;;  %vm7475_vm9 = vcmp.ge.f32.partialorder %v20260_v21, 0.0 }
 0x42f   :  { %7273 = vmatpush1.bf16.msra.mxu1 %v17282_v22  ;;  %v3804_v22 = vld [vmem:[#allocation8 + $0x318] sm:$0xff]  ;;  %v4179_v3 = vld [vmem:[#allocation8 + $0xed0] sm:$0xff]  ;;  %vm7476_vm8 = vcmp.ge.f32.partialorder %v20264_v25, 0.0 }
 0x430   :  { %v6981_v12 = vpop.f32.mrf.mxu1  ;;  %7274 = vmatprep.subr.bf16.mxu1 %v17275_v11  ;;  %7322 = vmatpush1.bf16.msra.mxu0 %v16868_v5  ;;  %v4211_v11 = vld [vmem:[#allocation8 + $0xfd0] sm:$0xff]  ;;  %v16949_v60 = vcombine.high %v3804_v22, %v3808_v15  ;;  %v3796_v27 = vld [vmem:[#allocation8 + $0x2d8] sm:$0xff]  ;;  %v16948_v43 = vcombine.low %v3804_v22, %v3808_v15 }
 0x431   :  { %7323 = vmatprep.subr.bf16.mxu0 %v16861_v20  ;;  %v4215_v5 = vld [vmem:[#allocation8 + $0xff0] sm:$0xff]  ;;  %v3800_v20 = vld [vmem:[#allocation8 + $0x2f8] sm:$0xff] }
 0x432   :  { %v4207_v12 = vld [vmem:[#allocation8 + $0xfb0] sm:$0xff]  ;;  %v3776_v63 = vld [vmem:[#allocation8 + $0x238] sm:$0xff] }
 0x433   :  { %7275 = vmatpush1.bf16.msra.mxu1 %v17274_v28  ;;  %v17355_v28 = vcombine.high %v4211_v11, %v4215_v5  ;;  %v4183_v30 = vld [vmem:[#allocation8 + $0xef0] sm:$0xff]  ;;  %v4020_v8 = vld [vmem:[#allocation8 + $0x9d8] sm:$0xff] }
 0x434   :  { %7276 = vmatprep.subr.bf16.mxu1 %v17267_v16  ;;  %7324 = vmatpush1.bf16.msra.mxu0 %v16860_v18  ;;  %v16941_v16 = vcombine.high %v3796_v27, %v3800_v20  ;;  %v17354_v18 = vcombine.low %v4211_v11, %v4215_v5  ;;  %v4024_v9 = vld [vmem:[#allocation8 + $0x9f8] sm:$0xff]  ;;  %v4171_v22 = vld [vmem:[#allocation8 + $0xe90] sm:$0xff] }
 0x435   :  { %7325 = vmatprep.subr.bf16.mxu0 %v16853_v32  ;;  %v17347_v32 = vcombine.high %v4203_v19, %v4207_v12  ;;  %v4175_v15 = vld [vmem:[#allocation8 + $0xeb0] sm:$0xff]  ;;  %v4012_v11 = vld [vmem:[#allocation8 + $0x998] sm:$0xff] }
 0x436   :  { %v4016_v5 = vld [vmem:[#allocation8 + $0x9b8] sm:$0xff] }
 0x437   :  { %7277 = vmatpush1.bf16.msra.mxu1 %v17266_v24  ;;  %v16940_v24 = vcombine.low %v3796_v27, %v3800_v20  ;;  %v4163_v27 = vld [vmem:[#allocation8 + $0xe50] sm:$0xff] }
 0x438   :  { %7278 = vmatprep.subr.bf16.mxu1 %v17259_v48  ;;  %7326 = vmatpush1.bf16.msra.mxu0 %v16852_v41  ;;  %v16933_v48 = vcombine.high %v3788_v36, %v3792_v26  ;;  %v17346_v41 = vcombine.low %v4203_v19, %v4207_v12  ;;  %v4167_v20 = vld [vmem:[#allocation8 + $0xe70] sm:$0xff]  ;;  %v4004_v19 = vld [vmem:[#allocation8 + $0x958] sm:$0xff] }
 0x439   :  { %7327 = vmatprep.subr.bf16.mxu0 %v16973_v53  ;;  %v17339_v53 = vcombine.high %v4195_v44, %v4199_v2  ;;  %v4008_v12 = vld [vmem:[#allocation8 + $0x978] sm:$0xff] }
 0x43b   :  { %7279 = vmatpush1.bf16.msra.mxu1 %v17258_v54  ;;  %v16932_v54 = vcombine.low %v3788_v36, %v3792_v26  ;;  %v17156_v36 = vcombine.low %v4012_v11, %v4016_v5  ;;  %v4155_v26 = vld [vmem:[#allocation8 + $0xe10] sm:$0xff] }
 0x43c   :  { %7280 = vmatprep.subr.bf16.mxu1 %v17251_v35  ;;  %7328 = vmatpush2.bf16.msra.mxu0 %v16972_v61  ;;  %v16925_v35 = vcombine.high %v3780_v45, %v3784_v50  ;;  %v17338_v61 = vcombine.low %v4195_v44, %v4199_v2  ;;  %v17149_v44 = vcombine.high %v4004_v19, %v4008_v12 }
 0x43d   :  { %7329 = vmatprep.subr.bf16.mxu0 %v16965_v49  ;;  %v17331_v49 = vcombine.high %v4187_v55, %v4191_v57  ;;  %v17306_v2 = vcombine.low %v4163_v27, %v4167_v20 }
 0x43f   :  { %7281 = vmatpush1.bf16.msra.mxu1 %v17250_v1  ;;  %v16924_v1 = vcombine.low %v3780_v45, %v3784_v50 }
 0x440   :  { %7282 = vmatprep.subr.bf16.mxu1 %v17243_v4  ;;  %7330 = vmatpush2.bf16.msra.mxu0 %v16964_v7  ;;  %v16917_v4 = vcombine.high %v3772_v62, %v3776_v63  ;;  %v17330_v7 = vcombine.low %v4187_v55, %v4191_v57 }
 0x441   :  { %7331 = vmatprep.subr.bf16.mxu0 %v16957_v10  ;;  %v17323_v10 = vcombine.high %v4179_v3, %v4183_v30 }
 0x443   :  { %7283 = vmatpush1.bf16.msra.mxu1 %v17242_v17  ;;  %v16916_v17 = vcombine.low %v3772_v62, %v3776_v63  ;;  %v20272_v63 = vld [vmem:[#allocation10] sm:$0xff] }
 0x444   :  { %7284 = vmatprep.subr.bf16.mxu1 %v17235_v23  ;;  %7332 = vmatpush2.bf16.msra.mxu0 %v16956_v58  ;;  %v17165_v23 = vcombine.high %v4020_v8, %v4024_v9  ;;  %v17322_v58 = vcombine.low %v4179_v3, %v4183_v30  ;;  %v3884_v3 = vld [vmem:[#allocation8 + $0x598] sm:$0xff] }
 0x445   :  { %7333 = vmatprep.subr.bf16.mxu0 %v16949_v60  ;;  %v17315_v60 = vcombine.high %v4171_v22, %v4175_v15  ;;  %v3888_v30 = vld [vmem:[#allocation8 + $0x5b8] sm:$0xff] }
 0x447   :  { %7285 = vmatpush1.bf16.msra.mxu1 %v17234_v29  ;;  %v17164_v29 = vcombine.low %v4020_v8, %v4024_v9  ;;  %v3980_v9 = vld [vmem:[#allocation8 + $0x898] sm:$0xff] }
 0x448   :  { %7286 = vmatprep.subr.bf16.mxu1 %v17355_v28  ;;  %7334 = vmatpush2.bf16.msra.mxu0 %v16948_v43  ;;  %v17157_v28 = vcombine.high %v4012_v11, %v4016_v5  ;;  %v17314_v43 = vcombine.low %v4171_v22, %v4175_v15 }
 0x449   :  { %7335 = vmatprep.subr.bf16.mxu0 %v16941_v16 }
 0x44b   :  { %7287 = vmatpush2.bf16.msra.mxu1 %v17354_v18  ;;  %v17307_v18 = vcombine.high %v4163_v27, %v4167_v20  ;;  %v17028_v27 = vcombine.low %v3884_v3, %v3888_v30  ;;  %v3972_v20 = vld [vmem:[#allocation8 + $0x858] sm:$0xff] }
 0x44c   :  { %7288 = vmatprep.subr.bf16.mxu1 %v17347_v32  ;;  %7336 = vmatpush2.bf16.msra.mxu0 %v16940_v24  ;;  %v4159_v32 = vld [vmem:[#allocation8 + $0xe30] sm:$0xff] }
 0x44d   :  { %7337 = vmatprep.subr.bf16.mxu0 %v16933_v48  ;;  %v3996_v48 = vld [vmem:[#allocation8 + $0x918] sm:$0xff]  ;;  %v17299_v50 = vcombine.high %v4155_v26, %v4159_v32  ;;  %v17298_v57 = vcombine.low %v4155_v26, %v4159_v32 }
 0x44f   :  { %7289 = vmatpush2.bf16.msra.mxu1 %v17346_v41  ;;  %v4000_v41 = vld [vmem:[#allocation8 + $0x938] sm:$0xff] }
 0x450   :  { %7290 = vmatprep.subr.bf16.mxu1 %v17339_v53  ;;  %7338 = vmatpush2.bf16.msra.mxu0 %v16932_v54  ;;  %v3892_v53 = vld [vmem:[#allocation8 + $0x5d8] sm:$0xff] }
 0x451   :  { %7339 = vmatprep.subr.bf16.mxu0 %v16925_v35  ;;  %v3896_v54 = vld [vmem:[#allocation8 + $0x5f8] sm:$0xff] }
 0x452   :  { %v3988_v35 = vld [vmem:[#allocation8 + $0x8d8] sm:$0xff]  ;;  %v17037_v62 = vcombine.high %v3892_v53, %v3896_v54  ;;  %v17036_v8 = vcombine.low %v3892_v53, %v3896_v54 }
 0x453   :  { %7291 = vmatpush2.bf16.msra.mxu1 %v17338_v61  ;;  %v3992_v61 = vld [vmem:[#allocation8 + $0x8f8] sm:$0xff] }
 0x454   :  { %7292 = vmatprep.subr.bf16.mxu1 %v17331_v49  ;;  %7340 = vmatpush2.bf16.msra.mxu0 %v16924_v1  ;;  %v4230_v49 = vrot.slane %v20272_v63, %v20111_v56  ;;  %v17140_v1 = vcombine.low %v3996_v48, %v4000_v41  ;;  %v17132_v15 = vcombine.low %v3988_v35, %v3992_v61  ;;  %v3864_v53 = vld [vmem:[#allocation8 + $0x4f8] sm:$0xff] }
 0x455   :  { %7341 = vmatprep.subr.bf16.mxu0 %v16917_v4  ;;  %v17133_v4 = vcombine.high %v3988_v35, %v3992_v61  ;;  %v3852_v61 = vld [vmem:[#allocation8 + $0x498] sm:$0xff] }
 0x456   :  { %v7018_v22 = vadd.f32 %v20252_v31, %v4230_v49 }
 0x457   :  { %7293 = vmatpush2.bf16.msra.mxu1 %v17330_v7  ;;  %v4234_v7 = vrot.slane %v20272_v63, %v20132_v0 }
 0x458   :  { %7294 = vmatprep.subr.bf16.mxu1 %v17323_v10  ;;  %7342 = vmatpush2.bf16.msra.mxu0 %v16916_v17  ;;  %v3984_v10 = vld [vmem:[#allocation8 + $0x8b8] sm:$0xff]  ;;  %v17029_v17 = vcombine.high %v3884_v3, %v3888_v30 }
 0x459   :  { %7393 = vmatprep.subr.bf16.mxu0 %v17165_v23  ;;  %v3876_v23 = vld [vmem:[#allocation8 + $0x558] sm:$0xff]  ;;  %v17125_v5 = vcombine.high %v3980_v9, %v3984_v10 }
 0x45a   :  { %v4080_v3 = vld [vmem:[#allocation8 + $0xbb8] sm:$0xff] }
 0x45b   :  { %7295 = vmatpush2.bf16.msra.mxu1 %v17322_v58  ;;  %v20266_v16 = vpop.f32.mrf.mxu0  ;;  %7344 = vmatmul.mubr.bf16.vlgmr.msra.gmra.mxu0 %v20167_v34  ;;  %v17148_v34 = vcombine.low %v4004_v19, %v4008_v12  ;;  %v3880_v58 = vld [vmem:[#allocation8 + $0x578] sm:$0xff]  ;;  %v17124_v12 = vcombine.low %v3980_v9, %v3984_v10 }
 0x45c   :  { %7296 = vmatprep.subr.bf16.mxu1 %v17315_v60  ;;  %7394 = vmatpush1.bf16.msra.mxu0 %v17164_v29  ;;  %v7020_v60 = vadd.f32 %v20256_v52, %v4234_v7  ;;  %v17021_v31 = vcombine.high %v3876_v23, %v3880_v58  ;;  %v3844_v7 = vld [vmem:[#allocation8 + $0x458] sm:$0xff] }
 0x45d   :  { %7425 = vmatprep.mubr.bf16.mxu0 %v20193_v51  ;;  %v20270_v24 = vpop.f32.mrf.mxu0  ;;  %7395 = vmatprep.subr.bf16.mxu0 %v17157_v28  ;;  %v17141_v51 = vcombine.high %v3996_v48, %v4000_v41  ;;  %v3976_v28 = vld [vmem:[#allocation8 + $0x878] sm:$0xff] }
 0x45e   :  { %v17117_v52 = vcombine.high %v3972_v20, %v3976_v28 }
 0x45f   :  { %7297 = vmatpush2.bf16.msra.mxu1 %v17314_v43  ;;  %v7103_v45 = vpop.f32.mrf.mxu0 }
 0x460   :  { %7298 = vmatprep.subr.bf16.mxu1 %v17307_v18  ;;  %7396 = vmatpush1.bf16.msra.mxu0 %v17156_v36  ;;  %v3868_v18 = vld [vmem:[#allocation8 + $0x518] sm:$0xff] }
 0x461   :  { %v7104_v55 = vpop.f32.mrf.mxu0  ;;  %7397 = vmatprep.subr.bf16.mxu0 %v17149_v44  ;;  %v3872_v36 = vld [vmem:[#allocation8 + $0x538] sm:$0xff]  ;;  %v17020_v44 = vcombine.low %v3876_v23, %v3880_v58 }
 0x462   :  { %v17013_v45 = vcombine.high %v3868_v18, %v3872_v36  ;;  %v17012_v54 = vcombine.low %v3868_v18, %v3872_v36  ;;  %v4084_v55 = vld [vmem:[#allocation8 + $0xbd8] sm:$0xff] }
 0x463   :  { %7299 = vmatpush2.bf16.msra.mxu1 %v17306_v2  ;;  %v3968_v2 = vld [vmem:[#allocation8 + $0x838] sm:$0xff] }
 0x464   :  { %7300 = vmatprep.subr.bf16.mxu1 %v17299_v50  ;;  %7398 = vmatpush1.bf16.msra.mxu0 %v17148_v34  ;;  %v17116_v50 = vcombine.low %v3972_v20, %v3976_v28  ;;  %v3860_v34 = vld [vmem:[#allocation8 + $0x4d8] sm:$0xff] }
 0x465   :  { %7399 = vmatprep.subr.bf16.mxu0 %v17141_v51  ;;  %v4088_v51 = vld [vmem:[#allocation8 + $0xbf8] sm:$0xff]  ;;  %v17004_v49 = vcombine.low %v3860_v34, %v3864_v53 }
 0x466   :  { %v3836_v58 = vld [vmem:[#allocation8 + $0x418] sm:$0xff] }
 0x467   :  { %7301 = vmatpush2.bf16.msra.mxu1 %v17298_v57  ;;  %v17005_v57 = vcombine.high %v3860_v34, %v3864_v53  ;;  %v4052_v18 = vld [vmem:[#allocation8 + $0xad8] sm:$0xff] }
 0x468   :  { %7352 = vmatprep.subr.bf16.mxu1 %v17037_v62  ;;  %7400 = vmatpush1.bf16.msra.mxu0 %v17140_v1  ;;  %v17229_v62 = vcombine.high %v4084_v55, %v4088_v51  ;;  %v4076_v1 = vld [vmem:[#allocation8 + $0xb98] sm:$0xff] }
 0x469   :  { %7401 = vmatprep.subr.bf16.mxu0 %v17133_v4  ;;  %v17228_v4 = vcombine.low %v4084_v55, %v4088_v51  ;;  %v17221_v9 = vcombine.high %v4076_v1, %v4080_v3  ;;  %v17220_v23 = vcombine.low %v4076_v1, %v4080_v3  ;;  %v4056_v36 = vld [vmem:[#allocation8 + $0xaf8] sm:$0xff] }
 0x46a   :  { %v7058_v11 = vpop.f32.mrf.mxu1  ;;  %7303 = vmatmul.mubr.bf16.vlgmr.msra.gmra.mxu1 %v20224_v14  ;;  %v17196_v53 = vcombine.low %v4052_v18, %v4056_v36 }
 0x46b   :  { %v7059_v29 = vadd.f32 %v7058_v11, %v7018_v22  ;;  %7353 = vmatpush1.bf16.msra.mxu1 %v17036_v8  ;;  %7384 = vmatprep.mubr.bf16.mxu1 %v20145_v33  ;;  %v3964_v33 = vld [vmem:[#allocation8 + $0x818] sm:$0xff] }
 0x46c   :  { %v7060_v43 = vpop.f32.mrf.mxu1  ;;  %7354 = vmatprep.subr.bf16.mxu1 %v17029_v17  ;;  %7402 = vmatpush1.bf16.msra.mxu0 %v17132_v15  ;;  %v17108_v35 = vcombine.low %v3964_v33, %v3968_v2  ;;  %v3848_v8 = vld [vmem:[#allocation8 + $0x478] sm:$0xff] }
 0x46d   :  { %v7061_v19 = vadd.f32 %v7060_v43, %v7020_v60  ;;  %v20283_v26 = vadd.f32 %v20266_v16, %v7059_v29  ;;  %7403 = vmatprep.subr.bf16.mxu0 %v17125_v5  ;;  %v17109_v16 = vcombine.high %v3964_v33, %v3968_v2  ;;  %v4068_v17 = vld [vmem:[#allocation8 + $0xb58] sm:$0xff]  ;;  %v16989_v15 = vcombine.high %v3844_v7, %v3848_v8 }
 0x46e   :  { %v7062_v32 = vpop.f32.mrf.mxu1  ;;  %v4072_v22 = vld [vmem:[#allocation8 + $0xb78] sm:$0xff]  ;;  %v16988_v60 = vcombine.low %v3844_v7, %v3848_v8  ;;  %v17197_v2 = vcombine.high %v4052_v18, %v4056_v36 }
 0x46f   :  { %7355 = vmatpush1.bf16.msra.mxu1 %v17028_v27  ;;  %v20286_v48 = vadd.f32 %v20270_v24, %v7061_v19  ;;  %v3856_v24 = vld [vmem:[#allocation8 + $0x4b8] sm:$0xff]  ;;  %v17213_v5 = vcombine.high %v4068_v17, %v4072_v22  ;;  %v17212_v28 = vcombine.low %v4068_v17, %v4072_v22 }
 0x470   :  { %v7063_v41 = vpop.f32.mrf.mxu1  ;;  %7356 = vmatprep.subr.bf16.mxu1 %v17021_v31  ;;  %7404 = vmatpush1.bf16.msra.mxu0 %v17124_v12  ;;  %v16997_v30 = vcombine.high %v3852_v61, %v3856_v24  ;;  %v16996_v10 = vcombine.low %v3852_v61, %v3856_v24  ;;  %v3840_v11 = vld [vmem:[#allocation8 + $0x438] sm:$0xff] }
 0x471   :  { %7405 = vmatprep.subr.bf16.mxu0 %v17117_v52  ;;  %v4060_v29 = vld [vmem:[#allocation8 + $0xb18] sm:$0xff]  ;;  %v16981_v20 = vcombine.high %v3836_v58, %v3840_v11  ;;  %v16980_v12 = vcombine.low %v3836_v58, %v3840_v11 }
 0x472   :  { %v4064_v27 = vld [vmem:[#allocation8 + $0xb38] sm:$0xff] }
 0x473   :  { %7357 = vmatpush1.bf16.msra.mxu1 %v17020_v44  ;;  %v3956_v43 = vld [vmem:[#allocation8 + $0x7d8] sm:$0xff]  ;;  %v17205_v19 = vcombine.high %v4060_v29, %v4064_v27  ;;  %v17204_v52 = vcombine.low %v4060_v29, %v4064_v27 }
 0x474   :  { %7358 = vmatprep.subr.bf16.mxu1 %v17013_v45  ;;  %7406 = vmatpush1.bf16.msra.mxu0 %v17116_v50  ;;  %v3960_v31 = vld [vmem:[#allocation8 + $0x7f8] sm:$0xff] }
 0x475   :  { %7407 = vmatprep.subr.bf16.mxu0 %v17109_v16  ;;  %v17101_v32 = vcombine.high %v3956_v43, %v3960_v31  ;;  %v3948_v44 = vld [vmem:[#allocation8 + $0x798] sm:$0xff]  ;;  %v17100_v41 = vcombine.low %v3956_v43, %v3960_v31 }
 0x476   :  { %v3952_v33 = vld [vmem:[#allocation8 + $0x7b8] sm:$0xff] }
 0x477   :  { %7359 = vmatpush1.bf16.msra.mxu1 %v17012_v54  ;;  %v4044_v45 = vld [vmem:[#allocation8 + $0xa98] sm:$0xff]  ;;  %v17093_v34 = vcombine.high %v3948_v44, %v3952_v33  ;;  %v17092_v51 = vcombine.low %v3948_v44, %v3952_v33 }
 0x478   :  { %7360 = vmatprep.subr.bf16.mxu1 %v17005_v57  ;;  %7408 = vmatpush1.bf16.msra.mxu0 %v17108_v35  ;;  %v4048_v50 = vld [vmem:[#allocation8 + $0xab8] sm:$0xff] }
 0x479   :  { %7409 = vmatprep.subr.bf16.mxu0 %v17229_v62  ;;  %v3940_v16 = vld [vmem:[#allocation8 + $0x758] sm:$0xff]  ;;  %v17189_v55 = vcombine.high %v4044_v45, %v4048_v50  ;;  %v17188_v24 = vcombine.low %v4044_v45, %v4048_v50 }
 0x47a   :  { %v3944_v54 = vld [vmem:[#allocation8 + $0x778] sm:$0xff] }
 0x47b   :  { %7361 = vmatpush1.bf16.msra.mxu1 %v17004_v49  ;;  %v4036_v57 = vld [vmem:[#allocation8 + $0xa58] sm:$0xff]  ;;  %v17085_v61 = vcombine.high %v3940_v16, %v3944_v54  ;;  %v17084_v3 = vcombine.low %v3940_v16, %v3944_v54  ;;  %v18733_v54 = vld [vmem:[#allocation11 + $0x60] sm:$0xff]  }
 0x47c   :  { %7362 = vmatprep.subr.bf16.mxu1 %v16997_v30  ;;  %7410 = vmatpush2.bf16.msra.mxu0 %v17228_v4  ;;  %v4040_v35 = vld [vmem:[#allocation8 + $0xa78] sm:$0xff] }
 0x47d   :  { %7411 = vmatprep.subr.bf16.mxu0 %v17221_v9  ;;  %v3932_v62 = vld [vmem:[#allocation8 + $0x718] sm:$0xff]  ;;  %v17181_v1 = vcombine.high %v4036_v57, %v4040_v35  ;;  %v17180_v8 = vcombine.low %v4036_v57, %v4040_v35  ;;  %v18734_v57 = vld [vmem:[#allocation11 + $0x20] sm:$0xff]  }
 0x47e   :  { %v3936_v49 = vld [vmem:[#allocation8 + $0x738] sm:$0xff] }
 0x47f   :  { %7363 = vmatpush1.bf16.msra.mxu1 %v16996_v10  ;;  %v4028_v30 = vld [vmem:[#allocation8 + $0xa18] sm:$0xff]  ;;  %v17077_v7 = vcombine.high %v3932_v62, %v3936_v49  ;;  %v17076_v22 = vcombine.low %v3932_v62, %v3936_v49 }
 0x480   :  { %7364 = vmatprep.subr.bf16.mxu1 %v16989_v15  ;;  %7412 = vmatpush2.bf16.msra.mxu0 %v17220_v23  ;;  %v4032_v4 = vld [vmem:[#allocation8 + $0xa38] sm:$0xff]  ;;  %v7484_v15 = vmul.f32 0.1, %v20264_v25 }
 0x481   :  { %7413 = vmatprep.subr.bf16.mxu0 %v17213_v5  ;;  %v3924_v9 = vld [vmem:[#allocation8 + $0x6d8] sm:$0xff]  ;;  %v17173_v17 = vcombine.high %v4028_v30, %v4032_v4  ;;  %v17172_v58 = vcombine.low %v4028_v30, %v4032_v4 }
 0x482   :  { %v3928_v10 = vld [vmem:[#allocation8 + $0x6f8] sm:$0xff] }
 0x483   :  { %7365 = vmatpush1.bf16.msra.mxu1 %v16988_v60  ;;  %v17069_v23 = vcombine.high %v3924_v9, %v3928_v10  ;;  %v3916_v11 = vld [vmem:[#allocation8 + $0x698] sm:$0xff]  ;;  %v18727_v60 = vld [vmem:[#allocation11 + $0x78] sm:$0xff]   ;;  %v17068_v29 = vcombine.low %v3924_v9, %v3928_v10 }
 0x484   :  { %7366 = vmatprep.subr.bf16.mxu1 %v16981_v20  ;;  %7414 = vmatpush2.bf16.msra.mxu0 %v17212_v28  ;;  %v3920_v5 = vld [vmem:[#allocation8 + $0x6b8] sm:$0xff]  ;;  %v7492_v20 = vsel %vm7476_vm8, %v20264_v25, %v7484_v15  ;;  %v18728_v28 = vld [vmem:[#allocation11 + $0x38] sm:$0xff]  }
 0x485   :  { %7415 = vmatprep.subr.bf16.mxu0 %v17205_v19  ;;  %v17061_v27 = vcombine.high %v3916_v11, %v3920_v5  ;;  %v3908_v43 = vld [vmem:[#allocation8 + $0x658] sm:$0xff]  ;;  %v7500_v18 = vpack.c.bf16 %v7492_v20, %v7492_v20  ;;  %v7483_v20 = vmul.f32 0.1, %v20260_v21 }
 0x486   :  { %v3912_v31 = vld [vmem:[#allocation8 + $0x678] sm:$0xff] }
 0x487   :  { %7367 = vmatpush1.bf16.msra.mxu1 %v16980_v12  ;;  %v18729_v19 = vld [vmem:[#allocation11 + $0x70] sm:$0xff]   ;;  %v17060_v12 = vcombine.low %v3916_v11, %v3920_v5 }
 0x488   :  { %7368 = vmatprep.subr.bf16.mxu1 %v17101_v32  ;;  %7416 = vmatpush2.bf16.msra.mxu0 %v17204_v52  ;;  %v17053_v32 = vcombine.high %v3908_v43, %v3912_v31  ;;  %v18730_v52 = vld [vmem:[#allocation11 + $0x30] sm:$0xff]  }
 0x489   :  { %7417 = vmatprep.subr.bf16.mxu0 %v17197_v2  ;;  %v3900_v44 = vld [vmem:[#allocation8 + $0x618] sm:$0xff]  ;;  %v18731_v2 = vld [vmem:[#allocation11 + $0x68] sm:$0xff]  }
 0x48a   :  { %v3904_v25 = vld [vmem:[#allocation8 + $0x638] sm:$0xff] }
 0x48b   :  { %7369 = vmatpush2.bf16.msra.mxu1 %v17100_v41  ;;  %v17052_v41 = vcombine.low %v3908_v43, %v3912_v31  ;;  %v17045_v50 = vcombine.high %v3900_v44, %v3904_v25  ;;  %v4152_v16 = vld [vmem:[#allocation8 + $0xdf8] sm:$0xff]  ;;  %v18742_v31 = vld [vmem:[#allocation11] sm:$0xff]  }
 0x48c   :  { %7370 = vmatprep.subr.bf16.mxu1 %v17093_v34  ;;  %7418 = vmatpush2.bf16.msra.mxu0 %v17196_v53  ;;  %v18732_v34 = vld [vmem:[#allocation11 + $0x28] sm:$0xff]   ;;  %v4148_v53 = vld [vmem:[#allocation8 + $0xdd8] sm:$0xff] }
 0x48d   :  { %7419 = vmatprep.subr.bf16.mxu0 %v17189_v55  ;;  %v17044_v55 = vcombine.low %v3900_v44, %v3904_v25  ;;  %v4140_v35 = vld [vmem:[#allocation8 + $0xd98] sm:$0xff]  ;;  %v17292_v62 = vcombine.low %v4148_v53, %v4152_v16 }
 0x48e   :  { %v4136_v30 = vld [vmem:[#allocation8 + $0xd78] sm:$0xff] }
 0x48f   :  { %7371 = vmatpush2.bf16.msra.mxu1 %v17092_v51  ;;  %v17293_v51 = vcombine.high %v4148_v53, %v4152_v16  ;;  %v4124_v15 = vld [vmem:[#allocation8 + $0xd18] sm:$0xff] }
 0x490   :  { %7372 = vmatprep.subr.bf16.mxu1 %v17085_v61  ;;  %7420 = vmatpush2.bf16.msra.mxu0 %v17188_v24  ;;  %v4144_v61 = vld [vmem:[#allocation8 + $0xdb8] sm:$0xff]  ;;  %v18735_v24 = vld [vmem:[#allocation11 + $0x58] sm:$0xff]  }
 0x491   :  { %7421 = vmatprep.subr.bf16.mxu0 %v17181_v1  ;;  %v17285_v49 = vcombine.high %v4140_v35, %v4144_v61  ;;  %v18736_v1 = vld [vmem:[#allocation11 + $0x18] sm:$0xff]   ;;  %v17284_v9 = vcombine.low %v4140_v35, %v4144_v61  ;;  %v4100_v25 = vld [vmem:[#allocation8 + $0xc58] sm:$0xff]  ;;  %v18764_v61 = vld [vmem:[#allocation11 + $0x128] sm:$0xff]  }
 0x492   :  { %v4092_v16 = vld [vmem:[#allocation8 + $0xc18] sm:$0xff] }
 0x493   :  { %7373 = vmatpush2.bf16.msra.mxu1 %v17084_v3  ;;  %v4132_v3 = vld [vmem:[#allocation8 + $0xd58] sm:$0xff] }
 0x494   :  { %7374 = vmatprep.subr.bf16.mxu1 %v17077_v7  ;;  %7422 = vmatpush2.bf16.msra.mxu0 %v17180_v8  ;;  %v18737_v7 = vld [vmem:[#allocation11 + $0x50] sm:$0xff]   ;;  %v17276_v11 = vcombine.low %v4132_v3, %v4136_v30 }
 0x495   :  { %7423 = vmatprep.subr.bf16.mxu0 %v17173_v17  ;;  %v17277_v17 = vcombine.high %v4132_v3, %v4136_v30  ;;  %v4216_v35 = vld [vmem:[#allocation8 + $0xff8] sm:$0xff]  ;;  %v18766_v30 = vld [vmem:[#allocation11 + $0x120] sm:$0xff]  }
 0x496   :  { %v4208_v3 = vld [vmem:[#allocation8 + $0xfb8] sm:$0xff] }
 0x497   :  { %7375 = vmatpush2.bf16.msra.mxu1 %v17076_v22  ;;  %v18738_v22 = vld [vmem:[#allocation11 + $0x10] sm:$0xff]  }
 0x498   :  { %7376 = vmatprep.subr.bf16.mxu1 %v17069_v23  ;;  %7424 = vmatpush2.bf16.msra.mxu0 %v17172_v58  ;;  %v4128_v23 = vld [vmem:[#allocation8 + $0xd38] sm:$0xff] }
 0x499   :  { %18465 = vmatprep.subr.bf16.mxu0 %v18727_v60  ;;  %v18740_v60 = vld [vmem:[#allocation11 + $0x8] sm:$0xff]  }
 0x49b   :  { %7377 = vmatpush2.bf16.msra.mxu1 %v17068_v29  ;;  %v20291_v36 = vpop.f32.mrf.mxu0  ;;  %7426 = vmatmul.mubr.bf16.vlgmr.msra.gmra.mxu0 %v20200_v42  ;;  %v4120_v29 = vld [vmem:[#allocation8 + $0xcf8] sm:$0xff] }
 0x49c   :  { %7378 = vmatprep.subr.bf16.mxu1 %v17061_v27  ;;  %18466 = vmatpush3.bf16.msra.mxu0 %v18728_v28  ;;  %v18741_v27 = vld [vmem:[#allocation11 + $0x40] sm:$0xff]   ;;  %v17268_v28 = vcombine.low %v4124_v15, %v4128_v23 }
 0x49d   :  { %8058 = vmatprep.mubr.bf16.mxu0 %v7500_v18  ;;  %v20294_v33 = vpop.f32.mrf.mxu0  ;;  %18467 = vmatprep.subr.bf16.mxu0 %v18729_v19  ;;  %v4108_v19 = vld [vmem:[#allocation8 + $0xc98] sm:$0xff]  ;;  %v18759_v18 = vld [vmem:[#allocation11 + $0x178] sm:$0xff]  }
 0x49f   :  { %7379 = vmatpush2.bf16.msra.mxu1 %v17060_v12  ;;  %v7185_v45 = vpop.f32.mrf.mxu0  ;;  %v4112_v12 = vld [vmem:[#allocation8 + $0xcb8] sm:$0xff] }
 0x4a0   :  { %7380 = vmatprep.subr.bf16.mxu1 %v17053_v32  ;;  %18468 = vmatpush3.bf16.msra.mxu0 %v18730_v52  ;;  %v7491_v32 = vsel %vm7475_vm9, %v20260_v21, %v7483_v20  ;;  %v17253_v44 = vcombine.high %v4108_v19, %v4112_v12  ;;  %v18762_v21 = vld [vmem:[#allocation11 + $0x130] sm:$0xff]  }
 0x4a1   :  { %v7186_v42 = vpop.f32.mrf.mxu0  ;;  %18469 = vmatprep.subr.bf16.mxu0 %v18731_v2  ;;  %v4104_v2 = vld [vmem:[#allocation8 + $0xc78] sm:$0xff]  ;;  %v7499_v45 = vpack.c.bf16 %v7491_v32, %v7491_v32  ;;  %v18774_v32 = vld [vmem:[#allocation11 + $0x100] sm:$0xff]  }
 0x4a2   :  { %v17245_v53 = vcombine.high %v4100_v25, %v4104_v2  ;;  %v4096_v42 = vld [vmem:[#allocation8 + $0xc38] sm:$0xff] }
 0x4a3   :  { %7381 = vmatpush2.bf16.msra.mxu1 %v17052_v41  ;;  %v18760_v41 = vld [vmem:[#allocation11 + $0x138] sm:$0xff]   ;;  %v4184_v20 = vld [vmem:[#allocation8 + $0xef8] sm:$0xff] }
 0x4a4   :  { %7382 = vmatprep.subr.bf16.mxu1 %v17045_v50  ;;  %18470 = vmatpush3.bf16.msra.mxu0 %v18732_v34  ;;  %v18761_v50 = vld [vmem:[#allocation11 + $0x170] sm:$0xff]   ;;  %v17252_v34 = vcombine.low %v4108_v19, %v4112_v12 }
 0x4a5   :  { %18471 = vmatprep.subr.bf16.mxu0 %v18733_v54  ;;  %v18763_v54 = vld [vmem:[#allocation11 + $0x168] sm:$0xff]   ;;  %v4172_v12 = vld [vmem:[#allocation8 + $0xe98] sm:$0xff] }
 0x4a7   :  { %7383 = vmatpush2.bf16.msra.mxu1 %v17044_v55  ;;  %v17244_v55 = vcombine.low %v4100_v25, %v4104_v2  ;;  %v4164_v25 = vld [vmem:[#allocation8 + $0xe58] sm:$0xff] }
 0x4a8   :  { %7434 = vmatprep.subr.bf16.mxu1 %v17293_v51  ;;  %18472 = vmatpush3.bf16.msra.mxu0 %v18734_v57  ;;  %v17237_v51 = vcombine.high %v4092_v16, %v4096_v42  ;;  %v4212_v57 = vld [vmem:[#allocation8 + $0xfd8] sm:$0xff] }
 0x4a9   :  { %18473 = vmatprep.subr.bf16.mxu0 %v18735_v24  ;;  %v18765_v24 = vld [vmem:[#allocation11 + $0x160] sm:$0xff]   ;;  %v4168_v2 = vld [vmem:[#allocation8 + $0xe78] sm:$0xff] }
 0x4aa   :  { %v7140_v4 = vpop.f32.mrf.mxu1  ;;  %7385 = vmatmul.mubr.bf16.vlgmr.msra.gmra.mxu1 %v20169_v47  ;;  %v18739_v47 = vld [vmem:[#allocation11 + $0x48] sm:$0xff]  }
 0x4ab   :  { %v20298_v8 = vadd.f32 %v7140_v4, %v20283_v26  ;;  %7435 = vmatpush1.bf16.msra.mxu1 %v17292_v62  ;;  %7466 = vmatprep.mubr.bf16.mxu1 %v20222_v39  ;;  %v17269_v26 = vcombine.high %v4124_v15, %v4128_v23  ;;  %v4116_v39 = vld [vmem:[#allocation8 + $0xcd8] sm:$0xff]  ;;  %v17236_v62 = vcombine.low %v4092_v16, %v4096_v42  ;;  %v18767_v4 = vld [vmem:[#allocation11 + $0x158] sm:$0xff]  }
 0x4ac   :  { %v20301_v10 = vpop.f32.mrf.mxu1  ;;  %7436 = vmatprep.subr.bf16.mxu1 %v17285_v49  ;;  %18474 = vmatpush3.bf16.msra.mxu0 %v18736_v1  ;;  %v17261_v43 = vcombine.high %v4116_v39, %v4120_v29  ;;  %v17260_v52 = vcombine.low %v4116_v39, %v4120_v29  ;;  %v17357_v49 = vcombine.high %v4212_v57, %v4216_v35  ;;  %v4204_v1 = vld [vmem:[#allocation8 + $0xf98] sm:$0xff]  ;;  %v18768_v15 = vld [vmem:[#allocation11 + $0x118] sm:$0xff]  }
 0x4ad   :  { %18475 = vmatprep.subr.bf16.mxu0 %v18737_v7  ;;  %v17356_v7 = vcombine.low %v4212_v57, %v4216_v35  ;;  %v18769_v23 = vld [vmem:[#allocation11 + $0x150] sm:$0xff]   ;;  %v7143_v16 = vadd.f32 %v20301_v10, %v20286_v48  ;;  %v4242_v48 = vrot.slane %v20272_v63, %v20184_v40  ;;  %v18744_v10 = vld [vmem:[#allocation11 + $0xb8] sm:$0xff]   ;;  %vm7477_vm11 = vcmp.ge.f32.partialorder %v20298_v8, 0.0 }
 0x4ae   :  { %v7144_v58 = vpop.f32.mrf.mxu1 }
 0x4af   :  { %7437 = vmatpush1.bf16.msra.mxu1 %v17284_v9  ;;  %v17349_v9 = vcombine.high %v4204_v1, %v4208_v3  ;;  %v17348_v58 = vcombine.low %v4204_v1, %v4208_v3  ;;  %vm7478_vm10 = vcmp.ge.f32.partialorder %v7143_v16, 0.0 }
 0x4b0   :  { %v7145_v5 = vpop.f32.mrf.mxu1  ;;  %7438 = vmatprep.subr.bf16.mxu1 %v17277_v17  ;;  %18476 = vmatpush3.bf16.msra.mxu0 %v18738_v22  ;;  %v4196_v17 = vld [vmem:[#allocation8 + $0xf58] sm:$0xff] }
 0x4b1   :  { %18477 = vmatprep.subr.bf16.mxu0 %v18739_v47  ;;  %v4200_v22 = vld [vmem:[#allocation8 + $0xf78] sm:$0xff] }
 0x4b2   :  { %v17341_v47 = vcombine.high %v4196_v17, %v4200_v22  ;;  %v4192_v5 = vld [vmem:[#allocation8 + $0xf38] sm:$0xff]  ;;  %v17340_v39 = vcombine.low %v4196_v17, %v4200_v22  ;;  %v18747_v22 = vld [vmem:[#allocation11 + $0xe8] sm:$0xff]  }
 0x4b3   :  { %7439 = vmatpush1.bf16.msra.mxu1 %v17276_v11  ;;  %v4188_v11 = vld [vmem:[#allocation8 + $0xf18] sm:$0xff] }
 0x4b4   :  { %7440 = vmatprep.subr.bf16.mxu1 %v17269_v26  ;;  %18478 = vmatpush3.bf16.msra.mxu0 %v18740_v60  ;;  %v18770_v26 = vld [vmem:[#allocation11 + $0x110] sm:$0xff]   ;;  %v18771_v60 = vld [vmem:[#allocation11 + $0x148] sm:$0xff]   ;;  %v17333_v29 = vcombine.high %v4188_v11, %v4192_v5 }
 0x4b5   :  { %18479 = vmatprep.subr.bf16.mxu0 %v18741_v27  ;;  %v4180_v27 = vld [vmem:[#allocation8 + $0xed8] sm:$0xff] }
 0x4b6   :  { %v17325_v19 = vcombine.high %v4180_v27, %v4184_v20 }
 0x4b7   :  { %7441 = vmatpush1.bf16.msra.mxu1 %v17268_v28  ;;  %v18772_v28 = vld [vmem:[#allocation11 + $0x108] sm:$0xff]  }
 0x4b8   :  { %7442 = vmatprep.subr.bf16.mxu1 %v17261_v43  ;;  %18480 = vmatpush3.bf16.msra.mxu0 %v18742_v31  ;;  %v18773_v43 = vld [vmem:[#allocation11 + $0x140] sm:$0xff]   ;;  %v17332_v31 = vcombine.low %v4188_v11, %v4192_v5 }
 0x4b9   :  { %18509 = vmatprep.subr.bf16.mxu0 %v18759_v18  ;;  %v4176_v18 = vld [vmem:[#allocation8 + $0xeb8] sm:$0xff]  ;;  %v18749_v5 = vld [vmem:[#allocation11 + $0xe0] sm:$0xff]  }
 0x4bb   :  { %7443 = vmatpush1.bf16.msra.mxu1 %v17260_v52  ;;  %8059 = vmatmul.mubr.bf16.vlgmr.msra.gmra.mxu0 %v7499_v45  ;;  %v17324_v52 = vcombine.low %v4180_v27, %v4184_v20  ;;  %v18756_v27 = vld [vmem:[#allocation11 + $0x88] sm:$0xff]   ;;  %v18757_v20 = vld [vmem:[#allocation11 + $0xc0] sm:$0xff]  }
 0x4bc   :  { %7444 = vmatprep.subr.bf16.mxu1 %v17253_v44  ;;  %18510 = vmatpush3.bf16.msra.mxu0 %v18760_v41  ;;  %v17317_v44 = vcombine.high %v4172_v12, %v4176_v18  ;;  %v17316_v41 = vcombine.low %v4172_v12, %v4176_v18  ;;  %v18776_v12 = vld [vmem:[#allocation11 + $0x1b8] sm:$0xff]  }
 0x4bd   :  { %18511 = vmatprep.subr.bf16.mxu0 %v18761_v50  ;;  %v17309_v50 = vcombine.high %v4164_v25, %v4168_v2 }
 0x4bf   :  { %7445 = vmatpush1.bf16.msra.mxu1 %v17252_v34  ;;  %v4156_v34 = vld [vmem:[#allocation8 + $0xe18] sm:$0xff] }
 0x4c0   :  { %7446 = vmatprep.subr.bf16.mxu1 %v17245_v53  ;;  %18512 = vmatpush3.bf16.msra.mxu0 %v18762_v21  ;;  %v4160_v53 = vld [vmem:[#allocation8 + $0xe38] sm:$0xff]  ;;  %v17308_v21 = vcombine.low %v4164_v25, %v4168_v2  ;;  %v18780_v25 = vld [vmem:[#allocation11 + $0x1a8] sm:$0xff]   ;;  %v18781_v2 = vld [vmem:[#allocation11 + $0x1e0] sm:$0xff]  }
 0x4c1   :  { %18513 = vmatprep.subr.bf16.mxu0 %v18763_v54  ;;  %v17300_v35 = vcombine.low %v4156_v34, %v4160_v53 }
 0x4c3   :  { %7447 = vmatpush1.bf16.msra.mxu1 %v17244_v55  ;;  %v17301_v55 = vcombine.high %v4156_v34, %v4160_v53 }
 0x4c4   :  { %7448 = vmatprep.subr.bf16.mxu1 %v17237_v51  ;;  %18514 = vmatpush3.bf16.msra.mxu0 %v18764_v61  ;;  %v7486_v51 = vmul.f32 0.1, %v7143_v16  ;;  %v18743_v61 = vld [vmem:[#allocation11 + $0xf8] sm:$0xff]  }
 0x4c5   :  { %18515 = vmatprep.subr.bf16.mxu0 %v18765_v24  ;;  %v4238_v24 = vrot.slane %v20272_v63, %v20151_v59 }
 0x4c7   :  { %7449 = vmatpush1.bf16.msra.mxu1 %v17236_v62  ;;  %v7494_v62 = vsel %vm7478_vm10, %v7143_v16, %v7486_v51  ;;  %v7182_v1 = vadd.f32 %v20291_v36, %v4238_v24  ;;  %v18787_v51 = vld [vmem:[#allocation11 + $0x1c8] sm:$0xff]  }
 0x4c8   :  { %7450 = vmatprep.subr.bf16.mxu1 %v17357_v49  ;;  %18516 = vmatpush3.bf16.msra.mxu0 %v18766_v30  ;;  %v18745_v49 = vld [vmem:[#allocation11 + $0xf0] sm:$0xff]   ;;  %v7502_v3 = vpack.c.bf16 %v7494_v62, %v7494_v62 }
 0x4c9   :  { %18517 = vmatprep.subr.bf16.mxu0 %v18767_v4  ;;  %v7184_v4 = vadd.f32 %v20294_v33, %v4242_v48  ;;  %v18751_v33 = vld [vmem:[#allocation11 + $0xd8] sm:$0xff]  }
 0x4cb   :  { %7451 = vmatpush2.bf16.msra.mxu1 %v17356_v7 }
 0x4cc   :  { %7452 = vmatprep.subr.bf16.mxu1 %v17349_v9  ;;  %18518 = vmatpush3.bf16.msra.mxu0 %v18768_v15  ;;  %v18746_v9 = vld [vmem:[#allocation11 + $0xb0] sm:$0xff]  }
 0x4cd   :  { %18519 = vmatprep.subr.bf16.mxu0 %v18769_v23 }
 0x4cf   :  { %7453 = vmatpush2.bf16.msra.mxu1 %v17348_v58 }
 0x4d0   :  { %7454 = vmatprep.subr.bf16.mxu1 %v17341_v47  ;;  %18520 = vmatpush3.bf16.msra.mxu0 %v18770_v26  ;;  %v18748_v47 = vld [vmem:[#allocation11 + $0xa8] sm:$0xff]   ;;  %v18752_v26 = vld [vmem:[#allocation11 + $0x98] sm:$0xff]  }
 0x4d1   :  { %18521 = vmatprep.subr.bf16.mxu0 %v18771_v60  ;;  %v18753_v60 = vld [vmem:[#allocation11 + $0xd0] sm:$0xff]  }
 0x4d3   :  { %7455 = vmatpush2.bf16.msra.mxu1 %v17340_v39  ;;  %v18754_v39 = vld [vmem:[#allocation11 + $0x90] sm:$0xff]  }
 0x4d4   :  { %7456 = vmatprep.subr.bf16.mxu1 %v17333_v29  ;;  %18522 = vmatpush3.bf16.msra.mxu0 %v18772_v28  ;;  %v18755_v29 = vld [vmem:[#allocation11 + $0xc8] sm:$0xff]   ;;  %v7485_v28 = vmul.f32 0.1, %v20298_v8 }
 0x4d5   :  { %18523 = vmatprep.subr.bf16.mxu0 %v18773_v43  ;;  %v18758_v43 = vld [vmem:[#allocation11 + $0x80] sm:$0xff]  }
 0x4d7   :  { %7457 = vmatpush2.bf16.msra.mxu1 %v17332_v31  ;;  %v18775_v31 = vld [vmem:[#allocation11 + $0x1f8] sm:$0xff]  }
 0x4d8   :  { %7458 = vmatprep.subr.bf16.mxu1 %v17325_v19  ;;  %18524 = vmatpush3.bf16.msra.mxu0 %v18774_v32  ;;  %v7493_v19 = vsel %vm7477_vm11, %v20298_v8, %v7485_v28  ;;  %v18777_v32 = vld [vmem:[#allocation11 + $0x1f0] sm:$0xff]   ;;  %v18784_v8 = vld [vmem:[#allocation11 + $0x198] sm:$0xff]   ;;  %v19878_v28 = vmov 0.0  }
 0x4d9   :  { %v7501_v18 = vpack.c.bf16 %v7493_v19, %v7493_v19  ;;  %18659 = vmatprep.subr.bf16.mxu0 %v19878_v28 }
 0x4db   :  { %7459 = vmatpush2.bf16.msra.mxu1 %v17324_v52  ;;  %v7263_v45 = vpop.f32.mrf.mxu0  ;;  %v18778_v52 = vld [vmem:[#allocation11 + $0x1b0] sm:$0xff]  }
 0x4dc   :  { %7460 = vmatprep.subr.bf16.mxu1 %v17317_v44  ;;  %v18779_v44 = vld [vmem:[#allocation11 + $0x1e8] sm:$0xff]  }
 0x4dd   :  { %v7265_v42 = vpop.f32.mrf.mxu0 }
 0x4df   :  { %7461 = vmatpush2.bf16.msra.mxu1 %v17316_v41  ;;  %v7267_v54 = vpop.f32.mrf.mxu0  ;;  %v18782_v41 = vld [vmem:[#allocation11 + $0x1a0] sm:$0xff]  }
 0x4e0   :  { %7462 = vmatprep.subr.bf16.mxu1 %v17309_v50  ;;  %v18785_v50 = vld [vmem:[#allocation11 + $0x1d0] sm:$0xff]  }
 0x4e1   :  { %v7268_v57 = vpop.f32.mrf.mxu0 }
 0x4e3   :  { %7463 = vmatpush2.bf16.msra.mxu1 %v17308_v21  ;;  %v18786_v21 = vld [vmem:[#allocation11 + $0x190] sm:$0xff]  }
 0x4e4   :  { %7464 = vmatprep.subr.bf16.mxu1 %v17301_v55 }
 0x4e7   :  { %7465 = vmatpush2.bf16.msra.mxu1 %v17300_v35  ;;  %v18788_v35 = vld [vmem:[#allocation11 + $0x188] sm:$0xff]  }
 0x4e8   :  { %18487 = vmatprep.subr.bf16.mxu1 %v18743_v61 }
 0x4ea   :  { %v7222_v30 = vpop.f32.mrf.mxu1  ;;  %7467 = vmatmul.mubr.bf16.vlgmr.msra.gmra.mxu1 %v20224_v14  ;;  %v18750_v14 = vld [vmem:[#allocation11 + $0xa0] sm:$0xff]  }
 0x4eb   :  { %v7223_v7 = vadd.f32 %v7222_v30, %v7182_v1  ;;  %18488 = vmatpush3.bf16.msra.mxu1 %v18744_v10  ;;  %8098 = vmatprep.mubr.bf16.mxu1 %v7502_v3  ;;  %v18789_v10 = vld [vmem:[#allocation11 + $0x1c0] sm:$0xff]  }
 0x4ec   :  { %v7224_v17 = vpop.f32.mrf.mxu1  ;;  %18489 = vmatprep.subr.bf16.mxu1 %v18745_v49  ;;  %v18790_v3 = vld [vmem:[#allocation11 + $0x180] sm:$0xff]  }
 0x4ed   :  { %v7225_v15 = vadd.f32 %v7224_v17, %v7184_v4  ;;  %v7264_v23 = vadd.f32 %v7263_v45, %v7223_v7  ;;  %v18783_v45 = vld [vmem:[#allocation11 + $0x1d8] sm:$0xff]  }
 0x4ee   :  { %v7226_v58 = vpop.f32.mrf.mxu1 }
 0x4ef   :  { %18490 = vmatpush3.bf16.msra.mxu1 %v18746_v9  ;;  %v20315_v11 = vadd.f32 %v7265_v42, %v7225_v15  ;;  %v4250_v58 = vrot.slane %v20272_v63, %v20212_v46 }
 0x4f0   :  { %v7227_v36 = vpop.f32.mrf.mxu1  ;;  %18491 = vmatprep.subr.bf16.mxu1 %v18747_v22 }
 0x4f3   :  { %18492 = vmatpush3.bf16.msra.mxu1 %v18748_v47 }
 0x4f4   :  { %18493 = vmatprep.subr.bf16.mxu1 %v18749_v5 }
 0x4f7   :  { %18494 = vmatpush3.bf16.msra.mxu1 %v18750_v14 }
 0x4f8   :  { %18495 = vmatprep.subr.bf16.mxu1 %v18751_v33 }
 0x4fb   :  { %18496 = vmatpush3.bf16.msra.mxu1 %v18752_v26 }
 0x4fc   :  { %18497 = vmatprep.subr.bf16.mxu1 %v18753_v60 }
 0x4ff   :  { %18498 = vmatpush3.bf16.msra.mxu1 %v18754_v39 }
 0x500   :  { %18499 = vmatprep.subr.bf16.mxu1 %v18755_v29 }
 0x503   :  { %18500 = vmatpush3.bf16.msra.mxu1 %v18756_v27  ;;  %v18791_v27 = vld [vmem:[#allocation14 + $0x38] sm:$0xff]  }
 0x504   :  { %18501 = vmatprep.subr.bf16.mxu1 %v18757_v20 }
 0x507   :  { %18502 = vmatpush3.bf16.msra.mxu1 %v18758_v43  ;;  %v18792_v43 = vld [vmem:[#allocation14 + $0x30] sm:$0xff]  }
 0x508   :  { %18531 = vmatprep.subr.bf16.mxu1 %v18775_v31 }
 0x50a   :  { %8099 = vmatmul.mubr.bf16.vlgmr.msra.gmra.mxu1 %v7501_v18 }
 0x50b   :  { %18532 = vmatpush3.bf16.msra.mxu1 %v18776_v12  ;;  %v18793_v12 = vld [vmem:[#allocation14 + $0x28] sm:$0xff]  }
 0x50c   :  { %18533 = vmatprep.subr.bf16.mxu1 %v18777_v32  ;;  %v18794_v32 = vld [vmem:[#allocation14 + $0x20] sm:$0xff]  }
 0x50f   :  { %18534 = vmatpush3.bf16.msra.mxu1 %v18778_v52  ;;  %v18795_v52 = vld [vmem:[#allocation14 + $0x18] sm:$0xff]  }
 0x510   :  { %18535 = vmatprep.subr.bf16.mxu1 %v18779_v44 }
 0x513   :  { %18536 = vmatpush3.bf16.msra.mxu1 %v18780_v25 }
 0x514   :  { %18537 = vmatprep.subr.bf16.mxu1 %v18781_v2 }
 0x517   :  { %18538 = vmatpush3.bf16.msra.mxu1 %v18782_v41 }
 0x518   :  { %18539 = vmatprep.subr.bf16.mxu1 %v18783_v45 }
 0x51b   :  { %18540 = vmatpush3.bf16.msra.mxu1 %v18784_v8  ;;  %v7345_v34 = vpop.f32.mrf.mxu0 }
 0x51c   :  { %18541 = vmatprep.subr.bf16.mxu1 %v18785_v50 }
 0x51d   :  { %v7347_v53 = vpop.f32.mrf.mxu0 }
 0x51e   :  { %v7348_v36 = vadd.f32 %v7347_v53, %v4250_v58  ;;  %v18803_v58 = vld [vmem:[#allocation17 + $0x18] sm:$0xff]  }
 0x51f   :  { %v7349_v16 = vpop.f32.mrf.mxu0  ;;  %18542 = vmatpush3.bf16.msra.mxu1 %v18786_v21 }
 0x520   :  { %18543 = vmatprep.subr.bf16.mxu1 %v18787_v51 }
 0x521   :  { %v7350_v42 = vpop.f32.mrf.mxu0 }
 0x523   :  { %18544 = vmatpush3.bf16.msra.mxu1 %v18788_v35 }
 0x524   :  { %18545 = vmatprep.subr.bf16.mxu1 %v18789_v10 }
 0x527   :  { %18546 = vmatpush3.bf16.msra.mxu1 %v18790_v3  ;;  %v18797_v3 = vld [vmem:[#allocation14 + $0x8] sm:$0xff]  }
 0x528   :  { %18679 = vmatprep.subr.bf16.mxu1 %v19878_v28 }
 0x52a   :  { %v7304_v54 = vpop.f32.mrf.mxu1 }
 0x52b   :  { %v7305_v55 = vadd.f32 %v7304_v54, %v7264_v23  ;;  %v4246_v23 = vrot.slane %v20272_v63, %v20209_v37  ;;  %v17358_v54 = vld [vmem:[#allocation13] ss:$0 sm:$0xff] }
 0x52c   :  { %v7306_v57 = vpop.f32.mrf.mxu1 }
 0x52d   :  { %vm7479_vm12 = vcmp.ge.f32.partialorder %v7305_v55, 0.0  ;;  %v7487_v61 = vmul.f32 0.1, %v7305_v55  ;;  %v7307_v24 = vadd.f32 %v7306_v57, %v20315_v11  ;;  %v7346_v47 = vadd.f32 %v7345_v34, %v4246_v23  ;;  %v18802_v23 = vld [vmem:[#allocation17 + $0x20] sm:$0xff]  }
 0x52e   :  { %v7308_v62 = vpop.f32.mrf.mxu1 }
 0x52f   :  { %vm7480_vm13 = vcmp.ge.f32.partialorder %v7307_v24, 0.0  ;;  %v7488_v48 = vmul.f32 0.1, %v7307_v24  ;;  %v7495_v49 = vsel %vm7479_vm12, %v7305_v55, %v7487_v61 }
 0x530   :  { %v7309_v1 = vpop.f32.mrf.mxu1  ;;  %v7503_v7 = vpack.c.bf16 %v7495_v49, %v7495_v49 }
 0x531   :  { %v7496_v30 = vsel %vm7480_vm13, %v7307_v24, %v7488_v48  ;;  %v18796_v48 = vld [vmem:[#allocation14 + $0x10] sm:$0xff]  }
 0x532   :  { %v7504_v4 = vpack.c.bf16 %v7496_v30, %v7496_v30 }
 0x534   :  { %8138 = vmatprep.mubr.bf16.mxu0 %v7504_v4 }
 0x535   :  { %8139 = vmatmul.mubr.bf16.vlgmr.msra.gmra.mxu0 %v7503_v7 }
 0x536   :  { %18660 = vmatpush3.bf16.msra.mxu0 %v18791_v27  ;;  %18675 = vmatprep.mubr.msk.bf16.mxu0 %vm19879_vm0, %v19878_v28 }
 0x537   :  { %18661 = vmatprep.subr.bf16.mxu0 %v19878_v28 }
 0x53a   :  { %18662 = vmatpush3.bf16.msra.mxu0 %v18792_v43  ;;  %v8474_v43 = vld [vmem:[#allocation20 + $0x1c0] sm:$0xff] }
 0x53b   :  { %18663 = vmatprep.subr.bf16.mxu0 %v19878_v28 }
 0x53e   :  { %18664 = vmatpush3.bf16.msra.mxu0 %v18793_v12  ;;  %v8479_v12 = vld [vmem:[#allocation20 + $0x1e8] sm:$0xff] }
 0x53f   :  { %18665 = vmatprep.subr.bf16.mxu0 %v19878_v28 }
 0x542   :  { %18666 = vmatpush3.bf16.msra.mxu0 %v18794_v32  ;;  %v8470_v32 = vld [vmem:[#allocation20 + $0x1a0] sm:$0xff] }
 0x543   :  { %18667 = vmatprep.subr.bf16.mxu0 %v19878_v28 }
 0x546   :  { %18668 = vmatpush3.bf16.msra.mxu0 %v18795_v52 }
 0x547   :  { %18669 = vmatprep.subr.bf16.mxu0 %v19878_v28 }
 0x54a   :  { %18670 = vmatpush3.bf16.msra.mxu0 %v18796_v48  ;;  %v8430_v48 = vld [vmem:[#allocation20 + $0x60] sm:$0xff] }
 0x54b   :  { %18671 = vmatprep.subr.bf16.mxu0 %v19878_v28 }
 0x54e   :  { %18672 = vmatpush3.bf16.msra.mxu0 %v18797_v3 }
 0x54f   :  { %18673 = vmatprep.subr.bf16.mxu0 %v19878_v28 }
 0x55b   :  { %v7427_v9 = vpop.f32.mrf.mxu0 }
 0x55d   :  { %v7429_v17 = vpop.f32.mrf.mxu0 }
 0x55f   :  { %v7431_v22 = vpop.f32.mrf.mxu0 }
 0x560   :  { %v18800_v22 = vld [vmem:[#allocation17 + $0x30] sm:$0xff]  }
 0x561   :  { %v7432_v15 = vpop.f32.mrf.mxu0 }
 0x562   :  { %v18801_v15 = vld [vmem:[#allocation17 + $0x28] sm:$0xff]  }
 0x56a   :  { %v7386_v11 = vpop.f32.mrf.mxu1 }
 0x56b   :  { %v7387_v5 = vadd.f32 %v7386_v11, %v7346_v47  ;;  %v18804_v47 = vld [vmem:[#allocation17 + $0x10] sm:$0xff]   ;;  %v18805_v11 = vld [vmem:[#allocation17 + $0x8] sm:$0xff]  }
 0x56c   :  { %v7388_v14 = vpop.f32.mrf.mxu1 }
 0x56d   :  { %v7389_v33 = vadd.f32 %v7388_v14, %v7348_v36  ;;  %v7428_v26 = vadd.f32 %v7427_v9, %v7387_v5  ;;  %v18798_v9 = vld [vmem:[#allocation14] sm:$0xff]  }
 0x56e   :  { %v7390_v60 = vpop.f32.mrf.mxu1  ;;  %18674 = vmatpush3.bf16.msra.mxu0 %v18798_v9 }
 0x56f   :  { %v7430_v39 = vadd.f32 %v7429_v17, %v7389_v33  ;;  %v18799_v17 = vld [vmem:[#allocation17 + $0x38] sm:$0xff]  }
 0x570   :  { %v7391_v29 = vpop.f32.mrf.mxu1 }
 0x57b   :  { %v18481_v20 = vpop.f32.mrf.mxu0 }
 0x57d   :  { %v18482_v63 = vpop.f32.mrf.mxu0 }
 0x57e   :  { %v18483_v31 = vadd.f32 %v18482_v63, %v18481_v20  ;;  %v18806_v20 = vld [vmem:[#allocation17] sm:$0xff]  }
 0x57f   :  { %v18484_v19 = vpop.f32.mrf.mxu0  ;;  %v8478_v63 = vld [vmem:[#allocation20 + $0x1e0] sm:$0xff] }
 0x580   :  { %v8061_v57 = vadd.f32 %v18483_v31, %v17358_v54  ;;  %v8475_v31 = vld [vmem:[#allocation20 + $0x1c8] sm:$0xff]  ;;  %v17497_v19 = vcombine.low %v8474_v43, %v8478_v63  ;;  %v8446_v54 = vld [vmem:[#allocation20 + $0xe0] sm:$0xff] }
 0x581   :  { %v18485_v18 = vpop.f32.mrf.mxu0  ;;  %v17499_v52 = vcombine.low %v8475_v31, %v8479_v12 }
 0x582   :  { %v8466_v18 = vld [vmem:[#allocation20 + $0x180] sm:$0xff] }
 0x5aa   :  { %v7468_v44 = vpop.f32.mrf.mxu1 }
 0x5ab   :  { %v7469_v25 = vadd.f32 %v7468_v44, %v7428_v26  ;;  %v17500_v44 = vcombine.high %v8475_v31, %v8479_v12 }
 0x5ac   :  { %v7470_v2 = vpop.f32.mrf.mxu1 }
 0x5ad   :  { %vm7481_vm14 = vcmp.ge.f32.partialorder %v7469_v25, 0.0  ;;  %v7489_v41 = vmul.f32 0.1, %v7469_v25  ;;  %v7471_v45 = vadd.f32 %v7470_v2, %v7430_v39  ;;  %v17489_v2 = vcombine.low %v8466_v18, %v8470_v32 }
 0x5ae   :  { %v7472_v8 = vpop.f32.mrf.mxu1 }
 0x5af   :  { %vm7482_vm15 = vcmp.ge.f32.partialorder %v7471_v45, 0.0  ;;  %v7490_v50 = vmul.f32 0.1, %v7471_v45  ;;  %v7497_v34 = vsel %vm7481_vm14, %v7469_v25, %v7489_v41  ;;  %v17490_v25 = vcombine.high %v8466_v18, %v8470_v32  ;;  %v8458_v41 = vld [vmem:[#allocation20 + $0x140] sm:$0xff] }
 0x5b0   :  { %v7473_v53 = vpop.f32.mrf.mxu1  ;;  %v7505_v21 = vpack.c.bf16 %v7497_v34, %v7497_v34  ;;  %v8450_v34 = vld [vmem:[#allocation20 + $0x100] sm:$0xff] }
 0x5b1   :  { %v7498_v16 = vsel %vm7482_vm15, %v7471_v45, %v7490_v50  ;;  %v8462_v45 = vld [vmem:[#allocation20 + $0x160] sm:$0xff] }
 0x5b2   :  { %v7506_v42 = vpack.c.bf16 %v7498_v16, %v7498_v16  ;;  %v17482_v8 = vcombine.high %v8458_v41, %v8462_v45  ;;  %v17481_v50 = vcombine.low %v8458_v41, %v8462_v45  ;;  %v8454_v53 = vld [vmem:[#allocation20 + $0x120] sm:$0xff]  ;;  %v8423_v41 = vld [vmem:[#allocation20 + $0x28] sm:$0xff] }
 0x5b3   :  { %v17474_v16 = vcombine.high %v8450_v34, %v8454_v53 }
 0x5b4   :  { %8178 = vmatprep.mubr.bf16.mxu1 %v7506_v42  ;;  %v17473_v42 = vcombine.low %v8450_v34, %v8454_v53  ;;  %v8476_v34 = vld [vmem:[#allocation20 + $0x1d0] sm:$0xff] }
 0x5b5   :  { %8179 = vmatmul.mubr.bf16.vlgmr.msra.gmra.mxu1 %v7505_v21  ;;  %v8442_v21 = vld [vmem:[#allocation20 + $0xc0] sm:$0xff]  ;;  %v8480_v53 = vld [vmem:[#allocation20 + $0x1f0] sm:$0xff] }
 0x5b6   :  { %18695 = vmatprep.mubr.msk.bf16.mxu1 %vm19879_vm0, %v19878_v28  ;;  %18680 = vmatpush3.bf16.msra.mxu1 %v18799_v17 }
 0x5b7   :  { %18681 = vmatprep.subr.bf16.mxu1 %v19878_v28 }
 0x5ba   :  { %18682 = vmatpush3.bf16.msra.mxu1 %v18800_v22 }
 0x5bb   :  { %18683 = vmatprep.subr.bf16.mxu1 %v19878_v28 }
 0x5be   :  { %18684 = vmatpush3.bf16.msra.mxu1 %v18801_v15 }
 0x5bf   :  { %18685 = vmatprep.subr.bf16.mxu1 %v19878_v28 }
 0x5c2   :  { %18686 = vmatpush3.bf16.msra.mxu1 %v18802_v23  ;;  %v8459_v23 = vld [vmem:[#allocation20 + $0x148] sm:$0xff] }
 0x5c3   :  { %18687 = vmatprep.subr.bf16.mxu1 %v19878_v28 }
 0x5c6   :  { %18688 = vmatpush3.bf16.msra.mxu1 %v18803_v58  ;;  %v8463_v58 = vld [vmem:[#allocation20 + $0x168] sm:$0xff] }
 0x5c7   :  { %18689 = vmatprep.subr.bf16.mxu1 %v19878_v28 }
 0x5ca   :  { %v18503_v55 = vpop.f32.mrf.mxu1  ;;  %18690 = vmatpush3.bf16.msra.mxu1 %v18804_v47 }
 0x5cb   :  { %18691 = vmatprep.subr.bf16.mxu1 %v19878_v28 }
 0x5cc   :  { %v18504_v51 = vpop.f32.mrf.mxu1 }
 0x5cd   :  { %v18505_v35 = vadd.f32 %v18504_v51, %v18503_v55  ;;  %v17466_v55 = vcombine.high %v8442_v21, %v8446_v54  ;;  %v17465_v51 = vcombine.low %v8442_v21, %v8446_v54  ;;  %v8481_v21 = vld [vmem:[#allocation20 + $0x1f8] sm:$0xff]  ;;  %v17501_v54 = vcombine.low %v8476_v34, %v8480_v53 }
 0x5ce   :  { %v18506_v61 = vpop.f32.mrf.mxu1  ;;  %18692 = vmatpush3.bf16.msra.mxu1 %v18805_v11 }
 0x5cf   :  { %v8101_v24 = vadd.f32 %v18505_v35, %v8061_v57  ;;  %18693 = vmatprep.subr.bf16.mxu1 %v19878_v28  ;;  %v17498_v28 = vcombine.high %v8474_v43, %v8478_v63  ;;  %v8434_v57 = vld [vmem:[#allocation20 + $0x80] sm:$0xff]  ;;  %v8439_v43 = vld [vmem:[#allocation20 + $0xa8] sm:$0xff] }
 0x5d0   :  { %v18507_v62 = vpop.f32.mrf.mxu1  ;;  %v8438_v35 = vld [vmem:[#allocation20 + $0xa0] sm:$0xff] }
 0x5d1   :  { %8844 = vmatprep.subr.bf16.mxu0 %v17498_v28  ;;  %v17458_v61 = vcombine.high %v8434_v57, %v8438_v35  ;;  %v8426_v62 = vld [vmem:[#allocation20 + $0x40] sm:$0xff]  ;;  %v8431_v28 = vld [vmem:[#allocation20 + $0x68] sm:$0xff] }
 0x5d2   :  { %18694 = vmatpush3.bf16.msra.mxu1 %v18806_v20  ;;  %v8435_v20 = vld [vmem:[#allocation20 + $0x88] sm:$0xff] }
 0x5d3   :  { %8885 = vmatprep.subr.bf16.mxu1 %v17500_v44  ;;  %v17460_v31 = vcombine.high %v8435_v20, %v8439_v43  ;;  %v17459_v12 = vcombine.low %v8435_v20, %v8439_v43  ;;  %v8422_v44 = vld [vmem:[#allocation20 + $0x20] sm:$0xff]  ;;  %v8444_v43 = vld [vmem:[#allocation20 + $0xd0] sm:$0xff] }
 0x5f5   :  { %v18525_v10 = vpop.f32.mrf.mxu0 }
 0x5f7   :  { %v18526_v49 = vpop.f32.mrf.mxu0 }
 0x5f8   :  { %v18527_v1 = vadd.f32 %v18526_v49, %v18525_v10  ;;  %v17450_v10 = vcombine.high %v8426_v62, %v8430_v48  ;;  %v17449_v49 = vcombine.low %v8426_v62, %v8430_v48  ;;  %v8468_v62 = vld [vmem:[#allocation20 + $0x190] sm:$0xff] }
 0x5f9   :  { %v18528_v30 = vpop.f32.mrf.mxu0 }
 0x5fa   :  { %v8141_v4 = vadd.f32 %v18527_v1, %v8101_v24  ;;  %v17457_v24 = vcombine.low %v8434_v57, %v8438_v35  ;;  %v17423_v1 = vld [vmem:[#allocation16] ss:$0 sm:$0xff]  ;;  %v8467_v30 = vld [vmem:[#allocation20 + $0x188] sm:$0xff]  ;;  %v17432_v57 = vld [vmem:[#allocation19] ss:$0 sm:$0xff] }
 0x5fb   :  { %v18529_v7 = vpop.f32.mrf.mxu0 }
 0x675   :  { %v18547_v36 = vpop.f32.mrf.mxu1 }
 0x677   :  { %v18548_v5 = vpop.f32.mrf.mxu1 }
 0x678   :  { %v18549_v14 = vadd.f32 %v18548_v5, %v18547_v36  ;;  %v17484_v36 = vcombine.high %v8459_v23, %v8463_v58  ;;  %v8451_v5 = vld [vmem:[#allocation20 + $0x108] sm:$0xff] }
 0x679   :  { %v18550_v33 = vpop.f32.mrf.mxu1 }
 0x67a   :  { %v8181_v26 = vadd.f32 %v18549_v14, %v8141_v4  ;;  %v8471_v4 = vld [vmem:[#allocation20 + $0x1a8] sm:$0xff]  ;;  %v17483_v33 = vcombine.low %v8459_v23, %v8463_v58  ;;  %v8461_v23 = vld [vmem:[#allocation20 + $0x158] sm:$0xff] }
 0x67b   :  { %v18551_v60 = vpop.f32.mrf.mxu1  ;;  %v17492_v22 = vcombine.high %v8467_v30, %v8471_v4  ;;  %v17491_v11 = vcombine.low %v8467_v30, %v8471_v4  ;;  %v8455_v14 = vld [vmem:[#allocation20 + $0x128] sm:$0xff]  ;;  %v8465_v58 = vld [vmem:[#allocation20 + $0x178] sm:$0xff] }
 0x67c   :  { %vm8186_vm1 = vcmp.ge.f32.partialorder %v8181_v26, 0.0  ;;  %v8187_v39 = vmul.f32 0.1, %v8181_v26  ;;  %v8443_v60 = vld [vmem:[#allocation20 + $0xc8] sm:$0xff] }
 0x67e   :  { %v8188_v29 = vsel %vm8186_vm1, %v8181_v26, %v8187_v39  ;;  %v17476_v26 = vcombine.high %v8451_v5, %v8455_v14  ;;  %v8447_v39 = vld [vmem:[#allocation20 + $0xe8] sm:$0xff] }
 0x67f   :  { %v8189_v27 = vpack.c.bf16 %v8188_v29, %v8188_v29  ;;  %v17475_v29 = vcombine.low %v8451_v5, %v8455_v14  ;;  %v17467_v63 = vcombine.low %v8443_v60, %v8447_v39  ;;  %v17488_v5 = vcombine.high %v8461_v23, %v8465_v58  ;;  %v8452_v14 = vld [vmem:[#allocation20 + $0x110] sm:$0xff] }
 0x681   :  { %18676 = vmatmul.mubr.bf16.vlgmr.msra.gmra.mxu0 %v8189_v27  ;;  %v17468_v27 = vcombine.high %v8443_v60, %v8447_v39  ;;  %v8457_v60 = vld [vmem:[#allocation20 + $0x138] sm:$0xff] }
 0x682   :  { %8876 = vmatprep.mubr.bf16.mxu0 %v19877_v38  ;;  %8845 = vmatpush1.bf16.msra.mxu0 %v17497_v19  ;;  %v8427_v19 = vld [vmem:[#allocation20 + $0x48] sm:$0xff] }
 0x683   :  { %8846 = vmatprep.subr.bf16.mxu0 %v17490_v25  ;;  %v17452_v18 = vcombine.high %v8427_v19, %v8431_v28  ;;  %v17451_v32 = vcombine.low %v8427_v19, %v8431_v28  ;;  %v8419_v25 = vld [vmem:[#allocation20 + $0x8] sm:$0xff]  ;;  %v8449_v19 = vld [vmem:[#allocation20 + $0xf8] sm:$0xff] }
 0x686   :  { %8847 = vmatpush1.bf16.msra.mxu0 %v17489_v2 }
 0x687   :  { %8848 = vmatprep.subr.bf16.mxu0 %v17482_v8  ;;  %v17443_v8 = vcombine.low %v8419_v25, %v8423_v41 }
 0x68a   :  { %8849 = vmatpush1.bf16.msra.mxu0 %v17481_v50  ;;  %v17444_v50 = vcombine.high %v8419_v25, %v8423_v41  ;;  %v8441_v25 = vld [vmem:[#allocation20 + $0xb8] sm:$0xff] }
 0x68b   :  { %8850 = vmatprep.subr.bf16.mxu0 %v17474_v16  ;;  %v8477_v16 = vld [vmem:[#allocation20 + $0x1d8] sm:$0xff] }
 0x68e   :  { %8851 = vmatpush1.bf16.msra.mxu0 %v17473_v42  ;;  %v17502_v42 = vcombine.high %v8476_v34, %v8480_v53  ;;  %v8432_v34 = vld [vmem:[#allocation20 + $0x70] sm:$0xff]  ;;  %v8429_v53 = vld [vmem:[#allocation20 + $0x58] sm:$0xff] }
 0x68f   :  { %8852 = vmatprep.subr.bf16.mxu0 %v17466_v55  ;;  %v17503_v55 = vcombine.low %v8477_v16, %v8481_v21 }
 0x692   :  { %8853 = vmatpush1.bf16.msra.mxu0 %v17465_v51  ;;  %v17504_v51 = vcombine.high %v8477_v16, %v8481_v21  ;;  %v8433_v16 = vld [vmem:[#allocation20 + $0x78] sm:$0xff] }
 0x693   :  { %8854 = vmatprep.subr.bf16.mxu0 %v17458_v61 }
 0x696   :  { %8855 = vmatpush1.bf16.msra.mxu0 %v17457_v24 }
 0x697   :  { %8856 = vmatprep.subr.bf16.mxu0 %v17450_v10  ;;  %v8472_v10 = vld [vmem:[#allocation20 + $0x1b0] sm:$0xff] }
 0x69a   :  { %8857 = vmatpush1.bf16.msra.mxu0 %v17449_v49  ;;  %v8469_v49 = vld [vmem:[#allocation20 + $0x198] sm:$0xff] }
 0x741   :  { %v8295_v3 = vpop.f32.mrf.mxu0 }
 0x742   :  { %v8296_v7 = vadd.f32 %v17423_v1, %v8295_v3  ;;  %v8473_v1 = vld [vmem:[#allocation20 + $0x1b8] sm:$0xff] }
 0x743   :  { %v18677_v9 = vpop.f32.mrf.mxu0 }
 0x744   :  { %v8302_v17 = vpack.c.bf16 %v8296_v7, %v8296_v7  ;;  %8301 = vst [vmem:[#allocation30] sm:$0xff] %v8296_v7  ;;  %v17494_v9 = vcombine.high %v8468_v62, %v8472_v10 }
 0x745   :  { %v8298_v15 = vpop.f32.mrf.mxu0 }
 0x746   :  { %18696 = vmatmul.mubr.bf16.vlgmr.msra.gmra.mxu1 %v8302_v17  ;;  %v17496_v17 = vcombine.high %v8469_v49, %v8473_v1  ;;  %v8464_v15 = vld [vmem:[#allocation20 + $0x170] sm:$0xff] }
 0x747   :  { %v18678_v47 = vpop.f32.mrf.mxu0  ;;  %8886 = vmatpush1.bf16.msra.mxu1 %v17499_v52  ;;  %8917 = vmatprep.mubr.bf16.mxu1 %v19877_v38  ;;  %v8418_v52 = vld [vmem:[#allocation20] sm:$0xff] }
 0x748   :  { %8887 = vmatprep.subr.bf16.mxu1 %v17492_v22  ;;  %v17442_v2 = vcombine.high %v8418_v52, %v8422_v44  ;;  %v17441_v45 = vcombine.low %v8418_v52, %v8422_v44  ;;  %v8460_v22 = vld [vmem:[#allocation20 + $0x150] sm:$0xff]  ;;  %v17493_v47 = vcombine.low %v8468_v62, %v8472_v10  ;;  %v8437_v44 = vld [vmem:[#allocation20 + $0x98] sm:$0xff]  ;;  %v17455_v62 = vcombine.low %v8429_v53, %v8433_v16 }
 0x749   :  { %v17485_v39 = vcombine.low %v8460_v22, %v8464_v15  ;;  %v8440_v52 = vld [vmem:[#allocation20 + $0xb0] sm:$0xff]  ;;  %v17463_v21 = vcombine.low %v8437_v44, %v8441_v25 }
 0x74a   :  { %8858 = vmatprep.subr.bf16.mxu0 %v17442_v2 }
 0x74b   :  { %8888 = vmatpush1.bf16.msra.mxu1 %v17491_v11  ;;  %8859 = vmatpush1.bf16.msra.mxu0 %v17441_v45  ;;  %v17495_v11 = vcombine.low %v8469_v49, %v8473_v1  ;;  %v9096_v49 = vld [vmem:[#allocation23 + $0x1c0] sm:$0xff] }
 0x74c   :  { %8889 = vmatprep.subr.bf16.mxu1 %v17484_v36  ;;  %8926 = vmatprep.subr.bf16.mxu0 %v17502_v42  ;;  %v17486_v36 = vcombine.high %v8460_v22, %v8464_v15  ;;  %v9100_v1 = vld [vmem:[#allocation23 + $0x1e0] sm:$0xff] }
 0x74d   :  { %v9088_v15 = vld [vmem:[#allocation23 + $0x180] sm:$0xff] }
 0x74f   :  { %8890 = vmatpush1.bf16.msra.mxu1 %v17483_v33  ;;  %v8456_v33 = vld [vmem:[#allocation20 + $0x130] sm:$0xff] }
 0x750   :  { %8891 = vmatprep.subr.bf16.mxu1 %v17476_v26  ;;  %v8453_v26 = vld [vmem:[#allocation20 + $0x118] sm:$0xff]  ;;  %v17477_v28 = vcombine.low %v8452_v14, %v8456_v33 }
 0x751   :  { %v17480_v20 = vcombine.high %v8453_v26, %v8457_v60 }
 0x753   :  { %8892 = vmatpush1.bf16.msra.mxu1 %v17475_v29  ;;  %v17487_v29 = vcombine.low %v8461_v23, %v8465_v58  ;;  %v9092_v23 = vld [vmem:[#allocation23 + $0x1a0] sm:$0xff] }
 0x754   :  { %8893 = vmatprep.subr.bf16.mxu1 %v17468_v27  ;;  %v17478_v27 = vcombine.high %v8452_v14, %v8456_v33  ;;  %v9216_v58 = vld [vmem:[#allocation23 + $0x580] sm:$0xff] }
 0x755   :  { %v9080_v33 = vld [vmem:[#allocation23 + $0x140] sm:$0xff] }
 0x757   :  { %8894 = vmatpush1.bf16.msra.mxu1 %v17467_v63  ;;  %v8448_v63 = vld [vmem:[#allocation20 + $0xf0] sm:$0xff] }
 0x758   :  { %8895 = vmatprep.subr.bf16.mxu1 %v17460_v31  ;;  %v8445_v31 = vld [vmem:[#allocation20 + $0xd8] sm:$0xff]  ;;  %v17469_v2 = vcombine.low %v8444_v43, %v8448_v63 }
 0x759   :  { %v17471_v41 = vcombine.low %v8445_v31, %v8449_v19 }
 0x75b   :  { %8896 = vmatpush1.bf16.msra.mxu1 %v17459_v12  ;;  %v17479_v12 = vcombine.low %v8453_v26, %v8457_v60  ;;  %v9084_v26 = vld [vmem:[#allocation23 + $0x160] sm:$0xff] }
 0x75c   :  { %8897 = vmatprep.subr.bf16.mxu1 %v17452_v18  ;;  %v17470_v18 = vcombine.high %v8444_v43, %v8448_v63  ;;  %v9208_v60 = vld [vmem:[#allocation23 + $0x540] sm:$0xff] }
 0x75d   :  { %v9072_v63 = vld [vmem:[#allocation23 + $0x100] sm:$0xff] }
 0x75f   :  { %8898 = vmatpush1.bf16.msra.mxu1 %v17451_v32  ;;  %v8436_v32 = vld [vmem:[#allocation20 + $0x90] sm:$0xff] }
 0x760   :  { %8899 = vmatprep.subr.bf16.mxu1 %v17444_v50  ;;  %v17462_v45 = vcombine.high %v8436_v32, %v8440_v52  ;;  %v8428_v50 = vld [vmem:[#allocation20 + $0x50] sm:$0xff]  ;;  %v17461_v42 = vcombine.low %v8436_v32, %v8440_v52  ;;  %v9064_v32 = vld [vmem:[#allocation23 + $0xc0] sm:$0xff] }
 0x761   :  { %v9068_v52 = vld [vmem:[#allocation23 + $0xe0] sm:$0xff] }
 0x763   :  { %8900 = vmatpush1.bf16.msra.mxu1 %v17443_v8  ;;  %v17464_v8 = vcombine.high %v8437_v44, %v8441_v25  ;;  %v9192_v44 = vld [vmem:[#allocation23 + $0x4c0] sm:$0xff] }
 0x764   :  { %8967 = vmatprep.subr.bf16.mxu1 %v17504_v51  ;;  %v8420_v51 = vld [vmem:[#allocation20 + $0x10] sm:$0xff]  ;;  %v9196_v25 = vld [vmem:[#allocation23 + $0x4e0] sm:$0xff] }
 0x806   :  { %v8408_v35 = vpop.f32.mrf.mxu1 }
 0x807   :  { %v8409_v61 = vadd.f32 %v17432_v57, %v8408_v35  ;;  %v8424_v57 = vld [vmem:[#allocation20 + $0x30] sm:$0xff]  ;;  %v8421_v35 = vld [vmem:[#allocation20 + $0x18] sm:$0xff] }
 0x808   :  { %v18697_v24 = vpop.f32.mrf.mxu1 }
 0x809   :  { %vm8414_vm2 = vcmp.ge.f32.partialorder %v8409_v61, 0.0  ;;  %v8415_v48 = vmul.f32 0.1, %v8409_v61  ;;  %v17453_v24 = vcombine.low %v8428_v50, %v8432_v34 }
 0x80a   :  { %v8411_v3 = vpop.f32.mrf.mxu1 }
 0x80b   :  { %v8416_v30 = vsel %vm8414_vm2, %v8409_v61, %v8415_v48  ;;  %v8425_v61 = vld [vmem:[#allocation20 + $0x38] sm:$0xff]  ;;  %v17446_v48 = vcombine.high %v8420_v51, %v8424_v57  ;;  %v9224_v3 = vld [vmem:[#allocation23 + $0x5c0] sm:$0xff] }
 0x80c   :  { %v20345_v4 = vpack.c.bf16 %v8416_v30, %v8416_v30  ;;  %v18698_v7 = vpop.f32.mrf.mxu1  ;;  %v17448_v10 = vcombine.high %v8421_v35, %v8425_v61  ;;  %v9228_v30 = vld [vmem:[#allocation23 + $0x5e0] sm:$0xff] }
 0x80d   :  { %v17445_v7 = vcombine.low %v8420_v51, %v8424_v57  ;;  %v17690_v22 = vcombine.high %v9224_v3, %v9228_v30  ;;  %v9048_v51 = vld [vmem:[#allocation23 + $0x40] sm:$0xff] }
 0x80e   :  { %8877 = vmatmul.mubr.bf16.vlgmr.msra.gmra.mxu0 %v20345_v4  ;;  %8918 = vmatmul.mubr.bf16.vlgmr.msra.gmra.mxu1 %v20345_v4  ;;  %v9052_v57 = vld [vmem:[#allocation23 + $0x60] sm:$0xff] }
 0x80f   :  { %8927 = vmatpush1.bf16.msra.mxu0 %v17501_v54  ;;  %8968 = vmatpush1.bf16.msra.mxu1 %v17503_v55  ;;  %v17454_v54 = vcombine.high %v8428_v50, %v8432_v34  ;;  %v17456_v55 = vcombine.high %v8429_v53, %v8433_v16  ;;  %v9056_v50 = vld [vmem:[#allocation23 + $0x80] sm:$0xff] }
 0x810   :  { %8928 = vmatprep.subr.bf16.mxu0 %v17494_v9  ;;  %8969 = vmatprep.subr.bf16.mxu1 %v17496_v17  ;;  %v17447_v9 = vcombine.low %v8421_v35, %v8425_v61  ;;  %v17562_v17 = vcombine.high %v9096_v49, %v9100_v1  ;;  %v9060_v34 = vld [vmem:[#allocation23 + $0xa0] sm:$0xff] }
 0x811   :  { %8958 = vmatprep.mubr.bf16.mxu0 %v19877_v38  ;;  %8999 = vmatprep.mubr.bf16.mxu1 %v19877_v38  ;;  %v17472_v38 = vcombine.high %v8445_v31, %v8449_v19  ;;  %v9076_v31 = vld [vmem:[#allocation23 + $0x120] sm:$0xff] }
 0x812   :  { %v9200_v19 = vld [vmem:[#allocation23 + $0x500] sm:$0xff] }
 0x813   :  { %8929 = vmatpush1.bf16.msra.mxu0 %v17493_v47  ;;  %8970 = vmatpush1.bf16.msra.mxu1 %v17495_v11  ;;  %v9220_v47 = vld [vmem:[#allocation23 + $0x5a0] sm:$0xff]  ;;  %v17561_v11 = vcombine.low %v9096_v49, %v9100_v1 }
 0x814   :  { %8930 = vmatprep.subr.bf16.mxu0 %v17486_v36  ;;  %8971 = vmatprep.subr.bf16.mxu1 %v17488_v5  ;;  %v17689_v36 = vcombine.low %v9224_v3, %v9228_v30  ;;  %v17554_v5 = vcombine.high %v9088_v15, %v9092_v23  ;;  %v17682_v14 = vcombine.high %v9216_v58, %v9220_v47  ;;  %v9184_v53 = vld [vmem:[#allocation23 + $0x480] sm:$0xff] }
 0x815   :  { %v9188_v16 = vld [vmem:[#allocation23 + $0x4a0] sm:$0xff] }
 0x816   :  { %v9176_v35 = vld [vmem:[#allocation23 + $0x440] sm:$0xff] }
 0x817   :  { %8931 = vmatpush1.bf16.msra.mxu0 %v17485_v39  ;;  %8972 = vmatpush1.bf16.msra.mxu1 %v17487_v29  ;;  %v9212_v39 = vld [vmem:[#allocation23 + $0x560] sm:$0xff]  ;;  %v17553_v29 = vcombine.low %v9088_v15, %v9092_v23 }
 0x818   :  { %8932 = vmatprep.subr.bf16.mxu0 %v17478_v27  ;;  %8973 = vmatprep.subr.bf16.mxu1 %v17480_v20  ;;  %v17681_v27 = vcombine.low %v9216_v58, %v9220_v47  ;;  %v17546_v20 = vcombine.high %v9080_v33, %v9084_v26  ;;  %v17674_v43 = vcombine.high %v9208_v60, %v9212_v39  ;;  %v9180_v61 = vld [vmem:[#allocation23 + $0x460] sm:$0xff] }
 0x819   :  { %v9040_v49 = vld [vmem:[#allocation23] sm:$0xff] }
 0x81a   :  { %v9044_v1 = vld [vmem:[#allocation23 + $0x20] sm:$0xff] }
 0x81b   :  { %8933 = vmatpush1.bf16.msra.mxu0 %v17477_v28  ;;  %8974 = vmatpush1.bf16.msra.mxu1 %v17479_v12  ;;  %v9204_v28 = vld [vmem:[#allocation23 + $0x520] sm:$0xff]  ;;  %v17545_v12 = vcombine.low %v9080_v33, %v9084_v26 }
 0x81c   :  { %8934 = vmatprep.subr.bf16.mxu0 %v17470_v18  ;;  %8975 = vmatprep.subr.bf16.mxu1 %v17472_v38  ;;  %v17673_v18 = vcombine.low %v9208_v60, %v9212_v39  ;;  %v17538_v38 = vcombine.high %v9072_v63, %v9076_v31  ;;  %v9168_v3 = vld [vmem:[#allocation23 + $0x400] sm:$0xff] }
 0x81d   :  { %v9172_v30 = vld [vmem:[#allocation23 + $0x420] sm:$0xff] }
 0x81e   :  { %v9160_v15 = vld [vmem:[#allocation23 + $0x3c0] sm:$0xff] }
 0x81f   :  { %8935 = vmatpush1.bf16.msra.mxu0 %v17469_v2  ;;  %8976 = vmatpush1.bf16.msra.mxu1 %v17471_v41  ;;  %v17537_v2 = vcombine.low %v9072_v63, %v9076_v31  ;;  %v17665_v41 = vcombine.low %v9200_v19, %v9204_v28  ;;  %v9164_v23 = vld [vmem:[#allocation23 + $0x3e0] sm:$0xff] }
 0x820   :  { %8936 = vmatprep.subr.bf16.mxu0 %v17462_v45  ;;  %8977 = vmatprep.subr.bf16.mxu1 %v17464_v8  ;;  %v17530_v45 = vcombine.high %v9064_v32, %v9068_v52  ;;  %v17658_v8 = vcombine.high %v9192_v44, %v9196_v25  ;;  %v9288_v58 = vld [vmem:[#allocation23 + $0x7c0] sm:$0xff] }
 0x821   :  { %v9292_v47 = vld [vmem:[#allocation23 + $0x7e0] sm:$0xff] }
 0x822   :  { %v9152_v33 = vld [vmem:[#allocation23 + $0x380] sm:$0xff] }
 0x823   :  { %8937 = vmatpush1.bf16.msra.mxu0 %v17461_v42  ;;  %8978 = vmatpush1.bf16.msra.mxu1 %v17463_v21  ;;  %v17529_v42 = vcombine.low %v9064_v32, %v9068_v52  ;;  %v17657_v21 = vcombine.low %v9192_v44, %v9196_v25  ;;  %v9156_v26 = vld [vmem:[#allocation23 + $0x3a0] sm:$0xff] }
 0x824   :  { %8938 = vmatprep.subr.bf16.mxu0 %v17454_v54  ;;  %8979 = vmatprep.subr.bf16.mxu1 %v17456_v55  ;;  %v17522_v54 = vcombine.high %v9056_v50, %v9060_v34  ;;  %v17650_v55 = vcombine.high %v9184_v53, %v9188_v16  ;;  %v9280_v60 = vld [vmem:[#allocation23 + $0x780] sm:$0xff] }
 0x825   :  { %v9284_v39 = vld [vmem:[#allocation23 + $0x7a0] sm:$0xff] }
 0x826   :  { %v9144_v63 = vld [vmem:[#allocation23 + $0x340] sm:$0xff] }
 0x827   :  { %8939 = vmatpush1.bf16.msra.mxu0 %v17453_v24  ;;  %8980 = vmatpush1.bf16.msra.mxu1 %v17455_v62  ;;  %v17521_v24 = vcombine.low %v9056_v50, %v9060_v34  ;;  %v17649_v62 = vcombine.low %v9184_v53, %v9188_v16  ;;  %v9148_v31 = vld [vmem:[#allocation23 + $0x360] sm:$0xff] }
 0x828   :  { %8940 = vmatprep.subr.bf16.mxu0 %v17446_v48  ;;  %8981 = vmatprep.subr.bf16.mxu1 %v17448_v10  ;;  %v17514_v48 = vcombine.high %v9048_v51, %v9052_v57  ;;  %v17642_v10 = vcombine.high %v9176_v35, %v9180_v61  ;;  %v9136_v32 = vld [vmem:[#allocation23 + $0x300] sm:$0xff] }
 0x829   :  { %v9140_v52 = vld [vmem:[#allocation23 + $0x320] sm:$0xff] }
 0x82a   :  { %v9264_v44 = vld [vmem:[#allocation23 + $0x700] sm:$0xff] }
 0x82b   :  { %8941 = vmatpush1.bf16.msra.mxu0 %v17445_v7  ;;  %8982 = vmatpush1.bf16.msra.mxu1 %v17447_v9  ;;  %v17513_v7 = vcombine.low %v9048_v51, %v9052_v57  ;;  %v17641_v9 = vcombine.low %v9176_v35, %v9180_v61  ;;  %v9268_v25 = vld [vmem:[#allocation23 + $0x720] sm:$0xff] }
 0x82c   :  { %12154 = vmatprep.subr.bf16.mxu0 %v17562_v17  ;;  %12195 = vmatprep.subr.bf16.mxu1 %v17690_v22  ;;  %v17506_v17 = vcombine.high %v9040_v49, %v9044_v1  ;;  %v17634_v22 = vcombine.high %v9168_v3, %v9172_v30  ;;  %v9128_v50 = vld [vmem:[#allocation23 + $0x2c0] sm:$0xff] }
 0x82d   :  { %v9132_v34 = vld [vmem:[#allocation23 + $0x2e0] sm:$0xff] }
 0x82e   :  { %8959 = vmatmul.mubr.bf16.vlgmr.msra.gmra.mxu0 %v20345_v4  ;;  %9000 = vmatmul.mubr.bf16.vlgmr.msra.gmra.mxu1 %v20345_v4  ;;  %v17666_v4 = vcombine.high %v9200_v19, %v9204_v28  ;;  %v9272_v19 = vld [vmem:[#allocation23 + $0x740] sm:$0xff]  ;;  %v17594_v57 = vcombine.high %v9128_v50, %v9132_v34 }
 0x82f   :  { %12155 = vmatpush1.bf16.msra.mxu0 %v17561_v11  ;;  %12196 = vmatpush1.bf16.msra.mxu1 %v17689_v36  ;;  %v17505_v11 = vcombine.low %v9040_v49, %v9044_v1  ;;  %v17633_v36 = vcombine.low %v9168_v3, %v9172_v30  ;;  %v9276_v28 = vld [vmem:[#allocation23 + $0x760] sm:$0xff]  ;;  %v17593_v3 = vcombine.low %v9128_v50, %v9132_v34 }
 0x830   :  { %12156 = vmatprep.subr.bf16.mxu0 %v17554_v5  ;;  %12197 = vmatprep.subr.bf16.mxu1 %v17682_v14  ;;  %v17626_v5 = vcombine.high %v9160_v15, %v9164_v23  ;;  %v17754_v14 = vcombine.high %v9288_v58, %v9292_v47  ;;  %v9256_v53 = vld [vmem:[#allocation23 + $0x6c0] sm:$0xff] }
 0x831   :  { %v9260_v16 = vld [vmem:[#allocation23 + $0x6e0] sm:$0xff] }
 0x832   :  { %v20357_v51 = vld [vmem:[#allocation23 + $0xdc0] sm:$0xff]  ;;  %v17722_v35 = vcombine.high %v9256_v53, %v9260_v16  ;;  %v17721_v30 = vcombine.low %v9256_v53, %v9260_v16 }
 0x833   :  { %12157 = vmatpush1.bf16.msra.mxu0 %v17553_v29  ;;  %12198 = vmatpush1.bf16.msra.mxu1 %v17681_v27  ;;  %v17625_v29 = vcombine.low %v9160_v15, %v9164_v23  ;;  %v17753_v27 = vcombine.low %v9288_v58, %v9292_v47  ;;  %v9120_v61 = vld [vmem:[#allocation23 + $0x280] sm:$0xff] }
 0x834   :  { %12158 = vmatprep.subr.bf16.mxu0 %v17546_v20  ;;  %12199 = vmatprep.subr.bf16.mxu1 %v17674_v43  ;;  %v17618_v20 = vcombine.high %v9152_v33, %v9156_v26  ;;  %v17746_v43 = vcombine.high %v9280_v60, %v9284_v39  ;;  %v9240_v15 = vld [vmem:[#allocation23 + $0x640] sm:$0xff] }
 0x835   :  { %v9244_v23 = vld [vmem:[#allocation23 + $0x660] sm:$0xff] }
 0x837   :  { %12159 = vmatpush1.bf16.msra.mxu0 %v17545_v12  ;;  %12200 = vmatpush1.bf16.msra.mxu1 %v17673_v18  ;;  %v17617_v12 = vcombine.low %v9152_v33, %v9156_v26  ;;  %v17745_v18 = vcombine.low %v9280_v60, %v9284_v39  ;;  %v9232_v33 = vld [vmem:[#allocation23 + $0x600] sm:$0xff]  ;;  %v17705_v39 = vcombine.low %v9240_v15, %v9244_v23 }
 0x838   :  { %12160 = vmatprep.subr.bf16.mxu0 %v17538_v38  ;;  %12201 = vmatprep.subr.bf16.mxu1 %v17666_v4  ;;  %v17610_v38 = vcombine.high %v9144_v63, %v9148_v31  ;;  %v17738_v4 = vcombine.high %v9272_v19, %v9276_v28  ;;  %v9236_v26 = vld [vmem:[#allocation23 + $0x620] sm:$0xff] }
 0x83b   :  { %12161 = vmatpush1.bf16.msra.mxu0 %v17537_v2  ;;  %12202 = vmatpush1.bf16.msra.mxu1 %v17665_v41  ;;  %v17609_v2 = vcombine.low %v9144_v63, %v9148_v31  ;;  %v17737_v41 = vcombine.low %v9272_v19, %v9276_v28  ;;  %v20369_v19 = vld [vmem:[#allocation22] sm:$0xff] }
 0x83c   :  { %12162 = vmatprep.subr.bf16.mxu0 %v17530_v45  ;;  %12203 = vmatprep.subr.bf16.mxu1 %v17658_v8  ;;  %v17602_v45 = vcombine.high %v9136_v32, %v9140_v52  ;;  %v17730_v8 = vcombine.high %v9264_v44, %v9268_v25  ;;  %v8487_v28 = vrot.slane %v20369_v19, %v20075_v6 }
 0x83f   :  { %12163 = vmatpush1.bf16.msra.mxu0 %v17529_v42  ;;  %12204 = vmatpush1.bf16.msra.mxu1 %v17657_v21  ;;  %v17601_v42 = vcombine.low %v9136_v32, %v9140_v52  ;;  %v17729_v21 = vcombine.low %v9264_v44, %v9268_v25  ;;  %v8499_v32 = vrot.slane %v20369_v19, %v20132_v0 }
 0x840   :  { %12164 = vmatprep.subr.bf16.mxu0 %v17522_v54  ;;  %12205 = vmatprep.subr.bf16.mxu1 %v17650_v55  ;;  %v20353_v54 = vld [vmem:[#allocation23 + $0x9c0] sm:$0xff] }
 0x841   :  { %v20355_v55 = vld [vmem:[#allocation23 + $0x9e0] sm:$0xff] }
 0x842   :  { %v17817_v49 = vcombine.low %v20353_v54, %v20355_v55  ;;  %v17818_v63 = vcombine.high %v20353_v54, %v20355_v55 }
 0x843   :  { %12165 = vmatpush1.bf16.msra.mxu0 %v17521_v24  ;;  %12206 = vmatpush1.bf16.msra.mxu1 %v17649_v62  ;;  %v20359_v24 = vld [vmem:[#allocation23 + $0xde0] sm:$0xff] }
 0x844   :  { %12166 = vmatprep.subr.bf16.mxu0 %v17514_v48  ;;  %12207 = vmatprep.subr.bf16.mxu1 %v17642_v10  ;;  %v9124_v62 = vld [vmem:[#allocation23 + $0x2a0] sm:$0xff]  ;;  %v17945_v1 = vcombine.low %v20357_v51, %v20359_v24  ;;  %v17946_v31 = vcombine.high %v20357_v51, %v20359_v24 }
 0x845   :  { %v9248_v48 = vld [vmem:[#allocation23 + $0x680] sm:$0xff]  ;;  %v17585_v58 = vcombine.low %v9120_v61, %v9124_v62 }
 0x846   :  { %v9252_v10 = vld [vmem:[#allocation23 + $0x6a0] sm:$0xff] }
 0x847   :  { %12167 = vmatpush1.bf16.msra.mxu0 %v17513_v7  ;;  %12208 = vmatpush1.bf16.msra.mxu1 %v17641_v9  ;;  %v17586_v7 = vcombine.high %v9120_v61, %v9124_v62  ;;  %v17714_v9 = vcombine.high %v9248_v48, %v9252_v10  ;;  %v17713_v47 = vcombine.low %v9248_v48, %v9252_v10  ;;  %v9344_v61 = vld [vmem:[#allocation23 + $0x980] sm:$0xff] }
 0x848   :  { %12168 = vmatprep.subr.bf16.mxu0 %v17506_v17  ;;  %12209 = vmatprep.subr.bf16.mxu1 %v17634_v22  ;;  %v9112_v17 = vld [vmem:[#allocation23 + $0x240] sm:$0xff] }
 0x849   :  { %v9116_v22 = vld [vmem:[#allocation23 + $0x260] sm:$0xff] }
 0x84a   :  { %v17577_v60 = vcombine.low %v9112_v17, %v9116_v22  ;;  %v9348_v62 = vld [vmem:[#allocation23 + $0x9a0] sm:$0xff] }
 0x84b   :  { %12169 = vmatpush1.bf16.msra.mxu0 %v17505_v11  ;;  %12210 = vmatpush1.bf16.msra.mxu1 %v17633_v36  ;;  %v17578_v11 = vcombine.high %v9112_v17, %v9116_v22  ;;  %v17706_v36 = vcombine.high %v9240_v15, %v9244_v23  ;;  %v17810_v15 = vcombine.high %v9344_v61, %v9348_v62  ;;  %v9324_v51 = vld [vmem:[#allocation23 + $0x8e0] sm:$0xff] }
 0x84c   :  { %12170 = vmatprep.subr.bf16.mxu0 %v17626_v5  ;;  %12211 = vmatprep.subr.bf16.mxu1 %v17754_v14  ;;  %v9104_v5 = vld [vmem:[#allocation23 + $0x200] sm:$0xff] }
 0x84d   :  { %v9108_v14 = vld [vmem:[#allocation23 + $0x220] sm:$0xff] }
 0x84e   :  { %v9448_v24 = vld [vmem:[#allocation23 + $0xcc0] sm:$0xff] }
 0x84f   :  { %12171 = vmatpush2.bf16.msra.mxu0 %v17625_v29  ;;  %12212 = vmatpush2.bf16.msra.mxu1 %v17753_v27  ;;  %v17570_v29 = vcombine.high %v9104_v5, %v9108_v14  ;;  %v17698_v27 = vcombine.high %v9232_v33, %v9236_v26 }
 0x850   :  { %12172 = vmatprep.subr.bf16.mxu0 %v17618_v20  ;;  %12213 = vmatprep.subr.bf16.mxu1 %v17746_v43  ;;  %v17569_v20 = vcombine.low %v9104_v5, %v9108_v14  ;;  %v17697_v43 = vcombine.low %v9232_v33, %v9236_v26  ;;  %v9468_v5 = vld [vmem:[#allocation23 + $0xd60] sm:$0xff]  ;;  %v17809_v14 = vcombine.low %v9344_v61, %v9348_v62 }
 0x853   :  { %12173 = vmatpush2.bf16.msra.mxu0 %v17617_v12  ;;  %12214 = vmatpush2.bf16.msra.mxu1 %v17745_v18  ;;  %v8495_v12 = vrot.slane %v20369_v19, %v20111_v56 }
 0x854   :  { %12174 = vmatprep.subr.bf16.mxu0 %v17610_v38  ;;  %12215 = vmatprep.subr.bf16.mxu1 %v17738_v4  ;;  %v8491_v4 = vrot.slane %v20369_v19, %v20078_v13 }
 0x857   :  { %12175 = vmatpush2.bf16.msra.mxu0 %v17609_v2  ;;  %12216 = vmatpush2.bf16.msra.mxu1 %v17737_v41 }
 0x858   :  { %12176 = vmatprep.subr.bf16.mxu0 %v17602_v45  ;;  %12217 = vmatprep.subr.bf16.mxu1 %v17730_v8 }
 0x85b   :  { %12177 = vmatpush2.bf16.msra.mxu0 %v17601_v42  ;;  %12218 = vmatpush2.bf16.msra.mxu1 %v17729_v21 }
 0x85c   :  { %12178 = vmatprep.subr.bf16.mxu0 %v17594_v57  ;;  %12219 = vmatprep.subr.bf16.mxu1 %v17722_v35 }
 0x85f   :  { %12179 = vmatpush2.bf16.msra.mxu0 %v17593_v3  ;;  %12220 = vmatpush2.bf16.msra.mxu1 %v17721_v30  ;;  %v9472_v3 = vld [vmem:[#allocation23 + $0xd80] sm:$0xff] }
 0x860   :  { %12180 = vmatprep.subr.bf16.mxu0 %v17586_v7  ;;  %12221 = vmatprep.subr.bf16.mxu1 %v17714_v9  ;;  %v9476_v30 = vld [vmem:[#allocation23 + $0xda0] sm:$0xff] }
 0x861   :  { %v17937_v33 = vcombine.low %v9472_v3, %v9476_v30 }
 0x863   :  { %12181 = vmatpush2.bf16.msra.mxu0 %v17585_v58  ;;  %12222 = vmatpush2.bf16.msra.mxu1 %v17713_v47  ;;  %v17938_v58 = vcombine.high %v9472_v3, %v9476_v30  ;;  %v9336_v47 = vld [vmem:[#allocation23 + $0x940] sm:$0xff] }
 0x864   :  { %12182 = vmatprep.subr.bf16.mxu0 %v17578_v11  ;;  %12223 = vmatprep.subr.bf16.mxu1 %v17706_v36  ;;  %v9340_v11 = vld [vmem:[#allocation23 + $0x960] sm:$0xff] }
 0x865   :  { %v9464_v36 = vld [vmem:[#allocation23 + $0xd40] sm:$0xff]  ;;  %v17802_v26 = vcombine.high %v9336_v47, %v9340_v11 }
 0x866   :  { %v17929_v54 = vcombine.low %v9464_v36, %v9468_v5  ;;  %v9424_v3 = vld [vmem:[#allocation23 + $0xc00] sm:$0xff] }
 0x867   :  { %12183 = vmatpush2.bf16.msra.mxu0 %v17577_v60  ;;  %12224 = vmatpush2.bf16.msra.mxu1 %v17705_v39  ;;  %v17930_v60 = vcombine.high %v9464_v36, %v9468_v5  ;;  %v9328_v39 = vld [vmem:[#allocation23 + $0x900] sm:$0xff] }
 0x868   :  { %12184 = vmatprep.subr.bf16.mxu0 %v17570_v29  ;;  %12225 = vmatprep.subr.bf16.mxu1 %v17698_v27  ;;  %v9332_v29 = vld [vmem:[#allocation23 + $0x920] sm:$0xff] }
 0x869   :  { %v9456_v27 = vld [vmem:[#allocation23 + $0xd00] sm:$0xff]  ;;  %v17794_v55 = vcombine.high %v9328_v39, %v9332_v29 }
 0x86a   :  { %v9428_v30 = vld [vmem:[#allocation23 + $0xc20] sm:$0xff] }
 0x86b   :  { %12185 = vmatpush2.bf16.msra.mxu0 %v17569_v20  ;;  %12226 = vmatpush2.bf16.msra.mxu1 %v17697_v43  ;;  %v9460_v20 = vld [vmem:[#allocation23 + $0xd20] sm:$0xff]  ;;  %v17801_v43 = vcombine.low %v9336_v47, %v9340_v11  ;;  %v17890_v36 = vcombine.high %v9424_v3, %v9428_v30 }
 0x86c   :  { %12236 = vmatprep.subr.bf16.mxu0 %v17818_v63  ;;  %12277 = vmatprep.subr.bf16.mxu1 %v17946_v31  ;;  %v9320_v63 = vld [vmem:[#allocation23 + $0x8c0] sm:$0xff]  ;;  %v17793_v31 = vcombine.low %v9328_v39, %v9332_v29 }
 0x86d   :  { %v9416_v5 = vld [vmem:[#allocation23 + $0xbc0] sm:$0xff] }
 0x86e   :  { %v9544_v29 = vld [vmem:[#allocation23 + $0xfc0] sm:$0xff] }
 0x8ce   :  { %v8878_v18 = vpop.f32.mrf.mxu0  ;;  %v8919_v38 = vpop.f32.mrf.mxu1 }
 0x8cf   :  { %v8879_v52 = vadd.f32 %v8878_v18, %v8487_v28  ;;  %v8920_v44 = vadd.f32 %v8919_v38, %v8495_v12  ;;  %v17921_v28 = vcombine.low %v9456_v27, %v9460_v20  ;;  %v17786_v12 = vcombine.high %v9320_v63, %v9324_v51  ;;  %v9312_v38 = vld [vmem:[#allocation23 + $0x880] sm:$0xff] }
 0x8d0   :  { %v8880_v25 = vpop.f32.mrf.mxu0  ;;  %v8921_v2 = vpop.f32.mrf.mxu1 }
 0x8d1   :  { %v9016_v41 = vmul.f32 0.1, %v8879_v52  ;;  %vm9008_vm3 = vcmp.ge.f32.partialorder %v8879_v52, 0.0  ;;  %v9018_v45 = vmul.f32 0.1, %v8920_v44  ;;  %v8881_v8 = vadd.f32 %v8880_v25, %v8491_v4  ;;  %v9316_v4 = vld [vmem:[#allocation23 + $0x8a0] sm:$0xff] }
 0x8d2   :  { %v8922_v50 = vadd.f32 %v8921_v2, %v8499_v32  ;;  %v8882_v34 = vpop.f32.mrf.mxu0  ;;  %v8923_v53 = vpop.f32.mrf.mxu1  ;;  %vm9010_vm4 = vcmp.ge.f32.partialorder %v8920_v44, 0.0  ;;  %v9440_v32 = vld [vmem:[#allocation23 + $0xc80] sm:$0xff]  ;;  %v17778_v2 = vcombine.high %v9312_v38, %v9316_v4 }
 0x8d3   :  { %vm9009_vm5 = vcmp.ge.f32.partialorder %v8881_v8, 0.0  ;;  %v9017_v16 = vmul.f32 0.1, %v8881_v8  ;;  %v9024_v57 = vsel %vm9008_vm3, %v8879_v52, %v9016_v41  ;;  %v9026_v48 = vsel %vm9010_vm4, %v8920_v44, %v9018_v45  ;;  %v9444_v52 = vld [vmem:[#allocation23 + $0xca0] sm:$0xff] }
 0x8d4   :  { %v8883_v42 = vpop.f32.mrf.mxu0  ;;  %v8924_v21 = vpop.f32.mrf.mxu1  ;;  %vm9011_vm6 = vcmp.ge.f32.partialorder %v8922_v50, 0.0  ;;  %v9019_v35 = vmul.f32 0.1, %v8922_v50  ;;  %v20381_v17 = vpack.c.bf16 %v9024_v57, %v9024_v57  ;;  %v20385_v23 = vpack.c.bf16 %v9026_v48, %v9026_v48  ;;  %v9304_v45 = vld [vmem:[#allocation23 + $0x840] sm:$0xff] }
 0x8d5   :  { %v9025_v10 = vsel %vm9009_vm5, %v8881_v8, %v9017_v16  ;;  %v17785_v44 = vcombine.low %v9320_v63, %v9324_v51  ;;  %v17906_v41 = vcombine.high %v9440_v32, %v9444_v52  ;;  %v9308_v8 = vld [vmem:[#allocation23 + $0x860] sm:$0xff]  ;;  %v17777_v53 = vcombine.low %v9312_v38, %v9316_v4 }
 0x8d6   :  { %v20379_v7 = vpack.c.bf16 %v9025_v10, %v9025_v10  ;;  %v9027_v9 = vsel %vm9011_vm6, %v8922_v50, %v9019_v35  ;;  %v9432_v50 = vld [vmem:[#allocation23 + $0xc40] sm:$0xff]  ;;  %v17905_v16 = vcombine.low %v9440_v32, %v9444_v52  ;;  %v17770_v42 = vcombine.high %v9304_v45, %v9308_v8 }
 0x8d7   :  { %v20383_v22 = vpack.c.bf16 %v9027_v9, %v9027_v9  ;;  %v9436_v34 = vld [vmem:[#allocation23 + $0xc60] sm:$0xff]  ;;  %v8507_v48 = vrot.slane %v20369_v19, %v20184_v40  ;;  %v8515_v10 = vrot.slane %v20369_v19, %v20212_v46  ;;  %v17769_v9 = vcombine.low %v9304_v45, %v9308_v8 }
 0x8d8   :  { %12186 = vmatprep.mubr.bf16.mxu0 %v20379_v7  ;;  %v17898_v21 = vcombine.high %v9432_v50, %v9436_v34  ;;  %v9296_v57 = vld [vmem:[#allocation23 + $0x800] sm:$0xff]  ;;  %v17897_v47 = vcombine.low %v9432_v50, %v9436_v34 }
 0x8d9   :  { %12227 = vmatprep.mubr.bf16.mxu1 %v20383_v22  ;;  %12187 = vmatmul.mubr.bf16.vlgmr.msra.gmra.mxu0 %v20381_v17  ;;  %v9300_v35 = vld [vmem:[#allocation23 + $0x820] sm:$0xff] }
 0x8da   :  { %12228 = vmatmul.mubr.bf16.vlgmr.msra.gmra.mxu1 %v20385_v23  ;;  %12237 = vmatpush1.bf16.msra.mxu0 %v17817_v49  ;;  %v17922_v49 = vcombine.high %v9456_v27, %v9460_v20  ;;  %v17762_v11 = vcombine.high %v9296_v57, %v9300_v35  ;;  %v9548_v27 = vld [vmem:[#allocation23 + $0xfe0] sm:$0xff]  ;;  %v17761_v20 = vcombine.low %v9296_v57, %v9300_v35 }
 0x8db   :  { %12278 = vmatpush1.bf16.msra.mxu1 %v17945_v1  ;;  %12238 = vmatprep.subr.bf16.mxu0 %v17810_v15  ;;  %v9452_v1 = vld [vmem:[#allocation23 + $0xce0] sm:$0xff] }
 0x8dc   :  { %12279 = vmatprep.subr.bf16.mxu1 %v17938_v58  ;;  %v17914_v18 = vcombine.high %v9448_v24, %v9452_v1  ;;  %v17913_v25 = vcombine.low %v9448_v24, %v9452_v1  ;;  %v18010_v24 = vcombine.high %v9544_v29, %v9548_v27  ;;  %v9408_v1 = vld [vmem:[#allocation23 + $0xb80] sm:$0xff] }
 0x8dd   :  { %v9404_v45 = vld [vmem:[#allocation23 + $0xb60] sm:$0xff] }
 0x8de   :  { %12239 = vmatpush1.bf16.msra.mxu0 %v17809_v14  ;;  %v9420_v14 = vld [vmem:[#allocation23 + $0xbe0] sm:$0xff] }
 0x8df   :  { %12280 = vmatpush1.bf16.msra.mxu1 %v17937_v33  ;;  %12240 = vmatprep.subr.bf16.mxu0 %v17802_v26  ;;  %v17882_v63 = vcombine.high %v9416_v5, %v9420_v14  ;;  %v17881_v32 = vcombine.low %v9416_v5, %v9420_v14  ;;  %v9528_v8 = vld [vmem:[#allocation23 + $0xf40] sm:$0xff] }
 0x8e0   :  { %12281 = vmatprep.subr.bf16.mxu1 %v17930_v60  ;;  %v9532_v50 = vld [vmem:[#allocation23 + $0xf60] sm:$0xff] }
 0x8e1   :  { %v9396_v57 = vld [vmem:[#allocation23 + $0xb20] sm:$0xff] }
 0x8e2   :  { %12241 = vmatpush1.bf16.msra.mxu0 %v17801_v43  ;;  %v9520_v35 = vld [vmem:[#allocation23 + $0xf00] sm:$0xff] }
 0x8e3   :  { %12282 = vmatpush1.bf16.msra.mxu1 %v17929_v54  ;;  %12242 = vmatprep.subr.bf16.mxu0 %v17794_v55 }
 0x8e4   :  { %12283 = vmatprep.subr.bf16.mxu1 %v17922_v49  ;;  %v17889_v49 = vcombine.low %v9424_v3, %v9428_v30  ;;  %v17993_v3 = vcombine.low %v9528_v8, %v9532_v50 }
 0x8e6   :  { %12243 = vmatpush1.bf16.msra.mxu0 %v17793_v31  ;;  %v9412_v31 = vld [vmem:[#allocation23 + $0xba0] sm:$0xff] }
 0x8e7   :  { %12284 = vmatpush1.bf16.msra.mxu1 %v17921_v28  ;;  %12244 = vmatprep.subr.bf16.mxu0 %v17786_v12  ;;  %v9536_v12 = vld [vmem:[#allocation23 + $0xf80] sm:$0xff]  ;;  %v17873_v34 = vcombine.low %v9408_v1, %v9412_v31 }
 0x8e8   :  { %12285 = vmatprep.subr.bf16.mxu1 %v17914_v18  ;;  %v9540_v18 = vld [vmem:[#allocation23 + $0xfa0] sm:$0xff] }
 0x8ea   :  { %12245 = vmatpush1.bf16.msra.mxu0 %v17785_v44  ;;  %v18009_v44 = vcombine.low %v9544_v29, %v9548_v27  ;;  %v9508_v29 = vld [vmem:[#allocation23 + $0xea0] sm:$0xff] }
 0x8eb   :  { %12286 = vmatpush1.bf16.msra.mxu1 %v17913_v25  ;;  %12246 = vmatprep.subr.bf16.mxu0 %v17778_v2  ;;  %v17874_v25 = vcombine.high %v9408_v1, %v9412_v31  ;;  %v18002_v2 = vcombine.high %v9536_v12, %v9540_v18  ;;  %v9500_v1 = vld [vmem:[#allocation23 + $0xe60] sm:$0xff] }
 0x8ec   :  { %12287 = vmatprep.subr.bf16.mxu1 %v17906_v41  ;;  %v9400_v41 = vld [vmem:[#allocation23 + $0xb40] sm:$0xff] }
 0x8ee   :  { %v20397_v61 = vpop.f32.mrf.mxu0  ;;  %v20399_v62 = vpop.f32.mrf.mxu1  ;;  %12247 = vmatpush1.bf16.msra.mxu0 %v17777_v53  ;;  %v18001_v53 = vcombine.low %v9536_v12, %v9540_v18 }
 0x8ef   :  { %12288 = vmatpush1.bf16.msra.mxu1 %v17905_v16  ;;  %12248 = vmatprep.subr.bf16.mxu0 %v17770_v42  ;;  %v17866_v16 = vcombine.high %v9400_v41, %v9404_v45  ;;  %v17994_v42 = vcombine.high %v9528_v8, %v9532_v50 }
 0x8f0   :  { %v8962_v15 = vpop.f32.mrf.mxu0  ;;  %v9003_v58 = vpop.f32.mrf.mxu1  ;;  %12289 = vmatprep.subr.bf16.mxu1 %v17898_v21  ;;  %v9392_v21 = vld [vmem:[#allocation23 + $0xb00] sm:$0xff] }
 0x8f1   :  { %v8963_v33 = vadd.f32 %v8962_v15, %v8507_v48  ;;  %v9004_v26 = vadd.f32 %v9003_v58, %v8515_v10  ;;  %v9524_v48 = vld [vmem:[#allocation23 + $0xf20] sm:$0xff]  ;;  %v17865_v10 = vcombine.low %v9400_v41, %v9404_v45  ;;  %v17858_v30 = vcombine.high %v9392_v21, %v9396_v57 }
 0x8f2   :  { %v8964_v60 = vpop.f32.mrf.mxu0  ;;  %v9005_v39 = vpop.f32.mrf.mxu1  ;;  %12249 = vmatpush1.bf16.msra.mxu0 %v17769_v9  ;;  %v17986_v9 = vcombine.high %v9520_v35, %v9524_v48  ;;  %v9384_v15 = vld [vmem:[#allocation23 + $0xac0] sm:$0xff]  ;;  %v17985_v5 = vcombine.low %v9520_v35, %v9524_v48 }
 0x8f3   :  { %vm9013_vm7 = vcmp.ge.f32.partialorder %v8963_v33, 0.0  ;;  %v9021_v43 = vmul.f32 0.1, %v8963_v33  ;;  %12290 = vmatpush1.bf16.msra.mxu1 %v17897_v47  ;;  %12250 = vmatprep.subr.bf16.mxu0 %v17762_v11  ;;  %vm9015_vm8 = vcmp.ge.f32.partialorder %v9004_v26, 0.0  ;;  %v9023_v51 = vmul.f32 0.1, %v9004_v26 }
 0x8f4   :  { %v8965_v54 = vpop.f32.mrf.mxu0  ;;  %v9006_v55 = vpop.f32.mrf.mxu1  ;;  %12291 = vmatprep.subr.bf16.mxu1 %v17890_v36  ;;  %v9388_v58 = vld [vmem:[#allocation23 + $0xae0] sm:$0xff]  ;;  %v17857_v36 = vcombine.low %v9392_v21, %v9396_v57  ;;  %v9229_v21 = vld [vmem:[#allocation23 + $0x5e8] sm:$0xff] }
 0x8f5   :  { %v9029_v28 = vsel %vm9013_vm7, %v8963_v33, %v9021_v43  ;;  %v9031_v4 = vsel %vm9015_vm8, %v9004_v26, %v9023_v51  ;;  %v9512_v47 = vld [vmem:[#allocation23 + $0xec0] sm:$0xff]  ;;  %v17850_v14 = vcombine.high %v9384_v15, %v9388_v58  ;;  %v17849_v27 = vcombine.low %v9384_v15, %v9388_v58  ;;  %v9217_v58 = vld [vmem:[#allocation23 + $0x588] sm:$0xff] }
 0x8f6   :  { %v20405_v38 = vpack.c.bf16 %v9029_v28, %v9029_v28  ;;  %12251 = vmatpush1.bf16.msra.mxu0 %v17761_v20  ;;  %v20407_v52 = vpack.c.bf16 %v9031_v4, %v9031_v4  ;;  %v9516_v11 = vld [vmem:[#allocation23 + $0xee0] sm:$0xff]  ;;  %v8503_v54 = vrot.slane %v20369_v19, %v20151_v59  ;;  %v8511_v51 = vrot.slane %v20369_v19, %v20209_v37 }
 0x8f7   :  { %12292 = vmatpush1.bf16.msra.mxu1 %v17889_v49  ;;  %12252 = vmatprep.subr.bf16.mxu0 %v17882_v63  ;;  %v17978_v33 = vcombine.high %v9512_v47, %v9516_v11  ;;  %v9376_v26 = vld [vmem:[#allocation23 + $0xa80] sm:$0xff]  ;;  %v17977_v20 = vcombine.low %v9512_v47, %v9516_v11  ;;  %v9221_v47 = vld [vmem:[#allocation23 + $0x5a8] sm:$0xff] }
 0x8f8   :  { %12268 = vmatprep.mubr.bf16.mxu0 %v20405_v38  ;;  %12293 = vmatprep.subr.bf16.mxu1 %v18010_v24  ;;  %v9380_v60 = vld [vmem:[#allocation23 + $0xaa0] sm:$0xff]  ;;  %v8961_v18 = vadd.f32 %v20397_v61, %v8503_v54 }
 0x8f9   :  { %12309 = vmatprep.mubr.bf16.mxu1 %v20407_v52  ;;  %v9504_v39 = vld [vmem:[#allocation23 + $0xe80] sm:$0xff]  ;;  %v17842_v43 = vcombine.high %v9376_v26, %v9380_v60  ;;  %v17841_v31 = vcombine.low %v9376_v26, %v9380_v60  ;;  %v9085_v26 = vld [vmem:[#allocation23 + $0x168] sm:$0xff]  ;;  %v17684_v60 = vcombine.high %v9217_v58, %v9221_v47 }
 0x8fa   :  { %12253 = vmatpush2.bf16.msra.mxu0 %v17881_v32  ;;  %v17970_v55 = vcombine.high %v9504_v39, %v9508_v29  ;;  %v9368_v49 = vld [vmem:[#allocation23 + $0xa40] sm:$0xff]  ;;  %v17969_v28 = vcombine.low %v9504_v39, %v9508_v29  ;;  %v9020_v50 = vmul.f32 0.1, %v8961_v18  ;;  %vm9012_vm9 = vcmp.ge.f32.partialorder %v8961_v18, 0.0  ;;  %v9209_v39 = vld [vmem:[#allocation23 + $0x548] sm:$0xff] }
 0x8fb   :  { %12294 = vmatpush2.bf16.msra.mxu1 %v18009_v44  ;;  %12254 = vmatprep.subr.bf16.mxu0 %v17874_v25  ;;  %v9372_v63 = vld [vmem:[#allocation23 + $0xa60] sm:$0xff]  ;;  %v9002_v25 = vadd.f32 %v20399_v62, %v8511_v51  ;;  %v9213_v29 = vld [vmem:[#allocation23 + $0x568] sm:$0xff] }
 0x8fc   :  { %12295 = vmatprep.subr.bf16.mxu1 %v18002_v2  ;;  %v9496_v24 = vld [vmem:[#allocation23 + $0xe40] sm:$0xff]  ;;  %v17834_v12 = vcombine.high %v9368_v49, %v9372_v63  ;;  %v17833_v19 = vcombine.low %v9368_v49, %v9372_v63  ;;  %v9028_v48 = vsel %vm9012_vm9, %v8961_v18, %v9020_v50  ;;  %v17676_v54 = vcombine.high %v9209_v39, %v9213_v29  ;;  %v9077_v49 = vld [vmem:[#allocation23 + $0x128] sm:$0xff] }
 0x8fd   :  { %v17962_v4 = vcombine.high %v9496_v24, %v9500_v1  ;;  %v9360_v32 = vld [vmem:[#allocation23 + $0xa00] sm:$0xff]  ;;  %v17961_v45 = vcombine.low %v9496_v24, %v9500_v1  ;;  %v9022_v61 = vmul.f32 0.1, %v9002_v25  ;;  %vm9014_vm10 = vcmp.ge.f32.partialorder %v9002_v25, 0.0  ;;  %v9201_v63 = vld [vmem:[#allocation23 + $0x508] sm:$0xff] }
 0x8fe   :  { %12255 = vmatpush2.bf16.msra.mxu0 %v17873_v34  ;;  %v9364_v44 = vld [vmem:[#allocation23 + $0xa20] sm:$0xff]  ;;  %v20417_v11 = vpack.c.bf16 %v9028_v48, %v9028_v48  ;;  %v9205_v51 = vld [vmem:[#allocation23 + $0x528] sm:$0xff]  ;;  %v17675_v1 = vcombine.low %v9209_v39, %v9213_v29 }
 0x8ff   :  { %12296 = vmatpush2.bf16.msra.mxu1 %v18001_v53  ;;  %12256 = vmatprep.subr.bf16.mxu0 %v17866_v16  ;;  %v9488_v2 = vld [vmem:[#allocation23 + $0xe00] sm:$0xff]  ;;  %v17826_v8 = vcombine.high %v9360_v32, %v9364_v44  ;;  %v9097_v53 = vld [vmem:[#allocation23 + $0x1c8] sm:$0xff]  ;;  %v17825_v62 = vcombine.low %v9360_v32, %v9364_v44 }
 0x900   :  { %12297 = vmatprep.subr.bf16.mxu1 %v17994_v42  ;;  %v9492_v41 = vld [vmem:[#allocation23 + $0xe20] sm:$0xff]  ;;  %v9101_v16 = vld [vmem:[#allocation23 + $0x1e8] sm:$0xff] }
 0x901   :  { %v17954_v34 = vcombine.high %v9488_v2, %v9492_v41  ;;  %v9225_v42 = vld [vmem:[#allocation23 + $0x5c8] sm:$0xff]  ;;  %v17953_v57 = vcombine.low %v9488_v2, %v9492_v41  ;;  %v17564_v35 = vcombine.high %v9097_v53, %v9101_v16  ;;  %v17563_v15 = vcombine.low %v9097_v53, %v9101_v16 }
 0x902   :  { %12257 = vmatpush2.bf16.msra.mxu0 %v17865_v10  ;;  %v17692_v10 = vcombine.high %v9225_v42, %v9229_v21  ;;  %v9069_v18 = vld [vmem:[#allocation23 + $0xe8] sm:$0xff] }
 0x903   :  { %12298 = vmatpush2.bf16.msra.mxu1 %v17993_v3  ;;  %12258 = vmatprep.subr.bf16.mxu0 %v17858_v30  ;;  %v9030_v3 = vsel %vm9014_vm10, %v9002_v25, %v9022_v61  ;;  %v9089_v30 = vld [vmem:[#allocation23 + $0x188] sm:$0xff]  ;;  %v17667_v25 = vcombine.low %v9201_v63, %v9205_v51 }
 0x904   :  { %12299 = vmatprep.subr.bf16.mxu1 %v17986_v9  ;;  %v9093_v9 = vld [vmem:[#allocation23 + $0x1a8] sm:$0xff] }
 0x905   :  { %v9197_v32 = vld [vmem:[#allocation23 + $0x4e8] sm:$0xff] }
 0x906   :  { %12259 = vmatpush2.bf16.msra.mxu0 %v17857_v36  ;;  %v17691_v36 = vcombine.low %v9225_v42, %v9229_v21  ;;  %v9189_v50 = vld [vmem:[#allocation23 + $0x4a8] sm:$0xff] }
 0x907   :  { %12300 = vmatpush2.bf16.msra.mxu1 %v17985_v5  ;;  %12260 = vmatprep.subr.bf16.mxu0 %v17850_v14  ;;  %v20419_v5 = vpack.c.bf16 %v9030_v3, %v9030_v3  ;;  %v17556_v14 = vcombine.high %v9089_v30, %v9093_v9  ;;  %v9049_v42 = vld [vmem:[#allocation23 + $0x48] sm:$0xff] }
 0x908   :  { %12301 = vmatprep.subr.bf16.mxu1 %v17978_v33  ;;  %v9081_v33 = vld [vmem:[#allocation23 + $0x148] sm:$0xff] }
 0x909   :  { %v17547_v24 = vcombine.low %v9081_v33, %v9085_v26  ;;  %v9053_v21 = vld [vmem:[#allocation23 + $0x68] sm:$0xff] }
 0x90a   :  { %12261 = vmatpush2.bf16.msra.mxu0 %v17849_v27  ;;  %v17555_v27 = vcombine.low %v9089_v30, %v9093_v9  ;;  %v9041_v30 = vld [vmem:[#allocation23 + $0x8] sm:$0xff] }
 0x90b   :  { %12302 = vmatpush2.bf16.msra.mxu1 %v17977_v20  ;;  %12262 = vmatprep.subr.bf16.mxu0 %v17842_v43  ;;  %v17683_v20 = vcombine.low %v9217_v58, %v9221_v47  ;;  %v17548_v43 = vcombine.high %v9081_v33, %v9085_v26  ;;  %v9045_v9 = vld [vmem:[#allocation23 + $0x28] sm:$0xff]  ;;  %v17515_v47 = vcombine.low %v9049_v42, %v9053_v21 }
 0x90c   :  { %12303 = vmatprep.subr.bf16.mxu1 %v17970_v55  ;;  %v9073_v55 = vld [vmem:[#allocation23 + $0x108] sm:$0xff] }
 0x90d   :  { %v17539_v44 = vcombine.low %v9073_v55, %v9077_v49  ;;  %v9173_v58 = vld [vmem:[#allocation23 + $0x428] sm:$0xff] }
 0x90e   :  { %12263 = vmatpush2.bf16.msra.mxu0 %v17841_v31  ;;  %v17540_v31 = vcombine.high %v9073_v55, %v9077_v49  ;;  %v9161_v26 = vld [vmem:[#allocation23 + $0x3c8] sm:$0xff] }
 0x90f   :  { %12304 = vmatpush2.bf16.msra.mxu1 %v17969_v28  ;;  %12264 = vmatprep.subr.bf16.mxu0 %v17834_v12  ;;  %v17668_v28 = vcombine.high %v9201_v63, %v9205_v51  ;;  %v9065_v12 = vld [vmem:[#allocation23 + $0xc8] sm:$0xff] }
 0x910   :  { %12305 = vmatprep.subr.bf16.mxu1 %v17962_v4  ;;  %v9193_v4 = vld [vmem:[#allocation23 + $0x4c8] sm:$0xff]  ;;  %v17532_v2 = vcombine.high %v9065_v12, %v9069_v18 }
 0x911   :  { %v17660_v41 = vcombine.high %v9193_v4, %v9197_v32  ;;  %v17659_v53 = vcombine.low %v9193_v4, %v9197_v32  ;;  %v9289_v39 = vld [vmem:[#allocation23 + $0x7c8] sm:$0xff] }
 0x912   :  { %12265 = vmatpush2.bf16.msra.mxu0 %v17833_v19  ;;  %v9057_v19 = vld [vmem:[#allocation23 + $0x88] sm:$0xff] }
 0x913   :  { %12306 = vmatpush2.bf16.msra.mxu1 %v17961_v45  ;;  %12266 = vmatprep.subr.bf16.mxu0 %v17826_v8  ;;  %v9061_v45 = vld [vmem:[#allocation23 + $0xa8] sm:$0xff] }
 0x914   :  { %12307 = vmatprep.subr.bf16.mxu1 %v17954_v34  ;;  %v9185_v8 = vld [vmem:[#allocation23 + $0x488] sm:$0xff]  ;;  %v17531_v34 = vcombine.low %v9065_v12, %v9069_v18  ;;  %v17524_v16 = vcombine.high %v9057_v19, %v9061_v45 }
 0x915   :  { %v17652_v61 = vcombine.high %v9185_v8, %v9189_v50  ;;  %v17651_v48 = vcombine.low %v9185_v8, %v9189_v50  ;;  %v9293_v29 = vld [vmem:[#allocation23 + $0x7e8] sm:$0xff] }
 0x916   :  { %12267 = vmatpush2.bf16.msra.mxu0 %v17825_v62  ;;  %v9177_v62 = vld [vmem:[#allocation23 + $0x448] sm:$0xff] }
 0x917   :  { %12308 = vmatpush2.bf16.msra.mxu1 %v17953_v57  ;;  %12318 = vmatprep.subr.bf16.mxu0 %v17564_v35  ;;  %v9181_v57 = vld [vmem:[#allocation23 + $0x468] sm:$0xff]  ;;  %v17523_v35 = vcombine.low %v9057_v19, %v9061_v45 }
 0x918   :  { %12359 = vmatprep.subr.bf16.mxu1 %v17692_v10  ;;  %v17516_v10 = vcombine.high %v9049_v42, %v9053_v21  ;;  %v17644_v3 = vcombine.high %v9177_v62, %v9181_v57  ;;  %v9153_v55 = vld [vmem:[#allocation23 + $0x388] sm:$0xff] }
 0x919   :  { %12269 = vmatmul.mubr.bf16.vlgmr.msra.gmra.mxu0 %v20417_v11  ;;  %v9157_v49 = vld [vmem:[#allocation23 + $0x3a8] sm:$0xff] }
 0x91a   :  { %12310 = vmatmul.mubr.bf16.vlgmr.msra.gmra.mxu1 %v20419_v5  ;;  %12319 = vmatpush1.bf16.msra.mxu0 %v17563_v15  ;;  %v9169_v15 = vld [vmem:[#allocation23 + $0x408] sm:$0xff] }
 0x91b   :  { %12350 = vmatprep.mubr.bf16.mxu0 %v20379_v7  ;;  %12360 = vmatpush1.bf16.msra.mxu1 %v17691_v36  ;;  %v17643_v36 = vcombine.low %v9177_v62, %v9181_v57  ;;  %v17636_v33 = vcombine.high %v9169_v15, %v9173_v58  ;;  %v9281_v63 = vld [vmem:[#allocation23 + $0x788] sm:$0xff] }
 0x91c   :  { %12391 = vmatprep.mubr.bf16.mxu1 %v20383_v22  ;;  %12320 = vmatprep.subr.bf16.mxu0 %v17556_v14  ;;  %v17508_v14 = vcombine.high %v9041_v30, %v9045_v9  ;;  %v9285_v51 = vld [vmem:[#allocation23 + $0x7a8] sm:$0xff] }
 0x91d   :  { %12361 = vmatprep.subr.bf16.mxu1 %v17684_v60  ;;  %v9165_v60 = vld [vmem:[#allocation23 + $0x3e8] sm:$0xff] }
 0x91e   :  { %12321 = vmatpush1.bf16.msra.mxu0 %v17555_v27  ;;  %v17507_v27 = vcombine.low %v9041_v30, %v9045_v9  ;;  %v9145_v12 = vld [vmem:[#allocation23 + $0x348] sm:$0xff] }
 0x91f   :  { %12362 = vmatpush1.bf16.msra.mxu1 %v17683_v20  ;;  %12322 = vmatprep.subr.bf16.mxu0 %v17548_v43  ;;  %v17635_v20 = vcombine.low %v9169_v15, %v9173_v58  ;;  %v17628_v43 = vcombine.high %v9161_v26, %v9165_v60  ;;  %v9149_v18 = vld [vmem:[#allocation23 + $0x368] sm:$0xff] }
 0x920   :  { %12363 = vmatprep.subr.bf16.mxu1 %v17676_v54  ;;  %v17756_v54 = vcombine.high %v9289_v39, %v9293_v29  ;;  %v9273_v4 = vld [vmem:[#allocation23 + $0x748] sm:$0xff] }
 0x921   :  { %v9277_v32 = vld [vmem:[#allocation23 + $0x768] sm:$0xff] }
 0x922   :  { %12323 = vmatpush1.bf16.msra.mxu0 %v17547_v24  ;;  %v17627_v24 = vcombine.low %v9161_v26, %v9165_v60  ;;  %v9137_v19 = vld [vmem:[#allocation23 + $0x308] sm:$0xff] }
 0x923   :  { %12364 = vmatpush1.bf16.msra.mxu1 %v17675_v1  ;;  %12324 = vmatprep.subr.bf16.mxu0 %v17540_v31  ;;  %v17755_v1 = vcombine.low %v9289_v39, %v9293_v29  ;;  %v17620_v31 = vcombine.high %v9153_v55, %v9157_v49  ;;  %v9141_v45 = vld [vmem:[#allocation23 + $0x328] sm:$0xff] }
 0x924   :  { %12365 = vmatprep.subr.bf16.mxu1 %v17668_v28  ;;  %v17748_v28 = vcombine.high %v9281_v63, %v9285_v51  ;;  %v9265_v8 = vld [vmem:[#allocation23 + $0x708] sm:$0xff] }
 0x925   :  { %v9269_v50 = vld [vmem:[#allocation23 + $0x728] sm:$0xff] }
 0x926   :  { %12325 = vmatpush1.bf16.msra.mxu0 %v17539_v44  ;;  %v17619_v44 = vcombine.low %v9153_v55, %v9157_v49  ;;  %v9129_v42 = vld [vmem:[#allocation23 + $0x2c8] sm:$0xff] }
 0x927   :  { %12366 = vmatpush1.bf16.msra.mxu1 %v17667_v25  ;;  %12326 = vmatprep.subr.bf16.mxu0 %v17532_v2  ;;  %v17747_v25 = vcombine.low %v9281_v63, %v9285_v51  ;;  %v17612_v2 = vcombine.high %v9145_v12, %v9149_v18  ;;  %v9133_v21 = vld [vmem:[#allocation23 + $0x2e8] sm:$0xff] }
 0x928   :  { %12367 = vmatprep.subr.bf16.mxu1 %v17660_v41  ;;  %v17740_v41 = vcombine.high %v9273_v4, %v9277_v32  ;;  %v9257_v62 = vld [vmem:[#allocation23 + $0x6c8] sm:$0xff] }
 0x929   :  { %v9261_v57 = vld [vmem:[#allocation23 + $0x6e8] sm:$0xff] }
 0x92a   :  { %12327 = vmatpush1.bf16.msra.mxu0 %v17531_v34  ;;  %v17611_v34 = vcombine.low %v9145_v12, %v9149_v18  ;;  %v9121_v30 = vld [vmem:[#allocation23 + $0x288] sm:$0xff] }
 0x92b   :  { %12368 = vmatpush1.bf16.msra.mxu1 %v17659_v53  ;;  %12328 = vmatprep.subr.bf16.mxu0 %v17524_v16  ;;  %v17739_v53 = vcombine.low %v9273_v4, %v9277_v32  ;;  %v17604_v16 = vcombine.high %v9137_v19, %v9141_v45  ;;  %v9125_v9 = vld [vmem:[#allocation23 + $0x2a8] sm:$0xff] }
 0x92c   :  { %12369 = vmatprep.subr.bf16.mxu1 %v17652_v61  ;;  %v17732_v61 = vcombine.high %v9265_v8, %v9269_v50  ;;  %v9249_v15 = vld [vmem:[#allocation23 + $0x688] sm:$0xff] }
 0x92d   :  { %v9253_v58 = vld [vmem:[#allocation23 + $0x6a8] sm:$0xff] }
 0x92e   :  { %12329 = vmatpush1.bf16.msra.mxu0 %v17523_v35  ;;  %v17603_v35 = vcombine.low %v9137_v19, %v9141_v45  ;;  %v9113_v26 = vld [vmem:[#allocation23 + $0x248] sm:$0xff] }
 0x92f   :  { %12370 = vmatpush1.bf16.msra.mxu1 %v17651_v48  ;;  %12330 = vmatprep.subr.bf16.mxu0 %v17516_v10  ;;  %v17731_v48 = vcombine.low %v9265_v8, %v9269_v50  ;;  %v17596_v10 = vcombine.high %v9129_v42, %v9133_v21  ;;  %v9117_v60 = vld [vmem:[#allocation23 + $0x268] sm:$0xff] }
 0x930   :  { %12371 = vmatprep.subr.bf16.mxu1 %v17644_v3  ;;  %v17724_v3 = vcombine.high %v9257_v62, %v9261_v57  ;;  %v9241_v39 = vld [vmem:[#allocation23 + $0x648] sm:$0xff] }
 0x931   :  { %v9245_v29 = vld [vmem:[#allocation23 + $0x668] sm:$0xff] }
 0x932   :  { %12331 = vmatpush1.bf16.msra.mxu0 %v17515_v47  ;;  %v17595_v47 = vcombine.low %v9129_v42, %v9133_v21  ;;  %v9105_v55 = vld [vmem:[#allocation23 + $0x208] sm:$0xff] }
 0x933   :  { %12372 = vmatpush1.bf16.msra.mxu1 %v17643_v36  ;;  %12332 = vmatprep.subr.bf16.mxu0 %v17508_v14  ;;  %v17723_v36 = vcombine.low %v9257_v62, %v9261_v57  ;;  %v17588_v14 = vcombine.high %v9121_v30, %v9125_v9  ;;  %v9109_v49 = vld [vmem:[#allocation23 + $0x228] sm:$0xff] }
 0x934   :  { %12373 = vmatprep.subr.bf16.mxu1 %v17636_v33  ;;  %v17716_v33 = vcombine.high %v9249_v15, %v9253_v58  ;;  %v9233_v63 = vld [vmem:[#allocation23 + $0x608] sm:$0xff] }
 0x935   :  { %v9237_v51 = vld [vmem:[#allocation23 + $0x628] sm:$0xff] }
 0x936   :  { %12333 = vmatpush1.bf16.msra.mxu0 %v17507_v27  ;;  %v17587_v27 = vcombine.low %v9121_v30, %v9125_v9  ;;  %v9353_v12 = vld [vmem:[#allocation23 + $0x9c8] sm:$0xff] }
 0x937   :  { %12374 = vmatpush1.bf16.msra.mxu1 %v17635_v20  ;;  %12334 = vmatprep.subr.bf16.mxu0 %v17628_v43  ;;  %v17715_v20 = vcombine.low %v9249_v15, %v9253_v58  ;;  %v17580_v43 = vcombine.high %v9113_v26, %v9117_v60  ;;  %v9357_v18 = vld [vmem:[#allocation23 + $0x9e8] sm:$0xff] }
 0x938   :  { %12375 = vmatprep.subr.bf16.mxu1 %v17756_v54  ;;  %v17708_v54 = vcombine.high %v9241_v39, %v9245_v29  ;;  %v9481_v4 = vld [vmem:[#allocation23 + $0xdc8] sm:$0xff]  ;;  %v17819_v8 = vcombine.low %v9353_v12, %v9357_v18 }
 0x939   :  { %v9485_v32 = vld [vmem:[#allocation23 + $0xde8] sm:$0xff] }
 0x93a   :  { %12335 = vmatpush2.bf16.msra.mxu0 %v17627_v24  ;;  %v17579_v24 = vcombine.low %v9113_v26, %v9117_v60  ;;  %v9345_v19 = vld [vmem:[#allocation23 + $0x988] sm:$0xff] }
 0x93b   :  { %12376 = vmatpush2.bf16.msra.mxu1 %v17755_v1  ;;  %12336 = vmatprep.subr.bf16.mxu0 %v17620_v31  ;;  %v17707_v1 = vcombine.low %v9241_v39, %v9245_v29  ;;  %v17572_v31 = vcombine.high %v9105_v55, %v9109_v49  ;;  %v9349_v45 = vld [vmem:[#allocation23 + $0x9a8] sm:$0xff] }
 0x93c   :  { %12377 = vmatprep.subr.bf16.mxu1 %v17748_v28  ;;  %v17700_v28 = vcombine.high %v9233_v63, %v9237_v51  ;;  %v9473_v50 = vld [vmem:[#allocation23 + $0xd88] sm:$0xff] }
 0x93d   :  { %v9341_v42 = vld [vmem:[#allocation23 + $0x968] sm:$0xff] }
 0x93e   :  { %12337 = vmatpush2.bf16.msra.mxu0 %v17619_v44  ;;  %v17571_v44 = vcombine.low %v9105_v55, %v9109_v49  ;;  %v9465_v62 = vld [vmem:[#allocation23 + $0xd48] sm:$0xff] }
 0x93f   :  { %12378 = vmatpush2.bf16.msra.mxu1 %v17747_v25  ;;  %12338 = vmatprep.subr.bf16.mxu0 %v17612_v2  ;;  %v17699_v25 = vcombine.low %v9233_v63, %v9237_v51  ;;  %v17820_v2 = vcombine.high %v9353_v12, %v9357_v18  ;;  %v9469_v57 = vld [vmem:[#allocation23 + $0xd68] sm:$0xff] }
 0x940   :  { %12379 = vmatprep.subr.bf16.mxu1 %v17740_v41  ;;  %v17948_v41 = vcombine.high %v9481_v4, %v9485_v32  ;;  %v9329_v30 = vld [vmem:[#allocation23 + $0x908] sm:$0xff] }
 0x941   :  { %v9333_v9 = vld [vmem:[#allocation23 + $0x928] sm:$0xff] }
 0x942   :  { %12339 = vmatpush2.bf16.msra.mxu0 %v17611_v34  ;;  %v9477_v34 = vld [vmem:[#allocation23 + $0xda8] sm:$0xff] }
 0x943   :  { %12380 = vmatpush2.bf16.msra.mxu1 %v17739_v53  ;;  %12340 = vmatprep.subr.bf16.mxu0 %v17604_v16  ;;  %v17947_v53 = vcombine.low %v9481_v4, %v9485_v32  ;;  %v17812_v16 = vcombine.high %v9345_v19, %v9349_v45  ;;  %v17940_v21 = vcombine.high %v9473_v50, %v9477_v34  ;;  %v9457_v15 = vld [vmem:[#allocation23 + $0xd08] sm:$0xff] }
 0x944   :  { %12381 = vmatprep.subr.bf16.mxu1 %v17732_v61  ;;  %v9337_v61 = vld [vmem:[#allocation23 + $0x948] sm:$0xff] }
 0x945   :  { %v9461_v58 = vld [vmem:[#allocation23 + $0xd28] sm:$0xff] }
 0x946   :  { %12341 = vmatpush2.bf16.msra.mxu0 %v17603_v35  ;;  %v17811_v35 = vcombine.low %v9345_v19, %v9349_v45  ;;  %v9321_v26 = vld [vmem:[#allocation23 + $0x8c8] sm:$0xff] }
 0x947   :  { %12382 = vmatpush2.bf16.msra.mxu1 %v17731_v48  ;;  %12342 = vmatprep.subr.bf16.mxu0 %v17596_v10  ;;  %v17939_v48 = vcombine.low %v9473_v50, %v9477_v34  ;;  %v17804_v10 = vcombine.high %v9337_v61, %v9341_v42  ;;  %v9325_v60 = vld [vmem:[#allocation23 + $0x8e8] sm:$0xff] }
 0x948   :  { %12383 = vmatprep.subr.bf16.mxu1 %v17724_v3  ;;  %v17932_v3 = vcombine.high %v9465_v62, %v9469_v57  ;;  %v9449_v39 = vld [vmem:[#allocation23 + $0xcc8] sm:$0xff] }
 0x949   :  { %v9453_v29 = vld [vmem:[#allocation23 + $0xce8] sm:$0xff] }
 0x94a   :  { %12343 = vmatpush2.bf16.msra.mxu0 %v17595_v47  ;;  %v17803_v47 = vcombine.low %v9337_v61, %v9341_v42  ;;  %v9313_v55 = vld [vmem:[#allocation23 + $0x888] sm:$0xff] }
 0x94b   :  { %12384 = vmatpush2.bf16.msra.mxu1 %v17723_v36  ;;  %12344 = vmatprep.subr.bf16.mxu0 %v17588_v14  ;;  %v17931_v36 = vcombine.low %v9465_v62, %v9469_v57  ;;  %v17796_v14 = vcombine.high %v9329_v30, %v9333_v9  ;;  %v9317_v49 = vld [vmem:[#allocation23 + $0x8a8] sm:$0xff] }
 0x94c   :  { %12385 = vmatprep.subr.bf16.mxu1 %v17716_v33  ;;  %v17924_v33 = vcombine.high %v9457_v15, %v9461_v58  ;;  %v9441_v63 = vld [vmem:[#allocation23 + $0xc88] sm:$0xff] }
 0x94d   :  { %v9445_v51 = vld [vmem:[#allocation23 + $0xca8] sm:$0xff] }
 0x94e   :  { %12345 = vmatpush2.bf16.msra.mxu0 %v17587_v27  ;;  %v17795_v27 = vcombine.low %v9329_v30, %v9333_v9  ;;  %v9305_v12 = vld [vmem:[#allocation23 + $0x848] sm:$0xff] }
 0x94f   :  { %12386 = vmatpush2.bf16.msra.mxu1 %v17715_v20  ;;  %12346 = vmatprep.subr.bf16.mxu0 %v17580_v43  ;;  %v17923_v20 = vcombine.low %v9457_v15, %v9461_v58  ;;  %v17788_v43 = vcombine.high %v9321_v26, %v9325_v60  ;;  %v9309_v18 = vld [vmem:[#allocation23 + $0x868] sm:$0xff] }
 0x950   :  { %12387 = vmatprep.subr.bf16.mxu1 %v17708_v54  ;;  %v17916_v54 = vcombine.high %v9449_v39, %v9453_v29  ;;  %v9433_v4 = vld [vmem:[#allocation23 + $0xc48] sm:$0xff]  ;;  %v17771_v34 = vcombine.low %v9305_v12, %v9309_v18 }
 0x951   :  { %v9437_v32 = vld [vmem:[#allocation23 + $0xc68] sm:$0xff] }
 0x952   :  { %12347 = vmatpush2.bf16.msra.mxu0 %v17579_v24  ;;  %v17787_v24 = vcombine.low %v9321_v26, %v9325_v60  ;;  %v9297_v19 = vld [vmem:[#allocation23 + $0x808] sm:$0xff] }
 0x953   :  { %12388 = vmatpush2.bf16.msra.mxu1 %v17707_v1  ;;  %12348 = vmatprep.subr.bf16.mxu0 %v17572_v31  ;;  %v17915_v1 = vcombine.low %v9449_v39, %v9453_v29  ;;  %v17780_v31 = vcombine.high %v9313_v55, %v9317_v49  ;;  %v9301_v45 = vld [vmem:[#allocation23 + $0x828] sm:$0xff] }
 0x954   :  { %12389 = vmatprep.subr.bf16.mxu1 %v17700_v28  ;;  %v17908_v28 = vcombine.high %v9441_v63, %v9445_v51  ;;  %v9429_v50 = vld [vmem:[#allocation23 + $0xc28] sm:$0xff] }
 0x955   :  { %v9417_v42 = vld [vmem:[#allocation23 + $0xbc8] sm:$0xff] }
 0x956   :  { %12349 = vmatpush2.bf16.msra.mxu0 %v17571_v44  ;;  %v17779_v44 = vcombine.low %v9313_v55, %v9317_v49  ;;  %v9545_v62 = vld [vmem:[#allocation23 + $0xfc8] sm:$0xff] }
 0x957   :  { %12390 = vmatpush2.bf16.msra.mxu1 %v17699_v25  ;;  %12400 = vmatprep.subr.bf16.mxu0 %v17820_v2  ;;  %v17907_v25 = vcombine.low %v9441_v63, %v9445_v51  ;;  %v17772_v2 = vcombine.high %v9305_v12, %v9309_v18  ;;  %v9549_v57 = vld [vmem:[#allocation23 + $0xfe8] sm:$0xff] }
 0x958   :  { %12441 = vmatprep.subr.bf16.mxu1 %v17948_v41  ;;  %v17900_v41 = vcombine.high %v9433_v4, %v9437_v32  ;;  %v9409_v30 = vld [vmem:[#allocation23 + $0xb88] sm:$0xff] }
 0x959   :  { %12351 = vmatmul.mubr.bf16.vlgmr.msra.gmra.mxu0 %v20381_v17  ;;  %v9413_v9 = vld [vmem:[#allocation23 + $0xba8] sm:$0xff] }
 0x95a   :  { %12392 = vmatmul.mubr.bf16.vlgmr.msra.gmra.mxu1 %v20385_v23  ;;  %12401 = vmatpush1.bf16.msra.mxu0 %v17819_v8  ;;  %v9425_v8 = vld [vmem:[#allocation23 + $0xc08] sm:$0xff] }
 0x95b   :  { %12432 = vmatprep.mubr.bf16.mxu0 %v20405_v38  ;;  %12442 = vmatpush1.bf16.msra.mxu1 %v17947_v53  ;;  %v17899_v53 = vcombine.low %v9433_v4, %v9437_v32  ;;  %v17892_v61 = vcombine.high %v9425_v8, %v9429_v50  ;;  %v9537_v15 = vld [vmem:[#allocation23 + $0xf88] sm:$0xff] }
 0x95c   :  { %12473 = vmatprep.mubr.bf16.mxu1 %v20407_v52  ;;  %12402 = vmatprep.subr.bf16.mxu0 %v17812_v16  ;;  %v17764_v16 = vcombine.high %v9297_v19, %v9301_v45  ;;  %v9541_v58 = vld [vmem:[#allocation23 + $0xfa8] sm:$0xff] }
 0x95d   :  { %12443 = vmatprep.subr.bf16.mxu1 %v17940_v21  ;;  %v9421_v21 = vld [vmem:[#allocation23 + $0xbe8] sm:$0xff] }
 0x95e   :  { %12403 = vmatpush1.bf16.msra.mxu0 %v17811_v35  ;;  %v17763_v35 = vcombine.low %v9297_v19, %v9301_v45  ;;  %v9401_v26 = vld [vmem:[#allocation23 + $0xb48] sm:$0xff] }
 0x95f   :  { %12444 = vmatpush1.bf16.msra.mxu1 %v17939_v48  ;;  %12404 = vmatprep.subr.bf16.mxu0 %v17804_v10  ;;  %v17891_v48 = vcombine.low %v9425_v8, %v9429_v50  ;;  %v17884_v10 = vcombine.high %v9417_v42, %v9421_v21  ;;  %v9405_v60 = vld [vmem:[#allocation23 + $0xb68] sm:$0xff] }
 0x960   :  { %12445 = vmatprep.subr.bf16.mxu1 %v17932_v3  ;;  %v18012_v3 = vcombine.high %v9545_v62, %v9549_v57  ;;  %v9529_v39 = vld [vmem:[#allocation23 + $0xf48] sm:$0xff] }
 0x961   :  { %v9533_v29 = vld [vmem:[#allocation23 + $0xf68] sm:$0xff] }
 0x962   :  { %12405 = vmatpush1.bf16.msra.mxu0 %v17803_v47  ;;  %v17883_v47 = vcombine.low %v9417_v42, %v9421_v21  ;;  %v9393_v55 = vld [vmem:[#allocation23 + $0xb08] sm:$0xff] }
 0x963   :  { %12446 = vmatpush1.bf16.msra.mxu1 %v17931_v36  ;;  %12406 = vmatprep.subr.bf16.mxu0 %v17796_v14  ;;  %v18011_v36 = vcombine.low %v9545_v62, %v9549_v57  ;;  %v17876_v14 = vcombine.high %v9409_v30, %v9413_v9  ;;  %v9397_v49 = vld [vmem:[#allocation23 + $0xb28] sm:$0xff] }
 0x964   :  { %12447 = vmatprep.subr.bf16.mxu1 %v17924_v33  ;;  %v18004_v33 = vcombine.high %v9537_v15, %v9541_v58  ;;  %v9521_v63 = vld [vmem:[#allocation23 + $0xf08] sm:$0xff] }
 0x965   :  { %v9525_v51 = vld [vmem:[#allocation23 + $0xf28] sm:$0xff] }
 0x966   :  { %12407 = vmatpush1.bf16.msra.mxu0 %v17795_v27  ;;  %v17875_v27 = vcombine.low %v9409_v30, %v9413_v9  ;;  %v9385_v12 = vld [vmem:[#allocation23 + $0xac8] sm:$0xff] }
 0x967   :  { %12448 = vmatpush1.bf16.msra.mxu1 %v17923_v20  ;;  %12408 = vmatprep.subr.bf16.mxu0 %v17788_v43  ;;  %v18003_v20 = vcombine.low %v9537_v15, %v9541_v58  ;;  %v17868_v43 = vcombine.high %v9401_v26, %v9405_v60  ;;  %v9389_v18 = vld [vmem:[#allocation23 + $0xae8] sm:$0xff] }
 0x968   :  { %12449 = vmatprep.subr.bf16.mxu1 %v17916_v54  ;;  %v17996_v54 = vcombine.high %v9529_v39, %v9533_v29  ;;  %v9513_v4 = vld [vmem:[#allocation23 + $0xec8] sm:$0xff] }
 0x969   :  { %v9517_v32 = vld [vmem:[#allocation23 + $0xee8] sm:$0xff] }
 0x96a   :  { %12409 = vmatpush1.bf16.msra.mxu0 %v17787_v24  ;;  %v17867_v24 = vcombine.low %v9401_v26, %v9405_v60  ;;  %v9377_v19 = vld [vmem:[#allocation23 + $0xa88] sm:$0xff]  ;;  %v9098_v26 = vld [vmem:[#allocation23 + $0x1d0] sm:$0xff] }
 0x96b   :  { %12450 = vmatpush1.bf16.msra.mxu1 %v17915_v1  ;;  %12410 = vmatprep.subr.bf16.mxu0 %v17780_v31  ;;  %v17995_v1 = vcombine.low %v9529_v39, %v9533_v29  ;;  %v17860_v31 = vcombine.high %v9393_v55, %v9397_v49  ;;  %v9381_v45 = vld [vmem:[#allocation23 + $0xaa8] sm:$0xff]  ;;  %v9102_v60 = vld [vmem:[#allocation23 + $0x1f0] sm:$0xff] }
 0x96c   :  { %12451 = vmatprep.subr.bf16.mxu1 %v17908_v28  ;;  %v17988_v28 = vcombine.high %v9521_v63, %v9525_v51  ;;  %v9505_v8 = vld [vmem:[#allocation23 + $0xe88] sm:$0xff]  ;;  %v9226_v39 = vld [vmem:[#allocation23 + $0x5d0] sm:$0xff] }
 0x96d   :  { %v9509_v50 = vld [vmem:[#allocation23 + $0xea8] sm:$0xff]  ;;  %v9230_v29 = vld [vmem:[#allocation23 + $0x5f0] sm:$0xff] }
 0x96e   :  { %12411 = vmatpush1.bf16.msra.mxu0 %v17779_v44  ;;  %v17859_v44 = vcombine.low %v9393_v55, %v9397_v49  ;;  %v9369_v42 = vld [vmem:[#allocation23 + $0xa48] sm:$0xff]  ;;  %v17694_v55 = vcombine.high %v9226_v39, %v9230_v29  ;;  %v9090_v49 = vld [vmem:[#allocation23 + $0x190] sm:$0xff] }
 0x96f   :  { %12452 = vmatpush1.bf16.msra.mxu1 %v17907_v25  ;;  %12412 = vmatprep.subr.bf16.mxu0 %v17772_v2  ;;  %v17987_v25 = vcombine.low %v9521_v63, %v9525_v51  ;;  %v17852_v2 = vcombine.high %v9385_v12, %v9389_v18  ;;  %v9373_v21 = vld [vmem:[#allocation23 + $0xa68] sm:$0xff]  ;;  %v9094_v63 = vld [vmem:[#allocation23 + $0x1b0] sm:$0xff]  ;;  %v17565_v51 = vcombine.low %v9098_v26, %v9102_v60 }
 0x970   :  { %12453 = vmatprep.subr.bf16.mxu1 %v17900_v41  ;;  %v17980_v41 = vcombine.high %v9513_v4, %v9517_v32  ;;  %v9497_v62 = vld [vmem:[#allocation23 + $0xe48] sm:$0xff] }
 0x971   :  { %v9501_v57 = vld [vmem:[#allocation23 + $0xe68] sm:$0xff] }
 0x972   :  { %12413 = vmatpush1.bf16.msra.mxu0 %v17771_v34  ;;  %v17851_v34 = vcombine.low %v9385_v12, %v9389_v18  ;;  %v9361_v30 = vld [vmem:[#allocation23 + $0xa08] sm:$0xff]  ;;  %v17558_v18 = vcombine.high %v9090_v49, %v9094_v63 }
 0x973   :  { %12454 = vmatpush1.bf16.msra.mxu1 %v17899_v53  ;;  %12414 = vmatprep.subr.bf16.mxu0 %v17764_v16  ;;  %v17979_v53 = vcombine.low %v9513_v4, %v9517_v32  ;;  %v17844_v16 = vcombine.high %v9377_v19, %v9381_v45  ;;  %v9365_v9 = vld [vmem:[#allocation23 + $0xa28] sm:$0xff]  ;;  %v9082_v4 = vld [vmem:[#allocation23 + $0x150] sm:$0xff] }
 0x974   :  { %12455 = vmatprep.subr.bf16.mxu1 %v17892_v61  ;;  %v17972_v61 = vcombine.high %v9505_v8, %v9509_v50  ;;  %v9489_v15 = vld [vmem:[#allocation23 + $0xe08] sm:$0xff]  ;;  %v9086_v32 = vld [vmem:[#allocation23 + $0x170] sm:$0xff] }
 0x975   :  { %v9493_v58 = vld [vmem:[#allocation23 + $0xe28] sm:$0xff] }
 0x976   :  { %12415 = vmatpush1.bf16.msra.mxu0 %v17763_v35  ;;  %v17843_v35 = vcombine.low %v9377_v19, %v9381_v45 }
 0x977   :  { %12456 = vmatpush1.bf16.msra.mxu1 %v17891_v48  ;;  %12416 = vmatprep.subr.bf16.mxu0 %v17884_v10  ;;  %v17971_v48 = vcombine.low %v9505_v8, %v9509_v50  ;;  %v17836_v10 = vcombine.high %v9369_v42, %v9373_v21  ;;  %v17557_v8 = vcombine.low %v9090_v49, %v9094_v63  ;;  %v9062_v49 = vld [vmem:[#allocation23 + $0xb0] sm:$0xff] }
 0x978   :  { %12457 = vmatprep.subr.bf16.mxu1 %v18012_v3  ;;  %v17964_v3 = vcombine.high %v9497_v62, %v9501_v57  ;;  %v9186_v63 = vld [vmem:[#allocation23 + $0x490] sm:$0xff] }
 0x97a   :  { %12417 = vmatpush2.bf16.msra.mxu0 %v17883_v47  ;;  %v17835_v47 = vcombine.low %v9369_v42, %v9373_v21 }
 0x97b   :  { %12458 = vmatpush2.bf16.msra.mxu1 %v18011_v36  ;;  %12418 = vmatprep.subr.bf16.mxu0 %v17876_v14  ;;  %v17963_v36 = vcombine.low %v9497_v62, %v9501_v57  ;;  %v17828_v14 = vcombine.high %v9361_v30, %v9365_v9  ;;  %v9074_v62 = vld [vmem:[#allocation23 + $0x110] sm:$0xff] }
 0x97c   :  { %12459 = vmatprep.subr.bf16.mxu1 %v18004_v33  ;;  %v17956_v33 = vcombine.high %v9489_v15, %v9493_v58  ;;  %v9078_v57 = vld [vmem:[#allocation23 + $0x130] sm:$0xff] }
 0x97e   :  { %12419 = vmatpush2.bf16.msra.mxu0 %v17875_v27  ;;  %v17827_v27 = vcombine.low %v9361_v30, %v9365_v9  ;;  %v17549_v9 = vcombine.low %v9082_v4, %v9086_v32 }
 0x97f   :  { %12460 = vmatpush2.bf16.msra.mxu1 %v18003_v20  ;;  %12420 = vmatprep.subr.bf16.mxu0 %v17868_v43  ;;  %v17955_v20 = vcombine.low %v9489_v15, %v9493_v58  ;;  %v17566_v43 = vcombine.high %v9098_v26, %v9102_v60  ;;  %v9070_v26 = vld [vmem:[#allocation23 + $0xf0] sm:$0xff] }
 0x980   :  { %12461 = vmatprep.subr.bf16.mxu1 %v17996_v54  ;;  %v20429_v54 = vld [vmem:[#allocation25] sm:$0xff]  ;;  %v9194_v60 = vld [vmem:[#allocation23 + $0x4d0] sm:$0xff] }
 0x981   :  { %v9561_v12 = vrot.slane %v20429_v54, %v20078_v13 }
 0x982   :  { %12421 = vmatpush2.bf16.msra.mxu0 %v17867_v24  ;;  %v9557_v24 = vrot.slane %v20429_v54, %v20075_v6 }
 0x983   :  { %12462 = vmatpush2.bf16.msra.mxu1 %v17995_v1  ;;  %12422 = vmatprep.subr.bf16.mxu0 %v17860_v31  ;;  %v9218_v1 = vld [vmem:[#allocation23 + $0x590] sm:$0xff] }
 0x984   :  { %12463 = vmatprep.subr.bf16.mxu1 %v17988_v28  ;;  %v9222_v31 = vld [vmem:[#allocation23 + $0x5b0] sm:$0xff]  ;;  %v17693_v28 = vcombine.low %v9226_v39, %v9230_v29  ;;  %v17541_v29 = vcombine.low %v9074_v62, %v9078_v57 }
 0x985   :  { %v9198_v39 = vld [vmem:[#allocation23 + $0x4f0] sm:$0xff] }
 0x986   :  { %12423 = vmatpush2.bf16.msra.mxu0 %v17859_v44 }
 0x987   :  { %12464 = vmatpush2.bf16.msra.mxu1 %v17987_v25  ;;  %12424 = vmatprep.subr.bf16.mxu0 %v17852_v2  ;;  %v17686_v25 = vcombine.high %v9218_v1, %v9222_v31  ;;  %v9210_v2 = vld [vmem:[#allocation23 + $0x550] sm:$0xff] }
 0x988   :  { %12465 = vmatprep.subr.bf16.mxu1 %v17980_v41  ;;  %v9214_v41 = vld [vmem:[#allocation23 + $0x570] sm:$0xff] }
 0x989   :  { %v17678_v21 = vcombine.high %v9210_v2, %v9214_v41  ;;  %v17677_v58 = vcombine.low %v9210_v2, %v9214_v41 }
 0x98a   :  { %12425 = vmatpush2.bf16.msra.mxu0 %v17851_v34  ;;  %v17685_v34 = vcombine.low %v9218_v1, %v9222_v31  ;;  %v17661_v1 = vcombine.low %v9194_v60, %v9198_v39 }
 0x98b   :  { %12466 = vmatpush2.bf16.msra.mxu1 %v17979_v53  ;;  %12426 = vmatprep.subr.bf16.mxu0 %v17844_v16  ;;  %v17550_v53 = vcombine.high %v9082_v4, %v9086_v32  ;;  %v9178_v4 = vld [vmem:[#allocation23 + $0x450] sm:$0xff] }
 0x98c   :  { %12467 = vmatprep.subr.bf16.mxu1 %v17972_v61  ;;  %v9182_v32 = vld [vmem:[#allocation23 + $0x470] sm:$0xff] }
 0x98d   :  { %v17646_v41 = vcombine.high %v9178_v4, %v9182_v32 }
 0x98e   :  { %12427 = vmatpush2.bf16.msra.mxu0 %v17843_v35 }
 0x98f   :  { %12468 = vmatpush2.bf16.msra.mxu1 %v17971_v48  ;;  %12428 = vmatprep.subr.bf16.mxu0 %v17836_v10  ;;  %v9202_v48 = vld [vmem:[#allocation23 + $0x510] sm:$0xff] }
 0x990   :  { %12469 = vmatprep.subr.bf16.mxu1 %v17964_v3  ;;  %v9206_v10 = vld [vmem:[#allocation23 + $0x530] sm:$0xff] }
 0x992   :  { %12429 = vmatpush2.bf16.msra.mxu0 %v17835_v47  ;;  %v17542_v47 = vcombine.high %v9074_v62, %v9078_v57  ;;  %v9166_v62 = vld [vmem:[#allocation23 + $0x3f0] sm:$0xff] }
 0x993   :  { %12470 = vmatpush2.bf16.msra.mxu1 %v17963_v36  ;;  %12430 = vmatprep.subr.bf16.mxu0 %v17828_v14  ;;  %v17670_v14 = vcombine.high %v9202_v48, %v9206_v10  ;;  %v9290_v57 = vld [vmem:[#allocation23 + $0x7d0] sm:$0xff] }
 0x994   :  { %12471 = vmatprep.subr.bf16.mxu1 %v17956_v33  ;;  %v9066_v33 = vld [vmem:[#allocation23 + $0xd0] sm:$0xff] }
 0x996   :  { %12431 = vmatpush2.bf16.msra.mxu0 %v17827_v27  ;;  %v17669_v27 = vcombine.low %v9202_v48, %v9206_v10 }
 0x997   :  { %12472 = vmatpush2.bf16.msra.mxu1 %v17955_v20  ;;  %12482 = vmatprep.subr.bf16.mxu0 %v17566_v43  ;;  %v17534_v20 = vcombine.high %v9066_v33, %v9070_v26  ;;  %v17662_v43 = vcombine.high %v9194_v60, %v9198_v39  ;;  %v9146_v39 = vld [vmem:[#allocation23 + $0x350] sm:$0xff] }
 0x998   :  { %12523 = vmatprep.subr.bf16.mxu1 %v17694_v55  ;;  %v9058_v55 = vld [vmem:[#allocation23 + $0x90] sm:$0xff] }
 0x999   :  { %12433 = vmatmul.mubr.bf16.vlgmr.msra.gmra.mxu0 %v20417_v11  ;;  %v12188_v44 = vpop.f32.mrf.mxu0  ;;  %v17526_v31 = vcombine.high %v9058_v55, %v9062_v49 }
 0x99a   :  { %12474 = vmatmul.mubr.bf16.vlgmr.msra.gmra.mxu1 %v20419_v5  ;;  %v12189_v19 = vadd.f32 %v12188_v44, %v9557_v24  ;;  %v12229_v45 = vpop.f32.mrf.mxu1  ;;  %12483 = vmatpush1.bf16.msra.mxu0 %v17565_v51  ;;  %v9190_v51 = vld [vmem:[#allocation23 + $0x4b0] sm:$0xff]  ;;  %v17533_v24 = vcombine.low %v9066_v33, %v9070_v26  ;;  %v17525_v44 = vcombine.low %v9058_v55, %v9062_v49 }
 0x99b   :  { %12514 = vmatprep.mubr.bf16.mxu0 %v20379_v7  ;;  %12524 = vmatpush1.bf16.msra.mxu1 %v17693_v28  ;;  %v12190_v50 = vpop.f32.mrf.mxu0  ;;  %v17654_v28 = vcombine.high %v9186_v63, %v9190_v51 }
 0x99c   :  { %v20438_v16 = vadd.f32 %v12229_v45, %v12189_v19  ;;  %12555 = vmatprep.mubr.bf16.mxu1 %v20383_v22  ;;  %v12191_v61 = vadd.f32 %v12190_v50, %v9561_v12  ;;  %v12231_v42 = vpop.f32.mrf.mxu1  ;;  %12484 = vmatprep.subr.bf16.mxu0 %v17558_v18  ;;  %v9050_v12 = vld [vmem:[#allocation23 + $0x50] sm:$0xff] }
 0x99d   :  { %12525 = vmatprep.subr.bf16.mxu1 %v17686_v25  ;;  %v12192_v35 = vpop.f32.mrf.mxu0  ;;  %v9054_v18 = vld [vmem:[#allocation23 + $0x70] sm:$0xff]  ;;  %v17653_v25 = vcombine.low %v9186_v63, %v9190_v51 }
 0x99e   :  { %v20441_v3 = vadd.f32 %v12231_v42, %v12191_v61  ;;  %v12233_v30 = vpop.f32.mrf.mxu1  ;;  %12485 = vmatpush1.bf16.msra.mxu0 %v17557_v8  ;;  %v17518_v2 = vcombine.high %v9050_v12, %v9054_v18  ;;  %v9042_v19 = vld [vmem:[#allocation23 + $0x10] sm:$0xff] }
 0x99f   :  { %12526 = vmatpush1.bf16.msra.mxu1 %v17685_v34  ;;  %v12193_v15 = vpop.f32.mrf.mxu0  ;;  %12486 = vmatprep.subr.bf16.mxu0 %v17550_v53  ;;  %v9046_v45 = vld [vmem:[#allocation23 + $0x30] sm:$0xff]  ;;  %v17517_v34 = vcombine.low %v9050_v12, %v9054_v18  ;;  %v17645_v53 = vcombine.low %v9178_v4, %v9182_v32 }
 0x9a0   :  { %v12234_v36 = vpop.f32.mrf.mxu1  ;;  %12527 = vmatprep.subr.bf16.mxu1 %v17678_v21  ;;  %v9170_v8 = vld [vmem:[#allocation23 + $0x410] sm:$0xff]  ;;  %v17510_v61 = vcombine.high %v9042_v19, %v9046_v45  ;;  %v17509_v48 = vcombine.low %v9042_v19, %v9046_v45 }
 0x9a1   :  { %v9174_v50 = vld [vmem:[#allocation23 + $0x430] sm:$0xff] }
 0x9a2   :  { %12487 = vmatpush1.bf16.msra.mxu0 %v17549_v9  ;;  %v17638_v42 = vcombine.high %v9170_v8, %v9174_v50  ;;  %v9162_v21 = vld [vmem:[#allocation23 + $0x3d0] sm:$0xff]  ;;  %v17637_v10 = vcombine.low %v9170_v8, %v9174_v50 }
 0x9a3   :  { %12528 = vmatpush1.bf16.msra.mxu1 %v17677_v58  ;;  %12488 = vmatprep.subr.bf16.mxu0 %v17542_v47  ;;  %v9294_v35 = vld [vmem:[#allocation23 + $0x7f0] sm:$0xff]  ;;  %v17630_v30 = vcombine.high %v9162_v21, %v9166_v62 }
 0x9a4   :  { %12529 = vmatprep.subr.bf16.mxu1 %v17670_v14  ;;  %v17758_v9 = vcombine.high %v9290_v57, %v9294_v35  ;;  %v9154_v15 = vld [vmem:[#allocation23 + $0x390] sm:$0xff]  ;;  %v17629_v14 = vcombine.low %v9162_v21, %v9166_v62  ;;  %v17757_v33 = vcombine.low %v9290_v57, %v9294_v35 }
 0x9a5   :  { %v9158_v58 = vld [vmem:[#allocation23 + $0x3b0] sm:$0xff] }
 0x9a6   :  { %12489 = vmatpush1.bf16.msra.mxu0 %v17541_v29  ;;  %v9282_v47 = vld [vmem:[#allocation23 + $0x790] sm:$0xff]  ;;  %v17622_v26 = vcombine.high %v9154_v15, %v9158_v58 }
 0x9a7   :  { %12530 = vmatpush1.bf16.msra.mxu1 %v17669_v27  ;;  %12490 = vmatprep.subr.bf16.mxu0 %v17534_v20  ;;  %v9286_v36 = vld [vmem:[#allocation23 + $0x7b0] sm:$0xff] }
 0x9a8   :  { %12531 = vmatprep.subr.bf16.mxu1 %v17662_v43  ;;  %v17750_v60 = vcombine.high %v9282_v47, %v9286_v36  ;;  %v9150_v29 = vld [vmem:[#allocation23 + $0x370] sm:$0xff]  ;;  %v17621_v43 = vcombine.low %v9154_v15, %v9158_v58  ;;  %v17749_v55 = vcombine.low %v9282_v47, %v9286_v36 }
 0x9a9   :  { %v9274_v27 = vld [vmem:[#allocation23 + $0x750] sm:$0xff]  ;;  %v17614_v49 = vcombine.high %v9146_v39, %v9150_v29 }
 0x9aa   :  { %12491 = vmatpush1.bf16.msra.mxu0 %v17533_v24  ;;  %v9278_v20 = vld [vmem:[#allocation23 + $0x770] sm:$0xff] }
 0x9ab   :  { %12532 = vmatpush1.bf16.msra.mxu1 %v17661_v1  ;;  %12492 = vmatprep.subr.bf16.mxu0 %v17526_v31  ;;  %v17742_v63 = vcombine.high %v9274_v27, %v9278_v20  ;;  %v9138_v51 = vld [vmem:[#allocation23 + $0x310] sm:$0xff]  ;;  %v17741_v12 = vcombine.low %v9274_v27, %v9278_v20 }
 0x9ac   :  { %12533 = vmatprep.subr.bf16.mxu1 %v17654_v28  ;;  %v9142_v24 = vld [vmem:[#allocation23 + $0x330] sm:$0xff]  ;;  %v17613_v28 = vcombine.low %v9146_v39, %v9150_v29 }
 0x9ad   :  { %v9266_v1 = vld [vmem:[#allocation23 + $0x710] sm:$0xff]  ;;  %v17606_v18 = vcombine.high %v9138_v51, %v9142_v24 }
 0x9ae   :  { %12493 = vmatpush1.bf16.msra.mxu0 %v17525_v44  ;;  %v9270_v31 = vld [vmem:[#allocation23 + $0x730] sm:$0xff] }
 0x9af   :  { %12534 = vmatpush1.bf16.msra.mxu1 %v17653_v25  ;;  %12494 = vmatprep.subr.bf16.mxu0 %v17518_v2  ;;  %v17734_v4 = vcombine.high %v9266_v1, %v9270_v31  ;;  %v9130_v32 = vld [vmem:[#allocation23 + $0x2d0] sm:$0xff]  ;;  %v17733_v19 = vcombine.low %v9266_v1, %v9270_v31 }
 0x9b0   :  { %12535 = vmatprep.subr.bf16.mxu1 %v17646_v41  ;;  %v9134_v44 = vld [vmem:[#allocation23 + $0x2f0] sm:$0xff]  ;;  %v17605_v41 = vcombine.low %v9138_v51, %v9142_v24 }
 0x9b1   :  { %v9258_v25 = vld [vmem:[#allocation23 + $0x6d0] sm:$0xff]  ;;  %v17598_v45 = vcombine.high %v9130_v32, %v9134_v44 }
 0x9b2   :  { %12495 = vmatpush1.bf16.msra.mxu0 %v17517_v34  ;;  %v9262_v2 = vld [vmem:[#allocation23 + $0x6f0] sm:$0xff] }
 0x9b3   :  { %12536 = vmatpush1.bf16.msra.mxu1 %v17645_v53  ;;  %12496 = vmatprep.subr.bf16.mxu0 %v17510_v61  ;;  %v17726_v8 = vcombine.high %v9258_v25, %v9262_v2  ;;  %v9122_v50 = vld [vmem:[#allocation23 + $0x290] sm:$0xff]  ;;  %v17725_v21 = vcombine.low %v9258_v25, %v9262_v2 }
 0x9b4   :  { %12537 = vmatprep.subr.bf16.mxu1 %v17638_v42  ;;  %v9126_v34 = vld [vmem:[#allocation23 + $0x2b0] sm:$0xff]  ;;  %v17597_v42 = vcombine.low %v9130_v32, %v9134_v44 }
 0x9b5   :  { %v9250_v53 = vld [vmem:[#allocation23 + $0x690] sm:$0xff]  ;;  %v17590_v62 = vcombine.high %v9122_v50, %v9126_v34 }
 0x9b6   :  { %12497 = vmatpush1.bf16.msra.mxu0 %v17509_v48  ;;  %v9254_v61 = vld [vmem:[#allocation23 + $0x6b0] sm:$0xff] }
 0x9b7   :  { %12538 = vmatpush1.bf16.msra.mxu1 %v17637_v10  ;;  %12498 = vmatprep.subr.bf16.mxu0 %v17630_v30  ;;  %v17718_v57 = vcombine.high %v9250_v53, %v9254_v61  ;;  %v9114_v35 = vld [vmem:[#allocation23 + $0x250] sm:$0xff]  ;;  %v17717_v15 = vcombine.low %v9250_v53, %v9254_v61 }
 0x9b8   :  { %12539 = vmatprep.subr.bf16.mxu1 %v17758_v9  ;;  %v9118_v48 = vld [vmem:[#allocation23 + $0x270] sm:$0xff]  ;;  %v17589_v9 = vcombine.low %v9122_v50, %v9126_v34 }
 0x9b9   :  { %v9242_v10 = vld [vmem:[#allocation23 + $0x650] sm:$0xff]  ;;  %v17582_v58 = vcombine.high %v9114_v35, %v9118_v48 }
 0x9ba   :  { %12499 = vmatpush2.bf16.msra.mxu0 %v17629_v14  ;;  %v9246_v30 = vld [vmem:[#allocation23 + $0x670] sm:$0xff] }
 0x9bb   :  { %12540 = vmatpush2.bf16.msra.mxu1 %v17757_v33  ;;  %12500 = vmatprep.subr.bf16.mxu0 %v17622_v26  ;;  %v17710_v47 = vcombine.high %v9242_v10, %v9246_v30  ;;  %v9106_v36 = vld [vmem:[#allocation23 + $0x210] sm:$0xff]  ;;  %v17709_v39 = vcombine.low %v9242_v10, %v9246_v30 }
 0x9bc   :  { %12541 = vmatprep.subr.bf16.mxu1 %v17750_v60  ;;  %v9110_v14 = vld [vmem:[#allocation23 + $0x230] sm:$0xff]  ;;  %v17581_v60 = vcombine.low %v9114_v35, %v9118_v48 }
 0x9bd   :  { %v9234_v33 = vld [vmem:[#allocation23 + $0x610] sm:$0xff]  ;;  %v17574_v29 = vcombine.high %v9106_v36, %v9110_v14 }
 0x9be   :  { %12501 = vmatpush2.bf16.msra.mxu0 %v17621_v43  ;;  %v9238_v26 = vld [vmem:[#allocation23 + $0x630] sm:$0xff] }
 0x9bf   :  { %12542 = vmatpush2.bf16.msra.mxu1 %v17749_v55  ;;  %12502 = vmatprep.subr.bf16.mxu0 %v17614_v49  ;;  %v17702_v27 = vcombine.high %v9234_v33, %v9238_v26  ;;  %v9354_v20 = vld [vmem:[#allocation23 + $0x9d0] sm:$0xff]  ;;  %v17701_v51 = vcombine.low %v9234_v33, %v9238_v26 }
 0x9c0   :  { %12543 = vmatprep.subr.bf16.mxu1 %v17742_v63  ;;  %v9358_v43 = vld [vmem:[#allocation23 + $0x9f0] sm:$0xff]  ;;  %v17573_v63 = vcombine.low %v9106_v36, %v9110_v14 }
 0x9c1   :  { %v9482_v55 = vld [vmem:[#allocation23 + $0xdd0] sm:$0xff]  ;;  %v17822_v24 = vcombine.high %v9354_v20, %v9358_v43 }
 0x9c2   :  { %12503 = vmatpush2.bf16.msra.mxu0 %v17613_v28  ;;  %v9486_v49 = vld [vmem:[#allocation23 + $0xdf0] sm:$0xff] }
 0x9c3   :  { %12544 = vmatpush2.bf16.msra.mxu1 %v17741_v12  ;;  %12504 = vmatprep.subr.bf16.mxu0 %v17606_v18  ;;  %v17950_v1 = vcombine.high %v9482_v55, %v9486_v49  ;;  %v9346_v31 = vld [vmem:[#allocation23 + $0x990] sm:$0xff]  ;;  %v17821_v12 = vcombine.low %v9354_v20, %v9358_v43  ;;  %v17949_v32 = vcombine.low %v9482_v55, %v9486_v49 }
 0x9c4   :  { %12545 = vmatprep.subr.bf16.mxu1 %v17734_v4  ;;  %v9350_v28 = vld [vmem:[#allocation23 + $0x9b0] sm:$0xff] }
 0x9c5   :  { %v9474_v18 = vld [vmem:[#allocation23 + $0xd90] sm:$0xff]  ;;  %v17814_v44 = vcombine.high %v9346_v31, %v9350_v28  ;;  %v17813_v53 = vcombine.low %v9346_v31, %v9350_v28 }
 0x9c6   :  { %12505 = vmatpush2.bf16.msra.mxu0 %v17605_v41  ;;  %v9478_v4 = vld [vmem:[#allocation23 + $0xdb0] sm:$0xff] }
 0x9c7   :  { %12546 = vmatpush2.bf16.msra.mxu1 %v17733_v19  ;;  %12506 = vmatprep.subr.bf16.mxu0 %v17598_v45  ;;  %v9338_v25 = vld [vmem:[#allocation23 + $0x950] sm:$0xff]  ;;  %v17942_v19 = vcombine.high %v9474_v18, %v9478_v4 }
 0x9c8   :  { %12547 = vmatprep.subr.bf16.mxu1 %v17726_v8  ;;  %v9342_v2 = vld [vmem:[#allocation23 + $0x970] sm:$0xff] }
 0x9c9   :  { %v9466_v45 = vld [vmem:[#allocation23 + $0xd50] sm:$0xff]  ;;  %v17805_v36 = vcombine.low %v9338_v25, %v9342_v2 }
 0x9ca   :  { %12507 = vmatpush2.bf16.msra.mxu0 %v17597_v42  ;;  %v9470_v8 = vld [vmem:[#allocation23 + $0xd70] sm:$0xff]  ;;  %v17941_v42 = vcombine.low %v9474_v18, %v9478_v4 }
 0x9cb   :  { %12548 = vmatpush2.bf16.msra.mxu1 %v17725_v21  ;;  %12508 = vmatprep.subr.bf16.mxu0 %v17590_v62  ;;  %v17806_v21 = vcombine.high %v9338_v25, %v9342_v2  ;;  %v9330_v48 = vld [vmem:[#allocation23 + $0x910] sm:$0xff]  ;;  %v17933_v33 = vcombine.low %v9466_v45, %v9470_v8 }
 0x9cc   :  { %12549 = vmatprep.subr.bf16.mxu1 %v17718_v57  ;;  %v9334_v10 = vld [vmem:[#allocation23 + $0x930] sm:$0xff] }
 0x9cd   :  { %v17798_v26 = vcombine.high %v9330_v48, %v9334_v10  ;;  %v9454_v20 = vld [vmem:[#allocation23 + $0xcf0] sm:$0xff]  ;;  %v17797_v43 = vcombine.low %v9330_v48, %v9334_v10 }
 0x9ce   :  { %12509 = vmatpush2.bf16.msra.mxu0 %v17589_v9  ;;  %v9458_v9 = vld [vmem:[#allocation23 + $0xd10] sm:$0xff] }
 0x9cf   :  { %12550 = vmatpush2.bf16.msra.mxu1 %v17717_v15  ;;  %12510 = vmatprep.subr.bf16.mxu0 %v17582_v58  ;;  %v9462_v15 = vld [vmem:[#allocation23 + $0xd30] sm:$0xff] }
 0x9d0   :  { %12551 = vmatprep.subr.bf16.mxu1 %v17710_v47  ;;  %v17925_v55 = vcombine.low %v9458_v9, %v9462_v15  ;;  %v9446_v31 = vld [vmem:[#allocation23 + $0xcb0] sm:$0xff] }
 0x9d1   :  { %v9434_v25 = vld [vmem:[#allocation23 + $0xc50] sm:$0xff] }
 0x9d2   :  { %12511 = vmatpush2.bf16.msra.mxu0 %v17581_v60  ;;  %v17926_v60 = vcombine.high %v9458_v9, %v9462_v15  ;;  %v9438_v2 = vld [vmem:[#allocation23 + $0xc70] sm:$0xff] }
 0x9d3   :  { %12552 = vmatpush2.bf16.msra.mxu1 %v17709_v39  ;;  %12512 = vmatprep.subr.bf16.mxu0 %v17574_v29  ;;  %v9322_v39 = vld [vmem:[#allocation23 + $0x8d0] sm:$0xff] }
 0x9d4   :  { %12553 = vmatprep.subr.bf16.mxu1 %v17702_v27  ;;  %v9326_v29 = vld [vmem:[#allocation23 + $0x8f0] sm:$0xff] }
 0x9d5   :  { %v9450_v27 = vld [vmem:[#allocation23 + $0xcd0] sm:$0xff]  ;;  %v17790_v49 = vcombine.high %v9322_v39, %v9326_v29  ;;  %v17789_v28 = vcombine.low %v9322_v39, %v9326_v29 }
 0x9d6   :  { %12513 = vmatpush2.bf16.msra.mxu0 %v17573_v63  ;;  %v17918_v63 = vcombine.high %v9450_v27, %v9454_v20  ;;  %v9422_v48 = vld [vmem:[#allocation23 + $0xbf0] sm:$0xff] }
 0x9d7   :  { %12554 = vmatpush2.bf16.msra.mxu1 %v17701_v51  ;;  %12564 = vmatprep.subr.bf16.mxu0 %v17822_v24  ;;  %v9314_v51 = vld [vmem:[#allocation23 + $0x890] sm:$0xff] }
 0x9d8   :  { %12605 = vmatprep.subr.bf16.mxu1 %v17950_v1  ;;  %v9318_v24 = vld [vmem:[#allocation23 + $0x8b0] sm:$0xff] }
 0x9d9   :  { %v12270_v41 = vpop.f32.mrf.mxu0  ;;  %12515 = vmatmul.mubr.bf16.vlgmr.msra.gmra.mxu0 %v20381_v17  ;;  %v9442_v1 = vld [vmem:[#allocation23 + $0xc90] sm:$0xff]  ;;  %v17782_v18 = vcombine.high %v9314_v51, %v9318_v24 }
 0x9da   :  { %v12271_v50 = vadd.f32 %v12270_v41, %v20438_v16  ;;  %v12311_v34 = vpop.f32.mrf.mxu1  ;;  %12556 = vmatmul.mubr.bf16.vlgmr.msra.gmra.mxu1 %v20385_v23  ;;  %12565 = vmatpush1.bf16.msra.mxu0 %v17821_v12  ;;  %v17934_v16 = vcombine.high %v9466_v45, %v9470_v8  ;;  %v17917_v12 = vcombine.low %v9450_v27, %v9454_v20  ;;  %v9546_v10 = vld [vmem:[#allocation23 + $0xfd0] sm:$0xff] }
 0x9db   :  { %12596 = vmatprep.mubr.bf16.mxu0 %v20405_v38  ;;  %12606 = vmatpush1.bf16.msra.mxu1 %v17949_v32  ;;  %v12272_v61 = vpop.f32.mrf.mxu0  ;;  %v17910_v4 = vcombine.high %v9442_v1, %v9446_v31  ;;  %v9306_v32 = vld [vmem:[#allocation23 + $0x850] sm:$0xff]  ;;  %v17781_v41 = vcombine.low %v9314_v51, %v9318_v24  ;;  %v17902_v8 = vcombine.high %v9434_v25, %v9438_v2 }
 0x9dc   :  { %v20447_v62 = vadd.f32 %v12311_v34, %v12271_v50  ;;  %12637 = vmatprep.mubr.bf16.mxu1 %v20407_v52  ;;  %v12273_v57 = vadd.f32 %v12272_v61, %v20441_v3  ;;  %v12313_v35 = vpop.f32.mrf.mxu1  ;;  %12566 = vmatprep.subr.bf16.mxu0 %v17814_v44  ;;  %v9310_v44 = vld [vmem:[#allocation23 + $0x870] sm:$0xff] }
 0x9dd   :  { %v12274_v30 = vpop.f32.mrf.mxu0  ;;  %12607 = vmatprep.subr.bf16.mxu1 %v17942_v19  ;;  %v17909_v19 = vcombine.low %v9442_v1, %v9446_v31  ;;  %v17774_v45 = vcombine.high %v9306_v32, %v9310_v44  ;;  %v9298_v50 = vld [vmem:[#allocation23 + $0x810] sm:$0xff] }
 0x9de   :  { %v20451_v58 = vadd.f32 %v12313_v35, %v12273_v57  ;;  %v12315_v47 = vpop.f32.mrf.mxu1  ;;  %12567 = vmatpush1.bf16.msra.mxu0 %v17813_v53  ;;  %v9302_v34 = vld [vmem:[#allocation23 + $0x830] sm:$0xff]  ;;  %vm12810_vm13 = vcmp.ge.f32.partialorder %v20447_v62, 0.0 }
 0x9df   :  { %12608 = vmatpush1.bf16.msra.mxu1 %v17941_v42  ;;  %v12275_v14 = vpop.f32.mrf.mxu0  ;;  %12568 = vmatprep.subr.bf16.mxu0 %v17806_v21  ;;  %v9426_v53 = vld [vmem:[#allocation23 + $0xc10] sm:$0xff]  ;;  %v17773_v42 = vcombine.low %v9306_v32, %v9310_v44  ;;  %v17901_v21 = vcombine.low %v9434_v25, %v9438_v2  ;;  %v17766_v57 = vcombine.high %v9298_v50, %v9302_v34 }
 0x9e0   :  { %v12316_v3 = vpop.f32.mrf.mxu1  ;;  %12609 = vmatprep.subr.bf16.mxu1 %v17934_v16  ;;  %v9430_v61 = vld [vmem:[#allocation23 + $0xc30] sm:$0xff]  ;;  %v17765_v9 = vcombine.low %v9298_v50, %v9302_v34  ;;  %vm12811_vm11 = vcmp.ge.f32.partialorder %v20451_v58, 0.0 }
 0x9e1   :  { %v17894_v35 = vcombine.high %v9426_v53, %v9430_v61  ;;  %v9418_v16 = vld [vmem:[#allocation23 + $0xbd0] sm:$0xff]  ;;  %v17893_v15 = vcombine.low %v9426_v53, %v9430_v61 }
 0x9e2   :  { %12569 = vmatpush1.bf16.msra.mxu0 %v17805_v36  ;;  %v9550_v30 = vld [vmem:[#allocation23 + $0xff0] sm:$0xff]  ;;  %v17886_v47 = vcombine.high %v9418_v16, %v9422_v48 }
 0x9e3   :  { %12610 = vmatpush1.bf16.msra.mxu1 %v17933_v33  ;;  %12570 = vmatprep.subr.bf16.mxu0 %v17798_v26  ;;  %v18014_v36 = vcombine.high %v9546_v10, %v9550_v30  ;;  %v9410_v14 = vld [vmem:[#allocation23 + $0xb90] sm:$0xff]  ;;  %v18013_v39 = vcombine.low %v9546_v10, %v9550_v30 }
 0x9e4   :  { %12611 = vmatprep.subr.bf16.mxu1 %v17926_v60  ;;  %v9414_v33 = vld [vmem:[#allocation23 + $0xbb0] sm:$0xff]  ;;  %v17885_v60 = vcombine.low %v9418_v16, %v9422_v48 }
 0x9e5   :  { %v9538_v26 = vld [vmem:[#allocation23 + $0xf90] sm:$0xff]  ;;  %v17878_v29 = vcombine.high %v9410_v14, %v9414_v33 }
 0x9e6   :  { %12571 = vmatpush1.bf16.msra.mxu0 %v17797_v43  ;;  %v9542_v3 = vld [vmem:[#allocation23 + $0xfb0] sm:$0xff] }
 0x9e7   :  { %12612 = vmatpush1.bf16.msra.mxu1 %v17925_v55  ;;  %12572 = vmatprep.subr.bf16.mxu0 %v17790_v49  ;;  %v18006_v27 = vcombine.high %v9538_v26, %v9542_v3  ;;  %v9402_v20 = vld [vmem:[#allocation23 + $0xb50] sm:$0xff]  ;;  %v18005_v51 = vcombine.low %v9538_v26, %v9542_v3 }
 0x9e8   :  { %12613 = vmatprep.subr.bf16.mxu1 %v17918_v63  ;;  %v9406_v43 = vld [vmem:[#allocation23 + $0xb70] sm:$0xff]  ;;  %v17877_v63 = vcombine.low %v9410_v14, %v9414_v33 }
 0x9e9   :  { %v9530_v55 = vld [vmem:[#allocation23 + $0xf50] sm:$0xff]  ;;  %v17870_v24 = vcombine.high %v9402_v20, %v9406_v43 }
 0x9ea   :  { %12573 = vmatpush1.bf16.msra.mxu0 %v17789_v28  ;;  %v9534_v49 = vld [vmem:[#allocation23 + $0xf70] sm:$0xff] }
 0x9eb   :  { %12614 = vmatpush1.bf16.msra.mxu1 %v17917_v12  ;;  %12574 = vmatprep.subr.bf16.mxu0 %v17782_v18  ;;  %v17998_v1 = vcombine.high %v9530_v55, %v9534_v49  ;;  %v9394_v31 = vld [vmem:[#allocation23 + $0xb10] sm:$0xff]  ;;  %v17997_v32 = vcombine.low %v9530_v55, %v9534_v49  ;;  %v9099_v49 = vld [vmem:[#allocation23 + $0x1d8] sm:$0xff] }
 0x9ec   :  { %12615 = vmatprep.subr.bf16.mxu1 %v17910_v4  ;;  %v9398_v28 = vld [vmem:[#allocation23 + $0xb30] sm:$0xff]  ;;  %v17869_v4 = vcombine.low %v9402_v20, %v9406_v43 }
 0x9ed   :  { %v9522_v12 = vld [vmem:[#allocation23 + $0xf10] sm:$0xff]  ;;  %v17862_v44 = vcombine.high %v9394_v31, %v9398_v28 }
 0x9ee   :  { %12575 = vmatpush1.bf16.msra.mxu0 %v17781_v41  ;;  %v9526_v18 = vld [vmem:[#allocation23 + $0xf30] sm:$0xff] }
 0x9ef   :  { %12616 = vmatpush1.bf16.msra.mxu1 %v17909_v19  ;;  %12576 = vmatprep.subr.bf16.mxu0 %v17774_v45  ;;  %v17990_v25 = vcombine.high %v9522_v12, %v9526_v18  ;;  %v9386_v2 = vld [vmem:[#allocation23 + $0xad0] sm:$0xff]  ;;  %v17989_v50 = vcombine.low %v9522_v12, %v9526_v18  ;;  %v9091_v18 = vld [vmem:[#allocation23 + $0x198] sm:$0xff] }
 0x9f0   :  { %12617 = vmatprep.subr.bf16.mxu1 %v17902_v8  ;;  %v9390_v41 = vld [vmem:[#allocation23 + $0xaf0] sm:$0xff]  ;;  %v17861_v8 = vcombine.low %v9394_v31, %v9398_v28 }
 0x9f1   :  { %v9514_v19 = vld [vmem:[#allocation23 + $0xed0] sm:$0xff]  ;;  %v17854_v34 = vcombine.high %v9386_v2, %v9390_v41 }
 0x9f2   :  { %12577 = vmatpush1.bf16.msra.mxu0 %v17773_v42  ;;  %v9518_v45 = vld [vmem:[#allocation23 + $0xef0] sm:$0xff] }
 0x9f3   :  { %12618 = vmatpush1.bf16.msra.mxu1 %v17901_v21  ;;  %12578 = vmatprep.subr.bf16.mxu0 %v17766_v57  ;;  %v17982_v53 = vcombine.high %v9514_v19, %v9518_v45  ;;  %v9378_v61 = vld [vmem:[#allocation23 + $0xa90] sm:$0xff]  ;;  %v17981_v16 = vcombine.low %v9514_v19, %v9518_v45  ;;  %v9569_v19 = vrot.slane %v20429_v54, %v20132_v0 }
 0x9f4   :  { %12619 = vmatprep.subr.bf16.mxu1 %v17894_v35  ;;  %v9382_v42 = vld [vmem:[#allocation23 + $0xab0] sm:$0xff]  ;;  %v17853_v35 = vcombine.low %v9386_v2, %v9390_v41  ;;  %v9223_v2 = vld [vmem:[#allocation23 + $0x5b8] sm:$0xff] }
 0x9f5   :  { %v9506_v21 = vld [vmem:[#allocation23 + $0xe90] sm:$0xff]  ;;  %v17846_v48 = vcombine.high %v9378_v61, %v9382_v42 }
 0x9f6   :  { %12579 = vmatpush1.bf16.msra.mxu0 %v17765_v9  ;;  %v9510_v57 = vld [vmem:[#allocation23 + $0xeb0] sm:$0xff] }
 0x9f7   :  { %12620 = vmatpush1.bf16.msra.mxu1 %v17893_v15  ;;  %12580 = vmatprep.subr.bf16.mxu0 %v17886_v47  ;;  %v17974_v10 = vcombine.high %v9506_v21, %v9510_v57  ;;  %v9370_v30 = vld [vmem:[#allocation23 + $0xa50] sm:$0xff]  ;;  %v17973_v14 = vcombine.low %v9506_v21, %v9510_v57 }
 0x9f8   :  { %12621 = vmatprep.subr.bf16.mxu1 %v18014_v36  ;;  %v9374_v9 = vld [vmem:[#allocation23 + $0xa70] sm:$0xff]  ;;  %v17845_v36 = vcombine.low %v9378_v61, %v9382_v42  ;;  %v9211_v61 = vld [vmem:[#allocation23 + $0x558] sm:$0xff] }
 0x9f9   :  { %v9498_v15 = vld [vmem:[#allocation23 + $0xe50] sm:$0xff]  ;;  %v17838_v33 = vcombine.high %v9370_v30, %v9374_v9  ;;  %v9215_v42 = vld [vmem:[#allocation23 + $0x578] sm:$0xff] }
 0x9fa   :  { %12581 = vmatpush2.bf16.msra.mxu0 %v17885_v60  ;;  %v9502_v47 = vld [vmem:[#allocation23 + $0xe70] sm:$0xff] }
 0x9fb   :  { %12622 = vmatpush2.bf16.msra.mxu1 %v18013_v39  ;;  %12582 = vmatprep.subr.bf16.mxu0 %v17878_v29  ;;  %v17966_v26 = vcombine.high %v9498_v15, %v9502_v47  ;;  %v9362_v3 = vld [vmem:[#allocation23 + $0xa10] sm:$0xff]  ;;  %v17965_v20 = vcombine.low %v9498_v15, %v9502_v47  ;;  %v17680_v15 = vcombine.high %v9211_v61, %v9215_v42  ;;  %v9075_v47 = vld [vmem:[#allocation23 + $0x118] sm:$0xff] }
 0x9fc   :  { %12623 = vmatprep.subr.bf16.mxu1 %v18006_v27  ;;  %v9366_v60 = vld [vmem:[#allocation23 + $0xa30] sm:$0xff]  ;;  %v17837_v27 = vcombine.low %v9370_v30, %v9374_v9 }
 0x9fd   :  { %v9490_v39 = vld [vmem:[#allocation23 + $0xe10] sm:$0xff]  ;;  %v17830_v43 = vcombine.high %v9362_v3, %v9366_v60 }
 0x9fe   :  { %12583 = vmatpush2.bf16.msra.mxu0 %v17877_v63  ;;  %v9494_v29 = vld [vmem:[#allocation23 + $0xe30] sm:$0xff]  ;;  %v9103_v63 = vld [vmem:[#allocation23 + $0x1f8] sm:$0xff] }
 0x9ff   :  { %12624 = vmatpush2.bf16.msra.mxu1 %v18005_v51  ;;  %12584 = vmatprep.subr.bf16.mxu0 %v17870_v24  ;;  %v17958_v55 = vcombine.high %v9490_v39, %v9494_v29  ;;  %v9227_v51 = vld [vmem:[#allocation23 + $0x5d8] sm:$0xff]  ;;  %v17957_v31 = vcombine.low %v9490_v39, %v9494_v29  ;;  %v17568_v28 = vcombine.high %v9099_v49, %v9103_v63 }
 0xa00   :  { %12625 = vmatprep.subr.bf16.mxu1 %v17998_v1  ;;  %v9231_v24 = vld [vmem:[#allocation23 + $0x5f8] sm:$0xff]  ;;  %v17829_v1 = vcombine.low %v9362_v3, %v9366_v60  ;;  %v17679_v29 = vcombine.low %v9211_v61, %v9215_v42 }
 0xa01   :  { %v17696_v12 = vcombine.high %v9227_v51, %v9231_v24  ;;  %v17695_v41 = vcombine.low %v9227_v51, %v9231_v24  ;;  %v9043_v42 = vld [vmem:[#allocation23 + $0x18] sm:$0xff] }
 0xa02   :  { %12585 = vmatpush2.bf16.msra.mxu0 %v17869_v4  ;;  %v9095_v4 = vld [vmem:[#allocation23 + $0x1b8] sm:$0xff] }
 0xa03   :  { %12626 = vmatpush2.bf16.msra.mxu1 %v17997_v32  ;;  %12586 = vmatprep.subr.bf16.mxu0 %v17862_v44  ;;  %v9565_v32 = vrot.slane %v20429_v54, %v20111_v56  ;;  %v17567_v44 = vcombine.low %v9099_v49, %v9103_v63  ;;  %v17560_v45 = vcombine.high %v9091_v18, %v9095_v4  ;;  %v9195_v49 = vld [vmem:[#allocation23 + $0x4d8] sm:$0xff] }
 0xa04   :  { %12627 = vmatprep.subr.bf16.mxu1 %v17990_v25  ;;  %v9219_v25 = vld [vmem:[#allocation23 + $0x598] sm:$0xff] }
 0xa05   :  { %v17687_v54 = vcombine.low %v9219_v25, %v9223_v2  ;;  %v9199_v63 = vld [vmem:[#allocation23 + $0x4f8] sm:$0xff] }
 0xa06   :  { %12587 = vmatpush2.bf16.msra.mxu0 %v17861_v8  ;;  %v9083_v8 = vld [vmem:[#allocation23 + $0x158] sm:$0xff] }
 0xa07   :  { %12628 = vmatpush2.bf16.msra.mxu1 %v17989_v50  ;;  %12588 = vmatprep.subr.bf16.mxu0 %v17854_v34  ;;  %v9087_v50 = vld [vmem:[#allocation23 + $0x178] sm:$0xff] }
 0xa08   :  { %12629 = vmatprep.subr.bf16.mxu1 %v17982_v53  ;;  %v17688_v53 = vcombine.high %v9219_v25, %v9223_v2  ;;  %v17551_v60 = vcombine.low %v9083_v8, %v9087_v50 }
 0xa0a   :  { %12589 = vmatpush2.bf16.msra.mxu0 %v17853_v35  ;;  %v17559_v35 = vcombine.low %v9091_v18, %v9095_v4  ;;  %v9187_v18 = vld [vmem:[#allocation23 + $0x498] sm:$0xff] }
 0xa0b   :  { %12630 = vmatpush2.bf16.msra.mxu1 %v17981_v16  ;;  %12590 = vmatprep.subr.bf16.mxu0 %v17846_v48  ;;  %v17552_v48 = vcombine.high %v9083_v8, %v9087_v50  ;;  %v9191_v4 = vld [vmem:[#allocation23 + $0x4b8] sm:$0xff] }
 0xa0c   :  { %12631 = vmatprep.subr.bf16.mxu1 %v17974_v10  ;;  %v17656_v2 = vcombine.high %v9187_v18, %v9191_v4  ;;  %v9183_v8 = vld [vmem:[#allocation23 + $0x478] sm:$0xff] }
 0xa0e   :  { %12591 = vmatpush2.bf16.msra.mxu0 %v17845_v36  ;;  %v9079_v36 = vld [vmem:[#allocation23 + $0x138] sm:$0xff] }
 0xa0f   :  { %12632 = vmatpush2.bf16.msra.mxu1 %v17973_v14  ;;  %12592 = vmatprep.subr.bf16.mxu0 %v17838_v33  ;;  %v9203_v33 = vld [vmem:[#allocation23 + $0x518] sm:$0xff]  ;;  %v17543_v51 = vcombine.low %v9075_v47, %v9079_v36 }
 0xa10   :  { %12633 = vmatprep.subr.bf16.mxu1 %v17966_v26  ;;  %v9207_v26 = vld [vmem:[#allocation23 + $0x538] sm:$0xff] }
 0xa11   :  { %v17671_v24 = vcombine.low %v9203_v33, %v9207_v26 }
 0xa12   :  { %12593 = vmatpush2.bf16.msra.mxu0 %v17837_v27 }
 0xa13   :  { %12634 = vmatpush2.bf16.msra.mxu1 %v17965_v20  ;;  %12594 = vmatprep.subr.bf16.mxu0 %v17830_v43  ;;  %v17672_v20 = vcombine.high %v9203_v33, %v9207_v26  ;;  %v9067_v43 = vld [vmem:[#allocation23 + $0xd8] sm:$0xff] }
 0xa14   :  { %12635 = vmatprep.subr.bf16.mxu1 %v17958_v55  ;;  %v9071_v55 = vld [vmem:[#allocation23 + $0xf8] sm:$0xff] }
 0xa16   :  { %12595 = vmatpush2.bf16.msra.mxu0 %v17829_v1  ;;  %v17536_v1 = vcombine.high %v9067_v43, %v9071_v55 }
 0xa17   :  { %12636 = vmatpush2.bf16.msra.mxu1 %v17957_v31  ;;  %12646 = vmatprep.subr.bf16.mxu0 %v17568_v28  ;;  %v17664_v31 = vcombine.high %v9195_v49, %v9199_v63  ;;  %v9059_v28 = vld [vmem:[#allocation23 + $0x98] sm:$0xff] }
 0xa18   :  { %12687 = vmatprep.subr.bf16.mxu1 %v17696_v12  ;;  %v9063_v12 = vld [vmem:[#allocation23 + $0xb8] sm:$0xff] }
 0xa19   :  { %v12352_v34 = vpop.f32.mrf.mxu0  ;;  %12597 = vmatmul.mubr.bf16.vlgmr.msra.gmra.mxu0 %v20417_v11  ;;  %v17528_v25 = vcombine.high %v9059_v28, %v9063_v12  ;;  %v17527_v50 = vcombine.low %v9059_v28, %v9063_v12 }
 0xa1a   :  { %v12353_v21 = vadd.f32 %v12352_v34, %v9565_v32  ;;  %v12393_v57 = vpop.f32.mrf.mxu1  ;;  %12638 = vmatmul.mubr.bf16.vlgmr.msra.gmra.mxu1 %v20419_v5  ;;  %12647 = vmatpush1.bf16.msra.mxu0 %v17567_v44  ;;  %v17535_v32 = vcombine.low %v9067_v43, %v9071_v55  ;;  %v17663_v44 = vcombine.low %v9195_v49, %v9199_v63  ;;  %v9147_v49 = vld [vmem:[#allocation23 + $0x358] sm:$0xff] }
 0xa1b   :  { %12678 = vmatprep.mubr.bf16.mxu0 %v20379_v7  ;;  %12688 = vmatpush1.bf16.msra.mxu1 %v17695_v41  ;;  %v12354_v16 = vpop.f32.mrf.mxu0  ;;  %v9051_v41 = vld [vmem:[#allocation23 + $0x58] sm:$0xff]  ;;  %v17655_v34 = vcombine.low %v9187_v18, %v9191_v4 }
 0xa1c   :  { %v20460_v10 = vadd.f32 %v12393_v57, %v12353_v21  ;;  %12719 = vmatprep.mubr.bf16.mxu1 %v20383_v22  ;;  %v12355_v30 = vadd.f32 %v12354_v16, %v9569_v19  ;;  %v12395_v9 = vpop.f32.mrf.mxu1  ;;  %12648 = vmatprep.subr.bf16.mxu0 %v17560_v45  ;;  %v17544_v22 = vcombine.high %v9075_v47, %v9079_v36  ;;  %v9055_v19 = vld [vmem:[#allocation23 + $0x78] sm:$0xff] }
 0xa1d   :  { %v12356_v14 = vpop.f32.mrf.mxu0  ;;  %12689 = vmatprep.subr.bf16.mxu1 %v17688_v53  ;;  %v9179_v45 = vld [vmem:[#allocation23 + $0x458] sm:$0xff]  ;;  %v17520_v53 = vcombine.high %v9051_v41, %v9055_v19  ;;  %v17519_v16 = vcombine.low %v9051_v41, %v9055_v19 }
 0xa1e   :  { %v20463_v3 = vadd.f32 %v12395_v9, %v12355_v30  ;;  %v12397_v7 = vpop.f32.mrf.mxu1  ;;  %12649 = vmatpush1.bf16.msra.mxu0 %v17559_v35  ;;  %v17648_v61 = vcombine.high %v9179_v45, %v9183_v8  ;;  %v9047_v21 = vld [vmem:[#allocation23 + $0x38] sm:$0xff] }
 0xa1f   :  { %12690 = vmatpush1.bf16.msra.mxu1 %v17687_v54  ;;  %v12357_v39 = vpop.f32.mrf.mxu0  ;;  %12650 = vmatprep.subr.bf16.mxu0 %v17552_v48  ;;  %v9171_v57 = vld [vmem:[#allocation23 + $0x418] sm:$0xff]  ;;  %v17647_v54 = vcombine.low %v9179_v45, %v9183_v8  ;;  %v17512_v48 = vcombine.high %v9043_v42, %v9047_v21  ;;  %v17511_v14 = vcombine.low %v9043_v42, %v9047_v21 }
 0xa20   :  { %v12398_v27 = vpop.f32.mrf.mxu1  ;;  %12691 = vmatprep.subr.bf16.mxu1 %v17680_v15  ;;  %v9175_v35 = vld [vmem:[#allocation23 + $0x438] sm:$0xff] }
 0xa21   :  { %v17640_v30 = vcombine.high %v9171_v57, %v9175_v35  ;;  %v9163_v9 = vld [vmem:[#allocation23 + $0x3d8] sm:$0xff]  ;;  %v17639_v33 = vcombine.low %v9171_v57, %v9175_v35 }
 0xa22   :  { %12651 = vmatpush1.bf16.msra.mxu0 %v17551_v60  ;;  %v9167_v15 = vld [vmem:[#allocation23 + $0x3f8] sm:$0xff] }
 0xa23   :  { %12692 = vmatpush1.bf16.msra.mxu1 %v17679_v29  ;;  %12652 = vmatprep.subr.bf16.mxu0 %v17544_v22  ;;  %v9291_v47 = vld [vmem:[#allocation23 + $0x7d8] sm:$0xff]  ;;  %v17632_v26 = vcombine.high %v9163_v9, %v9167_v15  ;;  %v17631_v27 = vcombine.low %v9163_v9, %v9167_v15 }
 0xa24   :  { %12693 = vmatprep.subr.bf16.mxu1 %v17672_v20  ;;  %v9295_v36 = vld [vmem:[#allocation23 + $0x7f8] sm:$0xff] }
 0xa25   :  { %v17760_v7 = vcombine.high %v9291_v47, %v9295_v36  ;;  %v9155_v60 = vld [vmem:[#allocation23 + $0x398] sm:$0xff]  ;;  %v17759_v20 = vcombine.low %v9291_v47, %v9295_v36 }
 0xa26   :  { %12653 = vmatpush1.bf16.msra.mxu0 %v17543_v51  ;;  %v9159_v39 = vld [vmem:[#allocation23 + $0x3b8] sm:$0xff] }
 0xa27   :  { %12694 = vmatpush1.bf16.msra.mxu1 %v17671_v24  ;;  %12654 = vmatprep.subr.bf16.mxu0 %v17536_v1  ;;  %v9283_v29 = vld [vmem:[#allocation23 + $0x798] sm:$0xff]  ;;  %v17624_v43 = vcombine.high %v9155_v60, %v9159_v39  ;;  %v17623_v1 = vcombine.low %v9155_v60, %v9159_v39 }
 0xa28   :  { %12695 = vmatprep.subr.bf16.mxu1 %v17664_v31  ;;  %v9287_v22 = vld [vmem:[#allocation23 + $0x7b8] sm:$0xff] }
 0xa29   :  { %v17752_v55 = vcombine.high %v9283_v29, %v9287_v22  ;;  %v9151_v63 = vld [vmem:[#allocation23 + $0x378] sm:$0xff]  ;;  %v17751_v31 = vcombine.low %v9283_v29, %v9287_v22 }
 0xa2a   :  { %12655 = vmatpush1.bf16.msra.mxu0 %v17535_v32  ;;  %v9275_v51 = vld [vmem:[#allocation23 + $0x758] sm:$0xff]  ;;  %v17616_v28 = vcombine.high %v9147_v49, %v9151_v63 }
 0xa2b   :  { %12696 = vmatpush1.bf16.msra.mxu1 %v17663_v44  ;;  %12656 = vmatprep.subr.bf16.mxu0 %v17528_v25  ;;  %v9279_v24 = vld [vmem:[#allocation23 + $0x778] sm:$0xff]  ;;  %v17615_v25 = vcombine.low %v9147_v49, %v9151_v63 }
 0xa2c   :  { %12697 = vmatprep.subr.bf16.mxu1 %v17656_v2  ;;  %v17744_v12 = vcombine.high %v9275_v51, %v9279_v24  ;;  %v9139_v18 = vld [vmem:[#allocation23 + $0x318] sm:$0xff]  ;;  %v17743_v2 = vcombine.low %v9275_v51, %v9279_v24 }
 0xa2d   :  { %v9143_v4 = vld [vmem:[#allocation23 + $0x338] sm:$0xff] }
 0xa2e   :  { %12657 = vmatpush1.bf16.msra.mxu0 %v17527_v50  ;;  %v9267_v32 = vld [vmem:[#allocation23 + $0x718] sm:$0xff]  ;;  %v17608_v41 = vcombine.high %v9139_v18, %v9143_v4 }
 0xa2f   :  { %12698 = vmatpush1.bf16.msra.mxu1 %v17655_v34  ;;  %12658 = vmatprep.subr.bf16.mxu0 %v17520_v53  ;;  %v9271_v44 = vld [vmem:[#allocation23 + $0x738] sm:$0xff]  ;;  %v17607_v53 = vcombine.low %v9139_v18, %v9143_v4 }
 0xa30   :  { %12699 = vmatprep.subr.bf16.mxu1 %v17648_v61  ;;  %v17736_v19 = vcombine.high %v9267_v32, %v9271_v44  ;;  %v9131_v45 = vld [vmem:[#allocation23 + $0x2d8] sm:$0xff]  ;;  %v17735_v61 = vcombine.low %v9267_v32, %v9271_v44 }
 0xa31   :  { %v9135_v8 = vld [vmem:[#allocation23 + $0x2f8] sm:$0xff] }
 0xa32   :  { %12659 = vmatpush1.bf16.msra.mxu0 %v17519_v16  ;;  %v9259_v50 = vld [vmem:[#allocation23 + $0x6d8] sm:$0xff]  ;;  %v17600_v42 = vcombine.high %v9131_v45, %v9135_v8 }
 0xa33   :  { %12700 = vmatpush1.bf16.msra.mxu1 %v17647_v54  ;;  %12660 = vmatprep.subr.bf16.mxu0 %v17512_v48  ;;  %v9263_v34 = vld [vmem:[#allocation23 + $0x6f8] sm:$0xff]  ;;  %v17599_v48 = vcombine.low %v9131_v45, %v9135_v8 }
 0xa34   :  { %12701 = vmatprep.subr.bf16.mxu1 %v17640_v30  ;;  %v17728_v21 = vcombine.high %v9259_v50, %v9263_v34  ;;  %v9123_v57 = vld [vmem:[#allocation23 + $0x298] sm:$0xff]  ;;  %v17727_v30 = vcombine.low %v9259_v50, %v9263_v34 }
 0xa35   :  { %v9127_v35 = vld [vmem:[#allocation23 + $0x2b8] sm:$0xff] }
 0xa36   :  { %12661 = vmatpush1.bf16.msra.mxu0 %v17511_v14  ;;  %v9251_v16 = vld [vmem:[#allocation23 + $0x698] sm:$0xff]  ;;  %v17592_v9 = vcombine.high %v9123_v57, %v9127_v35 }
 0xa37   :  { %12702 = vmatpush1.bf16.msra.mxu1 %v17639_v33  ;;  %12662 = vmatprep.subr.bf16.mxu0 %v17632_v26  ;;  %v9255_v54 = vld [vmem:[#allocation23 + $0x6b8] sm:$0xff]  ;;  %v17591_v26 = vcombine.low %v9123_v57, %v9127_v35 }
 0xa38   :  { %12703 = vmatprep.subr.bf16.mxu1 %v17760_v7  ;;  %v17720_v15 = vcombine.high %v9251_v16, %v9255_v54  ;;  %v9115_v47 = vld [vmem:[#allocation23 + $0x258] sm:$0xff]  ;;  %v17719_v7 = vcombine.low %v9251_v16, %v9255_v54 }
 0xa39   :  { %v9119_v36 = vld [vmem:[#allocation23 + $0x278] sm:$0xff] }
 0xa3a   :  { %12663 = vmatpush2.bf16.msra.mxu0 %v17631_v27  ;;  %v9243_v14 = vld [vmem:[#allocation23 + $0x658] sm:$0xff]  ;;  %v17584_v60 = vcombine.high %v9115_v47, %v9119_v36 }
 0xa3b   :  { %12704 = vmatpush2.bf16.msra.mxu1 %v17759_v20  ;;  %12664 = vmatprep.subr.bf16.mxu0 %v17624_v43  ;;  %v9247_v33 = vld [vmem:[#allocation23 + $0x678] sm:$0xff]  ;;  %v17583_v43 = vcombine.low %v9115_v47, %v9119_v36 }
 0xa3c   :  { %12705 = vmatprep.subr.bf16.mxu1 %v17752_v55  ;;  %v17712_v39 = vcombine.high %v9243_v14, %v9247_v33  ;;  %v9107_v29 = vld [vmem:[#allocation23 + $0x218] sm:$0xff]  ;;  %v17711_v55 = vcombine.low %v9243_v14, %v9247_v33 }
 0xa3d   :  { %v9111_v22 = vld [vmem:[#allocation23 + $0x238] sm:$0xff] }
 0xa3e   :  { %12665 = vmatpush2.bf16.msra.mxu0 %v17623_v1  ;;  %v9235_v27 = vld [vmem:[#allocation23 + $0x618] sm:$0xff]  ;;  %v17576_v49 = vcombine.high %v9107_v29, %v9111_v22 }
 0xa3f   :  { %12706 = vmatpush2.bf16.msra.mxu1 %v17751_v31  ;;  %12666 = vmatprep.subr.bf16.mxu0 %v17616_v28  ;;  %v9239_v20 = vld [vmem:[#allocation23 + $0x638] sm:$0xff]  ;;  %v17575_v28 = vcombine.low %v9107_v29, %v9111_v22 }
 0xa40   :  { %12707 = vmatprep.subr.bf16.mxu1 %v17744_v12  ;;  %v17704_v63 = vcombine.high %v9235_v27, %v9239_v20  ;;  %v9355_v51 = vld [vmem:[#allocation23 + $0x9d8] sm:$0xff]  ;;  %v17703_v12 = vcombine.low %v9235_v27, %v9239_v20 }
 0xa41   :  { %v9359_v24 = vld [vmem:[#allocation23 + $0x9f8] sm:$0xff] }
 0xa42   :  { %12667 = vmatpush2.bf16.msra.mxu0 %v17615_v25  ;;  %v9483_v1 = vld [vmem:[#allocation23 + $0xdd8] sm:$0xff]  ;;  %v17824_v18 = vcombine.high %v9355_v51, %v9359_v24  ;;  %v17823_v25 = vcombine.low %v9355_v51, %v9359_v24 }
 0xa43   :  { %12708 = vmatpush2.bf16.msra.mxu1 %v17743_v2  ;;  %12668 = vmatprep.subr.bf16.mxu0 %v17608_v41  ;;  %v9487_v31 = vld [vmem:[#allocation23 + $0xdf8] sm:$0xff] }
 0xa44   :  { %12709 = vmatprep.subr.bf16.mxu1 %v17736_v19  ;;  %v17952_v4 = vcombine.high %v9483_v1, %v9487_v31  ;;  %v9347_v32 = vld [vmem:[#allocation23 + $0x998] sm:$0xff]  ;;  %v17951_v19 = vcombine.low %v9483_v1, %v9487_v31 }
 0xa45   :  { %v9351_v44 = vld [vmem:[#allocation23 + $0x9b8] sm:$0xff] }
 0xa46   :  { %12669 = vmatpush2.bf16.msra.mxu0 %v17607_v53  ;;  %v9475_v2 = vld [vmem:[#allocation23 + $0xd98] sm:$0xff]  ;;  %v17816_v45 = vcombine.high %v9347_v32, %v9351_v44  ;;  %v17815_v35 = vcombine.low %v9347_v32, %v9351_v44 }
 0xa47   :  { %12710 = vmatpush2.bf16.msra.mxu1 %v17735_v61  ;;  %12670 = vmatprep.subr.bf16.mxu0 %v17600_v42  ;;  %v9479_v41 = vld [vmem:[#allocation23 + $0xdb8] sm:$0xff] }
 0xa48   :  { %12711 = vmatprep.subr.bf16.mxu1 %v17728_v21  ;;  %v9339_v8 = vld [vmem:[#allocation23 + $0x958] sm:$0xff]  ;;  %v17944_v53 = vcombine.high %v9475_v2, %v9479_v41  ;;  %v17943_v54 = vcombine.low %v9475_v2, %v9479_v41 }
 0xa49   :  { %v9343_v50 = vld [vmem:[#allocation23 + $0x978] sm:$0xff] }
 0xa4a   :  { %12671 = vmatpush2.bf16.msra.mxu0 %v17599_v48  ;;  %v9467_v61 = vld [vmem:[#allocation23 + $0xd58] sm:$0xff]  ;;  %v17808_v48 = vcombine.high %v9339_v8, %v9343_v50  ;;  %v17807_v14 = vcombine.low %v9339_v8, %v9343_v50 }
 0xa4b   :  { %12712 = vmatpush2.bf16.msra.mxu1 %v17727_v30  ;;  %12672 = vmatprep.subr.bf16.mxu0 %v17592_v9  ;;  %v9471_v42 = vld [vmem:[#allocation23 + $0xd78] sm:$0xff] }
 0xa4c   :  { %12713 = vmatprep.subr.bf16.mxu1 %v17720_v15  ;;  %v9331_v9 = vld [vmem:[#allocation23 + $0x918] sm:$0xff] }
 0xa4d   :  { %v9335_v15 = vld [vmem:[#allocation23 + $0x938] sm:$0xff] }
 0xa4e   :  { %12673 = vmatpush2.bf16.msra.mxu0 %v17591_v26  ;;  %v9459_v47 = vld [vmem:[#allocation23 + $0xd18] sm:$0xff]  ;;  %v17935_v26 = vcombine.low %v9467_v61, %v9471_v42  ;;  %v17799_v20 = vcombine.low %v9331_v9, %v9335_v15 }
 0xa4f   :  { %12714 = vmatpush2.bf16.msra.mxu1 %v17719_v7  ;;  %12674 = vmatprep.subr.bf16.mxu0 %v17584_v60  ;;  %v9463_v36 = vld [vmem:[#allocation23 + $0xd38] sm:$0xff]  ;;  %v17800_v7 = vcombine.high %v9331_v9, %v9335_v15 }
 0xa50   :  { %12715 = vmatprep.subr.bf16.mxu1 %v17712_v39  ;;  %v9323_v39 = vld [vmem:[#allocation23 + $0x8d8] sm:$0xff] }
 0xa51   :  { %v9327_v29 = vld [vmem:[#allocation23 + $0x8f8] sm:$0xff] }
 0xa52   :  { %12675 = vmatpush2.bf16.msra.mxu0 %v17583_v43  ;;  %v9451_v22 = vld [vmem:[#allocation23 + $0xcd8] sm:$0xff]  ;;  %v17927_v43 = vcombine.low %v9459_v47, %v9463_v36  ;;  %v17791_v31 = vcombine.low %v9323_v39, %v9327_v29 }
 0xa53   :  { %12716 = vmatpush2.bf16.msra.mxu1 %v17711_v55  ;;  %12676 = vmatprep.subr.bf16.mxu0 %v17576_v49  ;;  %v9455_v27 = vld [vmem:[#allocation23 + $0xcf8] sm:$0xff]  ;;  %v17792_v55 = vcombine.high %v9323_v39, %v9327_v29 }
 0xa54   :  { %12717 = vmatprep.subr.bf16.mxu1 %v17704_v63  ;;  %v17920_v49 = vcombine.high %v9451_v22, %v9455_v27  ;;  %v9315_v63 = vld [vmem:[#allocation23 + $0x898] sm:$0xff] }
 0xa55   :  { %v9319_v51 = vld [vmem:[#allocation23 + $0x8b8] sm:$0xff] }
 0xa56   :  { %12677 = vmatpush2.bf16.msra.mxu0 %v17575_v28  ;;  %v9443_v24 = vld [vmem:[#allocation23 + $0xc98] sm:$0xff]  ;;  %v17919_v28 = vcombine.low %v9451_v22, %v9455_v27  ;;  %v17783_v2 = vcombine.low %v9315_v63, %v9319_v51 }
 0xa57   :  { %12718 = vmatpush2.bf16.msra.mxu1 %v17703_v12  ;;  %12728 = vmatprep.subr.bf16.mxu0 %v17824_v18  ;;  %v9447_v1 = vld [vmem:[#allocation23 + $0xcb8] sm:$0xff]  ;;  %v17784_v12 = vcombine.high %v9315_v63, %v9319_v51 }
 0xa58   :  { %12769 = vmatprep.subr.bf16.mxu1 %v17952_v4  ;;  %v17912_v18 = vcombine.high %v9443_v24, %v9447_v1  ;;  %v9307_v4 = vld [vmem:[#allocation23 + $0x858] sm:$0xff]  ;;  %v17911_v41 = vcombine.low %v9443_v24, %v9447_v1 }
 0xa59   :  { %v12434_v34 = vpop.f32.mrf.mxu0  ;;  %12679 = vmatmul.mubr.bf16.vlgmr.msra.gmra.mxu0 %v20381_v17  ;;  %v9311_v32 = vld [vmem:[#allocation23 + $0x878] sm:$0xff] }
 0xa5a   :  { %v12435_v21 = vadd.f32 %v12434_v34, %v20460_v10  ;;  %v12475_v57 = vpop.f32.mrf.mxu1  ;;  %12720 = vmatmul.mubr.bf16.vlgmr.msra.gmra.mxu1 %v20385_v23  ;;  %12729 = vmatpush1.bf16.msra.mxu0 %v17823_v25  ;;  %v17936_v10 = vcombine.high %v9467_v61, %v9471_v42  ;;  %v9435_v44 = vld [vmem:[#allocation23 + $0xc58] sm:$0xff]  ;;  %v17775_v61 = vcombine.low %v9307_v4, %v9311_v32 }
 0xa5b   :  { %12760 = vmatprep.mubr.bf16.mxu0 %v20405_v38  ;;  %12770 = vmatpush1.bf16.msra.mxu1 %v17951_v19  ;;  %v20469_v16 = vpop.f32.mrf.mxu0  ;;  %v9439_v25 = vld [vmem:[#allocation23 + $0xc78] sm:$0xff]  ;;  %v17776_v19 = vcombine.high %v9307_v4, %v9311_v32 }
 0xa5c   :  { %v20471_v30 = vadd.f32 %v12475_v57, %v12435_v21  ;;  %12801 = vmatprep.mubr.bf16.mxu1 %v20407_v52  ;;  %v20474_v17 = vpop.f32.mrf.mxu1  ;;  %12730 = vmatprep.subr.bf16.mxu0 %v17816_v45  ;;  %v17928_v52 = vcombine.high %v9459_v47, %v9463_v36  ;;  %v17904_v45 = vcombine.high %v9435_v44, %v9439_v25  ;;  %v9299_v8 = vld [vmem:[#allocation23 + $0x818] sm:$0xff] }
 0xa5d   :  { %v12438_v23 = vpop.f32.mrf.mxu0  ;;  %12771 = vmatprep.subr.bf16.mxu1 %v17944_v53  ;;  %v9303_v50 = vld [vmem:[#allocation23 + $0x838] sm:$0xff]  ;;  %v17903_v42 = vcombine.low %v9435_v44, %v9439_v25 }
 0xa5e   :  { %v12479_v38 = vpop.f32.mrf.mxu1  ;;  %12731 = vmatpush1.bf16.msra.mxu0 %v17815_v35  ;;  %v9427_v34 = vld [vmem:[#allocation23 + $0xc18] sm:$0xff]  ;;  %v17768_v21 = vcombine.high %v9299_v8, %v9303_v50  ;;  %v17767_v9 = vcombine.low %v9299_v8, %v9303_v50  ;;  %vm12812_vm14 = vcmp.ge.f32.partialorder %v20471_v30, 0.0 }
 0xa5f   :  { %12772 = vmatpush1.bf16.msra.mxu1 %v17943_v54  ;;  %v12439_v33 = vpop.f32.mrf.mxu0  ;;  %12732 = vmatprep.subr.bf16.mxu0 %v17808_v48  ;;  %v9431_v53 = vld [vmem:[#allocation23 + $0xc38] sm:$0xff] }
 0xa60   :  { %v12480_v60 = vpop.f32.mrf.mxu1  ;;  %12773 = vmatprep.subr.bf16.mxu1 %v17936_v10  ;;  %v17896_v57 = vcombine.high %v9427_v34, %v9431_v53  ;;  %v9419_v35 = vld [vmem:[#allocation23 + $0xbd8] sm:$0xff]  ;;  %v17895_v15 = vcombine.low %v9427_v34, %v9431_v53 }
 0xa61   :  { %v9423_v54 = vld [vmem:[#allocation23 + $0xbf8] sm:$0xff] }
 0xa62   :  { %12733 = vmatpush1.bf16.msra.mxu0 %v17807_v14  ;;  %v9547_v48 = vld [vmem:[#allocation23 + $0xfd8] sm:$0xff]  ;;  %v17888_v23 = vcombine.high %v9419_v35, %v9423_v54 }
 0xa63   :  { %12774 = vmatpush1.bf16.msra.mxu1 %v17935_v26  ;;  %12734 = vmatprep.subr.bf16.mxu0 %v17800_v7  ;;  %v9551_v10 = vld [vmem:[#allocation23 + $0xff8] sm:$0xff]  ;;  %v17887_v26 = vcombine.low %v9419_v35, %v9423_v54 }
 0xa64   :  { %12775 = vmatprep.subr.bf16.mxu1 %v17928_v52  ;;  %v18016_v47 = vcombine.high %v9547_v48, %v9551_v10  ;;  %v9411_v36 = vld [vmem:[#allocation23 + $0xb98] sm:$0xff]  ;;  %v18015_v7 = vcombine.low %v9547_v48, %v9551_v10 }
 0xa65   :  { %v9415_v38 = vld [vmem:[#allocation23 + $0xbb8] sm:$0xff] }
 0xa66   :  { %12735 = vmatpush1.bf16.msra.mxu0 %v17799_v20  ;;  %v9539_v14 = vld [vmem:[#allocation23 + $0xf98] sm:$0xff]  ;;  %v17880_v60 = vcombine.high %v9411_v36, %v9415_v38  ;;  %v17879_v20 = vcombine.low %v9411_v36, %v9415_v38 }
 0xa67   :  { %12776 = vmatpush1.bf16.msra.mxu1 %v17927_v43  ;;  %12736 = vmatprep.subr.bf16.mxu0 %v17792_v55  ;;  %v9543_v33 = vld [vmem:[#allocation23 + $0xfb8] sm:$0xff] }
 0xa68   :  { %12777 = vmatprep.subr.bf16.mxu1 %v17920_v49  ;;  %v18008_v52 = vcombine.high %v9539_v14, %v9543_v33  ;;  %v9403_v39 = vld [vmem:[#allocation23 + $0xb58] sm:$0xff]  ;;  %v18007_v43 = vcombine.low %v9539_v14, %v9543_v33 }
 0xa69   :  { %v9407_v29 = vld [vmem:[#allocation23 + $0xb78] sm:$0xff] }
 0xa6a   :  { %12737 = vmatpush1.bf16.msra.mxu0 %v17791_v31  ;;  %v9531_v22 = vld [vmem:[#allocation23 + $0xf58] sm:$0xff]  ;;  %v17872_v55 = vcombine.high %v9403_v39, %v9407_v29  ;;  %v17871_v31 = vcombine.low %v9403_v39, %v9407_v29 }
 0xa6b   :  { %12778 = vmatpush1.bf16.msra.mxu1 %v17919_v28  ;;  %12738 = vmatprep.subr.bf16.mxu0 %v17784_v12  ;;  %v9535_v27 = vld [vmem:[#allocation23 + $0xf78] sm:$0xff] }
 0xa6c   :  { %12779 = vmatprep.subr.bf16.mxu1 %v17912_v18  ;;  %v18000_v49 = vcombine.high %v9531_v22, %v9535_v27  ;;  %v9395_v63 = vld [vmem:[#allocation23 + $0xb18] sm:$0xff]  ;;  %v17999_v28 = vcombine.low %v9531_v22, %v9535_v27 }
 0xa6d   :  { %v9399_v51 = vld [vmem:[#allocation23 + $0xb38] sm:$0xff] }
 0xa6e   :  { %12739 = vmatpush1.bf16.msra.mxu0 %v17783_v2  ;;  %v9523_v24 = vld [vmem:[#allocation23 + $0xf18] sm:$0xff]  ;;  %v17864_v12 = vcombine.high %v9395_v63, %v9399_v51  ;;  %v17863_v2 = vcombine.low %v9395_v63, %v9399_v51  ;;  %v18807_v63 = vld [vmem:[#allocation26 + $0x188] ss:$28 sps:$4 sm:$0xff]  }
 0xa6f   :  { %12780 = vmatpush1.bf16.msra.mxu1 %v17911_v41  ;;  %12740 = vmatprep.subr.bf16.mxu0 %v17776_v19  ;;  %v9527_v1 = vld [vmem:[#allocation23 + $0xf38] sm:$0xff] }
 0xa70   :  { %12781 = vmatprep.subr.bf16.mxu1 %v17904_v45  ;;  %v17992_v18 = vcombine.high %v9523_v24, %v9527_v1  ;;  %v9387_v4 = vld [vmem:[#allocation23 + $0xad8] sm:$0xff]  ;;  %v17991_v41 = vcombine.low %v9523_v24, %v9527_v1  ;;  %v18810_v24 = vld [vmem:[#allocation26 + $0x508] ss:$28 sps:$4 sm:$0xff]  }
 0xa71   :  { %v9391_v32 = vld [vmem:[#allocation23 + $0xaf8] sm:$0xff] }
 0xa72   :  { %12741 = vmatpush1.bf16.msra.mxu0 %v17775_v61  ;;  %v9515_v44 = vld [vmem:[#allocation23 + $0xed8] sm:$0xff]  ;;  %v17856_v19 = vcombine.high %v9387_v4, %v9391_v32  ;;  %v17855_v61 = vcombine.low %v9387_v4, %v9391_v32 }
 0xa73   :  { %12782 = vmatpush1.bf16.msra.mxu1 %v17903_v42  ;;  %12742 = vmatprep.subr.bf16.mxu0 %v17768_v21  ;;  %v9519_v25 = vld [vmem:[#allocation23 + $0xef8] sm:$0xff] }
 0xa74   :  { %12783 = vmatprep.subr.bf16.mxu1 %v17896_v57  ;;  %v17984_v45 = vcombine.high %v9515_v44, %v9519_v25  ;;  %v9379_v8 = vld [vmem:[#allocation23 + $0xa98] sm:$0xff]  ;;  %v17983_v42 = vcombine.low %v9515_v44, %v9519_v25 }
 0xa75   :  { %v9383_v50 = vld [vmem:[#allocation23 + $0xab8] sm:$0xff] }
 0xa76   :  { %12743 = vmatpush1.bf16.msra.mxu0 %v17767_v9  ;;  %v9507_v34 = vld [vmem:[#allocation23 + $0xe98] sm:$0xff]  ;;  %v17848_v21 = vcombine.high %v9379_v8, %v9383_v50  ;;  %v17847_v9 = vcombine.low %v9379_v8, %v9383_v50 }
 0xa77   :  { %12784 = vmatpush1.bf16.msra.mxu1 %v17895_v15  ;;  %12744 = vmatprep.subr.bf16.mxu0 %v17888_v23  ;;  %v9511_v53 = vld [vmem:[#allocation23 + $0xeb8] sm:$0xff]  ;;  %v12437_v15 = vadd.f32 %v20469_v16, %v20463_v3  ;;  %v12819_v16 = vmul.f32 0.1, %v20451_v58 }
 0xa78   :  { %12785 = vmatprep.subr.bf16.mxu1 %v18016_v47  ;;  %v17976_v57 = vcombine.high %v9507_v34, %v9511_v53  ;;  %v9371_v35 = vld [vmem:[#allocation23 + $0xa58] sm:$0xff]  ;;  %v17975_v23 = vcombine.low %v9507_v34, %v9511_v53  ;;  %v18827_v53 = vld [vmem:[#allocation26 + $0xe4] ss:$28 sps:$4 sm:$0xff]  }
 0xa79   :  { %v9375_v54 = vld [vmem:[#allocation23 + $0xa78] sm:$0xff] }
 0xa7a   :  { %12745 = vmatpush2.bf16.msra.mxu0 %v17887_v26  ;;  %v9499_v48 = vld [vmem:[#allocation23 + $0xe58] sm:$0xff]  ;;  %v17840_v47 = vcombine.high %v9371_v35, %v9375_v54 }
 0xa7b   :  { %12786 = vmatpush2.bf16.msra.mxu1 %v18015_v7  ;;  %12746 = vmatprep.subr.bf16.mxu0 %v17880_v60  ;;  %v9503_v10 = vld [vmem:[#allocation23 + $0xe78] sm:$0xff]  ;;  %v17839_v7 = vcombine.low %v9371_v35, %v9375_v54  ;;  %v12478_v60 = vadd.f32 %v20474_v17, %v12437_v15  ;;  %v18812_v17 = vld [vmem:[#allocation26 + $0x50c] ss:$28 sps:$4 sm:$0xff]  }
 0xa7c   :  { %12787 = vmatprep.subr.bf16.mxu1 %v18008_v52  ;;  %v17968_v36 = vcombine.high %v9499_v48, %v9503_v10  ;;  %v9363_v38 = vld [vmem:[#allocation23 + $0xa18] sm:$0xff]  ;;  %v17967_v52 = vcombine.low %v9499_v48, %v9503_v10  ;;  %v18833_v35 = vld [vmem:[#allocation26 + $0xac] ss:$28 sps:$4 sm:$0xff]  }
 0xa7d   :  { %v9367_v14 = vld [vmem:[#allocation23 + $0xa38] sm:$0xff]  ;;  %v12821_v22 = vmul.f32 0.1, %v12478_v60  ;;  %vm12813_vm12 = vcmp.ge.f32.partialorder %v12478_v60, 0.0  ;;  %v18836_v54 = vld [vmem:[#allocation26 + $0x42c] ss:$28 sps:$4 sm:$0xff]  }
 0xa7e   :  { %12747 = vmatpush2.bf16.msra.mxu0 %v17879_v20  ;;  %v9491_v33 = vld [vmem:[#allocation23 + $0xe18] sm:$0xff]  ;;  %v17832_v39 = vcombine.high %v9363_v38, %v9367_v14  ;;  %v17831_v29 = vcombine.low %v9363_v38, %v9367_v14  ;;  %v18809_v20 = vld [vmem:[#allocation26 + $0x18c] ss:$28 sps:$4 sm:$0xff]   ;;  %v18848_v38 = vld [vmem:[#allocation26 + $0x3bc] ss:$28 sps:$4 sm:$0xff]  }
 0xa7f   :  { %12788 = vmatpush2.bf16.msra.mxu1 %v18007_v43  ;;  %12748 = vmatprep.subr.bf16.mxu0 %v17872_v55  ;;  %v9495_v26 = vld [vmem:[#allocation23 + $0xe38] sm:$0xff]  ;;  %v12827_v43 = vsel %vm12811_vm11, %v20451_v58, %v12819_v16  ;;  %v20482_v55 = vld [vmem:[#allocation25] sm:$0xff]  ;;  %v12829_v51 = vsel %vm12813_vm12, %v12478_v60, %v12821_v22  ;;  %v18831_v48 = vld [vmem:[#allocation26 + $0xa8] ss:$28 sps:$4 sm:$0xff]  }
 0xa80   :  { %12789 = vmatprep.subr.bf16.mxu1 %v18000_v49  ;;  %v17960_v3 = vcombine.high %v9491_v33, %v9495_v26  ;;  %v17959_v27 = vcombine.low %v9491_v33, %v9495_v26  ;;  %v9573_v49 = vrot.slane %v20482_v55, %v20151_v59  ;;  %v18815_v1 = vld [vmem:[#allocation26 + $0x154] ss:$28 sps:$4 sm:$0xff]   ;;  %v20489_v58 = vpack.c.bf16 %v12829_v51, %v12829_v51  ;;  %v18834_v10 = vld [vmem:[#allocation26 + $0x428] ss:$28 sps:$4 sm:$0xff]   ;;  %v18849_v60 = vld [vmem:[#allocation26] ss:$28 sps:$4 sm:$0xff]  }
 0xa81   :  { %v18813_v32 = vld [vmem:[#allocation26 + $0x150] ss:$28 sps:$4 sm:$0xff]   ;;  %v18819_v8 = vld [vmem:[#allocation26 + $0x118] ss:$28 sps:$4 sm:$0xff]   ;;  %v18851_v26 = vld [vmem:[#allocation26 + $0x4] ss:$28 sps:$4 sm:$0xff]  }
 0xa82   :  { %12749 = vmatpush2.bf16.msra.mxu0 %v17871_v31  ;;  %v20486_v31 = vpack.c.bf16 %v12827_v43, %v12827_v43  ;;  %v18816_v25 = vld [vmem:[#allocation26 + $0x4d0] ss:$28 sps:$4 sm:$0xff]   ;;  %v18822_v34 = vld [vmem:[#allocation26 + $0x498] ss:$28 sps:$4 sm:$0xff]   ;;  %v18855_v16 = vld [vmem:[#allocation26 + $0x348] ss:$28 sps:$4 sm:$0xff]  }
 0xa83   :  { %12790 = vmatpush2.bf16.msra.mxu1 %v17999_v28  ;;  %12750 = vmatprep.subr.bf16.mxu0 %v17864_v12  ;;  %v18818_v12 = vld [vmem:[#allocation26 + $0x4d4] ss:$28 sps:$4 sm:$0xff]   ;;  %v18869_v43 = vld [vmem:[#allocation26 + $0x2dc] ss:$28 sps:$4 sm:$0xff]  }
 0xa84   :  { %12791 = vmatprep.subr.bf16.mxu1 %v17992_v18  ;;  %v18842_v15 = vld [vmem:[#allocation26 + $0x3f4] ss:$28 sps:$4 sm:$0xff]  }
 0xa85   :  { %v18843_v14 = vld [vmem:[#allocation26 + $0x38] ss:$28 sps:$4 sm:$0xff]  }
 0xa86   :  { %12751 = vmatpush2.bf16.msra.mxu0 %v17863_v2  ;;  %v18821_v2 = vld [vmem:[#allocation26 + $0x11c] ss:$28 sps:$4 sm:$0xff]   ;;  %v18863_v22 = vld [vmem:[#allocation26 + $0x314] ss:$28 sps:$4 sm:$0xff]  }
 0xa87   :  { %12792 = vmatpush2.bf16.msra.mxu1 %v17991_v41  ;;  %12752 = vmatprep.subr.bf16.mxu0 %v17856_v19  ;;  %v18824_v19 = vld [vmem:[#allocation26 + $0x49c] ss:$28 sps:$4 sm:$0xff]  }
 0xa88   :  { %12793 = vmatprep.subr.bf16.mxu1 %v17984_v45  ;;  %v18846_v33 = vld [vmem:[#allocation26 + $0x3b8] ss:$28 sps:$4 sm:$0xff]  }
 0xa89   :  { %v18870_v51 = vld [vmem:[#allocation26 + $0x658] ss:$28 sps:$4 sm:$0xff]  }
 0xa8a   :  { %12753 = vmatpush2.bf16.msra.mxu0 %v17855_v61 }
 0xa8b   :  { %12794 = vmatpush2.bf16.msra.mxu1 %v17983_v42  ;;  %12754 = vmatprep.subr.bf16.mxu0 %v17848_v21  ;;  %v18830_v42 = vld [vmem:[#allocation26 + $0x464] ss:$28 sps:$4 sm:$0xff]  }
 0xa8c   :  { %12795 = vmatprep.subr.bf16.mxu1 %v17976_v57  ;;  %v18825_v21 = vld [vmem:[#allocation26 + $0xe0] ss:$28 sps:$4 sm:$0xff]  }
 0xa8d   :  { %v18828_v57 = vld [vmem:[#allocation26 + $0x460] ss:$28 sps:$4 sm:$0xff]  }
 0xa8e   :  { %12755 = vmatpush2.bf16.msra.mxu0 %v17847_v9  ;;  %v18839_v9 = vld [vmem:[#allocation26 + $0x74] ss:$28 sps:$4 sm:$0xff]  }
 0xa8f   :  { %12796 = vmatpush2.bf16.msra.mxu1 %v17975_v23  ;;  %12756 = vmatprep.subr.bf16.mxu0 %v17840_v47  ;;  %v18837_v23 = vld [vmem:[#allocation26 + $0x70] ss:$28 sps:$4 sm:$0xff]  }
 0xa90   :  { %12797 = vmatprep.subr.bf16.mxu1 %v17968_v36  ;;  %v18840_v47 = vld [vmem:[#allocation26 + $0x3f0] ss:$28 sps:$4 sm:$0xff]   ;;  %v18845_v36 = vld [vmem:[#allocation26 + $0x3c] ss:$28 sps:$4 sm:$0xff]  }
 0xa92   :  { %12757 = vmatpush2.bf16.msra.mxu0 %v17839_v7  ;;  %v18854_v7 = vld [vmem:[#allocation26 + $0x384] ss:$28 sps:$4 sm:$0xff]  }
 0xa93   :  { %12798 = vmatpush2.bf16.msra.mxu1 %v17967_v52  ;;  %12758 = vmatprep.subr.bf16.mxu0 %v17832_v39  ;;  %v18852_v52 = vld [vmem:[#allocation26 + $0x380] ss:$28 sps:$4 sm:$0xff]   ;;  %v18857_v39 = vld [vmem:[#allocation26 + $0x34c] ss:$28 sps:$4 sm:$0xff]  }
 0xa94   :  { %12799 = vmatprep.subr.bf16.mxu1 %v17960_v3  ;;  %v18860_v3 = vld [vmem:[#allocation26 + $0x6cc] ss:$28 sps:$4 sm:$0xff]  }
 0xa96   :  { %12759 = vmatpush2.bf16.msra.mxu0 %v17831_v29  ;;  %v18858_v29 = vld [vmem:[#allocation26 + $0x6c8] ss:$28 sps:$4 sm:$0xff]  }
 0xa97   :  { %12800 = vmatpush2.bf16.msra.mxu1 %v17959_v27  ;;  %15695 = vmatprep.subr.bf16.mxu0 %v18809_v20  ;;  %v18866_v27 = vld [vmem:[#allocation26 + $0x694] ss:$28 sps:$4 sm:$0xff]  }
 0xa98   :  { %15736 = vmatprep.subr.bf16.mxu1 %v18812_v17  ;;  %v18861_v20 = vld [vmem:[#allocation26 + $0x310] ss:$28 sps:$4 sm:$0xff]  }
 0xa99   :  { %v12516_v28 = vpop.f32.mrf.mxu0  ;;  %12761 = vmatmul.mubr.bf16.vlgmr.msra.gmra.mxu0 %v20417_v11  ;;  %v18864_v17 = vld [vmem:[#allocation26 + $0x690] ss:$28 sps:$4 sm:$0xff]  }
 0xa9a   :  { %v12517_v18 = vadd.f32 %v12516_v28, %v9573_v49  ;;  %v12557_v4 = vpop.f32.mrf.mxu1  ;;  %12802 = vmatmul.mubr.bf16.vlgmr.msra.gmra.mxu1 %v20419_v5  ;;  %15696 = vmatpush1.bf16.msra.mxu0 %v18807_v63  ;;  %v18872_v49 = vld [vmem:[#allocation26 + $0x65c] ss:$28 sps:$4 sm:$0xff]  }
 0xa9b   :  { %15727 = vmatprep.mubr.bf16.mxu0 %v20486_v31  ;;  %15737 = vmatpush1.bf16.msra.mxu1 %v18810_v24  ;;  %v20493_v44 = vpop.f32.mrf.mxu0  ;;  %v18867_v63 = vld [vmem:[#allocation26 + $0x2d8] ss:$28 sps:$4 sm:$0xff]   ;;  %v18875_v24 = vld [vmem:[#allocation26 + $0x2a4] ss:$28 sps:$4 sm:$0xff]  }
 0xa9c   :  { %v20495_v41 = vadd.f32 %v12557_v4, %v12517_v18  ;;  %15768 = vmatprep.mubr.bf16.mxu1 %v20489_v58  ;;  %v20498_v11 = vpop.f32.mrf.mxu1  ;;  %15697 = vmatprep.subr.bf16.mxu0 %v18815_v1  ;;  %v18878_v1 = vld [vmem:[#allocation26 + $0x624] ss:$28 sps:$4 sm:$0xff]   ;;  %v18881_v18 = vld [vmem:[#allocation26 + $0x26c] ss:$28 sps:$4 sm:$0xff]  }
 0xa9d   :  { %v12520_v45 = vpop.f32.mrf.mxu0  ;;  %15738 = vmatprep.subr.bf16.mxu1 %v18818_v12  ;;  %v18873_v28 = vld [vmem:[#allocation26 + $0x2a0] ss:$28 sps:$4 sm:$0xff]   ;;  %v18884_v4 = vld [vmem:[#allocation26 + $0x5ec] ss:$28 sps:$4 sm:$0xff]  }
 0xa9e   :  { %v12561_v5 = vpop.f32.mrf.mxu1  ;;  %15698 = vmatpush1.bf16.msra.mxu0 %v18813_v32  ;;  %v18876_v12 = vld [vmem:[#allocation26 + $0x620] ss:$28 sps:$4 sm:$0xff]   ;;  %v18879_v32 = vld [vmem:[#allocation26 + $0x268] ss:$28 sps:$4 sm:$0xff]   ;;  %v18885_v45 = vld [vmem:[#allocation26 + $0x230] ss:$28 sps:$4 sm:$0xff]  }
 0xa9f   :  { %15739 = vmatpush1.bf16.msra.mxu1 %v18816_v25  ;;  %v12521_v50 = vpop.f32.mrf.mxu0  ;;  %15699 = vmatprep.subr.bf16.mxu0 %v18821_v2  ;;  %v18882_v25 = vld [vmem:[#allocation26 + $0x5e8] ss:$28 sps:$4 sm:$0xff]   ;;  %v18887_v2 = vld [vmem:[#allocation26 + $0x234] ss:$28 sps:$4 sm:$0xff]  }
 0xaa0   :  { %v12562_v61 = vpop.f32.mrf.mxu1  ;;  %15740 = vmatprep.subr.bf16.mxu1 %v18824_v19  ;;  %v18890_v19 = vld [vmem:[#allocation26 + $0x5b4] ss:$28 sps:$4 sm:$0xff]   ;;  %v18896_v50 = vld [vmem:[#allocation26 + $0x57c] ss:$28 sps:$4 sm:$0xff]  }
 0xaa1   :  { %v18888_v5 = vld [vmem:[#allocation26 + $0x5b0] ss:$28 sps:$4 sm:$0xff]   ;;  %v18899_v61 = vld [vmem:[#allocation26 + $0x1c4] ss:$28 sps:$4 sm:$0xff]  }
 0xaa2   :  { %15700 = vmatpush1.bf16.msra.mxu0 %v18819_v8  ;;  %v18893_v8 = vld [vmem:[#allocation26 + $0x1fc] ss:$28 sps:$4 sm:$0xff]  }
 0xaa3   :  { %15741 = vmatpush1.bf16.msra.mxu1 %v18822_v34  ;;  %15701 = vmatprep.subr.bf16.mxu0 %v18827_v53  ;;  %v18891_v34 = vld [vmem:[#allocation26 + $0x1f8] ss:$28 sps:$4 sm:$0xff]  }
 0xaa4   :  { %15742 = vmatprep.subr.bf16.mxu1 %v18830_v42  ;;  %v18894_v53 = vld [vmem:[#allocation26 + $0x578] ss:$28 sps:$4 sm:$0xff]   ;;  %v12818_v42 = vmul.f32 0.1, %v20447_v62 }
 0xaa6   :  { %15702 = vmatpush1.bf16.msra.mxu0 %v18825_v21  ;;  %v18902_v21 = vld [vmem:[#allocation26 + $0x544] ss:$28 sps:$4 sm:$0xff]  }
 0xaa7   :  { %15743 = vmatpush1.bf16.msra.mxu1 %v18828_v57  ;;  %15703 = vmatprep.subr.bf16.mxu0 %v18833_v35  ;;  %v12820_v57 = vmul.f32 0.1, %v20471_v30  ;;  %v9577_v35 = vrot.slane %v20482_v55, %v20184_v40 }
 0xaa8   :  { %15744 = vmatprep.subr.bf16.mxu1 %v18836_v54  ;;  %v18897_v54 = vld [vmem:[#allocation26 + $0x1c0] ss:$28 sps:$4 sm:$0xff]  }
 0xaaa   :  { %15704 = vmatpush1.bf16.msra.mxu0 %v18831_v48  ;;  %v18900_v48 = vld [vmem:[#allocation26 + $0x540] ss:$28 sps:$4 sm:$0xff]  }
 0xaab   :  { %15745 = vmatpush1.bf16.msra.mxu1 %v18834_v10  ;;  %15705 = vmatprep.subr.bf16.mxu0 %v18839_v9  ;;  %v18905_v10 = vld [vmem:[#allocation26 + $0x88c] ss:$28 sps:$4 sm:$0xff]   ;;  %v12826_v9 = vsel %vm12810_vm13, %v20447_v62, %v12818_v42  ;;  %v18926_v42 = vld [vmem:[#allocation26 + $0x704] ss:$28 sps:$4 sm:$0xff]  }
 0xaac   :  { %15746 = vmatprep.subr.bf16.mxu1 %v18842_v15  ;;  %v18962_v15 = vld [vmem:[#allocation26 + $0xc0c] ss:$28 sps:$4 sm:$0xff]  }
 0xaae   :  { %15706 = vmatpush1.bf16.msra.mxu0 %v18837_v23  ;;  %v12828_v23 = vsel %vm12812_vm14, %v20471_v30, %v12820_v57  ;;  %v19004_v57 = vld [vmem:[#allocation26 + $0xa84] ss:$28 sps:$4 sm:$0xff]  }
 0xaaf   :  { %15747 = vmatpush1.bf16.msra.mxu1 %v18840_v47  ;;  %15707 = vmatprep.subr.bf16.mxu0 %v18845_v36  ;;  %v12519_v47 = vadd.f32 %v20493_v44, %v9577_v35  ;;  %v18903_v36 = vld [vmem:[#allocation26 + $0x888] ss:$28 sps:$4 sm:$0xff]   ;;  %v18906_v44 = vld [vmem:[#allocation26 + $0x850] ss:$28 sps:$4 sm:$0xff]   ;;  %v18924_v35 = vld [vmem:[#allocation26 + $0x700] ss:$28 sps:$4 sm:$0xff]  }
 0xab0   :  { %15748 = vmatprep.subr.bf16.mxu1 %v18848_v38  ;;  %v20509_v38 = vpack.c.bf16 %v12826_v9, %v12826_v9  ;;  %v18927_v9 = vld [vmem:[#allocation26 + $0xa48] ss:$28 sps:$4 sm:$0xff]  }
 0xab1   :  { %v12560_v62 = vadd.f32 %v20498_v11, %v12519_v47  ;;  %v18909_v11 = vld [vmem:[#allocation26 + $0x818] ss:$28 sps:$4 sm:$0xff]  }
 0xab2   :  { %15708 = vmatpush1.bf16.msra.mxu0 %v18843_v14  ;;  %v18908_v14 = vld [vmem:[#allocation26 + $0x854] ss:$28 sps:$4 sm:$0xff]  }
 0xab3   :  { %15749 = vmatpush1.bf16.msra.mxu1 %v18846_v33  ;;  %15709 = vmatprep.subr.bf16.mxu0 %v18851_v26  ;;  %v18960_v33 = vld [vmem:[#allocation26 + $0xc08] ss:$28 sps:$4 sm:$0xff]   ;;  %v20511_v26 = vpack.c.bf16 %v12828_v23, %v12828_v23  ;;  %v19016_v47 = vld [vmem:[#allocation26 + $0xd94] ss:$28 sps:$4 sm:$0xff]  }
 0xab4   :  { %15750 = vmatprep.subr.bf16.mxu1 %v18854_v7  ;;  %v18968_v7 = vld [vmem:[#allocation26 + $0xbd4] ss:$28 sps:$4 sm:$0xff]   ;;  %v19008_v23 = vld [vmem:[#allocation26 + $0xdc8] ss:$28 sps:$4 sm:$0xff]  }
 0xab6   :  { %15710 = vmatpush1.bf16.msra.mxu0 %v18849_v60 }
 0xab7   :  { %15751 = vmatpush1.bf16.msra.mxu1 %v18852_v52  ;;  %15711 = vmatprep.subr.bf16.mxu0 %v18857_v39  ;;  %v18911_v39 = vld [vmem:[#allocation26 + $0x81c] ss:$28 sps:$4 sm:$0xff]  }
 0xab8   :  { %15752 = vmatprep.subr.bf16.mxu1 %v18860_v3  ;;  %v18966_v3 = vld [vmem:[#allocation26 + $0xbd0] ss:$28 sps:$4 sm:$0xff]  }
 0xaba   :  { %15712 = vmatpush2.bf16.msra.mxu0 %v18855_v16 }
 0xabb   :  { %15753 = vmatpush2.bf16.msra.mxu1 %v18858_v29  ;;  %15713 = vmatprep.subr.bf16.mxu0 %v18863_v22  ;;  %v18974_v22 = vld [vmem:[#allocation26 + $0xb9c] ss:$28 sps:$4 sm:$0xff]  }
 0xabc   :  { %15754 = vmatprep.subr.bf16.mxu1 %v18866_v27 }
 0xabe   :  { %15714 = vmatpush2.bf16.msra.mxu0 %v18861_v20 }
 0xabf   :  { %15755 = vmatpush2.bf16.msra.mxu1 %v18864_v17  ;;  %15715 = vmatprep.subr.bf16.mxu0 %v18869_v43 }
 0xac0   :  { %15756 = vmatprep.subr.bf16.mxu1 %v18872_v49  ;;  %v18914_v49 = vld [vmem:[#allocation26 + $0x7e4] ss:$28 sps:$4 sm:$0xff]  }
 0xac2   :  { %15716 = vmatpush2.bf16.msra.mxu0 %v18867_v63  ;;  %v18972_v63 = vld [vmem:[#allocation26 + $0xb98] ss:$28 sps:$4 sm:$0xff]  }
 0xac3   :  { %15757 = vmatpush2.bf16.msra.mxu1 %v18870_v51  ;;  %15717 = vmatprep.subr.bf16.mxu0 %v18875_v24 }
 0xac4   :  { %15758 = vmatprep.subr.bf16.mxu1 %v18878_v1  ;;  %v18980_v1 = vld [vmem:[#allocation26 + $0xb64] ss:$28 sps:$4 sm:$0xff]  }
 0xac6   :  { %15718 = vmatpush2.bf16.msra.mxu0 %v18873_v28 }
 0xac7   :  { %15759 = vmatpush2.bf16.msra.mxu1 %v18876_v12  ;;  %15719 = vmatprep.subr.bf16.mxu0 %v18881_v18  ;;  %v18912_v12 = vld [vmem:[#allocation26 + $0x7e0] ss:$28 sps:$4 sm:$0xff]  }
 0xac8   :  { %15760 = vmatprep.subr.bf16.mxu1 %v18884_v4  ;;  %v18917_v4 = vld [vmem:[#allocation26 + $0x7ac] ss:$28 sps:$4 sm:$0xff]  }
 0xaca   :  { %15720 = vmatpush2.bf16.msra.mxu0 %v18879_v32  ;;  %v18978_v32 = vld [vmem:[#allocation26 + $0xb60] ss:$28 sps:$4 sm:$0xff]  }
 0xacb   :  { %15761 = vmatpush2.bf16.msra.mxu1 %v18882_v25  ;;  %15721 = vmatprep.subr.bf16.mxu0 %v18887_v2  ;;  %v18986_v25 = vld [vmem:[#allocation26 + $0xb2c] ss:$28 sps:$4 sm:$0xff]  }
 0xacc   :  { %15762 = vmatprep.subr.bf16.mxu1 %v18890_v19  ;;  %v18915_v2 = vld [vmem:[#allocation26 + $0x7a8] ss:$28 sps:$4 sm:$0xff]   ;;  %v18920_v19 = vld [vmem:[#allocation26 + $0x774] ss:$28 sps:$4 sm:$0xff]  }
 0xace   :  { %15722 = vmatpush2.bf16.msra.mxu0 %v18885_v45  ;;  %v18984_v45 = vld [vmem:[#allocation26 + $0xb28] ss:$28 sps:$4 sm:$0xff]  }
 0xacf   :  { %15763 = vmatpush2.bf16.msra.mxu1 %v18888_v5  ;;  %15723 = vmatprep.subr.bf16.mxu0 %v18893_v8  ;;  %v18992_v5 = vld [vmem:[#allocation26 + $0xaf4] ss:$28 sps:$4 sm:$0xff]  }
 0xad0   :  { %15764 = vmatprep.subr.bf16.mxu1 %v18896_v50  ;;  %v18918_v8 = vld [vmem:[#allocation26 + $0x770] ss:$28 sps:$4 sm:$0xff]   ;;  %v18923_v50 = vld [vmem:[#allocation26 + $0x73c] ss:$28 sps:$4 sm:$0xff]  }
 0xad2   :  { %15724 = vmatpush2.bf16.msra.mxu0 %v18891_v34  ;;  %v18990_v34 = vld [vmem:[#allocation26 + $0xaf0] ss:$28 sps:$4 sm:$0xff]  }
 0xad3   :  { %15765 = vmatpush2.bf16.msra.mxu1 %v18894_v53  ;;  %15725 = vmatprep.subr.bf16.mxu0 %v18899_v61  ;;  %v18998_v53 = vld [vmem:[#allocation26 + $0xabc] ss:$28 sps:$4 sm:$0xff]  }
 0xad4   :  { %15766 = vmatprep.subr.bf16.mxu1 %v18902_v21  ;;  %v18921_v61 = vld [vmem:[#allocation26 + $0x738] ss:$28 sps:$4 sm:$0xff]  }
 0xad5   :  { %v18996_v21 = vld [vmem:[#allocation26 + $0xab8] ss:$28 sps:$4 sm:$0xff]  }
 0xad6   :  { %15726 = vmatpush2.bf16.msra.mxu0 %v18897_v54  ;;  %v18929_v54 = vld [vmem:[#allocation26 + $0xa4c] ss:$28 sps:$4 sm:$0xff]  }
 0xad7   :  { %15767 = vmatpush2.bf16.msra.mxu1 %v18900_v48  ;;  %15777 = vmatprep.subr.bf16.mxu0 %v18905_v10  ;;  %v19002_v48 = vld [vmem:[#allocation26 + $0xa80] ss:$28 sps:$4 sm:$0xff]   ;;  %v19010_v10 = vld [vmem:[#allocation26 + $0xdcc] ss:$28 sps:$4 sm:$0xff]  }
 0xad8   :  { %15818 = vmatprep.subr.bf16.mxu1 %v18962_v15  ;;  %v18932_v15 = vld [vmem:[#allocation26 + $0xa14] ss:$28 sps:$4 sm:$0xff]  }
 0xad9   :  { %v20513_v60 = vpop.f32.mrf.mxu0  ;;  %15728 = vmatmul.mubr.bf16.vlgmr.msra.gmra.mxu0 %v20509_v38 }
 0xada   :  { %v20517_v30 = vpop.f32.mrf.mxu1  ;;  %15769 = vmatmul.mubr.bf16.vlgmr.msra.gmra.mxu1 %v20511_v26  ;;  %15778 = vmatpush1.bf16.msra.mxu0 %v18903_v36  ;;  %v18930_v36 = vld [vmem:[#allocation26 + $0xa10] ss:$28 sps:$4 sm:$0xff]  }
 0xadb   :  { %v12600_v52 = vpop.f32.mrf.mxu0  ;;  %15779 = vmatprep.subr.bf16.mxu0 %v18908_v14  ;;  %15819 = vmatpush1.bf16.msra.mxu1 %v18960_v33  ;;  %v18935_v14 = vld [vmem:[#allocation26 + $0x9dc] ss:$28 sps:$4 sm:$0xff]   ;;  %v19014_v33 = vld [vmem:[#allocation26 + $0xd90] ss:$28 sps:$4 sm:$0xff]  }
 0xadc   :  { %v12601_v16 = vadd.f32 %v12600_v52, %v12560_v62  ;;  %v12641_v29 = vpop.f32.mrf.mxu1  ;;  %15820 = vmatprep.subr.bf16.mxu1 %v18968_v7  ;;  %v19022_v7 = vld [vmem:[#allocation26 + $0xd5c] ss:$28 sps:$4 sm:$0xff]  }
 0xadd   :  { %v12602_v27 = vpop.f32.mrf.mxu0  ;;  %v18933_v62 = vld [vmem:[#allocation26 + $0x9d8] ss:$28 sps:$4 sm:$0xff]  }
 0xade   :  { %v12642_v20 = vadd.f32 %v12641_v29, %v12601_v16  ;;  %v12643_v17 = vpop.f32.mrf.mxu1  ;;  %15780 = vmatpush1.bf16.msra.mxu0 %v18906_v44  ;;  %v18938_v44 = vld [vmem:[#allocation26 + $0x9a4] ss:$28 sps:$4 sm:$0xff]   ;;  %v19020_v52 = vld [vmem:[#allocation26 + $0xd58] ss:$28 sps:$4 sm:$0xff]   ;;  %v18941_v16 = vld [vmem:[#allocation26 + $0x96c] ss:$28 sps:$4 sm:$0xff]  }
 0xadf   :  { %v12603_v43 = vpop.f32.mrf.mxu0  ;;  %15781 = vmatprep.subr.bf16.mxu0 %v18911_v39  ;;  %15821 = vmatpush1.bf16.msra.mxu1 %v18966_v3  ;;  %v19028_v39 = vld [vmem:[#allocation26 + $0xd24] ss:$28 sps:$4 sm:$0xff]  }
 0xae0   :  { %vm12815_vm15 = vcmp.ge.f32.partialorder %v12642_v20, 0.0  ;;  %v12823_v51 = vmul.f32 0.1, %v12642_v20  ;;  %v12644_v24 = vpop.f32.mrf.mxu1  ;;  %15822 = vmatprep.subr.bf16.mxu1 %v18974_v22  ;;  %v18936_v3 = vld [vmem:[#allocation26 + $0x9a0] ss:$28 sps:$4 sm:$0xff]  }
 0xae1   :  { %v19026_v29 = vld [vmem:[#allocation26 + $0xd20] ss:$28 sps:$4 sm:$0xff]   ;;  %v19034_v22 = vld [vmem:[#allocation26 + $0xcec] ss:$28 sps:$4 sm:$0xff]   ;;  %v19040_v43 = vld [vmem:[#allocation26 + $0xcb4] ss:$28 sps:$4 sm:$0xff]  }
 0xae2   :  { %v12831_v28 = vsel %vm12815_vm15, %v12642_v20, %v12823_v51  ;;  %15782 = vmatpush1.bf16.msra.mxu0 %v18909_v11  ;;  %v18939_v27 = vld [vmem:[#allocation26 + $0x968] ss:$28 sps:$4 sm:$0xff]   ;;  %v18944_v20 = vld [vmem:[#allocation26 + $0x934] ss:$28 sps:$4 sm:$0xff]   ;;  %v12599_v11 = vadd.f32 %v20513_v60, %v20495_v41  ;;  %v18948_v60 = vld [vmem:[#allocation26 + $0x8c0] ss:$28 sps:$4 sm:$0xff]  }
 0xae3   :  { %v20520_v18 = vpack.c.bf16 %v12831_v28, %v12831_v28  ;;  %15783 = vmatprep.subr.bf16.mxu0 %v18914_v49  ;;  %15823 = vmatpush1.bf16.msra.mxu1 %v18972_v63  ;;  %v19032_v17 = vld [vmem:[#allocation26 + $0xce8] ss:$28 sps:$4 sm:$0xff]   ;;  %v18942_v49 = vld [vmem:[#allocation26 + $0x930] ss:$28 sps:$4 sm:$0xff]   ;;  %v18947_v63 = vld [vmem:[#allocation26 + $0x8fc] ss:$28 sps:$4 sm:$0xff]  }
 0xae4   :  { %15824 = vmatprep.subr.bf16.mxu1 %v18980_v1  ;;  %v19038_v51 = vld [vmem:[#allocation26 + $0xcb0] ss:$28 sps:$4 sm:$0xff]   ;;  %v12640_v24 = vadd.f32 %v20517_v30, %v12599_v11  ;;  %v19046_v1 = vld [vmem:[#allocation26 + $0xc7c] ss:$28 sps:$4 sm:$0xff]   ;;  %v19052_v41 = vld [vmem:[#allocation26 + $0xc44] ss:$28 sps:$4 sm:$0xff]  }
 0xae5   :  { %15809 = vmatprep.mubr.bf16.mxu0 %v20520_v18  ;;  %v18945_v28 = vld [vmem:[#allocation26 + $0x8f8] ss:$28 sps:$4 sm:$0xff]   ;;  %v19017_v11 = vld [vmem:[#allocation26 + $0x270] ss:$28 sps:$4 sm:$0xff]  }
 0xae6   :  { %15784 = vmatpush1.bf16.msra.mxu0 %v18912_v12  ;;  %v18950_v12 = vld [vmem:[#allocation26 + $0x8c4] ss:$28 sps:$4 sm:$0xff]   ;;  %vm12814_vm0 = vcmp.ge.f32.partialorder %v12640_v24, 0.0  ;;  %v19058_v30 = vld [vmem:[#allocation26 + $0x514] ss:$28 sps:$4 sm:$0xff]  }
 0xae7   :  { %15785 = vmatprep.subr.bf16.mxu0 %v18917_v4  ;;  %15825 = vmatpush1.bf16.msra.mxu1 %v18978_v32  ;;  %v19044_v4 = vld [vmem:[#allocation26 + $0xc78] ss:$28 sps:$4 sm:$0xff]   ;;  %v12822_v32 = vmul.f32 0.1, %v12640_v24 }
 0xae8   :  { %15826 = vmatprep.subr.bf16.mxu1 %v18986_v25  ;;  %v18953_v25 = vld [vmem:[#allocation26 + $0x194] ss:$28 sps:$4 sm:$0xff]  }
 0xaea   :  { %15786 = vmatpush1.bf16.msra.mxu0 %v18915_v2  ;;  %v19050_v2 = vld [vmem:[#allocation26 + $0xc40] ss:$28 sps:$4 sm:$0xff]  }
 0xaeb   :  { %15787 = vmatprep.subr.bf16.mxu0 %v18920_v19  ;;  %15827 = vmatpush1.bf16.msra.mxu1 %v18984_v45  ;;  %v12830_v19 = vsel %vm12814_vm0, %v12640_v24, %v12822_v32  ;;  %v18951_v45 = vld [vmem:[#allocation26 + $0x190] ss:$28 sps:$4 sm:$0xff]  }
 0xaec   :  { %15828 = vmatprep.subr.bf16.mxu1 %v18992_v5  ;;  %v20526_v5 = vpack.c.bf16 %v12830_v19, %v12830_v19  ;;  %v19037_v24 = vld [vmem:[#allocation26 + $0x1cc] ss:$28 sps:$4 sm:$0xff]  }
 0xaee   :  { %15788 = vmatpush1.bf16.msra.mxu0 %v18918_v8  ;;  %v18956_v8 = vld [vmem:[#allocation26 + $0x15c] ss:$28 sps:$4 sm:$0xff]  }
 0xaef   :  { %15789 = vmatprep.subr.bf16.mxu0 %v18923_v50  ;;  %15829 = vmatpush1.bf16.msra.mxu1 %v18990_v34 }
 0xaf0   :  { %15830 = vmatprep.subr.bf16.mxu1 %v18998_v53  ;;  %v18954_v53 = vld [vmem:[#allocation26 + $0x158] ss:$28 sps:$4 sm:$0xff]  }
 0xaf2   :  { %15790 = vmatpush1.bf16.msra.mxu0 %v18921_v61 }
 0xaf3   :  { %15791 = vmatprep.subr.bf16.mxu0 %v18926_v42  ;;  %15831 = vmatpush1.bf16.msra.mxu1 %v18996_v21  ;;  %v18959_v42 = vld [vmem:[#allocation26 + $0x124] ss:$28 sps:$4 sm:$0xff]  }
 0xaf4   :  { %15832 = vmatprep.subr.bf16.mxu1 %v19004_v57 }
 0xaf6   :  { %15792 = vmatpush1.bf16.msra.mxu0 %v18924_v35 }
 0xaf7   :  { %15793 = vmatprep.subr.bf16.mxu0 %v18929_v54  ;;  %15833 = vmatpush1.bf16.msra.mxu1 %v19002_v48  ;;  %v18957_v54 = vld [vmem:[#allocation26 + $0x120] ss:$28 sps:$4 sm:$0xff]  }
 0xaf8   :  { %15834 = vmatprep.subr.bf16.mxu1 %v19010_v10  ;;  %v18965_v10 = vld [vmem:[#allocation26 + $0xec] ss:$28 sps:$4 sm:$0xff]  }
 0xafa   :  { %15794 = vmatpush2.bf16.msra.mxu0 %v18927_v9 }
 0xafb   :  { %15795 = vmatprep.subr.bf16.mxu0 %v18932_v15  ;;  %15835 = vmatpush2.bf16.msra.mxu1 %v19008_v23  ;;  %v18963_v15 = vld [vmem:[#allocation26 + $0xe8] ss:$28 sps:$4 sm:$0xff]   ;;  %v18971_v23 = vld [vmem:[#allocation26 + $0xb4] ss:$28 sps:$4 sm:$0xff]  }
 0xafc   :  { %15836 = vmatprep.subr.bf16.mxu1 %v19016_v47  ;;  %v18969_v47 = vld [vmem:[#allocation26 + $0xb0] ss:$28 sps:$4 sm:$0xff]  }
 0xafe   :  { %15796 = vmatpush2.bf16.msra.mxu0 %v18930_v36  ;;  %v18977_v36 = vld [vmem:[#allocation26 + $0x7c] ss:$28 sps:$4 sm:$0xff]  }
 0xaff   :  { %15797 = vmatprep.subr.bf16.mxu0 %v18935_v14  ;;  %15837 = vmatpush2.bf16.msra.mxu1 %v19014_v33  ;;  %v18975_v14 = vld [vmem:[#allocation26 + $0x78] ss:$28 sps:$4 sm:$0xff]   ;;  %v18983_v33 = vld [vmem:[#allocation26 + $0x44] ss:$28 sps:$4 sm:$0xff]  }
 0xb00   :  { %15838 = vmatprep.subr.bf16.mxu1 %v19022_v7  ;;  %v18981_v7 = vld [vmem:[#allocation26 + $0x40] ss:$28 sps:$4 sm:$0xff]  }
 0xb02   :  { %15798 = vmatpush2.bf16.msra.mxu0 %v18933_v62  ;;  %v18989_v62 = vld [vmem:[#allocation26 + $0xc] ss:$28 sps:$4 sm:$0xff]  }
 0xb03   :  { %15799 = vmatprep.subr.bf16.mxu0 %v18938_v44  ;;  %15839 = vmatpush2.bf16.msra.mxu1 %v19020_v52  ;;  %v18987_v44 = vld [vmem:[#allocation26 + $0x8] ss:$28 sps:$4 sm:$0xff]   ;;  %v18995_v52 = vld [vmem:[#allocation26 + $0x354] ss:$28 sps:$4 sm:$0xff]  }
 0xb04   :  { %15840 = vmatprep.subr.bf16.mxu1 %v19028_v39  ;;  %v18993_v39 = vld [vmem:[#allocation26 + $0x350] ss:$28 sps:$4 sm:$0xff]  }
 0xb06   :  { %15800 = vmatpush2.bf16.msra.mxu0 %v18936_v3  ;;  %v19001_v3 = vld [vmem:[#allocation26 + $0x31c] ss:$28 sps:$4 sm:$0xff]  }
 0xb07   :  { %15801 = vmatprep.subr.bf16.mxu0 %v18941_v16  ;;  %15841 = vmatpush2.bf16.msra.mxu1 %v19026_v29  ;;  %v18999_v16 = vld [vmem:[#allocation26 + $0x318] ss:$28 sps:$4 sm:$0xff]   ;;  %v19007_v29 = vld [vmem:[#allocation26 + $0x2e4] ss:$28 sps:$4 sm:$0xff]  }
 0xb08   :  { %15842 = vmatprep.subr.bf16.mxu1 %v19034_v22  ;;  %v19005_v22 = vld [vmem:[#allocation26 + $0x2e0] ss:$28 sps:$4 sm:$0xff]  }
 0xb0a   :  { %15802 = vmatpush2.bf16.msra.mxu0 %v18939_v27  ;;  %v19013_v27 = vld [vmem:[#allocation26 + $0x2ac] ss:$28 sps:$4 sm:$0xff]  }
 0xb0b   :  { %15803 = vmatprep.subr.bf16.mxu0 %v18944_v20  ;;  %15843 = vmatpush2.bf16.msra.mxu1 %v19032_v17  ;;  %v19011_v20 = vld [vmem:[#allocation26 + $0x2a8] ss:$28 sps:$4 sm:$0xff]   ;;  %v19019_v17 = vld [vmem:[#allocation26 + $0x274] ss:$28 sps:$4 sm:$0xff]  }
 0xb0c   :  { %15844 = vmatprep.subr.bf16.mxu1 %v19040_v43  ;;  %v19025_v43 = vld [vmem:[#allocation26 + $0x23c] ss:$28 sps:$4 sm:$0xff]  }
 0xb0e   :  { %15804 = vmatpush2.bf16.msra.mxu0 %v18942_v49  ;;  %v19023_v49 = vld [vmem:[#allocation26 + $0x238] ss:$28 sps:$4 sm:$0xff]  }
 0xb0f   :  { %15805 = vmatprep.subr.bf16.mxu0 %v18947_v63  ;;  %15845 = vmatpush2.bf16.msra.mxu1 %v19038_v51  ;;  %v19031_v63 = vld [vmem:[#allocation26 + $0x204] ss:$28 sps:$4 sm:$0xff]  }
 0xb10   :  { %15846 = vmatprep.subr.bf16.mxu1 %v19046_v1  ;;  %v19029_v51 = vld [vmem:[#allocation26 + $0x200] ss:$28 sps:$4 sm:$0xff]   ;;  %v9581_v1 = vrot.slane %v20482_v55, %v20209_v37 }
 0xb12   :  { %15806 = vmatpush2.bf16.msra.mxu0 %v18945_v28  ;;  %v9585_v28 = vrot.slane %v20482_v55, %v20212_v46 }
 0xb13   :  { %15807 = vmatprep.subr.bf16.mxu0 %v18950_v12  ;;  %15847 = vmatpush2.bf16.msra.mxu1 %v19044_v4  ;;  %v19035_v12 = vld [vmem:[#allocation26 + $0x1c8] ss:$28 sps:$4 sm:$0xff]   ;;  %v19043_v4 = vld [vmem:[#allocation26 + $0x894] ss:$28 sps:$4 sm:$0xff]  }
 0xb14   :  { %15848 = vmatprep.subr.bf16.mxu1 %v19052_v41 }
 0xb16   :  { %15808 = vmatpush2.bf16.msra.mxu0 %v18948_v60  ;;  %v19041_v60 = vld [vmem:[#allocation26 + $0x890] ss:$28 sps:$4 sm:$0xff]  }
 0xb17   :  { %15859 = vmatprep.subr.bf16.mxu0 %v18953_v25  ;;  %15849 = vmatpush2.bf16.msra.mxu1 %v19050_v2  ;;  %v19049_v25 = vld [vmem:[#allocation26 + $0x85c] ss:$28 sps:$4 sm:$0xff]  }
 0xb18   :  { %15900 = vmatprep.subr.bf16.mxu1 %v19058_v30 }
 0xb19   :  { %v20528_v50 = vpop.f32.mrf.mxu0  ;;  %15810 = vmatmul.mubr.bf16.vlgmr.msra.gmra.mxu0 %v20526_v5 }
 0xb1a   :  { %v20531_v34 = vpop.f32.mrf.mxu1  ;;  %15860 = vmatpush1.bf16.msra.mxu0 %v18951_v45  ;;  %15891 = vmatprep.mubr.bf16.mxu0 %v20486_v31  ;;  %v12681_v32 = vadd.f32 %v20528_v50, %v9581_v1  ;;  %v19047_v45 = vld [vmem:[#allocation26 + $0x858] ss:$28 sps:$4 sm:$0xff]   ;;  %v19055_v50 = vld [vmem:[#allocation26 + $0x824] ss:$28 sps:$4 sm:$0xff]  }
 0xb1b   :  { %v20534_v61 = vpop.f32.mrf.mxu0  ;;  %15861 = vmatprep.subr.bf16.mxu0 %v18956_v8  ;;  %v19088_v1 = vld [vmem:[#allocation26 + $0x3fc] ss:$28 sps:$4 sm:$0xff]  }
 0xb1c   :  { %v20536_v21 = vpop.f32.mrf.mxu1  ;;  %v12683_v41 = vadd.f32 %v20534_v61, %v9585_v28  ;;  %v12722_v2 = vadd.f32 %v20531_v34, %v12681_v32  ;;  %v19089_v28 = vld [vmem:[#allocation26 + $0xa50] ss:$28 sps:$4 sm:$0xff]   ;;  %v19094_v32 = vld [vmem:[#allocation26 + $0x3c4] ss:$28 sps:$4 sm:$0xff]  }
 0xb1d   :  { %v12684_v57 = vpop.f32.mrf.mxu0 }
 0xb1e   :  { %v12725_v35 = vpop.f32.mrf.mxu1  ;;  %15862 = vmatpush1.bf16.msra.mxu0 %v18954_v53  ;;  %v12724_v30 = vadd.f32 %v20536_v21, %v12683_v41  ;;  %v19095_v41 = vld [vmem:[#allocation26 + $0xa18] ss:$28 sps:$4 sm:$0xff]  }
 0xb1f   :  { %v12685_v48 = vpop.f32.mrf.mxu0  ;;  %15863 = vmatprep.subr.bf16.mxu0 %v18959_v42 }
 0xb20   :  { %v12726_v9 = vpop.f32.mrf.mxu1  ;;  %v19053_v48 = vld [vmem:[#allocation26 + $0x820] ss:$28 sps:$4 sm:$0xff]  }
 0xb22   :  { %15864 = vmatpush1.bf16.msra.mxu0 %v18957_v54 }
 0xb23   :  { %15865 = vmatprep.subr.bf16.mxu0 %v18965_v10  ;;  %v19061_v10 = vld [vmem:[#allocation26 + $0x7ec] ss:$28 sps:$4 sm:$0xff]  }
 0xb26   :  { %15866 = vmatpush1.bf16.msra.mxu0 %v18963_v15 }
 0xb27   :  { %15867 = vmatprep.subr.bf16.mxu0 %v18971_v23 }
 0xb2a   :  { %15868 = vmatpush1.bf16.msra.mxu0 %v18969_v47 }
 0xb2b   :  { %15869 = vmatprep.subr.bf16.mxu0 %v18977_v36  ;;  %v19059_v36 = vld [vmem:[#allocation26 + $0x7e8] ss:$28 sps:$4 sm:$0xff]  }
 0xb2e   :  { %15870 = vmatpush1.bf16.msra.mxu0 %v18975_v14 }
 0xb2f   :  { %15871 = vmatprep.subr.bf16.mxu0 %v18983_v33  ;;  %v19056_v33 = vld [vmem:[#allocation26 + $0x510] ss:$28 sps:$4 sm:$0xff]  }
 0xb32   :  { %15872 = vmatpush1.bf16.msra.mxu0 %v18981_v7 }
 0xb33   :  { %15873 = vmatprep.subr.bf16.mxu0 %v18989_v62  ;;  %v19064_v62 = vld [vmem:[#allocation26 + $0x4dc] ss:$28 sps:$4 sm:$0xff]  }
 0xb36   :  { %15874 = vmatpush1.bf16.msra.mxu0 %v18987_v44  ;;  %v19067_v44 = vld [vmem:[#allocation26 + $0x7b4] ss:$28 sps:$4 sm:$0xff]  }
 0xb37   :  { %15875 = vmatprep.subr.bf16.mxu0 %v18995_v52  ;;  %v19065_v52 = vld [vmem:[#allocation26 + $0x7b0] ss:$28 sps:$4 sm:$0xff]  }
 0xb3a   :  { %15876 = vmatpush2.bf16.msra.mxu0 %v18993_v39  ;;  %v19062_v39 = vld [vmem:[#allocation26 + $0x4d8] ss:$28 sps:$4 sm:$0xff]  }
 0xb3b   :  { %15877 = vmatprep.subr.bf16.mxu0 %v19001_v3  ;;  %v19073_v3 = vld [vmem:[#allocation26 + $0x77c] ss:$28 sps:$4 sm:$0xff]  }
 0xb3e   :  { %15878 = vmatpush2.bf16.msra.mxu0 %v18999_v16  ;;  %v19070_v16 = vld [vmem:[#allocation26 + $0x4a4] ss:$28 sps:$4 sm:$0xff]  }
 0xb3f   :  { %15879 = vmatprep.subr.bf16.mxu0 %v19007_v29  ;;  %v19071_v29 = vld [vmem:[#allocation26 + $0x778] ss:$28 sps:$4 sm:$0xff]  }
 0xb42   :  { %15880 = vmatpush2.bf16.msra.mxu0 %v19005_v22  ;;  %v19068_v22 = vld [vmem:[#allocation26 + $0x4a0] ss:$28 sps:$4 sm:$0xff]  }
 0xb43   :  { %15881 = vmatprep.subr.bf16.mxu0 %v19013_v27  ;;  %v19079_v27 = vld [vmem:[#allocation26 + $0x744] ss:$28 sps:$4 sm:$0xff]  }
 0xb46   :  { %15882 = vmatpush2.bf16.msra.mxu0 %v19011_v20  ;;  %v19076_v20 = vld [vmem:[#allocation26 + $0x46c] ss:$28 sps:$4 sm:$0xff]  }
 0xb47   :  { %15883 = vmatprep.subr.bf16.mxu0 %v19019_v17  ;;  %v19077_v17 = vld [vmem:[#allocation26 + $0x740] ss:$28 sps:$4 sm:$0xff]  }
 0xb4a   :  { %15884 = vmatpush2.bf16.msra.mxu0 %v19017_v11  ;;  %v19074_v11 = vld [vmem:[#allocation26 + $0x468] ss:$28 sps:$4 sm:$0xff]  }
 0xb4b   :  { %15885 = vmatprep.subr.bf16.mxu0 %v19025_v43  ;;  %v19085_v43 = vld [vmem:[#allocation26 + $0x70c] ss:$28 sps:$4 sm:$0xff]  }
 0xb4e   :  { %15886 = vmatpush2.bf16.msra.mxu0 %v19023_v49  ;;  %v19082_v49 = vld [vmem:[#allocation26 + $0x434] ss:$28 sps:$4 sm:$0xff]  }
 0xb4f   :  { %15887 = vmatprep.subr.bf16.mxu0 %v19031_v63  ;;  %v19083_v63 = vld [vmem:[#allocation26 + $0x708] ss:$28 sps:$4 sm:$0xff]  }
 0xb52   :  { %15888 = vmatpush2.bf16.msra.mxu0 %v19029_v51  ;;  %v19080_v51 = vld [vmem:[#allocation26 + $0x430] ss:$28 sps:$4 sm:$0xff]  }
 0xb53   :  { %15889 = vmatprep.subr.bf16.mxu0 %v19037_v24  ;;  %v19091_v24 = vld [vmem:[#allocation26 + $0xa54] ss:$28 sps:$4 sm:$0xff]  }
 0xb56   :  { %15890 = vmatpush2.bf16.msra.mxu0 %v19035_v12  ;;  %v19086_v12 = vld [vmem:[#allocation26 + $0x3f8] ss:$28 sps:$4 sm:$0xff]  }
 0xb57   :  { %15941 = vmatprep.subr.bf16.mxu0 %v19043_v4  ;;  %v19097_v4 = vld [vmem:[#allocation26 + $0xa1c] ss:$28 sps:$4 sm:$0xff]  }
 0xb59   :  { %v12762_v19 = vpop.f32.mrf.mxu0  ;;  %15892 = vmatmul.mubr.bf16.vlgmr.msra.gmra.mxu0 %v20509_v38 }
 0xb5a   :  { %v12763_v46 = vadd.f32 %v12762_v19, %v12722_v2  ;;  %v12803_v55 = vpop.f32.mrf.mxu1  ;;  %15942 = vmatpush1.bf16.msra.mxu0 %v19041_v60  ;;  %15973 = vmatprep.mubr.bf16.mxu0 %v20520_v18  ;;  %v19092_v60 = vld [vmem:[#allocation26 + $0x3c0] ss:$28 sps:$4 sm:$0xff]   ;;  %v19100_v2 = vld [vmem:[#allocation26 + $0x38c] ss:$28 sps:$4 sm:$0xff]  }
 0xb5b   :  { %v12764_v8 = vpop.f32.mrf.mxu0  ;;  %15943 = vmatprep.subr.bf16.mxu0 %v19049_v25  ;;  %v19103_v25 = vld [vmem:[#allocation26 + $0x9e4] ss:$28 sps:$4 sm:$0xff]  }
 0xb5c   :  { %v12804_v53 = vadd.f32 %v12803_v55, %v12763_v46  ;;  %v12765_v61 = vadd.f32 %v12764_v8, %v12724_v30  ;;  %v12805_v42 = vpop.f32.mrf.mxu1  ;;  %v19101_v19 = vld [vmem:[#allocation26 + $0x9e0] ss:$28 sps:$4 sm:$0xff]   ;;  %v19098_v30 = vld [vmem:[#allocation26 + $0x388] ss:$28 sps:$4 sm:$0xff]   ;;  %v19106_v55 = vld [vmem:[#allocation26 + $0x6d4] ss:$28 sps:$4 sm:$0xff]  }
 0xb5d   :  { %v12766_v57 = vpop.f32.mrf.mxu0  ;;  %v19109_v46 = vld [vmem:[#allocation26 + $0x9ac] ss:$28 sps:$4 sm:$0xff]  }
 0xb5e   :  { %vm12816_vm1 = vcmp.ge.f32.partialorder %v12804_v53, 0.0  ;;  %v12824_v34 = vmul.f32 0.1, %v12804_v53  ;;  %v12806_v35 = vadd.f32 %v12805_v42, %v12765_v61  ;;  %v12807_v54 = vpop.f32.mrf.mxu1  ;;  %15944 = vmatpush1.bf16.msra.mxu0 %v19047_v45  ;;  %v19107_v45 = vld [vmem:[#allocation26 + $0x9a8] ss:$28 sps:$4 sm:$0xff]  }
 0xb5f   :  { %v12767_v21 = vpop.f32.mrf.mxu0  ;;  %15945 = vmatprep.subr.bf16.mxu0 %v19055_v50  ;;  %v19104_v8 = vld [vmem:[#allocation26 + $0x6d0] ss:$28 sps:$4 sm:$0xff]   ;;  %v19110_v42 = vld [vmem:[#allocation26 + $0x698] ss:$28 sps:$4 sm:$0xff]   ;;  %v19116_v54 = vld [vmem:[#allocation26 + $0x660] ss:$28 sps:$4 sm:$0xff]  }
 0xb60   :  { %vm12817_vm2 = vcmp.ge.f32.partialorder %v12806_v35, 0.0  ;;  %v12825_v9 = vmul.f32 0.1, %v12806_v35  ;;  %v12808_v15 = vpop.f32.mrf.mxu1  ;;  %v12832_v23 = vsel %vm12816_vm1, %v12804_v53, %v12824_v34  ;;  %v19115_v50 = vld [vmem:[#allocation26 + $0x974] ss:$28 sps:$4 sm:$0xff]  }
 0xb61   :  { %v20550_v7 = vpack.c.bf16 %v12832_v23, %v12832_v23  ;;  %v19112_v53 = vld [vmem:[#allocation26 + $0x69c] ss:$28 sps:$4 sm:$0xff]   ;;  %v19113_v61 = vld [vmem:[#allocation26 + $0x970] ss:$28 sps:$4 sm:$0xff]   ;;  %v19118_v34 = vld [vmem:[#allocation26 + $0x664] ss:$28 sps:$4 sm:$0xff]  }
 0xb62   :  { %v12833_v47 = vsel %vm12817_vm2, %v12806_v35, %v12825_v9  ;;  %15946 = vmatpush1.bf16.msra.mxu0 %v19053_v48  ;;  %v19121_v57 = vld [vmem:[#allocation26 + $0x93c] ss:$28 sps:$4 sm:$0xff]   ;;  %v19127_v48 = vld [vmem:[#allocation26 + $0x904] ss:$28 sps:$4 sm:$0xff]   ;;  %v19124_v21 = vld [vmem:[#allocation26 + $0x62c] ss:$28 sps:$4 sm:$0xff]  }
 0xb63   :  { %v20548_v14 = vpack.c.bf16 %v12833_v47, %v12833_v47  ;;  %15947 = vmatprep.subr.bf16.mxu0 %v19061_v10  ;;  %v19119_v35 = vld [vmem:[#allocation26 + $0x938] ss:$28 sps:$4 sm:$0xff]   ;;  %v19125_v10 = vld [vmem:[#allocation26 + $0x900] ss:$28 sps:$4 sm:$0xff]   ;;  %v19122_v9 = vld [vmem:[#allocation26 + $0x628] ss:$28 sps:$4 sm:$0xff]  }
 0xb64   :  { %v19133_v15 = vld [vmem:[#allocation26 + $0x8cc] ss:$28 sps:$4 sm:$0xff]   ;;  %v19130_v23 = vld [vmem:[#allocation26 + $0x5f4] ss:$28 sps:$4 sm:$0xff]  }
 0xb65   :  { %15850 = vmatprep.mubr.bf16.mxu1 %v20548_v14  ;;  %v19131_v47 = vld [vmem:[#allocation26 + $0x8c8] ss:$28 sps:$4 sm:$0xff]  }
 0xb66   :  { %15851 = vmatmul.mubr.bf16.vlgmr.msra.gmra.mxu1 %v20550_v7  ;;  %15948 = vmatpush1.bf16.msra.mxu0 %v19059_v36  ;;  %v19128_v36 = vld [vmem:[#allocation26 + $0x5f0] ss:$28 sps:$4 sm:$0xff]  }
 0xb67   :  { %15901 = vmatpush1.bf16.msra.mxu1 %v19056_v33  ;;  %15932 = vmatprep.mubr.bf16.mxu1 %v20489_v58  ;;  %v20555_v33 = vld [vmem:[#allocation28] sm:$0xff] }
 0xb68   :  { %15902 = vmatprep.subr.bf16.mxu1 %v19064_v62  ;;  %15949 = vmatprep.subr.bf16.mxu0 %v19067_v44  ;;  %v19139_v62 = vld [vmem:[#allocation26 + $0x19c] ss:$28 sps:$4 sm:$0xff]  }
 0xb69   :  { %v19136_v44 = vld [vmem:[#allocation26 + $0x5bc] ss:$28 sps:$4 sm:$0xff]  }
 0xb6a   :  { %15950 = vmatpush1.bf16.msra.mxu0 %v19065_v52  ;;  %v13359_v52 = vrot.slane %v20555_v33, %v20075_v6 }
 0xb6b   :  { %15903 = vmatpush1.bf16.msra.mxu1 %v19062_v39  ;;  %15951 = vmatprep.subr.bf16.mxu0 %v19073_v3  ;;  %v19137_v39 = vld [vmem:[#allocation26 + $0x198] ss:$28 sps:$4 sm:$0xff]  }
 0xb6c   :  { %15904 = vmatprep.subr.bf16.mxu1 %v19070_v16  ;;  %v19134_v3 = vld [vmem:[#allocation26 + $0x5b8] ss:$28 sps:$4 sm:$0xff]   ;;  %v19145_v16 = vld [vmem:[#allocation26 + $0x164] ss:$28 sps:$4 sm:$0xff]  }
 0xb6e   :  { %15952 = vmatpush1.bf16.msra.mxu0 %v19071_v29  ;;  %v13363_v29 = vrot.slane %v20555_v33, %v20078_v13  ;;  %v19148_v13 = vld [vmem:[#allocation26 + $0x54c] ss:$28 sps:$4 sm:$0xff]  }
 0xb6f   :  { %15905 = vmatpush1.bf16.msra.mxu1 %v19068_v22  ;;  %15953 = vmatprep.subr.bf16.mxu0 %v19079_v27  ;;  %v19142_v22 = vld [vmem:[#allocation26 + $0x584] ss:$28 sps:$4 sm:$0xff]  }
 0xb70   :  { %15906 = vmatprep.subr.bf16.mxu1 %v19076_v20 }
 0xb72   :  { %15954 = vmatpush1.bf16.msra.mxu0 %v19077_v17 }
 0xb73   :  { %15907 = vmatpush1.bf16.msra.mxu1 %v19074_v11  ;;  %15955 = vmatprep.subr.bf16.mxu0 %v19085_v43  ;;  %v19143_v11 = vld [vmem:[#allocation26 + $0x160] ss:$28 sps:$4 sm:$0xff]  }
 0xb74   :  { %15908 = vmatprep.subr.bf16.mxu1 %v19082_v49  ;;  %v19140_v43 = vld [vmem:[#allocation26 + $0x580] ss:$28 sps:$4 sm:$0xff]   ;;  %v19151_v49 = vld [vmem:[#allocation26 + $0x12c] ss:$28 sps:$4 sm:$0xff]  }
 0xb76   :  { %15956 = vmatpush1.bf16.msra.mxu0 %v19083_v63 }
 0xb77   :  { %15909 = vmatpush1.bf16.msra.mxu1 %v19080_v51  ;;  %15957 = vmatprep.subr.bf16.mxu0 %v19091_v24 }
 0xb78   :  { %15910 = vmatprep.subr.bf16.mxu1 %v19088_v1 }
 0xb7a   :  { %15958 = vmatpush2.bf16.msra.mxu0 %v19089_v28 }
 0xb7b   :  { %15911 = vmatpush1.bf16.msra.mxu1 %v19086_v12  ;;  %15959 = vmatprep.subr.bf16.mxu0 %v19097_v4  ;;  %v19149_v4 = vld [vmem:[#allocation26 + $0x128] ss:$28 sps:$4 sm:$0xff]  }
 0xb7c   :  { %15912 = vmatprep.subr.bf16.mxu1 %v19094_v32 }
 0xb7e   :  { %15960 = vmatpush2.bf16.msra.mxu0 %v19095_v41  ;;  %v19146_v41 = vld [vmem:[#allocation26 + $0x548] ss:$28 sps:$4 sm:$0xff]  }
 0xb7f   :  { %15913 = vmatpush1.bf16.msra.mxu1 %v19092_v60  ;;  %15961 = vmatprep.subr.bf16.mxu0 %v19103_v25  ;;  %v19157_v60 = vld [vmem:[#allocation26 + $0xf4] ss:$28 sps:$4 sm:$0xff]  }
 0xb80   :  { %15914 = vmatprep.subr.bf16.mxu1 %v19100_v2  ;;  %v19154_v2 = vld [vmem:[#allocation26 + $0xc14] ss:$28 sps:$4 sm:$0xff]  }
 0xb82   :  { %15962 = vmatpush2.bf16.msra.mxu0 %v19101_v19  ;;  %v19155_v19 = vld [vmem:[#allocation26 + $0xf0] ss:$28 sps:$4 sm:$0xff]  }
 0xb83   :  { %15915 = vmatpush1.bf16.msra.mxu1 %v19098_v30  ;;  %15963 = vmatprep.subr.bf16.mxu0 %v19109_v46  ;;  %v19152_v30 = vld [vmem:[#allocation26 + $0xc10] ss:$28 sps:$4 sm:$0xff]   ;;  %v19160_v46 = vld [vmem:[#allocation26 + $0xbdc] ss:$28 sps:$4 sm:$0xff]  }
 0xb84   :  { %15916 = vmatprep.subr.bf16.mxu1 %v19106_v55  ;;  %v19163_v55 = vld [vmem:[#allocation26 + $0xbc] ss:$28 sps:$4 sm:$0xff]  }
 0xb86   :  { %15964 = vmatpush2.bf16.msra.mxu0 %v19107_v45  ;;  %v19161_v45 = vld [vmem:[#allocation26 + $0xb8] ss:$28 sps:$4 sm:$0xff]  }
 0xb87   :  { %15917 = vmatpush2.bf16.msra.mxu1 %v19104_v8  ;;  %15965 = vmatprep.subr.bf16.mxu0 %v19115_v50  ;;  %v19158_v8 = vld [vmem:[#allocation26 + $0xbd8] ss:$28 sps:$4 sm:$0xff]   ;;  %v19169_v50 = vld [vmem:[#allocation26 + $0x84] ss:$28 sps:$4 sm:$0xff]  }
 0xb88   :  { %15918 = vmatprep.subr.bf16.mxu1 %v19112_v53  ;;  %v19166_v53 = vld [vmem:[#allocation26 + $0xba4] ss:$28 sps:$4 sm:$0xff]  }
 0xb8a   :  { %15966 = vmatpush2.bf16.msra.mxu0 %v19113_v61  ;;  %v19167_v61 = vld [vmem:[#allocation26 + $0x80] ss:$28 sps:$4 sm:$0xff]  }
 0xb8b   :  { %15919 = vmatpush2.bf16.msra.mxu1 %v19110_v42  ;;  %15967 = vmatprep.subr.bf16.mxu0 %v19121_v57  ;;  %v19164_v42 = vld [vmem:[#allocation26 + $0xba0] ss:$28 sps:$4 sm:$0xff]   ;;  %v19175_v57 = vld [vmem:[#allocation26 + $0x4c] ss:$28 sps:$4 sm:$0xff]  }
 0xb8c   :  { %15920 = vmatprep.subr.bf16.mxu1 %v19118_v34  ;;  %v19172_v34 = vld [vmem:[#allocation26 + $0xb6c] ss:$28 sps:$4 sm:$0xff]  }
 0xb8e   :  { %15968 = vmatpush2.bf16.msra.mxu0 %v19119_v35  ;;  %v19173_v35 = vld [vmem:[#allocation26 + $0x48] ss:$28 sps:$4 sm:$0xff]  }
 0xb8f   :  { %15921 = vmatpush2.bf16.msra.mxu1 %v19116_v54  ;;  %15969 = vmatprep.subr.bf16.mxu0 %v19127_v48  ;;  %v19170_v54 = vld [vmem:[#allocation26 + $0xb68] ss:$28 sps:$4 sm:$0xff]   ;;  %v19181_v48 = vld [vmem:[#allocation26 + $0x14] ss:$28 sps:$4 sm:$0xff]  }
 0xb90   :  { %15922 = vmatprep.subr.bf16.mxu1 %v19124_v21  ;;  %v19178_v21 = vld [vmem:[#allocation26 + $0xb34] ss:$28 sps:$4 sm:$0xff]  }
 0xb92   :  { %15970 = vmatpush2.bf16.msra.mxu0 %v19125_v10  ;;  %v19179_v10 = vld [vmem:[#allocation26 + $0x10] ss:$28 sps:$4 sm:$0xff]  }
 0xb93   :  { %15923 = vmatpush2.bf16.msra.mxu1 %v19122_v9  ;;  %15971 = vmatprep.subr.bf16.mxu0 %v19133_v15  ;;  %v19176_v9 = vld [vmem:[#allocation26 + $0xb30] ss:$28 sps:$4 sm:$0xff]   ;;  %v19187_v15 = vld [vmem:[#allocation26 + $0x35c] ss:$28 sps:$4 sm:$0xff]  }
 0xb94   :  { %15924 = vmatprep.subr.bf16.mxu1 %v19130_v23  ;;  %v19184_v23 = vld [vmem:[#allocation26 + $0xafc] ss:$28 sps:$4 sm:$0xff]  }
 0xb96   :  { %15972 = vmatpush2.bf16.msra.mxu0 %v19131_v47  ;;  %v19185_v47 = vld [vmem:[#allocation26 + $0x358] ss:$28 sps:$4 sm:$0xff]  }
 0xb97   :  { %15925 = vmatpush2.bf16.msra.mxu1 %v19128_v36  ;;  %16023 = vmatprep.subr.bf16.mxu0 %v19139_v62  ;;  %v19182_v36 = vld [vmem:[#allocation26 + $0xaf8] ss:$28 sps:$4 sm:$0xff]   ;;  %v19193_v62 = vld [vmem:[#allocation26 + $0x324] ss:$28 sps:$4 sm:$0xff]  }
 0xb98   :  { %15926 = vmatprep.subr.bf16.mxu1 %v19136_v44  ;;  %v19190_v44 = vld [vmem:[#allocation26 + $0xac4] ss:$28 sps:$4 sm:$0xff]  }
 0xb99   :  { %v15729_v27 = vpop.f32.mrf.mxu0  ;;  %15974 = vmatmul.mubr.bf16.vlgmr.msra.gmra.mxu0 %v20526_v5 }
 0xb9a   :  { %v15730_v20 = vadd.f32 %v15729_v27, %v13359_v52  ;;  %v15770_v17 = vpop.f32.mrf.mxu1  ;;  %16024 = vmatpush1.bf16.msra.mxu0 %v19137_v39  ;;  %16055 = vmatprep.mubr.bf16.mxu0 %v20486_v31  ;;  %v19191_v52 = vld [vmem:[#allocation26 + $0x320] ss:$28 sps:$4 sm:$0xff]   ;;  %v19205_v27 = vld [vmem:[#allocation26 + $0x2b4] ss:$28 sps:$4 sm:$0xff]  }
 0xb9b   :  { %15927 = vmatpush2.bf16.msra.mxu1 %v19134_v3  ;;  %v15731_v6 = vpop.f32.mrf.mxu0  ;;  %16025 = vmatprep.subr.bf16.mxu0 %v19145_v16  ;;  %v19188_v39 = vld [vmem:[#allocation26 + $0xac0] ss:$28 sps:$4 sm:$0xff]   ;;  %v19199_v3 = vld [vmem:[#allocation26 + $0x2ec] ss:$28 sps:$4 sm:$0xff]  }
 0xb9c   :  { %v20563_v63 = vadd.f32 %v15770_v17, %v15730_v20  ;;  %v15732_v51 = vadd.f32 %v15731_v6, %v13363_v29  ;;  %v15772_v24 = vpop.f32.mrf.mxu1  ;;  %15928 = vmatprep.subr.bf16.mxu1 %v19142_v22  ;;  %v19196_v16 = vld [vmem:[#allocation26 + $0xa8c] ss:$28 sps:$4 sm:$0xff]   ;;  %v19202_v20 = vld [vmem:[#allocation26 + $0xdd4] ss:$28 sps:$4 sm:$0xff]   ;;  %v19211_v6 = vld [vmem:[#allocation26 + $0x27c] ss:$28 sps:$4 sm:$0xff]  }
 0xb9d   :  { %v15733_v1 = vpop.f32.mrf.mxu0  ;;  %v19197_v29 = vld [vmem:[#allocation26 + $0x2e8] ss:$28 sps:$4 sm:$0xff]   ;;  %v19203_v17 = vld [vmem:[#allocation26 + $0x2b0] ss:$28 sps:$4 sm:$0xff]  }
 0xb9e   :  { %v20565_v28 = vadd.f32 %v15772_v24, %v15732_v51  ;;  %v15774_v12 = vpop.f32.mrf.mxu1  ;;  %16026 = vmatpush1.bf16.msra.mxu0 %v19143_v11  ;;  %v19194_v22 = vld [vmem:[#allocation26 + $0xa88] ss:$28 sps:$4 sm:$0xff]   ;;  %v19200_v11 = vld [vmem:[#allocation26 + $0xdd0] ss:$28 sps:$4 sm:$0xff]   ;;  %v19206_v51 = vld [vmem:[#allocation26 + $0xd98] ss:$28 sps:$4 sm:$0xff]  }
 0xb9f   :  { %15929 = vmatpush2.bf16.msra.mxu1 %v19140_v43  ;;  %v15734_v32 = vpop.f32.mrf.mxu0  ;;  %16027 = vmatprep.subr.bf16.mxu0 %v19151_v49  ;;  %v19208_v43 = vld [vmem:[#allocation26 + $0xd9c] ss:$28 sps:$4 sm:$0xff]   ;;  %v19217_v24 = vld [vmem:[#allocation26 + $0x244] ss:$28 sps:$4 sm:$0xff]  }
 0xba0   :  { %v15775_v25 = vpop.f32.mrf.mxu1  ;;  %15930 = vmatprep.subr.bf16.mxu1 %v19148_v13  ;;  %v19209_v49 = vld [vmem:[#allocation26 + $0x278] ss:$28 sps:$4 sm:$0xff]   ;;  %v19214_v13 = vld [vmem:[#allocation26 + $0xd64] ss:$28 sps:$4 sm:$0xff]   ;;  %v19220_v32 = vld [vmem:[#allocation26 + $0xd2c] ss:$28 sps:$4 sm:$0xff]  }
 0xba1   :  { %v19215_v1 = vld [vmem:[#allocation26 + $0x240] ss:$28 sps:$4 sm:$0xff]   ;;  %v19229_v25 = vld [vmem:[#allocation26 + $0x1d4] ss:$28 sps:$4 sm:$0xff]  }
 0xba2   :  { %16028 = vmatpush1.bf16.msra.mxu0 %v19149_v4  ;;  %v19212_v12 = vld [vmem:[#allocation26 + $0xd60] ss:$28 sps:$4 sm:$0xff]   ;;  %v19223_v4 = vld [vmem:[#allocation26 + $0x20c] ss:$28 sps:$4 sm:$0xff]  }
 0xba3   :  { %15931 = vmatpush2.bf16.msra.mxu1 %v19146_v41  ;;  %16029 = vmatprep.subr.bf16.mxu0 %v19157_v60  ;;  %v19221_v41 = vld [vmem:[#allocation26 + $0x208] ss:$28 sps:$4 sm:$0xff]  }
 0xba4   :  { %15982 = vmatprep.subr.bf16.mxu1 %v19154_v2  ;;  %v19218_v60 = vld [vmem:[#allocation26 + $0xd28] ss:$28 sps:$4 sm:$0xff]   ;;  %v19226_v2 = vld [vmem:[#allocation26 + $0xcf4] ss:$28 sps:$4 sm:$0xff]  }
 0xba6   :  { %15933 = vmatmul.mubr.bf16.vlgmr.msra.gmra.mxu1 %v20511_v26  ;;  %16030 = vmatpush1.bf16.msra.mxu0 %v19155_v19  ;;  %v19227_v19 = vld [vmem:[#allocation26 + $0x1d0] ss:$28 sps:$4 sm:$0xff]  }
 0xba7   :  { %15983 = vmatpush1.bf16.msra.mxu1 %v19152_v30  ;;  %16014 = vmatprep.mubr.bf16.mxu1 %v20548_v14  ;;  %v19224_v30 = vld [vmem:[#allocation26 + $0xcf0] ss:$28 sps:$4 sm:$0xff]  }
 0xba8   :  { %15984 = vmatprep.subr.bf16.mxu1 %v19160_v46  ;;  %16031 = vmatprep.subr.bf16.mxu0 %v19163_v55  ;;  %v19235_v46 = vld [vmem:[#allocation26 + $0x89c] ss:$28 sps:$4 sm:$0xff]  }
 0xba9   :  { %v19232_v55 = vld [vmem:[#allocation26 + $0xcbc] ss:$28 sps:$4 sm:$0xff]  }
 0xbaa   :  { %16032 = vmatpush1.bf16.msra.mxu0 %v19161_v45  ;;  %v19233_v45 = vld [vmem:[#allocation26 + $0x898] ss:$28 sps:$4 sm:$0xff]  }
 0xbab   :  { %15985 = vmatpush1.bf16.msra.mxu1 %v19158_v8  ;;  %16033 = vmatprep.subr.bf16.mxu0 %v19169_v50  ;;  %v19230_v8 = vld [vmem:[#allocation26 + $0xcb8] ss:$28 sps:$4 sm:$0xff]   ;;  %v19241_v50 = vld [vmem:[#allocation26 + $0x864] ss:$28 sps:$4 sm:$0xff]  }
 0xbac   :  { %15986 = vmatprep.subr.bf16.mxu1 %v19166_v53  ;;  %v19238_v53 = vld [vmem:[#allocation26 + $0xc84] ss:$28 sps:$4 sm:$0xff]  }
 0xbae   :  { %16034 = vmatpush1.bf16.msra.mxu0 %v19167_v61 }
 0xbaf   :  { %15987 = vmatpush1.bf16.msra.mxu1 %v19164_v42  ;;  %16035 = vmatprep.subr.bf16.mxu0 %v19175_v57  ;;  %v19239_v57 = vld [vmem:[#allocation26 + $0x860] ss:$28 sps:$4 sm:$0xff]  }
 0xbb0   :  { %15988 = vmatprep.subr.bf16.mxu1 %v19172_v34 }
 0xbb2   :  { %16036 = vmatpush1.bf16.msra.mxu0 %v19173_v35  ;;  %v19236_v35 = vld [vmem:[#allocation26 + $0xc80] ss:$28 sps:$4 sm:$0xff]  }
 0xbb3   :  { %15989 = vmatpush1.bf16.msra.mxu1 %v19170_v54  ;;  %16037 = vmatprep.subr.bf16.mxu0 %v19181_v48  ;;  %v19247_v54 = vld [vmem:[#allocation26 + $0x82c] ss:$28 sps:$4 sm:$0xff]  }
 0xbb4   :  { %15990 = vmatprep.subr.bf16.mxu1 %v19178_v21  ;;  %v19244_v21 = vld [vmem:[#allocation26 + $0xc4c] ss:$28 sps:$4 sm:$0xff]  }
 0xbb6   :  { %16038 = vmatpush1.bf16.msra.mxu0 %v19179_v10 }
 0xbb7   :  { %15991 = vmatpush1.bf16.msra.mxu1 %v19176_v9  ;;  %16039 = vmatprep.subr.bf16.mxu0 %v19187_v15  ;;  %v19245_v9 = vld [vmem:[#allocation26 + $0x828] ss:$28 sps:$4 sm:$0xff]  }
 0xbb8   :  { %15992 = vmatprep.subr.bf16.mxu1 %v19184_v23  ;;  %v19242_v15 = vld [vmem:[#allocation26 + $0xc48] ss:$28 sps:$4 sm:$0xff]   ;;  %v19253_v23 = vld [vmem:[#allocation26 + $0x7f4] ss:$28 sps:$4 sm:$0xff]  }
 0xbba   :  { %16040 = vmatpush2.bf16.msra.mxu0 %v19185_v47  ;;  %v19250_v47 = vld [vmem:[#allocation26 + $0x51c] ss:$28 sps:$4 sm:$0xff]  }
 0xbbb   :  { %15993 = vmatpush1.bf16.msra.mxu1 %v19182_v36  ;;  %16041 = vmatprep.subr.bf16.mxu0 %v19193_v62  ;;  %v19251_v36 = vld [vmem:[#allocation26 + $0x7f0] ss:$28 sps:$4 sm:$0xff]   ;;  %v19248_v62 = vld [vmem:[#allocation26 + $0x518] ss:$28 sps:$4 sm:$0xff]  }
 0xbbc   :  { %15994 = vmatprep.subr.bf16.mxu1 %v19190_v44  ;;  %v19259_v44 = vld [vmem:[#allocation26 + $0x7bc] ss:$28 sps:$4 sm:$0xff]  }
 0xbbe   :  { %16042 = vmatpush2.bf16.msra.mxu0 %v19191_v52  ;;  %v19257_v52 = vld [vmem:[#allocation26 + $0x7b8] ss:$28 sps:$4 sm:$0xff]  }
 0xbbf   :  { %15995 = vmatpush1.bf16.msra.mxu1 %v19188_v39  ;;  %16043 = vmatprep.subr.bf16.mxu0 %v19199_v3  ;;  %v19254_v39 = vld [vmem:[#allocation26 + $0x4e0] ss:$28 sps:$4 sm:$0xff]  }
 0xbc0   :  { %15996 = vmatprep.subr.bf16.mxu1 %v19196_v16  ;;  %v19265_v3 = vld [vmem:[#allocation26 + $0x784] ss:$28 sps:$4 sm:$0xff]   ;;  %v19262_v16 = vld [vmem:[#allocation26 + $0x4ac] ss:$28 sps:$4 sm:$0xff]  }
 0xbc2   :  { %16044 = vmatpush2.bf16.msra.mxu0 %v19197_v29  ;;  %v19263_v29 = vld [vmem:[#allocation26 + $0x780] ss:$28 sps:$4 sm:$0xff]  }
 0xbc3   :  { %15997 = vmatpush1.bf16.msra.mxu1 %v19194_v22  ;;  %16045 = vmatprep.subr.bf16.mxu0 %v19205_v27  ;;  %v19260_v22 = vld [vmem:[#allocation26 + $0x4a8] ss:$28 sps:$4 sm:$0xff]  }
 0xbc4   :  { %15998 = vmatprep.subr.bf16.mxu1 %v19202_v20  ;;  %v19271_v27 = vld [vmem:[#allocation26 + $0x74c] ss:$28 sps:$4 sm:$0xff]   ;;  %v19268_v20 = vld [vmem:[#allocation26 + $0x474] ss:$28 sps:$4 sm:$0xff]  }
 0xbc6   :  { %16046 = vmatpush2.bf16.msra.mxu0 %v19203_v17  ;;  %v19269_v17 = vld [vmem:[#allocation26 + $0x748] ss:$28 sps:$4 sm:$0xff]  }
 0xbc7   :  { %15999 = vmatpush2.bf16.msra.mxu1 %v19200_v11  ;;  %16047 = vmatprep.subr.bf16.mxu0 %v19211_v6  ;;  %v19266_v11 = vld [vmem:[#allocation26 + $0x470] ss:$28 sps:$4 sm:$0xff]  }
 0xbc8   :  { %16000 = vmatprep.subr.bf16.mxu1 %v19208_v43  ;;  %v19277_v6 = vld [vmem:[#allocation26 + $0x714] ss:$28 sps:$4 sm:$0xff]   ;;  %v19274_v43 = vld [vmem:[#allocation26 + $0x43c] ss:$28 sps:$4 sm:$0xff]  }
 0xbca   :  { %16048 = vmatpush2.bf16.msra.mxu0 %v19209_v49  ;;  %v19275_v49 = vld [vmem:[#allocation26 + $0x710] ss:$28 sps:$4 sm:$0xff]  }
 0xbcb   :  { %16001 = vmatpush2.bf16.msra.mxu1 %v19206_v51  ;;  %16049 = vmatprep.subr.bf16.mxu0 %v19217_v24  ;;  %v19272_v51 = vld [vmem:[#allocation26 + $0x438] ss:$28 sps:$4 sm:$0xff]  }
 0xbcc   :  { %16002 = vmatprep.subr.bf16.mxu1 %v19214_v13  ;;  %v19283_v24 = vld [vmem:[#allocation26 + $0xa5c] ss:$28 sps:$4 sm:$0xff]   ;;  %v19280_v13 = vld [vmem:[#allocation26 + $0x404] ss:$28 sps:$4 sm:$0xff]  }
 0xbce   :  { %16050 = vmatpush2.bf16.msra.mxu0 %v19215_v1  ;;  %v19281_v1 = vld [vmem:[#allocation26 + $0xa58] ss:$28 sps:$4 sm:$0xff]  }
 0xbcf   :  { %16003 = vmatpush2.bf16.msra.mxu1 %v19212_v12  ;;  %16051 = vmatprep.subr.bf16.mxu0 %v19223_v4  ;;  %v19278_v12 = vld [vmem:[#allocation26 + $0x400] ss:$28 sps:$4 sm:$0xff]  }
 0xbd0   :  { %16004 = vmatprep.subr.bf16.mxu1 %v19220_v32  ;;  %v19289_v4 = vld [vmem:[#allocation26 + $0xa24] ss:$28 sps:$4 sm:$0xff]   ;;  %v19286_v32 = vld [vmem:[#allocation26 + $0x3cc] ss:$28 sps:$4 sm:$0xff]  }
 0xbd2   :  { %16052 = vmatpush2.bf16.msra.mxu0 %v19221_v41  ;;  %v19287_v41 = vld [vmem:[#allocation26 + $0xa20] ss:$28 sps:$4 sm:$0xff]  }
 0xbd3   :  { %16005 = vmatpush2.bf16.msra.mxu1 %v19218_v60  ;;  %16053 = vmatprep.subr.bf16.mxu0 %v19229_v25  ;;  %v19284_v60 = vld [vmem:[#allocation26 + $0x3c8] ss:$28 sps:$4 sm:$0xff]  }
 0xbd4   :  { %16006 = vmatprep.subr.bf16.mxu1 %v19226_v2  ;;  %v19295_v25 = vld [vmem:[#allocation26 + $0x9ec] ss:$28 sps:$4 sm:$0xff]   ;;  %v19292_v2 = vld [vmem:[#allocation26 + $0x394] ss:$28 sps:$4 sm:$0xff]  }
 0xbd6   :  { %16054 = vmatpush2.bf16.msra.mxu0 %v19227_v19  ;;  %v19293_v19 = vld [vmem:[#allocation26 + $0x9e8] ss:$28 sps:$4 sm:$0xff]  }
 0xbd7   :  { %16007 = vmatpush2.bf16.msra.mxu1 %v19224_v30  ;;  %16105 = vmatprep.subr.bf16.mxu0 %v19235_v46  ;;  %v19290_v30 = vld [vmem:[#allocation26 + $0x390] ss:$28 sps:$4 sm:$0xff]  }
 0xbd8   :  { %16008 = vmatprep.subr.bf16.mxu1 %v19232_v55  ;;  %v19301_v46 = vld [vmem:[#allocation26 + $0x9b4] ss:$28 sps:$4 sm:$0xff]   ;;  %v19298_v55 = vld [vmem:[#allocation26 + $0x6dc] ss:$28 sps:$4 sm:$0xff]  }
 0xbd9   :  { %v15811_v61 = vpop.f32.mrf.mxu0  ;;  %16056 = vmatmul.mubr.bf16.vlgmr.msra.gmra.mxu0 %v20509_v38 }
 0xbda   :  { %v20571_v42 = vadd.f32 %v15811_v61, %v20563_v63  ;;  %16106 = vmatpush1.bf16.msra.mxu0 %v19233_v45  ;;  %16137 = vmatprep.mubr.bf16.mxu0 %v20520_v18  ;;  %v19299_v45 = vld [vmem:[#allocation26 + $0x9b0] ss:$28 sps:$4 sm:$0xff]   ;;  %v19305_v61 = vld [vmem:[#allocation26 + $0x978] ss:$28 sps:$4 sm:$0xff]  }
 0xbdb   :  { %16009 = vmatpush2.bf16.msra.mxu1 %v19230_v8  ;;  %v15813_v34 = vpop.f32.mrf.mxu0  ;;  %16107 = vmatprep.subr.bf16.mxu0 %v19241_v50  ;;  %v19296_v8 = vld [vmem:[#allocation26 + $0x6d8] ss:$28 sps:$4 sm:$0xff]  }
 0xbdc   :  { %v20575_v48 = vadd.f32 %v15813_v34, %v20565_v28  ;;  %16010 = vmatprep.subr.bf16.mxu1 %v19238_v53  ;;  %v19256_v28 = vld [vmem:[#allocation26 + $0x4e4] ss:$28 sps:$4 sm:$0xff]   ;;  %v19307_v50 = vld [vmem:[#allocation26 + $0x97c] ss:$28 sps:$4 sm:$0xff]  }
 0xbdd   :  { %v15815_v10 = vpop.f32.mrf.mxu0  ;;  %v19304_v53 = vld [vmem:[#allocation26 + $0x6a4] ss:$28 sps:$4 sm:$0xff]  }
 0xbde   :  { %16108 = vmatpush1.bf16.msra.mxu0 %v19239_v57  ;;  %v19302_v57 = vld [vmem:[#allocation26 + $0x6a0] ss:$28 sps:$4 sm:$0xff]   ;;  %v19319_v10 = vld [vmem:[#allocation26 + $0x90c] ss:$28 sps:$4 sm:$0xff]  }
 0xbdf   :  { %16011 = vmatpush2.bf16.msra.mxu1 %v19236_v35  ;;  %v15816_v63 = vpop.f32.mrf.mxu0  ;;  %16109 = vmatprep.subr.bf16.mxu0 %v19247_v54  ;;  %v19313_v34 = vld [vmem:[#allocation26 + $0x944] ss:$28 sps:$4 sm:$0xff]   ;;  %v19310_v35 = vld [vmem:[#allocation26 + $0x66c] ss:$28 sps:$4 sm:$0xff]  }
 0xbe0   :  { %16012 = vmatprep.subr.bf16.mxu1 %v19244_v21  ;;  %v19311_v54 = vld [vmem:[#allocation26 + $0x940] ss:$28 sps:$4 sm:$0xff]   ;;  %v19308_v21 = vld [vmem:[#allocation26 + $0x668] ss:$28 sps:$4 sm:$0xff]  }
 0xbe1   :  { %v19317_v63 = vld [vmem:[#allocation26 + $0x908] ss:$28 sps:$4 sm:$0xff]  }
 0xbe2   :  { %16110 = vmatpush1.bf16.msra.mxu0 %v19245_v9  ;;  %v19316_v9 = vld [vmem:[#allocation26 + $0x634] ss:$28 sps:$4 sm:$0xff]  }
 0xbe3   :  { %16013 = vmatpush2.bf16.msra.mxu1 %v19242_v15  ;;  %16111 = vmatprep.subr.bf16.mxu0 %v19253_v23  ;;  %v19314_v15 = vld [vmem:[#allocation26 + $0x630] ss:$28 sps:$4 sm:$0xff]  }
 0xbe4   :  { %16064 = vmatprep.subr.bf16.mxu1 %v19250_v47  ;;  %v19325_v23 = vld [vmem:[#allocation26 + $0x8d4] ss:$28 sps:$4 sm:$0xff]   ;;  %v19322_v47 = vld [vmem:[#allocation26 + $0x5fc] ss:$28 sps:$4 sm:$0xff]  }
 0xbe6   :  { %16015 = vmatmul.mubr.bf16.vlgmr.msra.gmra.mxu1 %v20550_v7  ;;  %16112 = vmatpush1.bf16.msra.mxu0 %v19251_v36  ;;  %v19323_v36 = vld [vmem:[#allocation26 + $0x8d0] ss:$28 sps:$4 sm:$0xff]  }
 0xbe7   :  { %16065 = vmatpush1.bf16.msra.mxu1 %v19248_v62  ;;  %16096 = vmatprep.mubr.bf16.mxu1 %v20489_v58  ;;  %v19320_v62 = vld [vmem:[#allocation26 + $0x5f8] ss:$28 sps:$4 sm:$0xff]  }
 0xbe8   :  { %16066 = vmatprep.subr.bf16.mxu1 %v19256_v28  ;;  %16113 = vmatprep.subr.bf16.mxu0 %v19259_v44  ;;  %v19329_v28 = vld [vmem:[#allocation26 + $0x360] ss:$28 sps:$4 sm:$0xff]  }
 0xbe9   :  { %v19328_v44 = vld [vmem:[#allocation26 + $0x5c4] ss:$28 sps:$4 sm:$0xff]  }
 0xbea   :  { %16114 = vmatpush1.bf16.msra.mxu0 %v19257_v52  ;;  %v19330_v52 = vld [vmem:[#allocation26 + $0x1a0] ss:$28 sps:$4 sm:$0xff]  }
 0xbeb   :  { %16067 = vmatpush1.bf16.msra.mxu1 %v19254_v39  ;;  %16115 = vmatprep.subr.bf16.mxu0 %v19265_v3  ;;  %v19326_v39 = vld [vmem:[#allocation26 + $0x5c0] ss:$28 sps:$4 sm:$0xff]   ;;  %v19334_v3 = vld [vmem:[#allocation26 + $0x328] ss:$28 sps:$4 sm:$0xff]  }
 0xbec   :  { %16068 = vmatprep.subr.bf16.mxu1 %v19262_v16  ;;  %v19333_v16 = vld [vmem:[#allocation26 + $0x58c] ss:$28 sps:$4 sm:$0xff]  }
 0xbee   :  { %16116 = vmatpush1.bf16.msra.mxu0 %v19263_v29 }
 0xbef   :  { %16069 = vmatpush1.bf16.msra.mxu1 %v19260_v22  ;;  %16117 = vmatprep.subr.bf16.mxu0 %v19271_v27  ;;  %v19335_v22 = vld [vmem:[#allocation26 + $0x168] ss:$28 sps:$4 sm:$0xff]  }
 0xbf0   :  { %16070 = vmatprep.subr.bf16.mxu1 %v19268_v20  ;;  %v19331_v20 = vld [vmem:[#allocation26 + $0x588] ss:$28 sps:$4 sm:$0xff]  }
 0xbf2   :  { %16118 = vmatpush1.bf16.msra.mxu0 %v19269_v17  ;;  %v19339_v17 = vld [vmem:[#allocation26 + $0x2f0] ss:$28 sps:$4 sm:$0xff]  }
 0xbf3   :  { %16071 = vmatpush1.bf16.msra.mxu1 %v19266_v11  ;;  %16119 = vmatprep.subr.bf16.mxu0 %v19277_v6  ;;  %v19338_v11 = vld [vmem:[#allocation26 + $0x554] ss:$28 sps:$4 sm:$0xff]  }
 0xbf4   :  { %16072 = vmatprep.subr.bf16.mxu1 %v19274_v43  ;;  %v19340_v43 = vld [vmem:[#allocation26 + $0x130] ss:$28 sps:$4 sm:$0xff]  }
 0xbf6   :  { %16120 = vmatpush1.bf16.msra.mxu0 %v19275_v49 }
 0xbf7   :  { %16073 = vmatpush1.bf16.msra.mxu1 %v19272_v51  ;;  %16121 = vmatprep.subr.bf16.mxu0 %v19283_v24  ;;  %v19336_v51 = vld [vmem:[#allocation26 + $0x550] ss:$28 sps:$4 sm:$0xff]   ;;  %v19344_v24 = vld [vmem:[#allocation26 + $0x2b8] ss:$28 sps:$4 sm:$0xff]  }
 0xbf8   :  { %16074 = vmatprep.subr.bf16.mxu1 %v19280_v13  ;;  %v19343_v13 = vld [vmem:[#allocation26 + $0xc1c] ss:$28 sps:$4 sm:$0xff]  }
 0xbfa   :  { %16122 = vmatpush2.bf16.msra.mxu0 %v19281_v1  ;;  %v19341_v1 = vld [vmem:[#allocation26 + $0xc18] ss:$28 sps:$4 sm:$0xff]  }
 0xbfb   :  { %16075 = vmatpush1.bf16.msra.mxu1 %v19278_v12  ;;  %16123 = vmatprep.subr.bf16.mxu0 %v19289_v4  ;;  %v19348_v12 = vld [vmem:[#allocation26 + $0xbe4] ss:$28 sps:$4 sm:$0xff]  }
 0xbfc   :  { %16076 = vmatprep.subr.bf16.mxu1 %v19286_v32  ;;  %v19349_v4 = vld [vmem:[#allocation26 + $0x280] ss:$28 sps:$4 sm:$0xff]  }
 0xbfe   :  { %16124 = vmatpush2.bf16.msra.mxu0 %v19287_v41  ;;  %v19350_v41 = vld [vmem:[#allocation26 + $0xc0] ss:$28 sps:$4 sm:$0xff]  }
 0xbff   :  { %16077 = vmatpush1.bf16.msra.mxu1 %v19284_v60  ;;  %16125 = vmatprep.subr.bf16.mxu0 %v19295_v25  ;;  %v19346_v25 = vld [vmem:[#allocation26 + $0xbe0] ss:$28 sps:$4 sm:$0xff]  }
 0xc00   :  { %16078 = vmatprep.subr.bf16.mxu1 %v19292_v2  ;;  %v19354_v2 = vld [vmem:[#allocation26 + $0x248] ss:$28 sps:$4 sm:$0xff]  }
 0xc02   :  { %16126 = vmatpush2.bf16.msra.mxu0 %v19293_v19 }
 0xc03   :  { %16079 = vmatpush1.bf16.msra.mxu1 %v19290_v30  ;;  %16127 = vmatprep.subr.bf16.mxu0 %v19301_v46  ;;  %v19353_v30 = vld [vmem:[#allocation26 + $0xbac] ss:$28 sps:$4 sm:$0xff]  }
 0xc04   :  { %16080 = vmatprep.subr.bf16.mxu1 %v19298_v55 }
 0xc06   :  { %16128 = vmatpush2.bf16.msra.mxu0 %v19299_v45 }
 0xc07   :  { %16081 = vmatpush2.bf16.msra.mxu1 %v19296_v8  ;;  %16129 = vmatprep.subr.bf16.mxu0 %v19307_v50  ;;  %v19355_v8 = vld [vmem:[#allocation26 + $0x88] ss:$28 sps:$4 sm:$0xff]  }
 0xc08   :  { %16082 = vmatprep.subr.bf16.mxu1 %v19304_v53  ;;  %v19351_v53 = vld [vmem:[#allocation26 + $0xba8] ss:$28 sps:$4 sm:$0xff]  }
 0xc0a   :  { %16130 = vmatpush2.bf16.msra.mxu0 %v19305_v61 }
 0xc0b   :  { %16083 = vmatpush2.bf16.msra.mxu1 %v19302_v57  ;;  %16131 = vmatprep.subr.bf16.mxu0 %v19313_v34  ;;  %v19358_v57 = vld [vmem:[#allocation26 + $0xb74] ss:$28 sps:$4 sm:$0xff]  }
 0xc0c   :  { %16084 = vmatprep.subr.bf16.mxu1 %v19310_v35  ;;  %v19360_v34 = vld [vmem:[#allocation26 + $0x50] ss:$28 sps:$4 sm:$0xff]  }
 0xc0d   :  { %v19356_v35 = vld [vmem:[#allocation26 + $0xb70] ss:$28 sps:$4 sm:$0xff]  }
 0xc0e   :  { %16132 = vmatpush2.bf16.msra.mxu0 %v19311_v54  ;;  %v19364_v54 = vld [vmem:[#allocation26 + $0x1d8] ss:$28 sps:$4 sm:$0xff]  }
 0xc0f   :  { %16085 = vmatpush2.bf16.msra.mxu1 %v19308_v21  ;;  %16133 = vmatprep.subr.bf16.mxu0 %v19319_v10  ;;  %v19365_v21 = vld [vmem:[#allocation26 + $0x18] ss:$28 sps:$4 sm:$0xff]  }
 0xc10   :  { %16086 = vmatprep.subr.bf16.mxu1 %v19316_v9  ;;  %v19361_v10 = vld [vmem:[#allocation26 + $0xb38] ss:$28 sps:$4 sm:$0xff]   ;;  %v19369_v9 = vld [vmem:[#allocation26 + $0xa60] ss:$28 sps:$4 sm:$0xff]  }
 0xc12   :  { %16134 = vmatpush2.bf16.msra.mxu0 %v19317_v63  ;;  %v19368_v63 = vld [vmem:[#allocation26 + $0xb04] ss:$28 sps:$4 sm:$0xff]  }
 0xc13   :  { %16087 = vmatpush2.bf16.msra.mxu1 %v19314_v15  ;;  %16135 = vmatprep.subr.bf16.mxu0 %v19325_v23  ;;  %v19370_v15 = vld [vmem:[#allocation26 + $0x8a0] ss:$28 sps:$4 sm:$0xff]  }
 0xc14   :  { %16088 = vmatprep.subr.bf16.mxu1 %v19322_v47  ;;  %v19366_v23 = vld [vmem:[#allocation26 + $0xb00] ss:$28 sps:$4 sm:$0xff]   ;;  %v19374_v47 = vld [vmem:[#allocation26 + $0xa28] ss:$28 sps:$4 sm:$0xff]  }
 0xc16   :  { %16136 = vmatpush2.bf16.msra.mxu0 %v19323_v36  ;;  %v19373_v36 = vld [vmem:[#allocation26 + $0xacc] ss:$28 sps:$4 sm:$0xff]  }
 0xc17   :  { %16089 = vmatpush2.bf16.msra.mxu1 %v19320_v62  ;;  %18571 = vmatprep.subr.bf16.mxu0 %v19329_v28  ;;  %v19375_v62 = vld [vmem:[#allocation26 + $0x868] ss:$28 sps:$4 sm:$0xff]  }
 0xc18   :  { %16090 = vmatprep.subr.bf16.mxu1 %v19328_v44  ;;  %v19371_v28 = vld [vmem:[#allocation26 + $0xac8] ss:$28 sps:$4 sm:$0xff]   ;;  %v19379_v44 = vld [vmem:[#allocation26 + $0x9f0] ss:$28 sps:$4 sm:$0xff]  }
 0xc19   :  { %v20579_v29 = vpop.f32.mrf.mxu0  ;;  %16138 = vmatmul.mubr.bf16.vlgmr.msra.gmra.mxu0 %v20526_v5 }
 0xc1a   :  { %18572 = vmatpush3.bf16.msra.mxu0 %v19330_v52  ;;  %16219 = vmatprep.mubr.bf16.mxu0 %v20486_v31  ;;  %v19345_v31 = vld [vmem:[#allocation26 + $0xf8] ss:$28 sps:$4 sm:$0xff]  }
 0xc1b   :  { %16091 = vmatpush2.bf16.msra.mxu1 %v19326_v39  ;;  %v20583_v27 = vpop.f32.mrf.mxu0  ;;  %18573 = vmatprep.subr.bf16.mxu0 %v19334_v3  ;;  %v19378_v52 = vld [vmem:[#allocation26 + $0xa94] ss:$28 sps:$4 sm:$0xff]  }
 0xc1c   :  { %16092 = vmatprep.subr.bf16.mxu1 %v19333_v16  ;;  %v19380_v39 = vld [vmem:[#allocation26 + $0x830] ss:$28 sps:$4 sm:$0xff]   ;;  %v19384_v16 = vld [vmem:[#allocation26 + $0x9b8] ss:$28 sps:$4 sm:$0xff]  }
 0xc1d   :  { %v15897_v6 = vpop.f32.mrf.mxu0  ;;  %v19376_v3 = vld [vmem:[#allocation26 + $0xa90] ss:$28 sps:$4 sm:$0xff]  }
 0xc1e   :  { %18574 = vmatpush3.bf16.msra.mxu0 %v19335_v22  ;;  %v19383_v22 = vld [vmem:[#allocation26 + $0xddc] ss:$28 sps:$4 sm:$0xff]  }
 0xc1f   :  { %16093 = vmatpush2.bf16.msra.mxu1 %v19331_v20  ;;  %v15898_v49 = vpop.f32.mrf.mxu0  ;;  %18575 = vmatprep.subr.bf16.mxu0 %v19339_v17  ;;  %v19381_v20 = vld [vmem:[#allocation26 + $0xdd8] ss:$28 sps:$4 sm:$0xff]   ;;  %v19388_v17 = vld [vmem:[#allocation26 + $0xda4] ss:$28 sps:$4 sm:$0xff]  }
 0xc20   :  { %16094 = vmatprep.subr.bf16.mxu1 %v19338_v11  ;;  %v19390_v11 = vld [vmem:[#allocation26 + $0x7c0] ss:$28 sps:$4 sm:$0xff]   ;;  %v19393_v49 = vld [vmem:[#allocation26 + $0xd6c] ss:$28 sps:$4 sm:$0xff]  }
 0xc21   :  { %v19386_v6 = vld [vmem:[#allocation26 + $0xda0] ss:$28 sps:$4 sm:$0xff]  }
 0xc22   :  { %18576 = vmatpush3.bf16.msra.mxu0 %v19340_v43  ;;  %v19394_v43 = vld [vmem:[#allocation26 + $0x948] ss:$28 sps:$4 sm:$0xff]  }
 0xc23   :  { %16095 = vmatpush2.bf16.msra.mxu1 %v19336_v51  ;;  %18577 = vmatprep.subr.bf16.mxu0 %v19344_v24  ;;  %v19395_v51 = vld [vmem:[#allocation26 + $0x788] ss:$28 sps:$4 sm:$0xff]  }
 0xc24   :  { %16146 = vmatprep.subr.bf16.mxu1 %v19343_v13  ;;  %v19391_v24 = vld [vmem:[#allocation26 + $0xd68] ss:$28 sps:$4 sm:$0xff]   ;;  %v19399_v13 = vld [vmem:[#allocation26 + $0x910] ss:$28 sps:$4 sm:$0xff]  }
 0xc26   :  { %16097 = vmatmul.mubr.bf16.vlgmr.msra.gmra.mxu1 %v20511_v26  ;;  %v15852_v32 = vpop.f32.mrf.mxu1  ;;  %18578 = vmatpush3.bf16.msra.mxu0 %v19345_v31  ;;  %v19398_v31 = vld [vmem:[#allocation26 + $0xd34] ss:$28 sps:$4 sm:$0xff]  }
 0xc27   :  { %v15853_v60 = vadd.f32 %v15852_v32, %v20571_v42  ;;  %16147 = vmatpush1.bf16.msra.mxu1 %v19341_v1  ;;  %16178 = vmatprep.mubr.bf16.mxu1 %v20548_v14  ;;  %v19359_v42 = vld [vmem:[#allocation26 + $0x210] ss:$28 sps:$4 sm:$0xff]   ;;  %v19403_v32 = vld [vmem:[#allocation26 + $0xcfc] ss:$28 sps:$4 sm:$0xff]  }
 0xc28   :  { %v15854_v19 = vpop.f32.mrf.mxu1  ;;  %16148 = vmatprep.subr.bf16.mxu1 %v19348_v12  ;;  %18579 = vmatprep.subr.bf16.mxu0 %v19349_v4  ;;  %v19400_v1 = vld [vmem:[#allocation26 + $0x750] ss:$28 sps:$4 sm:$0xff]   ;;  %v19404_v4 = vld [vmem:[#allocation26 + $0x8d8] ss:$28 sps:$4 sm:$0xff]  }
 0xc29   :  { %v16347_v46 = vmax.f32 %v15853_v60, 0.0  ;;  %v15855_v55 = vadd.f32 %v15854_v19, %v20575_v48  ;;  %v19363_v48 = vld [vmem:[#allocation26 + $0xb3c] ss:$28 sps:$4 sm:$0xff]   ;;  %v19396_v12 = vld [vmem:[#allocation26 + $0xd30] ss:$28 sps:$4 sm:$0xff]  }
 0xc2a   :  { %v15856_v45 = vpop.f32.mrf.mxu1  ;;  %18580 = vmatpush3.bf16.msra.mxu0 %v19350_v41  ;;  %v19405_v41 = vld [vmem:[#allocation26 + $0x718] ss:$28 sps:$4 sm:$0xff]   ;;  %v19411_v19 = vld [vmem:[#allocation26 + $0xc8c] ss:$28 sps:$4 sm:$0xff]  }
 0xc2b   :  { %16354 = vst [vmem:[#allocation29] sm:$0xff] %v16347_v46  ;;  %v16348_v50 = vmax.f32 %v15855_v55, 0.0  ;;  %16149 = vmatpush1.bf16.msra.mxu1 %v19346_v25  ;;  %18581 = vmatprep.subr.bf16.mxu0 %v19354_v2  ;;  %v19401_v60 = vld [vmem:[#allocation26 + $0xcf8] ss:$28 sps:$4 sm:$0xff]   ;;  %v19408_v25 = vld [vmem:[#allocation26 + $0xcc4] ss:$28 sps:$4 sm:$0xff]  }
 0xc2c   :  { %v15857_v61 = vpop.f32.mrf.mxu1  ;;  %16150 = vmatprep.subr.bf16.mxu1 %v19353_v30  ;;  %v19406_v2 = vld [vmem:[#allocation26 + $0xcc0] ss:$28 sps:$4 sm:$0xff]   ;;  %v19409_v55 = vld [vmem:[#allocation26 + $0xc88] ss:$28 sps:$4 sm:$0xff]   ;;  %v19414_v45 = vld [vmem:[#allocation26 + $0xc54] ss:$28 sps:$4 sm:$0xff]  }
 0xc2d   :  { %16355 = vst [vmem:[#allocation29 + $0x8] sm:$0xff] %v16348_v50  ;;  %v13367_v61 = vrot.slane %v20555_v33, %v20111_v56 }
 0xc2e   :  { %18582 = vmatpush3.bf16.msra.mxu0 %v19355_v8 }
 0xc2f   :  { %16151 = vmatpush1.bf16.msra.mxu1 %v19351_v53  ;;  %18583 = vmatprep.subr.bf16.mxu0 %v19359_v42  ;;  %v19412_v53 = vld [vmem:[#allocation26 + $0xc50] ss:$28 sps:$4 sm:$0xff]   ;;  %v19415_v42 = vld [vmem:[#allocation26 + $0x6e0] ss:$28 sps:$4 sm:$0xff]  }
 0xc30   :  { %16152 = vmatprep.subr.bf16.mxu1 %v19358_v57  ;;  %v13371_v57 = vrot.slane %v20555_v33, %v20132_v0 }
 0xc32   :  { %18584 = vmatpush3.bf16.msra.mxu0 %v19360_v34  ;;  %v19416_v34 = vld [vmem:[#allocation26 + $0x520] ss:$28 sps:$4 sm:$0xff]  }
 0xc33   :  { %16153 = vmatpush1.bf16.msra.mxu1 %v19356_v35  ;;  %18585 = vmatprep.subr.bf16.mxu0 %v19364_v54  ;;  %v15894_v35 = vadd.f32 %v20579_v29, %v13367_v61 }
 0xc34   :  { %16154 = vmatprep.subr.bf16.mxu1 %v19363_v48  ;;  %v15896_v48 = vadd.f32 %v20583_v27, %v13371_v57  ;;  %v19422_v27 = vld [vmem:[#allocation26 + $0x478] ss:$28 sps:$4 sm:$0xff]  }
 0xc36   :  { %18586 = vmatpush3.bf16.msra.mxu0 %v19365_v21 }
 0xc37   :  { %16155 = vmatpush1.bf16.msra.mxu1 %v19361_v10  ;;  %18615 = vmatprep.subr.bf16.mxu0 %v19369_v9  ;;  %v19418_v10 = vld [vmem:[#allocation26 + $0x4e8] ss:$28 sps:$4 sm:$0xff]   ;;  %v19419_v9 = vld [vmem:[#allocation26 + $0x670] ss:$28 sps:$4 sm:$0xff]  }
 0xc38   :  { %16156 = vmatprep.subr.bf16.mxu1 %v19368_v63 }
 0xc39   :  { %16220 = vmatmul.mubr.bf16.vlgmr.msra.gmra.mxu0 %v20509_v38  ;;  %v19385_v38 = vld [vmem:[#allocation26 + $0x7f8] ss:$28 sps:$4 sm:$0xff]  }
 0xc3a   :  { %18616 = vmatpush3.bf16.msra.mxu0 %v19370_v15  ;;  %16299 = vmatprep.mubr.bf16.mxu0 %v20520_v18  ;;  %v19389_v18 = vld [vmem:[#allocation26 + $0x980] ss:$28 sps:$4 sm:$0xff]   ;;  %v19420_v15 = vld [vmem:[#allocation26 + $0x4b0] ss:$28 sps:$4 sm:$0xff]  }
 0xc3b   :  { %16157 = vmatpush1.bf16.msra.mxu1 %v19366_v23  ;;  %18617 = vmatprep.subr.bf16.mxu0 %v19374_v47  ;;  %v19421_v47 = vld [vmem:[#allocation26 + $0x638] ss:$28 sps:$4 sm:$0xff]  }
 0xc3c   :  { %16158 = vmatprep.subr.bf16.mxu1 %v19373_v36  ;;  %v19423_v36 = vld [vmem:[#allocation26 + $0x600] ss:$28 sps:$4 sm:$0xff]  }
 0xc3e   :  { %18618 = vmatpush3.bf16.msra.mxu0 %v19375_v62  ;;  %v19425_v62 = vld [vmem:[#allocation26 + $0x5c8] ss:$28 sps:$4 sm:$0xff]  }
 0xc3f   :  { %16159 = vmatpush1.bf16.msra.mxu1 %v19371_v28  ;;  %18619 = vmatprep.subr.bf16.mxu0 %v19379_v44  ;;  %v19426_v28 = vld [vmem:[#allocation26 + $0x408] ss:$28 sps:$4 sm:$0xff]   ;;  %v19427_v44 = vld [vmem:[#allocation26 + $0x590] ss:$28 sps:$4 sm:$0xff]  }
 0xc40   :  { %16160 = vmatprep.subr.bf16.mxu1 %v19378_v52  ;;  %v19428_v52 = vld [vmem:[#allocation26 + $0x3d0] ss:$28 sps:$4 sm:$0xff]  }
 0xc42   :  { %18620 = vmatpush3.bf16.msra.mxu0 %v19380_v39  ;;  %v19429_v39 = vld [vmem:[#allocation26 + $0x558] ss:$28 sps:$4 sm:$0xff]  }
 0xc43   :  { %16161 = vmatpush1.bf16.msra.mxu1 %v19376_v3  ;;  %18621 = vmatprep.subr.bf16.mxu0 %v19384_v16  ;;  %v19430_v3 = vld [vmem:[#allocation26 + $0x398] ss:$28 sps:$4 sm:$0xff]   ;;  %v19431_v16 = vld [vmem:[#allocation26 + $0xde0] ss:$28 sps:$4 sm:$0xff]  }
 0xc44   :  { %16162 = vmatprep.subr.bf16.mxu1 %v19383_v22  ;;  %v19432_v22 = vld [vmem:[#allocation26 + $0xc20] ss:$28 sps:$4 sm:$0xff]  }
 0xc46   :  { %18622 = vmatpush3.bf16.msra.mxu0 %v19385_v38  ;;  %v19433_v38 = vld [vmem:[#allocation26 + $0xda8] ss:$28 sps:$4 sm:$0xff]  }
 0xc47   :  { %16163 = vmatpush2.bf16.msra.mxu1 %v19381_v20  ;;  %18623 = vmatprep.subr.bf16.mxu0 %v19389_v18  ;;  %v19434_v20 = vld [vmem:[#allocation26 + $0xbe8] ss:$28 sps:$4 sm:$0xff]   ;;  %v19435_v18 = vld [vmem:[#allocation26 + $0xd70] ss:$28 sps:$4 sm:$0xff]  }
 0xc48   :  { %16164 = vmatprep.subr.bf16.mxu1 %v19388_v17  ;;  %v19436_v17 = vld [vmem:[#allocation26 + $0xbb0] ss:$28 sps:$4 sm:$0xff]  }
 0xc4a   :  { %18624 = vmatpush3.bf16.msra.mxu0 %v19390_v11  ;;  %v19437_v11 = vld [vmem:[#allocation26 + $0xd38] ss:$28 sps:$4 sm:$0xff]  }
 0xc4b   :  { %16165 = vmatpush2.bf16.msra.mxu1 %v19386_v6  ;;  %18625 = vmatprep.subr.bf16.mxu0 %v19394_v43  ;;  %v19438_v6 = vld [vmem:[#allocation26 + $0xb78] ss:$28 sps:$4 sm:$0xff]   ;;  %v19439_v43 = vld [vmem:[#allocation26 + $0xd00] ss:$28 sps:$4 sm:$0xff]  }
 0xc4c   :  { %16166 = vmatprep.subr.bf16.mxu1 %v19393_v49  ;;  %v19440_v49 = vld [vmem:[#allocation26 + $0xb40] ss:$28 sps:$4 sm:$0xff]  }
 0xc4e   :  { %18626 = vmatpush3.bf16.msra.mxu0 %v19395_v51  ;;  %v19441_v51 = vld [vmem:[#allocation26 + $0xcc8] ss:$28 sps:$4 sm:$0xff]  }
 0xc4f   :  { %16167 = vmatpush2.bf16.msra.mxu1 %v19391_v24  ;;  %18627 = vmatprep.subr.bf16.mxu0 %v19399_v13  ;;  %v19443_v24 = vld [vmem:[#allocation26 + $0xc90] ss:$28 sps:$4 sm:$0xff]  }
 0xc50   :  { %16168 = vmatprep.subr.bf16.mxu1 %v19398_v31  ;;  %v19444_v31 = vld [vmem:[#allocation26 + $0xad0] ss:$28 sps:$4 sm:$0xff]  }
 0xc52   :  { %18628 = vmatpush3.bf16.msra.mxu0 %v19400_v1  ;;  %v19445_v1 = vld [vmem:[#allocation26 + $0xc58] ss:$28 sps:$4 sm:$0xff]  }
 0xc53   :  { %16169 = vmatpush2.bf16.msra.mxu1 %v19396_v12  ;;  %18629 = vmatprep.subr.bf16.mxu0 %v19404_v4 }
 0xc54   :  { %16170 = vmatprep.subr.bf16.mxu1 %v19403_v32  ;;  %v19446_v32 = vld [vmem:[#allocation26 + $0xa98] ss:$28 sps:$4 sm:$0xff]  }
 0xc56   :  { %18630 = vmatpush3.bf16.msra.mxu0 %v19405_v41 }
 0xc57   :  { %16171 = vmatpush2.bf16.msra.mxu1 %v19401_v60 }
 0xc58   :  { %16172 = vmatprep.subr.bf16.mxu1 %v19408_v25 }
 0xc59   :  { %v15975_v30 = vpop.f32.mrf.mxu0  ;;  %16300 = vmatmul.mubr.bf16.vlgmr.msra.gmra.mxu0 %v20526_v5  ;;  %v19417_v5 = vld [vmem:[#allocation26 + $0x6a8] ss:$28 sps:$4 sm:$0xff]  }
 0xc5b   :  { %16173 = vmatpush2.bf16.msra.mxu1 %v19406_v2  ;;  %v15977_v46 = vpop.f32.mrf.mxu0 }
 0xc5c   :  { %16174 = vmatprep.subr.bf16.mxu1 %v19411_v19 }
 0xc5d   :  { %v15979_v8 = vpop.f32.mrf.mxu0 }
 0xc5f   :  { %16175 = vmatpush2.bf16.msra.mxu1 %v19409_v55  ;;  %v15980_v50 = vpop.f32.mrf.mxu0 }
 0xc60   :  { %16176 = vmatprep.subr.bf16.mxu1 %v19414_v45 }
 0xc63   :  { %16177 = vmatpush2.bf16.msra.mxu1 %v19412_v53 }
 0xc64   :  { %18593 = vmatprep.subr.bf16.mxu1 %v19415_v42  ;;  %v19451_v42 = vld [vmem:[#allocation28] sm:$0xff] }
 0xc65   :  { %v13375_v61 = vrot.slane %v19451_v42, %v20151_v59 }
 0xc66   :  { %v15934_v54 = vpop.f32.mrf.mxu1  ;;  %16179 = vmatmul.mubr.bf16.vlgmr.msra.gmra.mxu1 %v20550_v7 }
 0xc67   :  { %v15935_v21 = vadd.f32 %v15934_v54, %v15894_v35  ;;  %18594 = vmatpush3.bf16.msra.mxu1 %v19416_v34  ;;  %16259 = vmatprep.mubr.bf16.mxu1 %v20489_v58  ;;  %v19424_v58 = vld [vmem:[#allocation26 + $0x440] ss:$28 sps:$4 sm:$0xff]  }
 0xc68   :  { %v15936_v56 = vpop.f32.mrf.mxu1  ;;  %18595 = vmatprep.subr.bf16.mxu1 %v19417_v5 }
 0xc69   :  { %v15937_v0 = vadd.f32 %v15936_v56, %v15896_v48  ;;  %v20600_v33 = vadd.f32 %v15975_v30, %v15935_v21 }
 0xc6a   :  { %v15938_v63 = vpop.f32.mrf.mxu1 }
 0xc6b   :  { %18596 = vmatpush3.bf16.msra.mxu1 %v19418_v10  ;;  %v20602_v29 = vadd.f32 %v15977_v46, %v15937_v0 }
 0xc6c   :  { %v15939_v23 = vpop.f32.mrf.mxu1  ;;  %18597 = vmatprep.subr.bf16.mxu1 %v19419_v9 }
 0xc6f   :  { %18598 = vmatpush3.bf16.msra.mxu1 %v19420_v15 }
 0xc70   :  { %18599 = vmatprep.subr.bf16.mxu1 %v19421_v47 }
 0xc73   :  { %18600 = vmatpush3.bf16.msra.mxu1 %v19422_v27 }
 0xc74   :  { %18601 = vmatprep.subr.bf16.mxu1 %v19423_v36 }
 0xc77   :  { %18602 = vmatpush3.bf16.msra.mxu1 %v19424_v58 }
 0xc78   :  { %18603 = vmatprep.subr.bf16.mxu1 %v19425_v62 }
 0xc7b   :  { %18604 = vmatpush3.bf16.msra.mxu1 %v19426_v28 }
 0xc7c   :  { %18605 = vmatprep.subr.bf16.mxu1 %v19427_v44 }
 0xc7f   :  { %18606 = vmatpush3.bf16.msra.mxu1 %v19428_v52 }
 0xc80   :  { %18607 = vmatprep.subr.bf16.mxu1 %v19429_v39 }
 0xc83   :  { %18608 = vmatpush3.bf16.msra.mxu1 %v19430_v3 }
 0xc84   :  { %18637 = vmatprep.subr.bf16.mxu1 %v19431_v16 }
 0xc86   :  { %16260 = vmatmul.mubr.bf16.vlgmr.msra.gmra.mxu1 %v20511_v26  ;;  %v19442_v26 = vld [vmem:[#allocation26 + $0xb08] ss:$28 sps:$4 sm:$0xff]  }
 0xc87   :  { %18638 = vmatpush3.bf16.msra.mxu1 %v19432_v22  ;;  %16339 = vmatprep.mubr.bf16.mxu1 %v20548_v14 }
 0xc88   :  { %18639 = vmatprep.subr.bf16.mxu1 %v19433_v38 }
 0xc8b   :  { %18640 = vmatpush3.bf16.msra.mxu1 %v19434_v20 }
 0xc8c   :  { %18641 = vmatprep.subr.bf16.mxu1 %v19435_v18 }
 0xc8f   :  { %18642 = vmatpush3.bf16.msra.mxu1 %v19436_v17 }
 0xc90   :  { %18643 = vmatprep.subr.bf16.mxu1 %v19437_v11 }
 0xc93   :  { %18644 = vmatpush3.bf16.msra.mxu1 %v19438_v6 }
 0xc94   :  { %18645 = vmatprep.subr.bf16.mxu1 %v19439_v43 }
 0xc97   :  { %18646 = vmatpush3.bf16.msra.mxu1 %v19440_v49 }
 0xc98   :  { %18647 = vmatprep.subr.bf16.mxu1 %v19441_v51 }
 0xc99   :  { %v16057_v14 = vpop.f32.mrf.mxu0 }
 0xc9a   :  { %v16058_v57 = vadd.f32 %v16057_v14, %v13375_v61 }
 0xc9b   :  { %18648 = vmatpush3.bf16.msra.mxu1 %v19442_v26  ;;  %v16059_v13 = vpop.f32.mrf.mxu0 }
 0xc9c   :  { %18649 = vmatprep.subr.bf16.mxu1 %v19443_v24 }
 0xc9d   :  { %v16061_v12 = vpop.f32.mrf.mxu0 }
 0xc9f   :  { %18650 = vmatpush3.bf16.msra.mxu1 %v19444_v31  ;;  %v16062_v4 = vpop.f32.mrf.mxu0 }
 0xca0   :  { %18651 = vmatprep.subr.bf16.mxu1 %v19445_v1 }
 0xca3   :  { %18652 = vmatpush3.bf16.msra.mxu1 %v19446_v32 }
 0xca6   :  { %v16016_v41 = vpop.f32.mrf.mxu1  ;;  %16340 = vmatmul.mubr.bf16.vlgmr.msra.gmra.mxu1 %v20550_v7  ;;  %v13379_v7 = vrot.slane %v19451_v42, %v20184_v40 }
 0xca7   :  { %v16017_v60 = vadd.f32 %v16016_v41, %v20600_v33 }
 0xca8   :  { %v16018_v25 = vpop.f32.mrf.mxu1  ;;  %v16060_v5 = vadd.f32 %v16059_v13, %v13379_v7 }
 0xca9   :  { %v16349_v2 = vmax.f32 %v16017_v60, 0.0  ;;  %v16019_v19 = vadd.f32 %v16018_v25, %v20602_v29 }
 0xcaa   :  { %v16020_v30 = vpop.f32.mrf.mxu1 }
 0xcab   :  { %16356 = vst [vmem:[#allocation29 + $0x10] sm:$0xff] %v16349_v2  ;;  %v16350_v46 = vmax.f32 %v16019_v19, 0.0 }
 0xcac   :  { %v16021_v55 = vpop.f32.mrf.mxu1 }
 0xcad   :  { %16357 = vst [vmem:[#allocation29 + $0x18] sm:$0xff] %v16350_v46 }
 0xcd9   :  { %v16139_v45 = vpop.f32.mrf.mxu0 }
 0xcdb   :  { %v16141_v8 = vpop.f32.mrf.mxu0 }
 0xcdd   :  { %v16143_v50 = vpop.f32.mrf.mxu0 }
 0xcdf   :  { %v16144_v53 = vpop.f32.mrf.mxu0 }
 0xce6   :  { %v16098_v34 = vpop.f32.mrf.mxu1 }
 0xce7   :  { %v16099_v35 = vadd.f32 %v16098_v34, %v16058_v57 }
 0xce8   :  { %v16100_v54 = vpop.f32.mrf.mxu1 }
 0xce9   :  { %v16101_v48 = vadd.f32 %v16100_v54, %v16060_v5  ;;  %v16140_v21 = vadd.f32 %v16139_v45, %v16099_v35 }
 0xcea   :  { %v16102_v10 = vpop.f32.mrf.mxu1 }
 0xceb   :  { %v16142_v56 = vadd.f32 %v16141_v8, %v16101_v48 }
 0xcec   :  { %v16103_v9 = vpop.f32.mrf.mxu1 }
 0xced   :  { %19803 = shalt.err (!%p19800_p5)
}
 0xcee   :  { %16380 = dma.vmem_to_hbm [thread:$0]  %s16378_s16, 128, %s20636_s18, [#allocation31]   ;;  %v13383_v16 = vrot.slane %v19451_v42, %v20209_v37 }
 0xcef   :  { %s19881_s18 = smov [#allocation29]  }
 0xcf0   :  { %s16367_s0 = sshll.u32 %s19881_s18, 4  ;;  %s16368_s0 = int_to_ptr.vmem [resolvable:$true] %s16367_s0 }
 0xcf1   :  { %s19812_s4 = scalar_lea.vmem %s16368_s0, 896  ;;  %p19817_p7 = scmp.lt.s32.totalorder %s16368_s0, %s16368_s0 }
 0xcf2   :  { %p19813_p6 = scmp.ne.s32.totalorder %s16368_s0, %s19812_s4  ;;  %p19818_p8 = scmp.lt.s32.totalorder %s19812_s4, %s19812_s4 }
 0xcf4   :  { %p19819_p9 = por %p19818_p8, %p19817_p7 }
 0xcf6   :  { %p19820_p10 = pnand %p19819_p9, %p19813_p6 }
 0xcf9   :  { %v18587_v59 = vpop.f32.mrf.mxu0 }
 0xcfb   :  { %v18588_v40 = vpop.f32.mrf.mxu0 }
 0xcfc   :  { %v18589_v0 = vadd.f32 %v18588_v40, %v18587_v59 }
 0xcfd   :  { %v18590_v33 = vpop.f32.mrf.mxu0 }
 0xcfe   :  { %v16222_v20 = vadd.f32 %v18589_v0, %v13383_v16 }
 0xcff   :  { %v18591_v63 = vpop.f32.mrf.mxu0 }
 0xd19   :  { %v18631_v15 = vpop.f32.mrf.mxu0 }
 0xd1b   :  { %v18632_v29 = vpop.f32.mrf.mxu0 }
 0xd1c   :  { %v18633_v23 = vadd.f32 %v18632_v29, %v18631_v15 }
 0xd1d   :  { %v18634_v47 = vpop.f32.mrf.mxu0 }
 0xd1f   :  { %v18635_v27 = vpop.f32.mrf.mxu0 }
 0xd26   :  { %v16180_v36 = vpop.f32.mrf.mxu1 }
 0xd27   :  { %v16181_v58 = vadd.f32 %v16180_v36, %v16140_v21 }
 0xd28   :  { %v16182_v62 = vpop.f32.mrf.mxu1 }
 0xd29   :  { %v16351_v28 = vmax.f32 %v16181_v58, 0.0  ;;  %v16183_v44 = vadd.f32 %v16182_v62, %v16142_v56 }
 0xd2a   :  { %v16184_v52 = vpop.f32.mrf.mxu1 }
 0xd2b   :  { %16358 = vst [vmem:[#allocation29 + $0x20] sm:$0xff] %v16351_v28  ;;  %v16352_v39 = vmax.f32 %v16183_v44, 0.0 }
 0xd2c   :  { %v16185_v3 = vpop.f32.mrf.mxu1 }
 0xd2d   :  { %16359 = vst [vmem:[#allocation29 + $0x28] sm:$0xff] %v16352_v39 }
 0xd46   :  { %v18609_v22 = vpop.f32.mrf.mxu1 }
 0xd48   :  { %v18610_v38 = vpop.f32.mrf.mxu1 }
 0xd49   :  { %v18611_v18 = vadd.f32 %v18610_v38, %v18609_v22 }
 0xd4a   :  { %v18612_v17 = vpop.f32.mrf.mxu1 }
 0xd4b   :  { %v16262_v11 = vadd.f32 %v18611_v18, %v16222_v20 }
 0xd4c   :  { %v18613_v6 = vpop.f32.mrf.mxu1 }
 0xd4d   :  { %v16302_v43 = vadd.f32 %v18633_v23, %v16262_v11 }
 0xd66   :  { %v18653_v49 = vpop.f32.mrf.mxu1 }
 0xd68   :  { %v18654_v51 = vpop.f32.mrf.mxu1 }
 0xd69   :  { %v18655_v26 = vadd.f32 %v18654_v51, %v18653_v49 }
 0xd6a   :  { %v18656_v24 = vpop.f32.mrf.mxu1 }
 0xd6b   :  { %v16342_v14 = vadd.f32 %v18655_v26, %v16302_v43 }
 0xd6c   :  { %v18657_v13 = vpop.f32.mrf.mxu1 }
 0xd6d   :  { %v16353_v31 = vmax.f32 %v16342_v14, 0.0 }
 0xd6f   :  { %16360 = vst [vmem:[#allocation29 + $0x30] sm:$0xff] %v16353_v31 }
 0xd70   :  { %19823 = shalt.err (!%p19820_p10)
}
 0xd71   :  { %16370 = dma.vmem_to_hbm [thread:$0]  %s16368_s0, 896, %s20635_s17, [#allocation4]  }
 0xd72   :  { %19850 = dma.done.wait [#allocation4], 896  }
 0xd73   :  { %19851 = vsyncadd [#allocation4], 4294966400 }
 0xd74   :  { %19852 = dma.done.wait [#allocation31], 128  }
 0xd75   :  { %19853 = vsyncadd [#allocation31], 4294967168 }
 0xd76   :  { %16387 = vsyncpa [#allocation3], 1 }
 0xd77   :  { %16388 = vsyncpa [#allocation6], 1 }
 0xd78   :  { %16389 = vsyncpa [#allocation9], 1 }
 0xd79   :  { %16390 = vsyncpa [#allocation12], 1 }
 0xd7a   :  { %16391 = vsyncpa [#allocation15], 1 }
 0xd7b   :  { %16392 = vsyncpa [#allocation18], 1 }
 0xd7c   :  { %16393 = vsyncpa [#allocation21], 1 }
 0xd7d   :  { %16394 = vsyncpa [#allocation24], 1 }
 0xd7e   :  { %16395 = vsyncpa [#allocation27], 1 }
 0xd7f   :  { %16396 = vsyncpa [#allocation4], 1 }
 0xd80   :  { %16397 = vsyncpa [#allocation31], 1 }

</bundles_post_ra>
